<compile_context>
chip_gen: v5e
topology: v5e:2x2
jax: 0.10.0
libtpu: 0.0.40
codegen_flags: <defaults>
</compile_context>

<pallas_src>
import functools
import math

import jax
import jax.numpy as jnp
import numpy as np
from jax.experimental import pallas as pl
from jax.experimental.pallas import tpu as pltpu


def _round_up(x: int, m: int) -> int:
    return ((x + m - 1) // m) * m


def _pe_kernel(factor_ref, offset_ref, sin_ref, cos_ref, *, tile_rows: int, pack: int):
    """One grid step: `tile_rows` packed rows of the sin/cos tables.

    Packed layout: packed row r, column u (0 <= u < W, W = pack * d_half)
    corresponds to sequence position p = r*pack + u//d_half and frequency
    index k = u % d_half.  factor_ref[0, u] = div_term[k] and
    offset_ref[0, u] = u // d_half are precomputed column-only rows.
    """
    i = pl.program_id(0)
    # Packed-row index of each sublane in this tile (tiny (tile_rows, 1) iota).
    local = jax.lax.broadcasted_iota(jnp.int32, (tile_rows, 1), 0)
    base = ((local + i * tile_rows) * pack).astype(jnp.float32)   # (tile_rows, 1)

    # Exact integer positions in f32, then a single rounding in pos*div_term
    # -> bit-identical angle to the reference position*div_term product.
    pos = base + offset_ref[...]            # (tile_rows, W)
    angle = pos * factor_ref[...]           # (tile_rows, W)

    sin_ref[...] = jnp.sin(angle)           # -> even feature columns
    cos_ref[...] = jnp.cos(angle)           # -> odd feature columns


def build_pe_table(max_len: int, d_model: int, tile_rows=None) -> jax.Array:
    """Builds the (1, max_len, d_model) float32 positional-embedding table."""
    if d_model % 2 != 0:
        raise ValueError("d_model must be even (as required by the PyTorch module).")
    d_half = d_model // 2

    # Fold `pack` consecutive positions per kernel row so the store width is a
    # multiple of 128 lanes (lane-dense, unmasked stores even for small d_model).
    pack = 128 // math.gcd(d_half, 128)
    w = pack * d_half                         # kernel row width (multiple of 128)

    n_rows = pl.cdiv(max_len, pack)           # packed rows needed
    if tile_rows is None:
        # Big tiles to amortize per-step overhead; keep >=2 grid steps when the
        # table is large enough (lets v7x shard the grid across its 2 TCs).
        tile_rows = min(512, _round_up(pl.cdiv(n_rows, 2), 8))
    # Cap so (2 outputs x 2 pipeline buffers) stays well inside scoped VMEM
    # on every generation (~2 MiB per output buffer budget).
    max_tile = max(8, ((2 * 1024 * 1024) // (w * 4)) // 8 * 8)
    tile_rows = max(8, min(_round_up(int(tile_rows), 8), max_tile))

    rows_pad = _round_up(n_rows, tile_rows)
    grid = (rows_pad // tile_rows,)

    # Column-only (grid-invariant) rows, computed once on host:
    #   factor[u] = div_term[u % d_half],  offset[u] = u // d_half
    div_term = np.exp(
        np.arange(0, d_model, 2, dtype=np.float32)
        * np.float32(-(math.log(10000.0) / d_model))
    )                                                           # (d_half,)
    factor = np.tile(div_term, pack).reshape(1, w).astype(np.float32)
    offset = np.repeat(np.arange(pack, dtype=np.float32), d_half).reshape(1, w)

    sin_tab, cos_tab = pl.pallas_call(
        functools.partial(_pe_kernel, tile_rows=tile_rows, pack=pack),
        out_shape=(
            jax.ShapeDtypeStruct((rows_pad, w), jnp.float32),
            jax.ShapeDtypeStruct((rows_pad, w), jnp.float32),
        ),
        grid=grid,
        in_specs=[
            pl.BlockSpec((1, w), lambda i: (0, 0)),
            pl.BlockSpec((1, w), lambda i: (0, 0)),
        ],
        out_specs=(
            pl.BlockSpec((tile_rows, w), lambda i: (i, 0)),
            pl.BlockSpec((tile_rows, w), lambda i: (i, 0)),
        ),
        compiler_params=pltpu.CompilerParams(dimension_semantics=("parallel",)),
    )(jnp.asarray(factor), jnp.asarray(offset))

    # One-time un-pack/interleave (plain XLA, only at construction):
    #   sin_tab[r, q*d_half + k] -> pe[r*pack + q, 2k]
    #   cos_tab[r, q*d_half + k] -> pe[r*pack + q, 2k + 1]
    sin3 = sin_tab.reshape(rows_pad, pack, d_half)
    cos3 = cos_tab.reshape(rows_pad, pack, d_half)
    pe = jnp.stack((sin3, cos3), axis=-1).reshape(rows_pad * pack, d_model)
    return pe[:max_len][None]                  # (1, max_len, d_model)


class PositionalEmbedding:
    """JAX/Pallas analogue of the PyTorch module (no learnable params).

    The table is built once at construction (mirrors register_buffer); the
    forward pass is just a slice of the cached buffer, exactly like PyTorch's
    `self.pe[:, :x.size(1)]` (including clamping when seq_len > max_len).
    """

    def __init__(self, d_model: int, max_len: int = 5000):
        self.d_model = d_model
        self.max_len = max_len
        self.pe = jax.block_until_ready(build_pe_table(max_len, d_model))

    def __call__(self, x: jax.Array) -> jax.Array:
        seq_len = x.shape[1]
        return self.pe[:, :seq_len]


def _reference_pe(seq_len: int, d_model: int) -> np.ndarray:
    pe = np.zeros((seq_len, d_model), dtype=np.float32)
    position = np.arange(0, seq_len, dtype=np.float32)[:, None]
    div_term = np.exp(
        np.arange(0, d_model, 2, dtype=np.float32) * -(math.log(10000.0) / d_model)
    )
    pe[:, 0::2] = np.sin(position * div_term)
    pe[:, 1::2] = np.cos(position * div_term)
    return pe[None]


if __name__ == "__main__":
    key = jax.random.PRNGKey(0)
    batch, seq, d_model = 2, 8, 32
    x = jax.random.normal(key, (batch, seq, d_model), dtype=jnp.float32)

    emb = PositionalEmbedding(d_model=d_model, max_len=5000)
    out = jax.block_until_ready(emb(x))

    assert out.shape == (1, seq, d_model), out.shape
    np.testing.assert_allclose(
        np.asarray(out), _reference_pe(seq, d_model), rtol=1e-5, atol=1e-5
    )

    # Spot-check deeper positions of the cached table (validates the lane
    # packing / interleave math); looser atol allows for transcendental
    # argument-reduction differences at larger angles.
    deep = 1024
    np.testing.assert_allclose(
        np.asarray(emb.pe[:, :deep]), _reference_pe(deep, d_model),
        rtol=1e-4, atol=1e-3,
    )

    print("KERNEL_OK")
</pallas_src>

<mosaic_0001>
module attributes {stable_mosaic.version = 11 : i64} {
  func.func @_pe_kernel(%arg0: i32, %arg1: memref<1x128xf32, #tpu.memory_space<vmem>>, %arg2: memref<1x128xf32, #tpu.memory_space<vmem>>, %arg3: memref<320x128xf32, #tpu.memory_space<vmem>>, %arg4: memref<320x128xf32, #tpu.memory_space<vmem>>) attributes {dimension_semantics = [#tpu.dimension_semantics<parallel>], iteration_bounds = array<i64: 2>, scalar_prefetch = 0 : i64, scratch_operands = 0 : i64, tpu.core_type = #tpu.core_type<tc>, window_params = [{pipeline_mode = #tpu.pipeline_mode<synchronous>, transform_indices = @transform_0, window_bounds = array<i64: 1, 128>}, {pipeline_mode = #tpu.pipeline_mode<synchronous>, transform_indices = @transform_1, window_bounds = array<i64: 1, 128>}, {transform_indices = @transform_2, window_bounds = array<i64: 320, 128>}, {transform_indices = @transform_3, window_bounds = array<i64: 320, 128>}]} {
    %0 = tpu.iota {dimensions = array<i32: 0>} : vector<320x1xi32>
    %c320_i32 = arith.constant 320 : i32
    %1 = arith.muli %arg0, %c320_i32 : i32
    %2 = vector.broadcast %1 : i32 to vector<320x1xi32>
    %3 = arith.addi %0, %2 : vector<320x1xi32>
    %c8_i32 = arith.constant 8 : i32
    %4 = vector.broadcast %c8_i32 : i32 to vector<320x1xi32>
    %5 = arith.muli %3, %4 : vector<320x1xi32>
    %6 = arith.sitofp %5 : vector<320x1xi32> to vector<320x1xf32>
    %c0 = arith.constant 0 : index
    %c0_0 = arith.constant 0 : index
    %7 = vector.load %arg2[%c0, %c0_0] : memref<1x128xf32, #tpu.memory_space<vmem>>, vector<1x128xf32>
    %8 = vector.broadcast %6 : vector<320x1xf32> to vector<320x128xf32>
    %9 = vector.broadcast %7 : vector<1x128xf32> to vector<320x128xf32>
    %10 = arith.addf %8, %9 : vector<320x128xf32>
    %c0_1 = arith.constant 0 : index
    %c0_2 = arith.constant 0 : index
    %11 = vector.load %arg1[%c0_1, %c0_2] : memref<1x128xf32, #tpu.memory_space<vmem>>, vector<1x128xf32>
    %12 = vector.broadcast %11 : vector<1x128xf32> to vector<320x128xf32>
    %13 = arith.mulf %10, %12 : vector<320x128xf32>
    %14 = math.sin %13 : vector<320x128xf32>
    %c0_3 = arith.constant 0 : index
    %c0_4 = arith.constant 0 : index
    %15 = vector.load %arg3[%c0_3, %c0_4] : memref<320x128xf32, #tpu.memory_space<vmem>>, vector<320x128xf32>
    tpu.vector_store %arg3[%c0_3, %c0_4], %14 {strides = array<i32>} : memref<320x128xf32, #tpu.memory_space<vmem>>, vector<320x128xf32>,
    %16 = math.cos %13 : vector<320x128xf32>
    %c0_5 = arith.constant 0 : index
    %c0_6 = arith.constant 0 : index
    %17 = vector.load %arg4[%c0_5, %c0_6] : memref<320x128xf32, #tpu.memory_space<vmem>>, vector<320x128xf32>
    tpu.vector_store %arg4[%c0_5, %c0_6], %16 {strides = array<i32>} : memref<320x128xf32, #tpu.memory_space<vmem>>, vector<320x128xf32>,
    return
  }
  func.func @transform_0(%arg0: i32) -> (i32, i32) {
    %c0_i32 = arith.constant 0 : i32
    %c0_i32_0 = arith.constant 0 : i32
    %c0_i32_1 = arith.constant 0 : i32
    return %c0_i32, %c0_i32_0 : i32, i32
  }
  func.func @transform_1(%arg0: i32) -> (i32, i32) {
    %c0_i32 = arith.constant 0 : i32
    %c0_i32_0 = arith.constant 0 : i32
    %c0_i32_1 = arith.constant 0 : i32
    return %c0_i32, %c0_i32_0 : i32, i32
  }
  func.func @transform_2(%arg0: i32) -> (i32, i32) {
    %c0_i32 = arith.constant 0 : i32
    %c0_i32_0 = arith.constant 0 : i32
    return %arg0, %c0_i32 : i32, i32
  }
  func.func @transform_3(%arg0: i32) -> (i32, i32) {
    %c0_i32 = arith.constant 0 : i32
    %c0_i32_0 = arith.constant 0 : i32
    return %arg0, %c0_i32 : i32, i32
  }
}

</mosaic_0001>

<bundles_post_ra>
// kernel: tpu_custom_call.1
= control target key start
LH: loop header
LB: loop body
LE: loop exit
PB: predicated region body
PF: predicated region fallthrough
CT: control target
= control target key end

     0   :  { %9 = vsyncpa [#allocation3], 0  ;;  %s19652_s0 = inlined_call_operand.hbm [shape: f32[1,128], index: 0, kind: input, shape index: {}]   ;;  %s19653_s1 = inlined_call_operand.hbm [shape: f32[1,128], index: 1, kind: input, shape index: {}]   ;;  %s19654_s2 = inlined_call_operand.hbm [shape: f32[640,128], index: 2, kind: output, shape index: {0}]   ;;  %s19655_s3 = inlined_call_operand.hbm [shape: f32[640,128], index: 3, kind: output, shape index: {1}]  }
   0x1   :  { %10 = vsyncpa [#allocation6], 0 }
   0x2   :  { %11 = vsyncpa [#allocation4], 0 }
   0x3   :  { %13 = vsyncpa [#allocation4 + $0x1], 0 }
   0x4   :  { %14 = vsyncpa [#allocation9], 0 }
   0x5   :  { %16 = vsyncpa [#allocation9 + $0x1], 0  ;;  %s13551_s12 = smov 0   ;;  %s13553_s13 = smov 0  }
   0x6   :  { %s13555_s14 = smov 0   ;;  %s13557_s15 = smov 0  }
   0x7 LB: > { %s13572_s16 = sadd.s32 4294967295, %s13518_s15   ;;  %s13026_s17 = sadd.s32 4294967294, %s13518_s15   ;;  %s13518_s15 = sphi %s13557_s15, %s20560_s15   ;;  %s13514_s14 = sphi %s13555_s14, %s20559_s14   ;;  %s13510_s13 = sphi %s13553_s13, %s20558_s13   ;;  %s13506_s12 = sphi %s13551_s12, %s20557_s12  }
   0x8   : > { %s13576_s18 = sadd.s32 1, %s13518_s15   ;;  %s71_s19 = sadd.s32 1, %s13514_s14 }
   0x9   : > { %s68_s20 = ssub.s32 %s13518_s15, %s13576_s18  ;;  %p81_p0 = scmp.ne.s32.totalorder %s13514_s14, %s13510_s13 }
   0xa   : > { %p69_p1 = scmp.eq.s32.totalorder %s68_s20, 0  ;;  %p82_p2 = scmp.eq.s32.totalorder %s13572_s16, 1 }
   0xb   : > { %p87_p3 = scmp.ne.s32.totalorder %s13510_s13, %s13506_s12  ;;  %p88_p4 = scmp.eq.s32.totalorder %s13026_s17, 1 }
   0xc   : > { %s13587_s21 = scalar_select %p69_p1, %s13514_s14, %s71_s19  }
   0xd   : > { %p13589_p5 = por %p82_p2, %p81_p0  ;;  %p13593_p6 = por %p88_p4, %p87_p3 }
   0xe   : > { %p13027_p7 = scmp.ge.s32.totalorder %s13518_s15, 1  ;;  %p121_p8 = scmp.lt.s32.totalorder %s13518_s15, 3 }
   0xf   : > { %p13306_p9 = scmp.eq.s32.totalorder %s13572_s16, 0  ;;  %s133_s27 = sshll.u32 %s19652_s0, 4  ;;  %s134_s27 = int_to_ptr.hbm [resolvable:$true] %s133_s27 }
  0x10   : > { %p13600_p10 = pnand %p13027_p7, %p121_p8  ;;  %s13520_s28 = smov [#allocation2]  }
  0x11   : > { %s135_s29 = sshll.u32 %s13520_s28, 4  ;;  %s145_s5 = sshll.u32 %s19653_s1, 4  ;;  %s136_s29 = int_to_ptr.vmem [resolvable:$true] %s135_s29  ;;  %s146_s5 = int_to_ptr.hbm [resolvable:$true] %s145_s5 }
  0x12   : > { %p13292_p11 = pneg %p13600_p10  ;;  %s13521_s6 = smov [#allocation5]  }
  0x13   : > { %s147_s7 = sshll.u32 %s13521_s6, 4  ;;  %160 = sbr.rel (%p13600_p10) target bundleno = 1731 (0x6c3), region = 28  ;;  %s148_s7 = int_to_ptr.vmem [resolvable:$true] %s147_s7 }
  0x14   : > { %p13293_p12 = pnand %p13306_p9, %p13292_p11 }
  0x16   : > { %13295 = dma.hbm_to_vmem [thread:$0]  (!%p13293_p12), %s134_s27, 16, %s136_s29, [#allocation3]  }
  0x17   : > { %13298 = dma.hbm_to_vmem [thread:$0]  (!%p13293_p12), %s146_s5, 16, %s148_s7, [#allocation6]  }
  0x18   : > { %13489 = dma.done.wait (%p13306_p9), [#allocation3], 16  }
  0x19   : > { %13491 = vsyncadd (%p13306_p9), [#allocation3], 4294967280 }
  0x1a   : > { %13493 = dma.done.wait (%p13306_p9), [#allocation6], 16  }
  0x1b   : > { %13495 = vsyncadd (%p13306_p9), [#allocation6], 4294967280  ;;  %v192_v0 = vlaneseq  ;;  %s13625_s8 = smul.u32 320, %s13572_s16  ;;  %s14132_s9 = sand.u32 1, %s13510_s13  }
  0x1c   : > { %s13279_s10 = smul.u32 320, %s14132_s9  ;;  %s12884_s26 = scalar_lea.sflag [#allocation4], %s14132_s9 }
  0x1d   : > { %v193_v1 = vshrl.u32 %v192_v0, 7  ;;  %v13628_v2 = vstv %s13625_s8  ;;  %s12900_s20 = scalar_lea.hbm %s19654_s2, %s13625_s8  ;;  %s13436_s4 = scalar_lea.hbm %s19654_s2, 640 }
  0x1e   : > { %s14173_s11 = scalar_lea.vmem [#allocation7], %s13279_s10  ;;  %s19162_s16 = scalar_lea.vmem [#allocation8], %s13279_s10 }
  0x1f   : > { %v194_v3 = vadd.s32 8, %v193_v1  ;;  %v195_v4 = vadd.s32 16, %v193_v1  ;;  %v196_v5 = vadd.s32 24, %v193_v1  ;;  %v197_v6 = vadd.s32 32, %v193_v1  ;;  %s12901_s24 = sshll.u32 %s14173_s11, 4  ;;  %s19287_s25 = sshll.u32 %s12900_s20, 4  ;;  %s19314_s24 = int_to_ptr.vmem [resolvable:$true] %s12901_s24  ;;  %s12904_s25 = int_to_ptr.hbm [resolvable:$true] %s19287_s25 }
  0x20   : > { %v198_v7 = vadd.s32 40, %v193_v1  ;;  %v199_v8 = vadd.s32 48, %v193_v1  ;;  %v200_v9 = vadd.s32 56, %v193_v1  ;;  %v201_v10 = vadd.s32 64, %v193_v1  ;;  %s13430_s27 = sshra.s32 %s12904_s25, 4  ;;  %s13431_s27 = int_to_ptr.hbm [resolvable:$true] %s13430_s27 }
  0x21   : > { %v202_v11 = vadd.s32 72, %v193_v1  ;;  %v203_v12 = vadd.s32 80, %v193_v1  ;;  %v204_v13 = vadd.s32 88, %v193_v1  ;;  %v205_v14 = vadd.s32 96, %v193_v1  ;;  %s13432_s28 = scalar_lea.hbm %s13431_s27, 320  ;;  %p13437_p2 = scmp.lt.s32.totalorder %s13431_s27, %s19654_s2 }
  0x22   : > { %v206_v15 = vadd.s32 104, %v193_v1  ;;  %v207_v16 = vadd.s32 112, %v193_v1  ;;  %v208_v17 = vadd.s32 120, %v193_v1  ;;  %v209_v18 = vadd.s32 128, %v193_v1  ;;  %p13433_p13 = scmp.ne.s32.totalorder %s13431_s27, %s13432_s28  ;;  %p13438_p3 = scmp.lt.s32.totalorder %s13436_s4, %s13432_s28 }
  0x23   : > { %v210_v19 = vadd.s32 136, %v193_v1  ;;  %v211_v20 = vadd.s32 144, %v193_v1  ;;  %v212_v21 = vadd.s32 152, %v193_v1  ;;  %v213_v22 = vadd.s32 160, %v193_v1 }
  0x24   : > { %v214_v23 = vadd.s32 168, %v193_v1  ;;  %v215_v24 = vadd.s32 176, %v193_v1  ;;  %v216_v25 = vadd.s32 184, %v193_v1  ;;  %v217_v26 = vadd.s32 192, %v193_v1  ;;  %p13434_p0 = pnand %p13433_p13, %p13589_p5  ;;  %p13439_p4 = por %p13438_p3, %p13437_p2 }
  0x25   : > { %v218_v27 = vadd.s32 200, %v193_v1  ;;  %v219_v28 = vadd.s32 208, %v193_v1  ;;  %v220_v29 = vadd.s32 216, %v193_v1  ;;  %v221_v30 = vadd.s32 224, %v193_v1 }
  0x26   : > { %v222_v31 = vadd.s32 232, %v193_v1  ;;  %v223_v32 = vadd.s32 240, %v193_v1  ;;  %v224_v33 = vadd.s32 248, %v193_v1  ;;  %v225_v34 = vadd.s32 256, %v193_v1  ;;  %p13435_p1 = pneg %p13434_p0 }
  0x27   : > { %v226_v35 = vadd.s32 264, %v193_v1  ;;  %v227_v36 = vadd.s32 272, %v193_v1  ;;  %v228_v37 = vadd.s32 280, %v193_v1  ;;  %v229_v38 = vadd.s32 288, %v193_v1 }
  0x28   : > { %v230_v39 = vadd.s32 296, %v193_v1  ;;  %v231_v40 = vadd.s32 304, %v193_v1  ;;  %v232_v41 = vadd.s32 312, %v193_v1  ;;  %v13631_v42 = vadd.s32 %v13628_v2, %v193_v1  ;;  %p13440_p7 = pnand %p13439_p4, %p13435_p1 }
  0x29   : > { %v13634_v43 = vadd.s32 %v13628_v2, %v194_v3  ;;  %v13637_v44 = vadd.s32 %v13628_v2, %v195_v4  ;;  %v13640_v45 = vadd.s32 %v13628_v2, %v196_v5  ;;  %v13643_v46 = vadd.s32 %v13628_v2, %v197_v6 }
  0x2a   : > { %v13646_v47 = vadd.s32 %v13628_v2, %v198_v7  ;;  %v13649_v48 = vadd.s32 %v13628_v2, %v199_v8  ;;  %v13652_v49 = vadd.s32 %v13628_v2, %v200_v9  ;;  %v13655_v50 = vadd.s32 %v13628_v2, %v201_v10 }
  0x2b   : > { %v13658_v51 = vadd.s32 %v13628_v2, %v202_v11  ;;  %v13661_v52 = vadd.s32 %v13628_v2, %v203_v12  ;;  %v13664_v53 = vadd.s32 %v13628_v2, %v204_v13  ;;  %v13667_v54 = vadd.s32 %v13628_v2, %v205_v14 }
  0x2c   : > { %v13670_v55 = vadd.s32 %v13628_v2, %v206_v15  ;;  %v13673_v56 = vadd.s32 %v13628_v2, %v207_v16  ;;  %v13676_v57 = vadd.s32 %v13628_v2, %v208_v17  ;;  %v13679_v58 = vadd.s32 %v13628_v2, %v209_v18 }
  0x2d   : > { %v13682_v59 = vadd.s32 %v13628_v2, %v210_v19  ;;  %v13685_v60 = vadd.s32 %v13628_v2, %v211_v20  ;;  %v13688_v61 = vadd.s32 %v13628_v2, %v212_v21  ;;  %v13691_v62 = vadd.s32 %v13628_v2, %v213_v22 }
  0x2e   : > { %v13694_v63 = vadd.s32 %v13628_v2, %v214_v23  ;;  %v13697_v0 = vadd.s32 %v13628_v2, %v215_v24  ;;  %v13700_v1 = vadd.s32 %v13628_v2, %v216_v25  ;;  %v13703_v3 = vadd.s32 %v13628_v2, %v217_v26 }
  0x2f   : > { %v13706_v4 = vadd.s32 %v13628_v2, %v218_v27  ;;  %v13709_v5 = vadd.s32 %v13628_v2, %v219_v28  ;;  %v13712_v6 = vadd.s32 %v13628_v2, %v220_v29  ;;  %v13715_v7 = vadd.s32 %v13628_v2, %v221_v30 }
  0x30   : > { %v13718_v8 = vadd.s32 %v13628_v2, %v222_v31  ;;  %v13721_v9 = vadd.s32 %v13628_v2, %v223_v32  ;;  %v13724_v10 = vadd.s32 %v13628_v2, %v224_v33  ;;  %v13727_v11 = vadd.s32 %v13628_v2, %v225_v34 }
  0x31   : > { %v13730_v12 = vadd.s32 %v13628_v2, %v226_v35  ;;  %v13733_v13 = vadd.s32 %v13628_v2, %v227_v36  ;;  %v13736_v14 = vadd.s32 %v13628_v2, %v228_v37  ;;  %v13739_v15 = vadd.s32 %v13628_v2, %v229_v38 }
  0x32   : > { %v13742_v16 = vadd.s32 %v13628_v2, %v230_v39  ;;  %v13745_v17 = vadd.s32 %v13628_v2, %v231_v40  ;;  %v13748_v18 = vadd.s32 %v13628_v2, %v232_v41  ;;  %v275_v19 = vmul.u32 8, %v13631_v42 }
  0x33   : > { %v276_v20 = vmul.u32 8, %v13634_v43  ;;  %v277_v21 = vmul.u32 8, %v13637_v44  ;;  %v278_v22 = vmul.u32 8, %v13640_v45  ;;  %v279_v23 = vmul.u32 8, %v13643_v46 }
  0x34   : > { %v280_v24 = vmul.u32 8, %v13646_v47  ;;  %v281_v25 = vmul.u32 8, %v13649_v48  ;;  %v282_v26 = vmul.u32 8, %v13652_v49  ;;  %v283_v27 = vmul.u32 8, %v13655_v50 }
  0x35   : > { %v284_v2 = vmul.u32 8, %v13658_v51  ;;  %v285_v28 = vmul.u32 8, %v13661_v52  ;;  %v286_v29 = vmul.u32 8, %v13664_v53  ;;  %v287_v30 = vmul.u32 8, %v13667_v54 }
  0x36   : > { %v288_v31 = vmul.u32 8, %v13670_v55  ;;  %v289_v32 = vmul.u32 8, %v13673_v56  ;;  %v290_v33 = vmul.u32 8, %v13676_v57  ;;  %v291_v34 = vmul.u32 8, %v13679_v58 }
  0x37   : > { %v292_v35 = vmul.u32 8, %v13682_v59  ;;  %v293_v36 = vmul.u32 8, %v13685_v60  ;;  %v294_v37 = vmul.u32 8, %v13688_v61  ;;  %v295_v38 = vmul.u32 8, %v13691_v62 }
  0x38   : > { %v296_v39 = vmul.u32 8, %v13694_v63  ;;  %v297_v40 = vmul.u32 8, %v13697_v0  ;;  %v298_v41 = vmul.u32 8, %v13700_v1  ;;  %v299_v42 = vmul.u32 8, %v13703_v3 }
  0x39   : > { %v300_v43 = vmul.u32 8, %v13706_v4  ;;  %v301_v44 = vmul.u32 8, %v13709_v5  ;;  %v302_v45 = vmul.u32 8, %v13712_v6  ;;  %v303_v46 = vmul.u32 8, %v13715_v7 }
  0x3a   : > { %v304_v47 = vmul.u32 8, %v13718_v8  ;;  %v305_v48 = vmul.u32 8, %v13721_v9  ;;  %v306_v49 = vmul.u32 8, %v13724_v10  ;;  %v307_v50 = vmul.u32 8, %v13727_v11 }
  0x3b   : > { %v308_v51 = vmul.u32 8, %v13730_v12  ;;  %v309_v52 = vmul.u32 8, %v13733_v13  ;;  %v310_v53 = vmul.u32 8, %v13736_v14  ;;  %v311_v54 = vmul.u32 8, %v13739_v15 }
  0x3c   : > { %v312_v55 = vmul.u32 8, %v13742_v16  ;;  %v313_v56 = vmul.u32 8, %v13745_v17  ;;  %v314_v57 = vmul.u32 8, %v13748_v18  ;;  %v315_v58 = vcvt.s32.f32 %v275_v19 }
  0x3d   : > { %v316_v59 = vcvt.s32.f32 %v276_v20  ;;  %v13790_v60 = vcvt.s32.f32 %v277_v21  ;;  %v318_v61 = vcvt.s32.f32 %v278_v22  ;;  %v319_v62 = vcvt.s32.f32 %v279_v23  ;;  %v13354_v23 = vld [vmem:[#allocation5] ss:$0 sm:$0xff] }
  0x3e   : > { %v320_v63 = vcvt.s32.f32 %v280_v24  ;;  %v321_v0 = vcvt.s32.f32 %v281_v25  ;;  %v322_v1 = vcvt.s32.f32 %v282_v26  ;;  %v323_v3 = vcvt.s32.f32 %v283_v27 }
  0x3f   : > { %v324_v4 = vcvt.s32.f32 %v284_v2  ;;  %v325_v5 = vcvt.s32.f32 %v285_v28  ;;  %v326_v6 = vcvt.s32.f32 %v286_v29  ;;  %v327_v7 = vcvt.s32.f32 %v287_v30 }
  0x40   : > { %v328_v8 = vcvt.s32.f32 %v288_v31  ;;  %v329_v9 = vcvt.s32.f32 %v289_v32  ;;  %v330_v10 = vcvt.s32.f32 %v290_v33  ;;  %v331_v11 = vcvt.s32.f32 %v291_v34 }
  0x41   : > { %v332_v12 = vcvt.s32.f32 %v292_v35  ;;  %v333_v13 = vcvt.s32.f32 %v293_v36  ;;  %v334_v14 = vcvt.s32.f32 %v294_v37  ;;  %v335_v15 = vcvt.s32.f32 %v295_v38 }
  0x42   : > { %v336_v16 = vcvt.s32.f32 %v296_v39  ;;  %v337_v17 = vcvt.s32.f32 %v297_v40  ;;  %v338_v18 = vcvt.s32.f32 %v298_v41  ;;  %v339_v19 = vcvt.s32.f32 %v299_v42 }
  0x43   : > { %v340_v20 = vcvt.s32.f32 %v300_v43  ;;  %v341_v21 = vcvt.s32.f32 %v301_v44  ;;  %v342_v22 = vcvt.s32.f32 %v302_v45  ;;  %v343_v24 = vcvt.s32.f32 %v303_v46 }
  0x44   : > { %v344_v25 = vcvt.s32.f32 %v304_v47  ;;  %v345_v26 = vcvt.s32.f32 %v305_v48  ;;  %v346_v27 = vcvt.s32.f32 %v306_v49  ;;  %v347_v2 = vcvt.s32.f32 %v307_v50 }
  0x45   : > { %v348_v28 = vcvt.s32.f32 %v308_v51  ;;  %v349_v29 = vcvt.s32.f32 %v309_v52  ;;  %v350_v30 = vcvt.s32.f32 %v310_v53  ;;  %v351_v31 = vcvt.s32.f32 %v311_v54 }
  0x46   : > { %v352_v32 = vcvt.s32.f32 %v312_v55  ;;  %v353_v33 = vcvt.s32.f32 %v313_v56  ;;  %v354_v34 = vcvt.s32.f32 %v314_v57  ;;  %v359_v35 = vadd.f32 %v13354_v23, %v315_v58 }
  0x47   : > { %v360_v36 = vadd.f32 %v13354_v23, %v316_v59  ;;  %v362_v37 = vadd.f32 %v13354_v23, %v318_v61  ;;  %v363_v38 = vadd.f32 %v13354_v23, %v319_v62  ;;  %v364_v39 = vadd.f32 %v13354_v23, %v320_v63 }
  0x48   : > { %v365_v40 = vadd.f32 %v13354_v23, %v321_v0  ;;  %v366_v41 = vadd.f32 %v13354_v23, %v322_v1  ;;  %v367_v42 = vadd.f32 %v13354_v23, %v323_v3  ;;  %v368_v43 = vadd.f32 %v13354_v23, %v324_v4  ;;  %v13355_v0 = vld [vmem:[#allocation2] ss:$0 sm:$0xff] }
  0x49   : > { %v369_v44 = vadd.f32 %v13354_v23, %v325_v5  ;;  %v370_v45 = vadd.f32 %v13354_v23, %v326_v6  ;;  %v371_v46 = vadd.f32 %v13354_v23, %v327_v7  ;;  %v372_v47 = vadd.f32 %v13354_v23, %v328_v8 }
  0x4a   : > { %v373_v48 = vadd.f32 %v13354_v23, %v329_v9  ;;  %v374_v49 = vadd.f32 %v13354_v23, %v330_v10  ;;  %v375_v50 = vadd.f32 %v13354_v23, %v331_v11  ;;  %v376_v51 = vadd.f32 %v13354_v23, %v332_v12 }
  0x4b   : > { %v377_v52 = vadd.f32 %v13354_v23, %v333_v13  ;;  %v378_v53 = vadd.f32 %v13354_v23, %v334_v14  ;;  %v379_v54 = vadd.f32 %v13354_v23, %v335_v15  ;;  %v380_v55 = vadd.f32 %v13354_v23, %v336_v16 }
  0x4c   : > { %v381_v56 = vadd.f32 %v13354_v23, %v337_v17  ;;  %v382_v57 = vadd.f32 %v13354_v23, %v338_v18  ;;  %v383_v58 = vadd.f32 %v13354_v23, %v339_v19  ;;  %v384_v59 = vadd.f32 %v13354_v23, %v340_v20 }
  0x4d   : > { %v385_v61 = vadd.f32 %v13354_v23, %v341_v21  ;;  %v386_v62 = vadd.f32 %v13354_v23, %v342_v22  ;;  %v387_v63 = vadd.f32 %v13354_v23, %v343_v24  ;;  %v388_v1 = vadd.f32 %v13354_v23, %v344_v25 }
  0x4e   : > { %v389_v3 = vadd.f32 %v13354_v23, %v345_v26  ;;  %v390_v4 = vadd.f32 %v13354_v23, %v346_v27  ;;  %v391_v5 = vadd.f32 %v13354_v23, %v347_v2  ;;  %v392_v6 = vadd.f32 %v13354_v23, %v348_v28 }
  0x4f   : > { %v393_v7 = vadd.f32 %v13354_v23, %v349_v29  ;;  %v394_v8 = vadd.f32 %v13354_v23, %v350_v30  ;;  %v395_v9 = vadd.f32 %v13354_v23, %v351_v31  ;;  %v361_v10 = vadd.f32 %v13354_v23, %v13790_v60 }
  0x50   : > { %v396_v11 = vadd.f32 %v13354_v23, %v352_v32  ;;  %v397_v12 = vadd.f32 %v13354_v23, %v353_v33  ;;  %v398_v13 = vadd.f32 %v13354_v23, %v354_v34  ;;  %v13793_v14 = vmul.f32 %v13355_v0, %v359_v35 }
  0x51   : > { %v13795_v15 = vmul.f32 %v13355_v0, %v360_v36  ;;  %v13797_v16 = vmul.f32 %v13355_v0, %v362_v37  ;;  %v13799_v17 = vmul.f32 %v13355_v0, %v363_v38  ;;  %v13801_v18 = vmul.f32 %v13355_v0, %v364_v39 }
  0x52   : > { %20027 = vst [vmem:[#allocation14_spill] sm:$0xff] %v13793_v14  ;;  %v13803_v19 = vmul.f32 %v13355_v0, %v365_v40  ;;  %v13805_v20 = vmul.f32 %v13355_v0, %v366_v41  ;;  %v13807_v21 = vmul.f32 %v13355_v0, %v367_v42  ;;  %v13809_v60 = vmul.f32 %v13355_v0, %v368_v43 }
  0x53   : > { %20028 = vst [vmem:[#allocation15_spill] sm:$0xff] %v13795_v15  ;;  %v13811_v22 = vmul.f32 %v13355_v0, %v369_v44  ;;  %v13813_v23 = vmul.f32 %v13355_v0, %v370_v45  ;;  %v13815_v24 = vmul.f32 %v13355_v0, %v371_v46  ;;  %v13817_v25 = vmul.f32 %v13355_v0, %v372_v47 }
  0x54   : > { %20029 = vst [vmem:[#allocation16_spill] sm:$0xff] %v13797_v16  ;;  %v13819_v26 = vmul.f32 %v13355_v0, %v373_v48  ;;  %v13821_v27 = vmul.f32 %v13355_v0, %v374_v49  ;;  %v13823_v2 = vmul.f32 %v13355_v0, %v375_v50  ;;  %v13825_v28 = vmul.f32 %v13355_v0, %v376_v51 }
  0x55   : > { %20030 = vst [vmem:[#allocation17_spill] sm:$0xff] %v13799_v17  ;;  %v13827_v29 = vmul.f32 %v13355_v0, %v377_v52  ;;  %v13829_v30 = vmul.f32 %v13355_v0, %v378_v53  ;;  %v13831_v31 = vmul.f32 %v13355_v0, %v379_v54  ;;  %v13833_v32 = vmul.f32 %v13355_v0, %v380_v55 }
  0x56   : > { %20031 = vst [vmem:[#allocation18_spill] sm:$0xff] %v13801_v18  ;;  %v13835_v33 = vmul.f32 %v13355_v0, %v381_v56  ;;  %v13837_v34 = vmul.f32 %v13355_v0, %v382_v57  ;;  %v13839_v35 = vmul.f32 %v13355_v0, %v383_v58  ;;  %v13841_v36 = vmul.f32 %v13355_v0, %v384_v59 }
  0x57   : > { %20032 = vst [vmem:[#allocation19_spill] sm:$0xff] %v13803_v19  ;;  %v13843_v37 = vmul.f32 %v13355_v0, %v385_v61  ;;  %v13845_v38 = vmul.f32 %v13355_v0, %v386_v62  ;;  %v13847_v39 = vmul.f32 %v13355_v0, %v387_v63  ;;  %v13849_v40 = vmul.f32 %v13355_v0, %v388_v1 }
  0x58   : > { %20033 = vst [vmem:[#allocation20_spill] sm:$0xff] %v13805_v20  ;;  %v13851_v41 = vmul.f32 %v13355_v0, %v389_v3  ;;  %v13853_v42 = vmul.f32 %v13355_v0, %v390_v4  ;;  %v13855_v43 = vmul.f32 %v13355_v0, %v391_v5  ;;  %v13857_v44 = vmul.f32 %v13355_v0, %v392_v6 }
  0x59   : > { %20034 = vst [vmem:[#allocation21_spill] sm:$0xff] %v13807_v21  ;;  %v13859_v45 = vmul.f32 %v13355_v0, %v393_v7  ;;  %v13861_v46 = vmul.f32 %v13355_v0, %v394_v8  ;;  %v13863_v47 = vmul.f32 %v13355_v0, %v395_v9  ;;  %v13865_v48 = vmul.f32 %v13355_v0, %v396_v11 }
  0x5a   : > { %20035 = vst [vmem:[#allocation22_spill] sm:$0xff] %v13809_v60  ;;  %v13867_v49 = vmul.f32 %v13355_v0, %v397_v12  ;;  %v13869_v50 = vmul.f32 %v13355_v0, %v398_v13  ;;  %v19657_v51 = vand.u32 2147483647, %v13793_v14  ;;  %v446_v52 = vand.u32 2139095040, %v13793_v14 }
  0x5b   : > { %20036 = vst [vmem:[#allocation23_spill] sm:$0xff] %v13811_v22  ;;  %v13875_v55 = vmul.f32 %v13355_v0, %v361_v10  ;;  %v19656_v57 = vand.u32 2147483647, %v13795_v15  ;;  %v601_v58 = vand.u32 2139095040, %v13795_v15  ;;  %v19664_v12 = vmov 683565275  }
  0x5c   : > { %20037 = vst [vmem:[#allocation24_spill] sm:$0xff] %v13813_v23  ;;  %v450_v53 = vand.u32 8388607, %v19657_v51  ;;  %v447_v54 = vshrl.u32 %v446_v52, 23  ;;  %v19668_v52 = vmov 2475754826  }
  0x5d   : > { %20038 = vst [vmem:[#allocation25_spill] sm:$0xff] %v13815_v24  ;;  %v602_v61 = vshrl.u32 %v601_v58, 23  ;;  %v605_v3 = vand.u32 8388607, %v19656_v57  ;;  %v756_v4 = vand.u32 2139095040, %v13875_v55 }
  0x5e   : > { %20039 = vst [vmem:[#allocation26_spill] sm:$0xff] %v13817_v25  ;;  %v451_v56 = vor.u32 8388608, %v450_v53  ;;  %v13033_v59 = vadd.s32 4294967169, %v447_v54  ;;  %v19666_v54 = vmov 2131351028  }
  0x5f   : > { %20040 = vst [vmem:[#allocation27_spill] sm:$0xff] %v13819_v26  ;;  %v13036_v1 = vadd.s32 4294967169, %v602_v61  ;;  %v606_v9 = vor.u32 8388608, %v605_v3  ;;  %v13887_v10 = vshrl.u32 %v756_v4, 23  ;;  %v19670_v58 = vmov 2102212464  }
  0x60   : > { %20041 = vst [vmem:[#allocation28_spill] sm:$0xff] %v13821_v27  ;;  %v453_v62 = vadd.s32 1, %v13033_v59  ;;  %v13879_v63 = vshll.u32 %v451_v56, 8  ;;  %v19672_v61 = vmov 920167782  }
  0x61   : > { %20042 = vst [vmem:[#allocation29_spill] sm:$0xff] %v13823_v2  ;;  %v608_v0 = vadd.s32 1, %v13036_v1  ;;  %v19675_v51 = vmov 1326507024  }
  0x62   : > { %20043 = vst [vmem:[#allocation30_spill] sm:$0xff] %v13825_v28  ;;  %vm454_vm0 = vcmp.gt.s32.totalorder %v453_v62, 0  ;;  %v13885_v8 = vand.u32 65535, %v13879_v63 }
  0x63   : > { %20044 = vst [vmem:[#allocation31_spill] sm:$0xff] %v13827_v29  ;;  %v455_v5 = vsel %vm454_vm0, %v453_v62, 0  ;;  %vm609_vm2 = vcmp.gt.s32.totalorder %v608_v0, 0 }
  0x64   : > { %20045 = vst [vmem:[#allocation32_spill] sm:$0xff] %v13829_v30  ;;  %v456_v6 = vshrl.u32 %v455_v5, 5  ;;  %v457_v7 = vand.u32 31, %v455_v5 }
  0x65   : > { %20046 = vst [vmem:[#allocation33_spill] sm:$0xff] %v13831_v31 }
  0x66   : > { %20047 = vst [vmem:[#allocation34_spill] sm:$0xff] %v13833_v32  ;;  %v458_v11 = vsub.s32 32, %v457_v7  ;;  %v460_v13 = vshll.u32 %v19664_v12, %v457_v7  ;;  %v463_v53 = vshll.u32 %v19668_v52, %v457_v7  ;;  %v466_v56 = vshll.u32 %v19666_v54, %v457_v7 }
  0x67   : > { %20048 = vst [vmem:[#allocation35_spill] sm:$0xff] %v13835_v33  ;;  %v469_v59 = vshll.u32 %v19670_v58, %v457_v7  ;;  %v472_v62 = vshll.u32 %v19672_v61, %v457_v7  ;;  %vm475_vm1 = vcmp.lt.s32.totalorder %v456_v6, 1  ;;  %vm476_vm3 = vcmp.lt.s32.totalorder %v456_v6, 2 }
  0x68   : > { %20049 = vst [vmem:[#allocation36_spill] sm:$0xff] %v13837_v34  ;;  %v459_v1 = vshrl.u32 %v19664_v12, %v458_v11  ;;  %v461_v3 = vshrl.u32 %v19668_v52, %v458_v11  ;;  %v464_v4 = vshrl.u32 %v19666_v54, %v458_v11  ;;  %v467_v5 = vshrl.u32 %v19670_v58, %v458_v11 }
  0x69   : > { %20050 = vst [vmem:[#allocation37_spill] sm:$0xff] %v13839_v35  ;;  %v470_v57 = vshrl.u32 %v19672_v61, %v458_v11  ;;  %vm478_vm4 = vcmp.lt.s32.totalorder %v456_v6, 4  ;;  %vm477_vm5 = vcmp.lt.s32.totalorder %v456_v6, 3 }
  0x6a   : > { %20051 = vst [vmem:[#allocation38_spill] sm:$0xff] %v13841_v36  ;;  %v468_v7 = vor.u32 %v467_v5, %v466_v56  ;;  %v19686_v36 = vmov 0  }
  0x6b   : > { %20052 = vst [vmem:[#allocation39_spill] sm:$0xff] %v13843_v37 }
  0x6c   : > { %20053 = vst [vmem:[#allocation40_spill] sm:$0xff] %v13845_v38  ;;  %v480_v52 = vsel %vm478_vm4, %v468_v7, 2102212464 }
  0x6d   : > { %20054 = vst [vmem:[#allocation41_spill] sm:$0xff] %v13847_v39 }
  0x6e   : > { %20055 = vst [vmem:[#allocation42_spill] sm:$0xff] %v13849_v40 }
  0x6f   : > { %20056 = vst [vmem:[#allocation43_spill] sm:$0xff] %v13851_v41 }
  0x70   : > { %20057 = vst [vmem:[#allocation44_spill] sm:$0xff] %v13853_v42 }
  0x71   : > { %20058 = vst [vmem:[#allocation45_spill] sm:$0xff] %v13855_v43 }
  0x72   : > { %20059 = vst [vmem:[#allocation46_spill] sm:$0xff] %v13857_v44 }
  0x73   : > { %20060 = vst [vmem:[#allocation47_spill] sm:$0xff] %v13859_v45 }
  0x74   : > { %20061 = vst [vmem:[#allocation48_spill] sm:$0xff] %v13861_v46  ;;  %v471_v46 = vor.u32 %v470_v57, %v469_v59  ;;  %v13909_v57 = vshll.u32 %v606_v9, 8 }
  0x75   : > { %20062 = vst [vmem:[#allocation49_spill] sm:$0xff] %v13863_v47  ;;  %v610_v47 = vsel %vm609_vm2, %v608_v0, 0 }
  0x76   : > { %20063 = vst [vmem:[#allocation50_spill] sm:$0xff] %v13865_v48  ;;  %v465_v48 = vor.u32 %v464_v4, %v463_v53  ;;  %v13900_v12 = vand.u32 31, %v610_v47 }
  0x77   : > { %20064 = vst [vmem:[#allocation51_spill] sm:$0xff] %v13867_v49  ;;  %v462_v49 = vor.u32 %v461_v3, %v460_v13  ;;  %v20067_v3 = vmov 683565275  }
  0x78   : > { %20065 = vst [vmem:[#allocation52_spill] sm:$0xff] %v13869_v50  ;;  %v473_v50 = vshrl.u32 %v19675_v51, %v458_v11  ;;  %v487_v61 = vsel %vm475_vm1, %v465_v48, %v468_v7  ;;  %v481_v44 = vsel %vm477_vm5, %v465_v48, %v480_v52  ;;  %v484_v11 = vsel %vm478_vm4, %v471_v46, 920167782 }
  0x79   : > { %20066 = vst [vmem:[#allocation53_spill] sm:$0xff] %v13875_v55  ;;  %v479_v54 = vsel %vm475_vm1, %v459_v1, %v462_v49  ;;  %v483_v58 = vsel %vm475_vm1, %v462_v49, %v465_v48  ;;  %v13906_v13 = vsub.s32 32, %v13900_v12  ;;  %v485_v53 = vsel %vm477_vm5, %v468_v7, %v484_v11 }
  0x7a   : > { %v474_v45 = vor.u32 %v473_v50, %v472_v62  ;;  %v493_v50 = vshrl.u32 %v13879_v63, 16  ;;  %v13912_v56 = vsel %vm476_vm3, %v479_v54, %v481_v44  ;;  %v486_v59 = vsel %vm476_vm3, %v483_v58, %v485_v53 }
  0x7b   : > { %v13916_v62 = vshrl.u32 %v610_v47, 5  ;;  %v516_v52 = vand.u32 65535, %v486_v59  ;;  %v517_v1 = vshrl.u32 %v486_v59, 16  ;;  %v20069_v54 = vmov 2131351028  }
  0x7c   : > { %v488_v51 = vsel %vm478_vm4, %v474_v45, 1326507024  ;;  %v619_v58 = vshrl.u32 %v20069_v54, %v13906_v13  ;;  %v621_v4 = vshll.u32 %v20069_v54, %v13900_v12 }
  0x7d   : > { %v489_v0 = vsel %vm477_vm5, %v471_v46, %v488_v51  ;;  %v615_v46 = vshll.u32 %v20067_v3, %v13900_v12  ;;  %v20068_v51 = vmov 2475754826   ;;  %v518_v7 = vmul.u32 %v516_v52, %v13885_v8 }
  0x7e   : > { %v490_v49 = vsel %vm476_vm3, %v487_v61, %v489_v0  ;;  %v616_v9 = vshrl.u32 %v20068_v51, %v13906_v13  ;;  %v618_v44 = vshll.u32 %v20068_v51, %v13900_v12  ;;  %v519_v11 = vmul.u32 %v517_v1, %v13885_v8 }
  0x7f   : > { %v494_v48 = vand.u32 65535, %v490_v49  ;;  %v495_v45 = vshrl.u32 %v490_v49, 16  ;;  %v520_v53 = vmul.u32 %v516_v52, %v493_v50  ;;  %v521_v43 = vmul.u32 %v517_v1, %v493_v50 }
  0x80   : > { %v522_v41 = vshll.u32 %v519_v11, 16  ;;  %v523_v40 = vshrl.u32 %v519_v11, 16  ;;  %v13932_v37 = vor.u32 %v616_v9, %v615_v46  ;;  %v13941_v46 = vor.u32 %v619_v58, %v618_v44 }
  0x81   : > { %v496_v6 = vmul.u32 %v494_v48, %v13885_v8  ;;  %v497_v47 = vmul.u32 %v495_v45, %v13885_v8  ;;  %v498_v61 = vmul.u32 %v494_v48, %v493_v50  ;;  %v499_v5 = vmul.u32 %v495_v45, %v493_v50 }
  0x82   : > { %v524_v39 = vshll.u32 %v520_v53, 16  ;;  %v525_v48 = vshrl.u32 %v520_v53, 16  ;;  %vm526_vm7 = vc.u32 %v518_v7, %v522_v41  ;;  %v528_v35 = vadd.s32 %v522_v41, %v518_v7 }
  0x83   : > { %v500_v0 = vshll.u32 %v497_v47, 16  ;;  %v501_v59 = vshrl.u32 %v497_v47, 16  ;;  %v502_v49 = vshll.u32 %v498_v61, 16  ;;  %v503_v42 = vshrl.u32 %v498_v61, 16 }
  0x84   : > { %v20070_v8 = vmov 2102212464   ;;  %v527_v50 = vsel %vm526_vm7, 1, %v19686_v36  ;;  %vm530_vm9 = vc.u32 %v528_v35, %v524_v39  ;;  %v20071_v7 = vmov 920167782  }
  0x85   : > { %vm504_vm6 = vc.u32 %v496_v6, %v500_v0  ;;  %v506_v38 = vadd.s32 %v500_v0, %v496_v6  ;;  %v622_v52 = vshrl.u32 %v20070_v8, %v13906_v13  ;;  %v624_v1 = vshll.u32 %v20070_v8, %v13900_v12 }
  0x86   : > { %v505_v45 = vsel %vm504_vm6, 1, %v19686_v36  ;;  %v529_v61 = vadd.s32 %v527_v50, %v521_v43  ;;  %v531_v11 = vsel %vm530_vm9, 1, %v19686_v36  ;;  %v625_v53 = vshrl.u32 %v20071_v7, %v13906_v13 }
  0x87   : > { %v507_v47 = vadd.s32 %v505_v45, %v499_v5  ;;  %vm508_vm8 = vc.u32 %v506_v38, %v502_v49  ;;  %v623_v41 = vor.u32 %v622_v52, %v621_v4  ;;  %v627_v38 = vshll.u32 %v20071_v7, %v13900_v12 }
  0x88   : > { %v509_v6 = vsel %vm508_vm8, 1, %v19686_v36  ;;  %v533_v5 = vadd.s32 %v531_v11, %v529_v61  ;;  %v20072_v0 = vmov 1326507024   ;;  %vm630_vm10 = vcmp.lt.s32.totalorder %v13916_v62, 1 }
  0x89   : > { %v511_v9 = vadd.s32 %v509_v6, %v507_v47  ;;  %v628_v49 = vshrl.u32 %v20072_v0, %v13906_v13  ;;  %v13951_v45 = vadd.s32 %v528_v35, %v524_v39  ;;  %v626_v44 = vor.u32 %v625_v53, %v624_v1 }
  0x8a   : > { %vm632_vm11 = vcmp.lt.s32.totalorder %v13916_v62, 3  ;;  %v534_v58 = vadd.s32 %v533_v5, %v523_v40  ;;  %vm631_vm12 = vcmp.lt.s32.totalorder %v13916_v62, 2  ;;  %vm633_vm13 = vcmp.lt.s32.totalorder %v13916_v62, 4 }
  0x8b   : > { %v512_v43 = vadd.s32 %v511_v9, %v501_v59  ;;  %v629_v4 = vor.u32 %v628_v49, %v627_v38  ;;  %v638_v12 = vsel %vm630_vm10, %v13932_v37, %v13941_v46  ;;  %v639_v35 = vsel %vm633_vm13, %v626_v44, 920167782 }
  0x8c   : > { %v13039_v39 = vadd.s32 4294967169, %v13887_v10  ;;  %v535_v59 = vadd.s32 %v534_v58, %v525_v48  ;;  %v640_v40 = vsel %vm632_vm11, %v623_v41, %v639_v35  ;;  %v647_v47 = vand.u32 65535, %v13909_v57 }
  0x8d   : > { %v13956_v52 = vadd.s32 %v512_v43, %v503_v42  ;;  %v648_v50 = vshrl.u32 %v13909_v57, 16  ;;  %v536_v42 = vmul.u32 %v13879_v63, %v13912_v56  ;;  %v641_v1 = vsel %vm631_vm12, %v638_v12, %v640_v40 }
  0x8e   : > { %v642_v10 = vsel %vm630_vm10, %v13941_v46, %v623_v41  ;;  %v539_v48 = vadd.s32 1, %v535_v59  ;;  %v643_v6 = vsel %vm633_vm13, %v629_v4, 1326507024  ;;  %v671_v61 = vand.u32 65535, %v641_v1 }
  0x8f   : > { %vm538_vm14 = vc.u32 %v13956_v52, %v13951_v45  ;;  %v672_v9 = vshrl.u32 %v641_v1, 16  ;;  %v644_v11 = vsel %vm632_vm11, %v626_v44, %v643_v6  ;;  %v19688_v63 = vand.u32 2147483647, %v13875_v55 }
  0x90   : > { %v540_v56 = vsel %vm538_vm14, %v539_v48, %v535_v59  ;;  %v614_v53 = vshrl.u32 %v20067_v3, %v13906_v13  ;;  %v645_v5 = vsel %vm631_vm12, %v642_v10, %v644_v11  ;;  %v673_v12 = vmul.u32 %v671_v61, %v647_v47 }
  0x91   : > { %v674_v38 = vmul.u32 %v672_v9, %v647_v47  ;;  %v541_v49 = vadd.s32 %v540_v56, %v536_v42  ;;  %v649_v43 = vand.u32 65535, %v645_v5  ;;  %v650_v58 = vshrl.u32 %v645_v5, 16 }
  0x92   : > { %v675_v4 = vmul.u32 %v671_v61, %v648_v50  ;;  %v763_v40 = vadd.s32 1, %v13039_v39  ;;  %v634_v59 = vsel %vm630_vm10, %v614_v53, %v13932_v37  ;;  %v635_v13 = vsel %vm633_vm13, %v623_v41, 2102212464 }
  0x93   : > { %v677_v35 = vshll.u32 %v674_v38, 16  ;;  %v542_v1 = vadd.s32 536870912, %v541_v49  ;;  %v651_v36 = vmul.u32 %v649_v43, %v647_v47  ;;  %v652_v44 = vmul.u32 %v650_v58, %v647_v47 }
  0x94   : > { %v653_v6 = vmul.u32 %v649_v43, %v648_v50  ;;  %v679_v10 = vshll.u32 %v675_v4, 16  ;;  %v760_v42 = vand.u32 8388607, %v19688_v63  ;;  %v654_v61 = vmul.u32 %v650_v58, %v648_v50 }
  0x95   : > { %v13994_v48 = vshrl.u32 %v542_v1, 30  ;;  %v655_v11 = vshll.u32 %v652_v44, 16  ;;  %v676_v56 = vmul.u32 %v672_v9, %v648_v50  ;;  %vm681_vm15 = vc.u32 %v673_v12, %v677_v35 }
  0x96   : > { %v657_v39 = vshll.u32 %v653_v6, 16  ;;  %v683_v47 = vadd.s32 %v677_v35, %v673_v12  ;;  %vm764_vm0 = vcmp.gt.s32.totalorder %v763_v40, 0  ;;  %v636_v37 = vsel %vm632_vm11, %v13941_v46, %v635_v13 }
  0x97   : > { %v544_v5 = vshll.u32 %v13994_v48, 30  ;;  %vm659_vm1 = vc.u32 %v651_v36, %v655_v11  ;;  %v661_v41 = vadd.s32 %v655_v11, %v651_v36  ;;  %v656_v53 = vshrl.u32 %v652_v44, 16 }
  0x98   : > { %v20073_v43 = vmov 0   ;;  %vm685_vm2 = vc.u32 %v683_v47, %v679_v10  ;;  %v765_v50 = vsel %vm764_vm0, %v763_v40, 0  ;;  %v678_v12 = vshrl.u32 %v674_v38, 16 }
  0x99   : > { %v660_v63 = vsel %vm659_vm1, 1, %v20073_v43  ;;  %v682_v1 = vsel %vm681_vm15, 1, %v20073_v43  ;;  %v545_v58 = vsub.s32 %v541_v49, %v544_v5  ;;  %vm663_vm3 = vc.u32 %v661_v41, %v657_v39 }
  0x9a   : > { %v662_v34 = vadd.s32 %v660_v63, %v654_v61  ;;  %v664_v9 = vsel %vm663_vm3, 1, %v20073_v43  ;;  %v684_v35 = vadd.s32 %v682_v1, %v676_v56  ;;  %v686_v33 = vsel %vm685_vm2, 1, %v20073_v43 }
  0x9b   : > { %vm546_vm4 = vcmp.lt.s32.totalorder %v545_v58, 0  ;;  %v547_v46 = vsub.s32 0, %v545_v58  ;;  %v658_v13 = vshrl.u32 %v653_v6, 16  ;;  %v680_v44 = vshrl.u32 %v675_v4, 16 }
  0x9c   : > { %v666_v36 = vadd.s32 %v664_v9, %v662_v34  ;;  %v688_v11 = vadd.s32 %v686_v33, %v684_v35  ;;  %v767_v32 = vand.u32 31, %v765_v50  ;;  %v14004_v29 = vadd.s32 %v683_v47, %v679_v10 }
  0x9d   : > { %v548_v31 = vsel %vm546_vm4, %v547_v46, %v545_v58  ;;  %v761_v63 = vor.u32 8388608, %v760_v42  ;;  %v637_v40 = vsel %vm631_vm12, %v634_v59, %v636_v37  ;;  %vm445_vm5 = vcmp.lt.s32.totalorder %v13793_v14, 0 }
  0x9e   : > { %v667_v30 = vadd.s32 %v666_v36, %v656_v53  ;;  %v549_v49 = vclz %v548_v31  ;;  %v689_v38 = vadd.s32 %v688_v11, %v678_v12  ;;  %v768_v39 = vsub.s32 32, %v767_v32 }
  0x9f   : > { %v537_v34 = vadd.s32 %v13951_v45, %v13956_v52  ;;  %v567_v6 = vsub.s32 4, %v13994_v48  ;;  %v691_v10 = vmul.u32 %v13909_v57, %v637_v40  ;;  %v14017_v31 = vshll.u32 %v761_v63, 8 }
  0xa0   : > { %v14008_v61 = vadd.s32 %v667_v30, %v658_v13  ;;  %v13034_v33 = vadd.s32 4294967294, %v549_v49  ;;  %v690_v4 = vadd.s32 %v689_v38, %v680_v44  ;;  %v20074_v30 = vand.u32 2147483647, %v13793_v14 }
  0xa1   : > { %v14025_v45 = vshrl.u32 %v765_v50, 5  ;;  %v773_v52 = vshll.u32 %v20068_v51, %v767_v32  ;;  %v774_v57 = vshrl.u32 %v20069_v54, %v768_v39  ;;  %v776_v56 = vshll.u32 %v20069_v54, %v767_v32 }
  0xa2   : > { %vm693_vm6 = vc.u32 %v14008_v61, %v14004_v29  ;;  %vm14021_vm7 = vcmp.le.f32.partialorder %v20074_v30, 0.7853982  ;;  %vm13035_vm8 = vcmp.lt.s32.totalorder %v13034_v33, 0  ;;  %v694_v59 = vadd.s32 1, %v690_v4 }
  0xa3   : > { %v552_v42 = vsel %vm13035_vm8, 0, %v13034_v33  ;;  %v777_v47 = vshrl.u32 %v20070_v8, %v768_v39  ;;  %v770_v9 = vshll.u32 %v20067_v3, %v767_v32  ;;  %v771_v12 = vshrl.u32 %v20068_v51, %v768_v39 }
  0xa4   : > { %v553_v5 = vsub.s32 32, %v552_v42  ;;  %v554_v37 = vshll.u32 %v545_v58, %v552_v42  ;;  %v557_v41 = vsub.s32 4294967266, %v552_v42  ;;  %v695_v53 = vsel %vm693_vm6, %v694_v59, %v690_v4 }
  0xa5   : > { %v696_v1 = vadd.s32 %v695_v53, %v691_v10  ;;  %v779_v50 = vshll.u32 %v20070_v8, %v767_v32  ;;  %v568_v13 = vsel %vm445_vm5, %v567_v6, %v13994_v48  ;;  %vm785_vm9 = vcmp.lt.s32.totalorder %v14025_v45, 1 }
  0xa6   : > { %v555_v35 = vshrl.u32 %v537_v34, %v553_v5  ;;  %v558_v46 = vadd.s32 127, %v557_v41  ;;  %v775_v44 = vor.u32 %v774_v57, %v773_v52  ;;  %v780_v58 = vshrl.u32 %v20071_v7, %v768_v39 }
  0xa7   : > { %v697_v36 = vadd.s32 536870912, %v696_v1  ;;  %v782_v11 = vshll.u32 %v20071_v7, %v767_v32  ;;  %v778_v40 = vor.u32 %v777_v47, %v776_v56  ;;  %v783_v38 = vshrl.u32 %v20072_v0, %v768_v39 }
  0xa8   : > { %v556_v63 = vor.u32 %v555_v35, %v554_v37  ;;  %v559_v49 = vshll.u32 %v558_v46, 23  ;;  %v772_v34 = vor.u32 %v771_v12, %v770_v9  ;;  %v781_v4 = vor.u32 %v780_v58, %v779_v50 }
  0xa9   : > { %v698_v33 = vshrl.u32 %v697_v36, 30  ;;  %vm788_vm10 = vcmp.lt.s32.totalorder %v14025_v45, 4  ;;  %v784_v6 = vor.u32 %v783_v38, %v782_v11  ;;  %vm787_vm11 = vcmp.lt.s32.totalorder %v14025_v45, 3 }
  0xaa   : > { %v560_v10 = vor.u32 4788187, %v559_v49  ;;  %v563_v48 = vcvt.s32.f32 %v556_v63  ;;  %v14045_v30 = vsel %vm14021_vm7, 0, %v568_v13  ;;  %vm786_vm12 = vcmp.lt.s32.totalorder %v14025_v45, 2 }
  0xab   : > { %v699_v32 = vshll.u32 %v698_v33, 30  ;;  %v14049_v59 = vand.u32 65535, %v14017_v31  ;;  %vm600_vm13 = vcmp.lt.s32.totalorder %v13795_v15, 0  ;;  %v769_v42 = vshrl.u32 %v20067_v3, %v768_v39 }
  0xac   : > { %v561_v52 = vand.u32 2147483647, %v560_v10  ;;  %v794_v57 = vsel %vm788_vm10, %v781_v4, 920167782  ;;  %v797_v56 = vsel %vm785_vm9, %v775_v44, %v778_v40  ;;  %v793_v5 = vsel %vm785_vm9, %v772_v34, %v775_v44 }
  0xad   : > { %v14057_v47 = vsub.s32 %v696_v1, %v699_v32  ;;  %v795_v37 = vsel %vm787_vm11, %v778_v40, %v794_v57  ;;  %v798_v41 = vsel %vm788_vm10, %v784_v6, 1326507024  ;;  %v587_v39 = vadd.s32 3, %v14045_v30 }
  0xae   : > { %v564_v53 = vmul.f32 %v563_v48, %v561_v52  ;;  %v799_v9 = vsel %vm787_vm11, %v781_v4, %v798_v41  ;;  %v14069_v12 = vshrl.u32 %v14017_v31, 16  ;;  %v790_v50 = vsel %vm788_vm10, %v778_v40, 2102212464 }
  0xaf   : > { %vm701_vm14 = vcmp.lt.s32.totalorder %v14057_v47, 0  ;;  %v702_v1 = vsub.s32 0, %v14057_v47  ;;  %v800_v35 = vsel %vm786_vm12, %v797_v56, %v799_v9  ;;  %v796_v13 = vsel %vm786_vm12, %v793_v5, %v795_v37 }
  0xb0   : > { %v565_v46 = vxor.u32 2147483648, %v564_v53  ;;  %v804_v36 = vand.u32 65535, %v800_v35  ;;  %v805_v58 = vshrl.u32 %v800_v35, 16  ;;  %v692_v11 = vadd.s32 %v14004_v29, %v14008_v61 }
  0xb1   : > { %v703_v63 = vsel %vm701_vm14, %v702_v1, %v14057_v47  ;;  %v722_v49 = vsub.s32 4, %v698_v33  ;;  %v789_v38 = vsel %vm785_vm9, %v769_v42, %v772_v34  ;;  %v791_v10 = vsel %vm787_vm11, %v775_v44, %v790_v50 }
  0xb2   : > { %v566_v40 = vsel %vm445_vm5, %v565_v46, %v564_v53  ;;  %v704_v4 = vclz %v703_v63  ;;  %v807_v48 = vmul.u32 %v805_v58, %v14049_v59  ;;  %v806_v29 = vmul.u32 %v804_v36, %v14049_v59 }
  0xb3   : > { %v14092_v6 = vsel %vm14021_vm7, %v13793_v14, %v566_v40  ;;  %v14096_v61 = vmul.u32 %v804_v36, %v14069_v12  ;;  %v827_v34 = vshrl.u32 %v796_v13, 16  ;;  %v14100_v52 = vand.u32 3, %v587_v39 }
  0xb4   : > { %v571_v32 = vmul.f32 %v14092_v6, %v14092_v6  ;;  %v13037_v42 = vadd.s32 4294967294, %v704_v4  ;;  %v810_v44 = vshll.u32 %v807_v48, 16  ;;  %v20077_v57 = vand.u32 2147483647, %v13795_v15 }
  0xb5   : > { %v723_v62 = vsel %vm600_vm13, %v722_v49, %v698_v33  ;;  %v14112_v5 = vsel %vm786_vm12, %v789_v38, %v791_v10  ;;  %v812_v37 = vshll.u32 %v14096_v61, 16  ;;  %v826_v41 = vand.u32 65535, %v796_v13 }
  0xb6   : > { %vm14104_vm15 = vcmp.le.f32.partialorder %v20077_v57, 0.7853982  ;;  %v572_v53 = vmul.f32 -0.001358992, %v571_v32  ;;  %v579_v39 = vmul.f32 -0.00019511016, %v571_v32  ;;  %v809_v9 = vmul.u32 %v805_v58, %v14069_v12 }
  0xb7   : > { %vm13038_vm0 = vcmp.lt.s32.totalorder %v13037_v42, 0  ;;  %vm814_vm1 = vc.u32 %v806_v29, %v810_v44  ;;  %v816_v50 = vadd.s32 %v810_v44, %v806_v29  ;;  %v829_v35 = vmul.u32 %v827_v34, %v14049_v59 }
  0xb8   : > { %v707_v1 = vsel %vm13038_vm0, 0, %v13037_v42  ;;  %v573_v46 = vadd.f32 0.041655596, %v572_v53  ;;  %v580_v36 = vadd.f32 0.008332121, %v579_v39  ;;  %vm593_vm2 = vcmp.eq.s32.totalorder %v14100_v52, 2 }
  0xb9   : > { %v708_v33 = vsub.s32 32, %v707_v1  ;;  %v709_v45 = vshll.u32 %v14057_v47, %v707_v1  ;;  %v712_v63 = vsub.s32 4294967266, %v707_v1  ;;  %v815_v13 = vsel %vm814_vm1, 1, %v20073_v43 }
  0xba   : > { %vm818_vm3 = vc.u32 %v816_v50, %v812_v37  ;;  %v830_v49 = vmul.u32 %v826_v41, %v14069_v12  ;;  %v574_v38 = vmul.f32 %v573_v46, %v571_v32  ;;  %v581_v58 = vmul.f32 %v580_v36, %v571_v32 }
  0xbb   : > { %v710_v40 = vshrl.u32 %v692_v11, %v708_v33  ;;  %v817_v4 = vadd.s32 %v815_v13, %v809_v9  ;;  %vm590_vm4 = vcmp.eq.s32.totalorder %v14100_v52, 0  ;;  %v713_v10 = vadd.s32 127, %v712_v63 }
  0xbc   : > { %v811_v29 = vshrl.u32 %v807_v48, 16  ;;  %v828_v42 = vmul.u32 %v826_v41, %v14049_v59  ;;  %v832_v47 = vshll.u32 %v829_v35, 16  ;;  %v575_v44 = vadd.f32 -0.4999988, %v574_v38 }
  0xbd   : > { %v582_v57 = vadd.f32 -0.16666654, %v581_v58  ;;  %vm589_vm5 = vcmp.lt.s32.totalorder %v14100_v52, 2  ;;  %v711_v53 = vor.u32 %v710_v40, %v709_v45  ;;  %v819_v37 = vsel %vm818_vm3, 1, %v20073_v43 }
  0xbe   : > { %v714_v39 = vshll.u32 %v713_v10, 23  ;;  %v821_v1 = vadd.s32 %v819_v37, %v817_v4  ;;  %v831_v11 = vmul.u32 %v827_v34, %v14069_v12  ;;  %v834_v9 = vshll.u32 %v830_v49, 16 }
  0xbf   : > { %v576_v50 = vmul.f32 %v575_v44, %v571_v32  ;;  %v583_v46 = vmul.f32 %v582_v57, %v571_v32  ;;  %v14128_v48 = vsel %vm14104_vm15, 0, %v723_v62  ;;  %v813_v59 = vshrl.u32 %v14096_v61, 16 }
  0xc0   : > { %v715_v41 = vor.u32 4788187, %v714_v39  ;;  %v718_v36 = vcvt.s32.f32 %v711_v53  ;;  %vm836_vm6 = vc.u32 %v828_v42, %v832_v47  ;;  %v838_v33 = vadd.s32 %v832_v47, %v828_v42 }
  0xc1   : > { %v14134_v45 = vadd.f32 1.0, %v576_v50  ;;  %v584_v63 = vadd.f32 1.0, %v583_v46  ;;  %v822_v12 = vadd.s32 %v821_v1, %v811_v29  ;;  %v837_v34 = vsel %vm836_vm6, 1, %v20073_v43 }
  0xc2   : > { %v716_v32 = vand.u32 2147483647, %v715_v41  ;;  %v833_v13 = vshrl.u32 %v829_v35, 16  ;;  %v839_v38 = vadd.s32 %v837_v34, %v831_v11  ;;  %vm840_vm7 = vc.u32 %v838_v33, %v834_v9 }
  0xc3   : > { %20080 = vst [vmem:[#allocation54_spill] sm:$0xff] %v14134_v45  ;;  %v14139_v61 = vmul.f32 %v584_v63, %v14092_v6  ;;  %v19697_v62 = vxor.u32 2147483648, %v14134_v45  ;;  %v835_v58 = vshrl.u32 %v830_v49, 16  ;;  %v841_v40 = vsel %vm840_vm7, 1, %v20073_v43 }
  0xc4   : > { %v719_v4 = vmul.f32 %v718_v36, %v716_v32  ;;  %v843_v10 = vadd.s32 %v841_v40, %v839_v38  ;;  %v19700_v42 = vand.u32 2147483647, %v13797_v16  ;;  %v911_v29 = vand.u32 2139095040, %v13797_v16 }
  0xc5   : > { %20081 = vst [vmem:[#allocation55_spill] sm:$0xff] %v14139_v61  ;;  %v19698_v47 = vxor.u32 2147483648, %v14139_v61  ;;  %v595_v6 = vsel %vm593_vm2, %v19697_v62, %v14139_v61  ;;  %v823_v35 = vadd.s32 %v822_v12, %v813_v59  ;;  %v842_v44 = vadd.s32 %v838_v33, %v834_v9 }
  0xc6   : > { %vm586_vm8 = vweird.f32 %v13793_v14  ;;  %v720_v49 = vxor.u32 2147483648, %v719_v4  ;;  %v844_v57 = vadd.s32 %v843_v10, %v833_v13  ;;  %v912_v53 = vshrl.u32 %v911_v29, 23 }
  0xc7   : > { %v592_v37 = vsel %vm590_vm4, %v14134_v45, %v19698_v47  ;;  %v742_v39 = vadd.s32 3, %v14128_v48  ;;  %v846_v1 = vmul.u32 %v14017_v31, %v14112_v5  ;;  %vm848_vm9 = vc.u32 %v823_v35, %v842_v44 }
  0xc8   : > { %v596_v11 = vsel %vm589_vm5, %v592_v37, %v595_v6  ;;  %v721_v9 = vsel %vm600_vm13, %v720_v49, %v719_v4  ;;  %v845_v50 = vadd.s32 %v844_v57, %v835_v58  ;;  %v13042_v46 = vadd.s32 4294967169, %v912_v53 }
  0xc9   : > { %v597_v59 = vsel %vm586_vm8, nan, %v596_v11  ;;  %v724_v41 = vsel %vm14104_vm15, %v13795_v15, %v721_v9  ;;  %v915_v36 = vand.u32 8388607, %v19700_v42  ;;  %v14176_v33 = vand.u32 3, %v742_v39 }
  0xca   : > { %v726_v31 = vmul.f32 %v724_v41, %v724_v41  ;;  %v849_v5 = vadd.s32 1, %v845_v50  ;;  %v918_v52 = vadd.s32 1, %v13042_v46  ;;  %6643 = vst [vmem:[%s14173_s11] sm:$0xff] %v597_v59  ;;  %v1066_v4 = vand.u32 2139095040, %v13799_v17 }
  0xcb   : > { %v916_v32 = vor.u32 8388608, %v915_v36  ;;  %vm748_vm11 = vcmp.eq.s32.totalorder %v14176_v33, 2  ;;  %vm745_vm12 = vcmp.eq.s32.totalorder %v14176_v33, 0  ;;  %v14181_v57 = vadd.s32 %v842_v44, %v823_v35 }
  0xcc   : > { %v727_v63 = vmul.f32 -0.001358992, %v726_v31  ;;  %v734_v12 = vmul.f32 -0.00019511016, %v726_v31  ;;  %v850_v34 = vsel %vm848_vm9, %v849_v5, %v845_v50  ;;  %vm919_vm10 = vcmp.gt.s32.totalorder %v918_v52, 0 }
  0xcd   : > { %v851_v56 = vadd.s32 %v850_v34, %v846_v1  ;;  %v920_v13 = vsel %vm919_vm10, %v918_v52, 0  ;;  %v14185_v37 = vshll.u32 %v916_v32, 8  ;;  %v19699_v39 = vand.u32 2147483647, %v13799_v17 }
  0xce   : > { %v728_v38 = vadd.f32 0.041655596, %v727_v63  ;;  %v735_v58 = vadd.f32 0.008332121, %v734_v12  ;;  %v922_v40 = vand.u32 31, %v920_v13  ;;  %vm744_vm13 = vcmp.lt.s32.totalorder %v14176_v33, 2 }
  0xcf   : > { %v852_v10 = vadd.s32 536870912, %v851_v56  ;;  %v1067_v50 = vshrl.u32 %v1066_v4, 23  ;;  %vm741_vm14 = vweird.f32 %v13795_v15  ;;  %v14199_v34 = vshrl.u32 %v920_v13, 5 }
  0xd0   : > { %v729_v29 = vmul.f32 %v728_v38, %v726_v31  ;;  %v736_v6 = vmul.f32 %v735_v58, %v726_v31  ;;  %v923_v49 = vsub.s32 32, %v922_v40  ;;  %v934_v9 = vshll.u32 %v20070_v8, %v922_v40 }
  0xd1   : > { %v14183_v53 = vshrl.u32 %v852_v10, 30  ;;  %v925_v35 = vshll.u32 %v20067_v3, %v922_v40  ;;  %v928_v59 = vshll.u32 %v20068_v51, %v922_v40  ;;  %v931_v32 = vshll.u32 %v20069_v54, %v922_v40 }
  0xd2   : > { %v730_v1 = vadd.f32 -0.4999988, %v729_v29  ;;  %v737_v11 = vadd.f32 -0.16666654, %v736_v6  ;;  %v926_v44 = vshrl.u32 %v20068_v51, %v923_v49  ;;  %v929_v52 = vshrl.u32 %v20069_v54, %v923_v49 }
  0xd3   : > { %v854_v46 = vshll.u32 %v14183_v53, 30  ;;  %v935_v63 = vshrl.u32 %v20071_v7, %v923_v49  ;;  %v14204_v38 = vand.u32 8388607, %v19699_v39  ;;  %v932_v10 = vshrl.u32 %v20070_v8, %v923_v49 }
  0xd4   : > { %v731_v36 = vmul.f32 %v730_v1, %v726_v31  ;;  %v738_v5 = vmul.f32 %v737_v11, %v726_v31  ;;  %v938_v13 = vshrl.u32 %v20072_v0, %v923_v49  ;;  %vm755_vm0 = vcmp.lt.s32.totalorder %v13875_v55, 0 }
  0xd5   : > { %v14197_v12 = vsub.s32 %v851_v56, %v854_v46  ;;  %v936_v31 = vor.u32 %v935_v63, %v934_v9  ;;  %v937_v56 = vshll.u32 %v20071_v7, %v922_v40  ;;  %v927_v11 = vor.u32 %v926_v44, %v925_v35 }
  0xd6   : > { %v14206_v58 = vadd.f32 1.0, %v731_v36  ;;  %v739_v4 = vadd.f32 1.0, %v738_v5  ;;  %v930_v46 = vor.u32 %v929_v52, %v928_v59  ;;  %vm940_vm1 = vcmp.lt.s32.totalorder %v14199_v34, 1 }
  0xd7   : > { %vm856_vm15 = vcmp.lt.s32.totalorder %v14197_v12, 0  ;;  %v857_v29 = vsub.s32 0, %v14197_v12  ;;  %vm943_vm2 = vcmp.lt.s32.totalorder %v14199_v34, 4  ;;  %v13045_v9 = vadd.s32 4294967169, %v1067_v50 }
  0xd8   : > { %20082 = vst [vmem:[#allocation56_spill] sm:$0xff] %v14206_v58  ;;  %v14213_v6 = vmul.f32 %v739_v4, %v724_v41  ;;  %v19695_v1 = vxor.u32 2147483648, %v14206_v58  ;;  %v933_v63 = vor.u32 %v932_v10, %v931_v32  ;;  %v939_v4 = vor.u32 %v938_v13, %v937_v56 }
  0xd9   : > { %v858_v36 = vsel %vm856_vm15, %v857_v29, %v14197_v12  ;;  %vm942_vm3 = vcmp.lt.s32.totalorder %v14199_v34, 3  ;;  %v949_v35 = vsel %vm943_vm2, %v936_v31, 920167782  ;;  %v957_v44 = vand.u32 65535, %v14185_v37 }
  0xda   : > { %20083 = vst [vmem:[#allocation57_spill] sm:$0xff] %v14213_v6  ;;  %v19696_v5 = vxor.u32 2147483648, %v14213_v6  ;;  %v750_v41 = vsel %vm748_vm11, %v19695_v1, %v14213_v6  ;;  %v859_v40 = vclz %v858_v36  ;;  %v20084_v59 = vand.u32 2147483647, %v13875_v55 }
  0xdb   : > { %vm941_vm5 = vcmp.lt.s32.totalorder %v14199_v34, 2  ;;  %v948_v10 = vsel %vm940_vm1, %v927_v11, %v930_v46  ;;  %v877_v56 = vsub.s32 4, %v14183_v53  ;;  %v924_v13 = vshrl.u32 %v20067_v3, %v923_v49 }
  0xdc   : > { %v747_v50 = vsel %vm745_vm12, %v14206_v58, %v19696_v5  ;;  %vm14237_vm4 = vcmp.le.f32.partialorder %v20084_v59, 0.7853982  ;;  %v13040_v32 = vadd.s32 4294967294, %v859_v40  ;;  %v1073_v36 = vadd.s32 1, %v13045_v9 }
  0xdd   : > { %v751_v29 = vsel %vm744_vm13, %v747_v50, %v750_v41  ;;  %v950_v40 = vsel %vm942_vm3, %v933_v63, %v949_v35  ;;  %v952_v1 = vsel %vm940_vm1, %v930_v46, %v933_v63  ;;  %v945_v33 = vsel %vm943_vm2, %v933_v63, 2102212464 }
  0xde   : > { %v752_v59 = vsel %vm741_vm14, nan, %v751_v29  ;;  %vm13041_vm6 = vcmp.lt.s32.totalorder %v13040_v32, 0  ;;  %v951_v41 = vsel %vm941_vm5, %v948_v10, %v950_v40  ;;  %v953_v49 = vsel %vm943_vm2, %v939_v4, 1326507024 }
  0xdf   : > { %v862_v5 = vsel %vm13041_vm6, 0, %v13040_v32  ;;  %6644 = vst [vmem:[%s14173_s11 + $0x8] sm:$0xff] %v752_v59  ;;  %v954_v35 = vsel %vm942_vm3, %v936_v31, %v953_v49  ;;  %v878_v32 = vsel %vm755_vm0, %v877_v56, %v14183_v53  ;;  %v958_v10 = vshrl.u32 %v14185_v37, 16 }
  0xe0   : > { %v863_v9 = vsub.s32 32, %v862_v5  ;;  %v864_v50 = vshll.u32 %v14197_v12, %v862_v5  ;;  %v867_v29 = vsub.s32 4294967266, %v862_v5  ;;  %v955_v63 = vsel %vm941_vm5, %v952_v1, %v954_v35 }
  0xe1   : > { %vm1074_vm7 = vcmp.gt.s32.totalorder %v1073_v36, 0  ;;  %v959_v40 = vand.u32 65535, %v955_v63  ;;  %v960_v62 = vshrl.u32 %v955_v63, 16  ;;  %v944_v12 = vsel %vm940_vm1, %v924_v13, %v927_v11 }
  0xe2   : > { %v865_v4 = vshrl.u32 %v14181_v57, %v863_v9  ;;  %v868_v59 = vadd.s32 127, %v867_v29  ;;  %v946_v31 = vsel %vm942_vm3, %v930_v46, %v945_v33  ;;  %v981_v5 = vand.u32 65535, %v951_v41 }
  0xe3   : > { %v982_v49 = vshrl.u32 %v951_v41, 16  ;;  %v961_v47 = vmul.u32 %v959_v40, %v957_v44  ;;  %v962_v1 = vmul.u32 %v960_v62, %v957_v44  ;;  %v14277_v35 = vsel %vm14237_vm4, 0, %v878_v32 }
  0xe4   : > { %v866_v53 = vor.u32 %v865_v4, %v864_v50  ;;  %v869_v56 = vshll.u32 %v868_v59, 23  ;;  %v963_v57 = vmul.u32 %v959_v40, %v958_v10  ;;  %v964_v9 = vmul.u32 %v960_v62, %v958_v10 }
  0xe5   : > { %v984_v29 = vmul.u32 %v982_v49, %v957_v44  ;;  %v965_v42 = vshll.u32 %v962_v1, 16  ;;  %v983_v11 = vmul.u32 %v981_v5, %v957_v44  ;;  %v14281_v46 = vsel %vm941_vm5, %v944_v12, %v946_v31 }
  0xe6   : > { %v870_v63 = vor.u32 4788187, %v869_v56  ;;  %v873_v39 = vcvt.s32.f32 %v866_v53  ;;  %v967_v13 = vshll.u32 %v963_v57, 16  ;;  %v985_v33 = vmul.u32 %v981_v5, %v958_v10 }
  0xe7   : > { %v986_v41 = vmul.u32 %v982_v49, %v958_v10  ;;  %vm969_vm9 = vc.u32 %v961_v47, %v965_v42  ;;  %v971_v4 = vadd.s32 %v965_v42, %v961_v47  ;;  %v987_v59 = vshll.u32 %v984_v29, 16 }
  0xe8   : > { %v871_v50 = vand.u32 2147483647, %v870_v63  ;;  %v966_v32 = vshrl.u32 %v962_v1, 16  ;;  %v970_v40 = vsel %vm969_vm9, 1, %v20073_v43  ;;  %v989_v62 = vshll.u32 %v985_v33, 16 }
  0xe9   : > { %v1075_v56 = vsel %vm1074_vm7, %v1073_v36, 0  ;;  %v972_v15 = vadd.s32 %v970_v40, %v964_v9  ;;  %vm973_vm10 = vc.u32 %v971_v4, %v967_v13  ;;  %vm991_vm11 = vc.u32 %v983_v11, %v987_v59 }
  0xea   : > { %v874_v53 = vmul.f32 %v873_v39, %v871_v50  ;;  %v968_v34 = vshrl.u32 %v963_v57, 16  ;;  %v974_v44 = vsel %vm973_vm10, 1, %v20073_v43  ;;  %v992_v12 = vsel %vm991_vm11, 1, %v20073_v43 }
  0xeb   : > { %v993_v10 = vadd.s32 %v987_v59, %v983_v11  ;;  %v976_v5 = vadd.s32 %v974_v44, %v972_v15  ;;  %v994_v42 = vadd.s32 %v992_v12, %v986_v41  ;;  %v1077_v47 = vand.u32 31, %v1075_v56 }
  0xec   : > { %v875_v31 = vxor.u32 2147483648, %v874_v53  ;;  %v988_v49 = vshrl.u32 %v984_v29, 16  ;;  %v990_v1 = vshrl.u32 %v985_v33, 16  ;;  %v14287_v63 = vshrl.u32 %v1075_v56, 5 }
  0xed   : > { %vm995_vm12 = vc.u32 %v993_v10, %v989_v62  ;;  %v977_v36 = vadd.s32 %v976_v5, %v966_v32  ;;  %v14292_v9 = vsub.s32 32, %v1077_v47  ;;  %v14297_v15 = vadd.s32 %v993_v10, %v989_v62 }
  0xee   : > { %v876_v39 = vsel %vm755_vm0, %v875_v31, %v874_v53  ;;  %v996_v57 = vsel %vm995_vm12, 1, %v20073_v43  ;;  %v1080_v29 = vshll.u32 %v20067_v3, %v1077_v47  ;;  %v897_v41 = vadd.s32 3, %v14277_v35 }
  0xef   : > { %v879_v11 = vsel %vm14237_vm4, %v13875_v55, %v876_v39  ;;  %v998_v13 = vadd.s32 %v996_v57, %v994_v42  ;;  %v14301_v50 = vadd.s32 %v977_v36, %v968_v34  ;;  %v1081_v4 = vshrl.u32 %v20068_v51, %v14292_v9 }
  0xf0   : > { %v881_v33 = vmul.f32 %v879_v11, %v879_v11  ;;  %v1001_v32 = vmul.u32 %v14185_v37, %v14281_v46  ;;  %v1083_v52 = vshll.u32 %v20068_v51, %v1077_v47  ;;  %v1084_v40 = vshrl.u32 %v20069_v54, %v14292_v9 }
  0xf1   : > { %v999_v59 = vadd.s32 %v998_v13, %v988_v49  ;;  %v1086_v53 = vshll.u32 %v20069_v54, %v1077_v47  ;;  %vm1095_vm13 = vcmp.lt.s32.totalorder %v14287_v63, 1  ;;  %vm1003_vm15 = vc.u32 %v14301_v50, %v14297_v15 }
  0xf2   : > { %v882_v62 = vmul.f32 -0.001358992, %v881_v33  ;;  %v889_v56 = vmul.f32 -0.00019511016, %v881_v33  ;;  %v14314_v44 = vor.u32 %v1081_v4, %v1080_v29  ;;  %v1087_v37 = vshrl.u32 %v20070_v8, %v14292_v9 }
  0xf3   : > { %v1000_v34 = vadd.s32 %v999_v59, %v990_v1  ;;  %v1089_v10 = vshll.u32 %v20070_v8, %v1077_v47  ;;  %v1090_v31 = vshrl.u32 %v20071_v7, %v14292_v9  ;;  %v14321_v42 = vor.u32 %v1084_v40, %v1083_v52 }
  0xf4   : > { %v883_v46 = vadd.f32 0.041655596, %v882_v62  ;;  %v890_v12 = vadd.f32 0.008332121, %v889_v56  ;;  %v1092_v49 = vshll.u32 %v20071_v7, %v1077_v47  ;;  %v1093_v1 = vshrl.u32 %v20072_v0, %v14292_v9 }
  0xf5   : > { %v1004_v5 = vadd.s32 1, %v1000_v34  ;;  %v1091_v57 = vor.u32 %v1090_v31, %v1089_v10  ;;  %vm1098_vm0 = vcmp.lt.s32.totalorder %v14287_v63, 4  ;;  %v1071_v29 = vor.u32 8388608, %v14204_v38 }
  0xf6   : > { %v884_v39 = vmul.f32 %v883_v46, %v881_v33  ;;  %v891_v36 = vmul.f32 %v890_v12, %v881_v33  ;;  %v1088_v4 = vor.u32 %v1087_v37, %v1086_v53  ;;  %v1094_v59 = vor.u32 %v1093_v1, %v1092_v49 }
  0xf7   : > { %v1005_v13 = vsel %vm1003_vm15, %v1004_v5, %v1000_v34  ;;  %vm1097_vm1 = vcmp.lt.s32.totalorder %v14287_v63, 3  ;;  %v898_v52 = vand.u32 3, %v897_v41  ;;  %vm1096_vm2 = vcmp.lt.s32.totalorder %v14287_v63, 2 }
  0xf8   : > { %v885_v62 = vadd.f32 -0.4999988, %v884_v39  ;;  %v892_v56 = vadd.f32 -0.16666654, %v891_v36  ;;  %v1006_v14 = vadd.s32 %v1005_v13, %v1001_v32  ;;  %v1103_v47 = vsel %vm1095_vm13, %v14314_v44, %v14321_v42 }
  0xf9   : > { %v1104_v40 = vsel %vm1098_vm0, %v1091_v57, 920167782  ;;  %v1107_v41 = vsel %vm1095_vm13, %v14321_v42, %v1088_v4  ;;  %v1108_v32 = vsel %vm1098_vm0, %v1094_v59, 1326507024  ;;  %v14343_v46 = vshll.u32 %v1071_v29, 8 }
  0xfa   : > { %v886_v34 = vmul.f32 %v885_v62, %v881_v33  ;;  %v893_v38 = vmul.f32 %v892_v56, %v881_v33  ;;  %v1007_v53 = vadd.s32 536870912, %v1006_v14  ;;  %v1105_v37 = vsel %vm1097_vm1, %v1088_v4, %v1104_v40 }
  0xfb   : > { %v1106_v33 = vsel %vm1096_vm2, %v1103_v47, %v1105_v37  ;;  %vm896_vm3 = vweird.f32 %v13875_v55  ;;  %vm903_vm4 = vcmp.eq.s32.totalorder %v898_v52, 2  ;;  %v1109_v5 = vsel %vm1097_vm1, %v1091_v57, %v1108_v32 }
  0xfc   : > { %v14345_v12 = vadd.f32 1.0, %v886_v34  ;;  %v894_v10 = vadd.f32 1.0, %v893_v38  ;;  %v14347_v31 = vshrl.u32 %v1007_v53, 30  ;;  %v1112_v49 = vand.u32 65535, %v14343_v46 }
  0xfd   : > { %v1136_v13 = vand.u32 65535, %v1106_v33  ;;  %vm900_vm5 = vcmp.eq.s32.totalorder %v898_v52, 0  ;;  %v1110_v29 = vsel %vm1096_vm2, %v1107_v41, %v1109_v5  ;;  %v1113_v59 = vshrl.u32 %v14343_v46, 16 }
  0xfe   : > { %20087 = vst [vmem:[#allocation58_spill] sm:$0xff] %v14345_v12  ;;  %v14355_v1 = vmul.f32 %v894_v10, %v879_v11  ;;  %v19703_v39 = vxor.u32 2147483648, %v14345_v12  ;;  %v1009_v36 = vshll.u32 %v14347_v31, 30  ;;  %v1137_v62 = vshrl.u32 %v1106_v33, 16 }
  0xff   : > { %vm899_vm6 = vcmp.lt.s32.totalorder %v898_v52, 2  ;;  %v1079_v47 = vshrl.u32 %v20067_v3, %v14292_v9  ;;  %v1114_v40 = vand.u32 65535, %v1110_v29  ;;  %v1115_v34 = vshrl.u32 %v1110_v29, 16 }
 0x100   : > { %20088 = vst [vmem:[#allocation59_spill] sm:$0xff] %v14355_v1  ;;  %v19708_v56 = vxor.u32 2147483648, %v14355_v1  ;;  %v905_v11 = vsel %vm903_vm4, %v19703_v39, %v14355_v1  ;;  %v1010_v57 = vsub.s32 %v1006_v14, %v1009_v36  ;;  %v1139_v38 = vmul.u32 %v1137_v62, %v1112_v49 }
 0x101   : > { %v1138_v37 = vmul.u32 %v1136_v13, %v1112_v49  ;;  %v1116_v32 = vmul.u32 %v1114_v40, %v1112_v49  ;;  %v1117_v10 = vmul.u32 %v1115_v34, %v1112_v49  ;;  %v1118_v33 = vmul.u32 %v1114_v40, %v1113_v59 }
 0x102   : > { %v902_v53 = vsel %vm900_vm5, %v14345_v12, %v19708_v56  ;;  %vm1011_vm7 = vcmp.lt.s32.totalorder %v1010_v57, 0  ;;  %v1012_v52 = vsub.s32 0, %v1010_v57  ;;  %v1140_v9 = vmul.u32 %v1136_v13, %v1113_v59 }
 0x103   : > { %v906_v41 = vsel %vm899_vm6, %v902_v53, %v905_v11  ;;  %v1142_v36 = vshll.u32 %v1139_v38, 16  ;;  %v1119_v39 = vmul.u32 %v1115_v34, %v1113_v59  ;;  %v1120_v58 = vshll.u32 %v1117_v10, 16 }
 0x104   : > { %v907_v14 = vsel %vm896_vm3, nan, %v906_v41  ;;  %v1013_v5 = vsel %vm1011_vm7, %v1012_v52, %v1010_v57  ;;  %v1122_v1 = vshll.u32 %v1118_v33, 16  ;;  %v1002_v56 = vadd.s32 %v14297_v15, %v14301_v50 }
 0x105   : > { %v1014_v29 = vclz %v1013_v5  ;;  %6645 = vst [vmem:[%s14173_s11 + $0x10] sm:$0xff] %v907_v14  ;;  %v1099_v11 = vsel %vm1095_vm13, %v1079_v47, %v14314_v44  ;;  %v1100_v49 = vsel %vm1098_vm0, %v1088_v4, 2102212464  ;;  %v1141_v40 = vmul.u32 %v1137_v62, %v1113_v59 }
 0x106   : > { %vm1124_vm9 = vc.u32 %v1116_v32, %v1120_v58  ;;  %v1126_v13 = vadd.s32 %v1120_v58, %v1116_v32  ;;  %vm1146_vm10 = vc.u32 %v1138_v37, %v1142_v36  ;;  %v1144_v52 = vshll.u32 %v1140_v9, 16 }
 0x107   : > { %v13043_v53 = vadd.s32 4294967294, %v1014_v29  ;;  %v1125_v34 = vsel %vm1124_vm9, 1, %v20073_v43  ;;  %v1147_v41 = vsel %vm1146_vm10, 1, %v20073_v43  ;;  %v1148_v14 = vadd.s32 %v1142_v36, %v1138_v37 }
 0x108   : > { %v1121_v15 = vshrl.u32 %v1117_v10, 16  ;;  %v1127_v50 = vadd.s32 %v1125_v34, %v1119_v39  ;;  %vm1128_vm12 = vc.u32 %v1126_v13, %v1122_v1  ;;  %v1123_v44 = vshrl.u32 %v1118_v33, 16 }
 0x109   : > { %vm13044_vm11 = vcmp.lt.s32.totalorder %v13043_v53, 0  ;;  %v1129_v47 = vsel %vm1128_vm12, 1, %v20073_v43  ;;  %v1149_v4 = vadd.s32 %v1147_v41, %v1141_v40  ;;  %v1032_v32 = vsub.s32 4, %v14347_v31 }
 0x10a   : > { %v1017_v5 = vsel %vm13044_vm11, 0, %v13043_v53  ;;  %v1131_v58 = vadd.s32 %v1129_v47, %v1127_v50  ;;  %v1101_v55 = vsel %vm1097_vm1, %v14321_v42, %v1100_v49  ;;  %v1143_v37 = vshrl.u32 %v1139_v38, 16 }
 0x10b   : > { %v1018_v59 = vsub.s32 32, %v1017_v5  ;;  %v1019_v62 = vshll.u32 %v1010_v57, %v1017_v5  ;;  %v1022_v29 = vsub.s32 4294967266, %v1017_v5  ;;  %vm1150_vm13 = vc.u32 %v1148_v14, %v1144_v52 }
 0x10c   : > { %v1132_v1 = vadd.s32 %v1131_v58, %v1121_v15  ;;  %v1151_v33 = vsel %vm1150_vm13, 1, %v20073_v43  ;;  %v1145_v36 = vshrl.u32 %v1140_v9, 16  ;;  %v1152_v53 = vadd.s32 %v1148_v14, %v1144_v52 }
 0x10d   : > { %v1020_v10 = vshrl.u32 %v1002_v56, %v1018_v59  ;;  %v1023_v39 = vadd.s32 127, %v1022_v29  ;;  %v1153_v40 = vadd.s32 %v1151_v33, %v1149_v4  ;;  %v19711_v57 = vand.u32 2147483647, %v13801_v18 }
 0x10e   : > { %v1133_v41 = vadd.s32 %v1132_v1, %v1123_v44  ;;  %v1221_v50 = vand.u32 2139095040, %v13801_v18  ;;  %vm910_vm15 = vcmp.lt.s32.totalorder %v13797_v16, 0  ;;  %v1102_v42 = vsel %vm1096_vm2, %v1099_v11, %v1101_v55 }
 0x10f   : > { %v1021_v13 = vor.u32 %v1020_v10, %v1019_v62  ;;  %v1024_v34 = vshll.u32 %v1023_v39, 23  ;;  %v1154_v56 = vadd.s32 %v1153_v40, %v1143_v37  ;;  %v1376_v38 = vand.u32 2139095040, %v13803_v19 }
 0x110   : > { %v1033_v9 = vsel %vm910_vm15, %v1032_v32, %v14347_v31  ;;  %v1222_v14 = vshrl.u32 %v1221_v50, 23  ;;  %v1225_v5 = vand.u32 8388607, %v19711_v57  ;;  %v1156_v4 = vmul.u32 %v14343_v46, %v1102_v42 }
 0x111   : > { %v1025_v49 = vor.u32 4788187, %v1024_v34  ;;  %v1028_v15 = vcvt.s32.f32 %v1021_v13  ;;  %v1155_v52 = vadd.s32 %v1154_v56, %v1145_v36  ;;  %v1377_v44 = vshrl.u32 %v1376_v38, 23 }
 0x112   : > { %vm1158_vm0 = vc.u32 %v1133_v41, %v1152_v53  ;;  %v20089_v55 = vand.u32 2147483647, %v13797_v16  ;;  %v13048_v59 = vadd.s32 4294967169, %v1222_v14  ;;  %v1226_v32 = vor.u32 8388608, %v1225_v5 }
 0x113   : > { %v1026_v47 = vand.u32 2147483647, %v1025_v49  ;;  %v1159_v11 = vadd.s32 1, %v1155_v52  ;;  %v13051_v29 = vadd.s32 4294967169, %v1377_v44  ;;  %v19710_v42 = vand.u32 2147483647, %v13803_v19 }
 0x114   : > { %vm14403_vm1 = vcmp.le.f32.partialorder %v20089_v55, 0.7853982  ;;  %v1228_v37 = vadd.s32 1, %v13048_v59  ;;  %v14417_v50 = vshll.u32 %v1226_v32, 8  ;;  %vm1065_vm4 = vcmp.lt.s32.totalorder %v13799_v17, 0 }
 0x115   : > { %v1029_v62 = vmul.f32 %v1028_v15, %v1026_v47  ;;  %v14409_v31 = vsel %vm14403_vm1, 0, %v1033_v9  ;;  %v1160_v58 = vsel %vm1158_vm0, %v1159_v11, %v1155_v52  ;;  %v1383_v40 = vadd.s32 1, %v13051_v29 }
 0x116   : > { %20092 = vst [vmem:[#allocation60_spill] sm:$0xff] %v14409_v31  ;;  %v1161_v46 = vadd.s32 %v1160_v58, %v1156_v4  ;;  %v1052_v39 = vadd.s32 3, %v14409_v31  ;;  %vm1229_vm2 = vcmp.gt.s32.totalorder %v1228_v37, 0  ;;  %v14422_v15 = vadd.s32 %v1152_v53, %v1133_v41 }
 0x117   : > { %v1030_v10 = vxor.u32 2147483648, %v1029_v62  ;;  %v1230_v36 = vsel %vm1229_vm2, %v1228_v37, 0  ;;  %vm1384_vm5 = vcmp.gt.s32.totalorder %v1383_v40, 0  ;;  %v14426_v44 = vand.u32 65535, %v14417_v50 }
 0x118   : > { %v1162_v33 = vadd.s32 536870912, %v1161_v46  ;;  %v1232_v34 = vand.u32 31, %v1230_v36  ;;  %v14420_v49 = vand.u32 3, %v1052_v39  ;;  %v14429_v47 = vshrl.u32 %v14417_v50, 16 }
 0x119   : > { %v1031_v1 = vsel %vm910_vm15, %v1030_v10, %v1029_v62  ;;  %v14433_v4 = vand.u32 8388607, %v19710_v42  ;;  %v14437_v63 = vshrl.u32 %v1230_v36, 5  ;;  %v14443_v29 = vsel %vm1384_vm5, %v1383_v40, 0 }
 0x11a   : > { %v1034_v13 = vsel %vm14403_vm1, %v13797_v16, %v1031_v1  ;;  %v1163_v38 = vshrl.u32 %v1162_v33, 30  ;;  %v1233_v5 = vsub.s32 32, %v1232_v34  ;;  %vm1058_vm6 = vcmp.eq.s32.totalorder %v14420_v49, 2 }
 0x11b   : > { %v1036_v56 = vmul.f32 %v1034_v13, %v1034_v13  ;;  %v1235_v11 = vshll.u32 %v20067_v3, %v1232_v34  ;;  %v1238_v59 = vshll.u32 %v20068_v51, %v1232_v34  ;;  %v1241_v62 = vshll.u32 %v20069_v54, %v1232_v34 }
 0x11c   : > { %v1164_v14 = vshll.u32 %v1163_v38, 30  ;;  %vm1055_vm9 = vcmp.eq.s32.totalorder %v14420_v49, 0  ;;  %v1187_v10 = vsub.s32 4, %v1163_v38  ;;  %v1244_v39 = vshll.u32 %v20070_v8, %v1232_v34 }
 0x11d   : > { %v1037_v9 = vmul.f32 -0.001358992, %v1036_v56  ;;  %v1044_v52 = vmul.f32 -0.00019511016, %v1036_v56  ;;  %v1245_v1 = vshrl.u32 %v20071_v7, %v1233_v5  ;;  %vm1054_vm10 = vcmp.lt.s32.totalorder %v14420_v49, 2 }
 0x11e   : > { %v14435_v41 = vsub.s32 %v1161_v46, %v1164_v14  ;;  %v1236_v46 = vshrl.u32 %v20068_v51, %v1233_v5  ;;  %vm1051_vm11 = vweird.f32 %v13797_v16  ;;  %v1242_v14 = vshrl.u32 %v20070_v8, %v1233_v5 }
 0x11f   : > { %v1038_v55 = vadd.f32 0.041655596, %v1037_v9  ;;  %v1045_v53 = vadd.f32 0.008332121, %v1044_v52  ;;  %v1239_v9 = vshrl.u32 %v20069_v54, %v1233_v5  ;;  %v1246_v6 = vor.u32 %v1245_v1, %v1244_v39 }
 0x120   : > { %vm1166_vm7 = vcmp.lt.s32.totalorder %v14435_v41, 0  ;;  %v1167_v37 = vsub.s32 0, %v14435_v41  ;;  %v1237_v12 = vor.u32 %v1236_v46, %v1235_v11  ;;  %vm1253_vm12 = vcmp.lt.s32.totalorder %v14437_v63, 4 }
 0x121   : > { %v1039_v58 = vmul.f32 %v1038_v55, %v1036_v56  ;;  %v1046_v32 = vmul.f32 %v1045_v53, %v1036_v56  ;;  %v1247_v55 = vshll.u32 %v20071_v7, %v1232_v34  ;;  %v1248_v53 = vshrl.u32 %v20072_v0, %v1233_v5 }
 0x122   : > { %v1168_v40 = vsel %vm1166_vm7, %v1167_v37, %v14435_v41  ;;  %v1188_v37 = vsel %vm1065_vm4, %v1187_v10, %v1163_v38  ;;  %v1240_v61 = vor.u32 %v1239_v9, %v1238_v59  ;;  %v1243_v34 = vor.u32 %v1242_v14, %v1241_v62 }
 0x123   : > { %v1040_v33 = vadd.f32 -0.4999988, %v1039_v58  ;;  %v1047_v36 = vadd.f32 -0.16666654, %v1046_v32  ;;  %v1169_v52 = vclz %v1168_v40  ;;  %v1234_v58 = vshrl.u32 %v20067_v3, %v1233_v5 }
 0x124   : > { %v14460_v32 = vshrl.u32 %v14443_v29, 5  ;;  %vm1250_vm15 = vcmp.lt.s32.totalorder %v14437_v63, 1  ;;  %vm1252_vm1 = vcmp.lt.s32.totalorder %v14437_v63, 3  ;;  %v1259_v62 = vsel %vm1253_vm12, %v1246_v6, 920167782 }
 0x125   : > { %v1041_v42 = vmul.f32 %v1040_v33, %v1036_v56  ;;  %v1048_v57 = vmul.f32 %v1047_v36, %v1036_v56  ;;  %v13046_v31 = vadd.s32 4294967294, %v1169_v52  ;;  %v1249_v56 = vor.u32 %v1248_v53, %v1247_v55 }
 0x126   : > { %v20093_v36 = vand.u32 2147483647, %v13799_v17  ;;  %vm1251_vm2 = vcmp.lt.s32.totalorder %v14437_v63, 2  ;;  %v1254_v46 = vsel %vm1250_vm15, %v1234_v58, %v1237_v12  ;;  %v1255_v39 = vsel %vm1253_vm12, %v1243_v34, 2102212464 }
 0x127   : > { %v14464_v40 = vadd.f32 1.0, %v1041_v42  ;;  %v1049_v45 = vadd.f32 1.0, %v1048_v57  ;;  %vm13047_vm13 = vcmp.lt.s32.totalorder %v13046_v31, 0  ;;  %v1260_v9 = vsel %vm1252_vm1, %v1243_v34, %v1259_v62 }
 0x128   : > { %vm14473_vm0 = vcmp.le.f32.partialorder %v20093_v36, 0.7853982  ;;  %v1172_v42 = vsel %vm13047_vm13, 0, %v13046_v31  ;;  %v1258_v31 = vsel %vm1250_vm15, %v1237_v12, %v1240_v61  ;;  %v1263_v52 = vsel %vm1253_vm12, %v1249_v56, 1326507024 }
 0x129   : > { %v14468_v5 = vmul.f32 %v1049_v45, %v1034_v13  ;;  %v19721_v33 = vxor.u32 2147483648, %v14464_v40  ;;  %v1173_v57 = vsub.s32 32, %v1172_v42  ;;  %v1174_v11 = vshll.u32 %v14435_v41, %v1172_v42 }
 0x12a   : > { %v1177_v59 = vsub.s32 4294967266, %v1172_v42  ;;  %v1261_v53 = vsel %vm1251_vm2, %v1258_v31, %v1260_v9  ;;  %v1264_v36 = vsel %vm1252_vm1, %v1246_v6, %v1263_v52  ;;  %v1256_v56 = vsel %vm1252_vm1, %v1240_v61, %v1255_v39 }
 0x12b   : > { %v19722_v45 = vxor.u32 2147483648, %v14468_v5  ;;  %v1060_v13 = vsel %vm1058_vm6, %v19721_v33, %v14468_v5  ;;  %v1175_v10 = vshrl.u32 %v14422_v15, %v1173_v57  ;;  %v1262_v15 = vsel %vm1250_vm15, %v1240_v61, %v1243_v34 }
 0x12c   : > { %v1178_v41 = vadd.s32 127, %v1177_v59  ;;  %v1291_v42 = vand.u32 65535, %v1261_v53  ;;  %v1292_v57 = vshrl.u32 %v1261_v53, 16  ;;  %v1265_v49 = vsel %vm1251_vm2, %v1262_v15, %v1264_v36 }
 0x12d   : > { %v1057_v1 = vsel %vm1055_vm9, %v14464_v40, %v19722_v45  ;;  %v1176_v14 = vor.u32 %v1175_v10, %v1174_v11  ;;  %v1269_v11 = vand.u32 65535, %v1265_v49  ;;  %v1270_v62 = vshrl.u32 %v1265_v49, 16 }
 0x12e   : > { %v1061_v12 = vsel %vm1054_vm10, %v1057_v1, %v1060_v13  ;;  %v1179_v55 = vshll.u32 %v1178_v41, 23  ;;  %v1294_v13 = vmul.u32 %v1292_v57, %v14426_v44  ;;  %v14521_v31 = vand.u32 31, %v14443_v29 }
 0x12f   : > { %v1062_v58 = vsel %vm1051_vm11, nan, %v1061_v12  ;;  %v1183_v59 = vcvt.s32.f32 %v1176_v14  ;;  %v14525_v6 = vsel %vm14473_vm0, 0, %v1188_v37  ;;  %v1293_v41 = vmul.u32 %v1291_v42, %v14426_v44 }
 0x130   : > { %v1180_v34 = vor.u32 4788187, %v1179_v55  ;;  %6646 = vst [vmem:[%s14173_s11 + $0x18] sm:$0xff] %v1062_v58  ;;  %v1295_v61 = vmul.u32 %v1291_v42, %v14429_v47  ;;  %v14531_v39 = vsel %vm1251_vm2, %v1254_v46, %v1256_v56  ;;  %v1271_v1 = vmul.u32 %v1269_v11, %v14426_v44 }
 0x131   : > { %v1272_v9 = vmul.u32 %v1270_v62, %v14426_v44  ;;  %v1273_v29 = vmul.u32 %v1269_v11, %v14429_v47  ;;  %v1296_v52 = vmul.u32 %v1292_v57, %v14429_v47  ;;  %v1297_v12 = vshll.u32 %v1294_v13, 16 }
 0x132   : > { %v1181_v10 = vand.u32 2147483647, %v1180_v34  ;;  %v1299_v37 = vshll.u32 %v1295_v61, 16  ;;  %v1274_v14 = vmul.u32 %v1270_v62, %v14429_v47  ;;  %v14539_v58 = vsub.s32 32, %v14521_v31 }
 0x133   : > { %v1275_v55 = vshll.u32 %v1272_v9, 16  ;;  %v1277_v53 = vshll.u32 %v1273_v29, 16  ;;  %v1298_v46 = vshrl.u32 %v1294_v13, 16  ;;  %vm1301_vm5 = vc.u32 %v1293_v41, %v1297_v12 }
 0x134   : > { %v1184_v15 = vmul.f32 %v1183_v59, %v1181_v10  ;;  %v1303_v36 = vadd.s32 %v1297_v12, %v1293_v41  ;;  %v1276_v42 = vshrl.u32 %v1272_v9, 16  ;;  %v1302_v34 = vsel %vm1301_vm5, 1, %v20073_v43 }
 0x135   : > { %vm1279_vm6 = vc.u32 %v1271_v1, %v1275_v55  ;;  %v1281_v44 = vadd.s32 %v1275_v55, %v1271_v1  ;;  %v1304_v47 = vadd.s32 %v1302_v34, %v1296_v52  ;;  %v1300_v10 = vshrl.u32 %v1295_v61, 16 }
 0x136   : > { %v1185_v63 = vxor.u32 2147483648, %v1184_v15  ;;  %v1280_v59 = vsel %vm1279_vm6, 1, %v20073_v43  ;;  %vm1305_vm7 = vc.u32 %v1303_v36, %v1299_v37  ;;  %v1207_v1 = vadd.s32 3, %v14525_v6 }
 0x137   : > { %v1282_v49 = vadd.s32 %v1280_v59, %v1274_v14  ;;  %vm1283_vm9 = vc.u32 %v1281_v44, %v1277_v53  ;;  %v1306_v11 = vsel %vm1305_vm7, 1, %v20073_v43  ;;  %v1278_v9 = vshrl.u32 %v1273_v29, 16 }
 0x138   : > { %v1186_v57 = vsel %vm1065_vm4, %v1185_v63, %v1184_v15  ;;  %v1284_v13 = vsel %vm1283_vm9, 1, %v20073_v43  ;;  %v1308_v41 = vadd.s32 %v1306_v11, %v1304_v47  ;;  %v1311_v52 = vmul.u32 %v14417_v50, %v14531_v39 }
 0x139   : > { %v1189_v56 = vsel %vm14473_vm0, %v13799_v17, %v1186_v57  ;;  %v1286_v15 = vadd.s32 %v1284_v13, %v1282_v49  ;;  %v14553_v38 = vadd.s32 %v1303_v36, %v1299_v37  ;;  %v1390_v63 = vshll.u32 %v20067_v3, %v14521_v31 }
 0x13a   : > { %v1191_v62 = vmul.f32 %v1189_v56, %v1189_v56  ;;  %v1309_v14 = vadd.s32 %v1308_v41, %v1298_v46  ;;  %v1391_v61 = vshrl.u32 %v20068_v51, %v14539_v58  ;;  %v1393_v44 = vshll.u32 %v20068_v51, %v14521_v31 }
 0x13b   : > { %v1287_v53 = vadd.s32 %v1286_v15, %v1276_v42  ;;  %v1394_v50 = vshrl.u32 %v20069_v54, %v14539_v58  ;;  %v1396_v37 = vshll.u32 %v20069_v54, %v14521_v31  ;;  %v1399_v46 = vshll.u32 %v20070_v8, %v14521_v31 }
 0x13c   : > { %v1192_v12 = vmul.f32 -0.001358992, %v1191_v62  ;;  %v1199_v55 = vmul.f32 -0.00019511016, %v1191_v62  ;;  %v1310_v57 = vadd.s32 %v1309_v14, %v1300_v10  ;;  %v1400_v36 = vshrl.u32 %v20071_v7, %v14539_v58 }
 0x13d   : > { %v14563_v39 = vadd.s32 %v1287_v53, %v1278_v9  ;;  %v1397_v49 = vshrl.u32 %v20070_v8, %v14539_v58  ;;  %v1381_v11 = vor.u32 8388608, %v14433_v4  ;;  %v1402_v13 = vshll.u32 %v20071_v7, %v14521_v31 }
 0x13e   : > { %v1193_v29 = vadd.f32 0.041655596, %v1192_v12  ;;  %v1200_v34 = vadd.f32 0.008332121, %v1199_v55  ;;  %v1314_v47 = vadd.s32 1, %v1310_v57  ;;  %v1403_v10 = vshrl.u32 %v20072_v0, %v14539_v58 }
 0x13f   : > { %vm1313_vm4 = vc.u32 %v14563_v39, %v14553_v38  ;;  %v1401_v12 = vor.u32 %v1400_v36, %v1399_v46  ;;  %v1208_v55 = vand.u32 3, %v1207_v1  ;;  %v1392_v53 = vor.u32 %v1391_v61, %v1390_v63 }
 0x140   : > { %v1194_v42 = vmul.f32 %v1193_v29, %v1191_v62  ;;  %v1201_v59 = vmul.f32 %v1200_v34, %v1191_v62  ;;  %v1315_v15 = vsel %vm1313_vm4, %v1314_v47, %v1310_v57  ;;  %v14580_v29 = vor.u32 %v1394_v50, %v1393_v44 }
 0x141   : > { %v1316_v14 = vadd.s32 %v1315_v15, %v1311_v52  ;;  %v14582_v45 = vor.u32 %v1397_v49, %v1396_v37  ;;  %vm1405_vm10 = vcmp.lt.s32.totalorder %v14460_v32, 1  ;;  %v1404_v31 = vor.u32 %v1403_v10, %v1402_v13 }
 0x142   : > { %v1195_v41 = vadd.f32 -0.4999988, %v1194_v42  ;;  %v1202_v9 = vadd.f32 -0.16666654, %v1201_v59  ;;  %vm1407_vm12 = vcmp.lt.s32.totalorder %v14460_v32, 3  ;;  %vm1408_vm13 = vcmp.lt.s32.totalorder %v14460_v32, 4 }
 0x143   : > { %v1317_v4 = vadd.s32 536870912, %v1316_v14  ;;  %vm1206_vm15 = vweird.f32 %v13799_v17  ;;  %v1414_v1 = vsel %vm1408_vm13, %v1401_v12, 920167782  ;;  %vm1213_vm0 = vcmp.eq.s32.totalorder %v1208_v55, 2 }
 0x144   : > { %v1196_v34 = vmul.f32 %v1195_v41, %v1191_v62  ;;  %v1203_v33 = vmul.f32 %v1202_v9, %v1191_v62  ;;  %vm1406_vm1 = vcmp.lt.s32.totalorder %v14460_v32, 2  ;;  %v1413_v52 = vsel %vm1405_vm10, %v1392_v53, %v14580_v29 }
 0x145   : > { %v14592_v62 = vshrl.u32 %v1317_v4, 30  ;;  %v1417_v44 = vsel %vm1405_vm10, %v14580_v29, %v14582_v45  ;;  %vm1210_vm2 = vcmp.eq.s32.totalorder %v1208_v55, 0  ;;  %v1418_v37 = vsel %vm1408_vm13, %v1404_v31, 1326507024 }
 0x146   : > { %v14587_v42 = vadd.f32 1.0, %v1196_v34  ;;  %v1204_v57 = vadd.f32 1.0, %v1203_v33  ;;  %v1415_v33 = vsel %vm1407_vm12, %v14582_v45, %v1414_v1  ;;  %v14611_v46 = vshll.u32 %v1381_v11, 8 }
 0x147   : > { %v1319_v50 = vshll.u32 %v14592_v62, 30  ;;  %vm1209_vm5 = vcmp.lt.s32.totalorder %v1208_v55, 2  ;;  %v1419_v59 = vsel %vm1407_vm12, %v1401_v12, %v1418_v37  ;;  %v1416_v49 = vsel %vm1406_vm1, %v1413_v52, %v1415_v33 }
 0x148   : > { %20096 = vst [vmem:[#allocation61_spill] sm:$0xff] %v14587_v42  ;;  %v14598_v63 = vmul.f32 %v1204_v57, %v1189_v56  ;;  %v19723_v61 = vxor.u32 2147483648, %v14587_v42  ;;  %v1420_v13 = vsel %vm1406_vm1, %v1417_v44, %v1419_v59  ;;  %v1422_v11 = vand.u32 65535, %v14611_v46 }
 0x149   : > { %v1320_v47 = vsub.s32 %v1316_v14, %v1319_v50  ;;  %v1423_v41 = vshrl.u32 %v14611_v46, 16  ;;  %v1424_v9 = vand.u32 65535, %v1420_v13  ;;  %v1446_v15 = vand.u32 65535, %v1416_v49 }
 0x14a   : > { %20097 = vst [vmem:[#allocation62_spill] sm:$0xff] %v14598_v63  ;;  %v19724_v56 = vxor.u32 2147483648, %v14598_v63  ;;  %v1215_v36 = vsel %vm1213_vm0, %v19723_v61, %v14598_v63  ;;  %v1425_v14 = vshrl.u32 %v1420_v13, 16  ;;  %v1389_v4 = vshrl.u32 %v20067_v3, %v14539_v58 }
 0x14b   : > { %vm1321_vm6 = vcmp.lt.s32.totalorder %v1320_v47, 0  ;;  %v1322_v12 = vsub.s32 0, %v1320_v47  ;;  %v1428_v31 = vmul.u32 %v1424_v9, %v1423_v41  ;;  %v1447_v57 = vshrl.u32 %v1416_v49, 16 }
 0x14c   : > { %v1212_v10 = vsel %vm1210_vm2, %v14587_v42, %v19724_v56  ;;  %v1426_v52 = vmul.u32 %v1424_v9, %v1422_v11  ;;  %v1427_v33 = vmul.u32 %v1425_v14, %v1422_v11  ;;  %v1429_v37 = vmul.u32 %v1425_v14, %v1423_v41 }
 0x14d   : > { %v1216_v55 = vsel %vm1209_vm5, %v1212_v10, %v1215_v36  ;;  %v1323_v1 = vsel %vm1321_vm6, %v1322_v12, %v1320_v47  ;;  %v1449_v50 = vmul.u32 %v1447_v57, %v1422_v11  ;;  %v1432_v36 = vshll.u32 %v1428_v31, 16 }
 0x14e   : > { %v1217_v34 = vsel %vm1206_vm15, nan, %v1216_v55  ;;  %v1324_v44 = vclz %v1323_v1  ;;  %v1430_v59 = vshll.u32 %v1427_v33, 16  ;;  %v1450_v10 = vmul.u32 %v1446_v15, %v1423_v41 }
 0x14f   : > { %6647 = vst [vmem:[%s14173_s11 + $0x20] sm:$0xff] %v1217_v34  ;;  %vm1220_vm7 = vcmp.lt.s32.totalorder %v13801_v18, 0  ;;  %v1312_v13 = vadd.s32 %v14553_v38, %v14563_v39  ;;  %v1409_v58 = vsel %vm1405_vm10, %v1389_v4, %v1392_v53  ;;  %v1431_v49 = vshrl.u32 %v1427_v33, 16 }
 0x150   : > { %v13049_v55 = vadd.s32 4294967294, %v1324_v44  ;;  %vm1434_vm9 = vc.u32 %v1426_v52, %v1430_v59  ;;  %v1436_v9 = vadd.s32 %v1430_v59, %v1426_v52  ;;  %v1448_v12 = vmul.u32 %v1446_v15, %v1422_v11 }
 0x151   : > { %v1435_v34 = vsel %vm1434_vm9, 1, %v20073_v43  ;;  %v1451_v14 = vmul.u32 %v1447_v57, %v1423_v41  ;;  %v1452_v1 = vshll.u32 %v1449_v50, 16  ;;  %v1454_v17 = vshll.u32 %v1450_v10, 16 }
 0x152   : > { %vm13050_vm4 = vcmp.lt.s32.totalorder %v13049_v55, 0  ;;  %v1437_v56 = vadd.s32 %v1435_v34, %v1429_v37  ;;  %vm1438_vm0 = vc.u32 %v1436_v9, %v1432_v36  ;;  %v1342_v53 = vsub.s32 4, %v14592_v62 }
 0x153   : > { %v1327_v61 = vsel %vm13050_vm4, 0, %v13049_v55  ;;  %v1439_v39 = vsel %vm1438_vm0, 1, %v20073_v43  ;;  %v1410_v11 = vsel %vm1408_vm13, %v14582_v45, 2102212464  ;;  %v1433_v15 = vshrl.u32 %v1428_v31, 16 }
 0x154   : > { %v1328_v42 = vsub.s32 32, %v1327_v61  ;;  %v1329_v63 = vshll.u32 %v1320_v47, %v1327_v61  ;;  %v1332_v38 = vsub.s32 4294967266, %v1327_v61  ;;  %v1441_v4 = vadd.s32 %v1439_v39, %v1437_v56 }
 0x155   : > { %vm1456_vm10 = vc.u32 %v1448_v12, %v1452_v1  ;;  %v1458_v57 = vadd.s32 %v1452_v1, %v1448_v12  ;;  %v1453_v44 = vshrl.u32 %v1449_v50, 16  ;;  %v1531_v61 = vand.u32 2139095040, %v13805_v20 }
 0x156   : > { %v1330_v52 = vshrl.u32 %v1312_v13, %v1328_v42  ;;  %v1333_v41 = vadd.s32 127, %v1332_v38  ;;  %v1442_v33 = vadd.s32 %v1441_v4, %v1431_v49  ;;  %v1457_v37 = vsel %vm1456_vm10, 1, %v20073_v43 }
 0x157   : > { %v1459_v36 = vadd.s32 %v1457_v37, %v1451_v14  ;;  %vm1460_vm2 = vc.u32 %v1458_v57, %v1454_v17  ;;  %v1343_v45 = vsel %vm1220_vm7, %v1342_v53, %v14592_v62  ;;  %v1411_v42 = vsel %vm1407_vm12, %v14580_v29, %v1410_v11 }
 0x158   : > { %v1331_v47 = vor.u32 %v1330_v52, %v1329_v63  ;;  %v1334_v59 = vshll.u32 %v1333_v41, 23  ;;  %v1461_v56 = vsel %vm1460_vm2, 1, %v20073_v43  ;;  %v1532_v31 = vshrl.u32 %v1531_v61, 23 }
 0x159   : > { %v1455_v55 = vshrl.u32 %v1450_v10, 16  ;;  %v1463_v49 = vadd.s32 %v1461_v56, %v1459_v36  ;;  %v14653_v9 = vadd.s32 %v1442_v33, %v1433_v15  ;;  %v14655_v63 = vadd.s32 %v1458_v57, %v1454_v17 }
 0x15a   : > { %v1335_v50 = vor.u32 4788187, %v1334_v59  ;;  %v1338_v13 = vcvt.s32.f32 %v1331_v47  ;;  %v13054_v12 = vadd.s32 4294967169, %v1532_v31  ;;  %v20098_v34 = vand.u32 2147483647, %v13801_v18 }
 0x15b   : > { %v1412_v29 = vsel %vm1406_vm1, %v1409_v58, %v1411_v42  ;;  %v1464_v1 = vadd.s32 %v1463_v49, %v1453_v44  ;;  %vm1468_vm12 = vc.u32 %v14653_v9, %v14655_v63  ;;  %v19733_v11 = vand.u32 2147483647, %v13805_v20 }
 0x15c   : > { %vm14659_vm13 = vcmp.le.f32.partialorder %v20098_v34, 0.7853982  ;;  %v1336_v14 = vand.u32 2147483647, %v1335_v50  ;;  %v1538_v38 = vadd.s32 1, %v13054_v12  ;;  %v1466_v53 = vmul.u32 %v14611_v46, %v1412_v29 }
 0x15d   : > { %v14667_v10 = vsel %vm14659_vm13, 0, %v1343_v45  ;;  %v1465_v17 = vadd.s32 %v1464_v1, %v1455_v55  ;;  %v1535_v44 = vand.u32 8388607, %v19733_v11  ;;  %vm1375_vm9 = vcmp.lt.s32.totalorder %v13803_v19, 0 }
 0x15e   : > { %v1339_v39 = vmul.f32 %v1338_v13, %v1336_v14  ;;  %vm1539_vm5 = vcmp.gt.s32.totalorder %v1538_v38, 0  ;;  %v1362_v32 = vadd.s32 3, %v14667_v10 }
 0x15f   : > { %v1469_v58 = vadd.s32 1, %v1465_v17  ;;  %v1540_v4 = vsel %vm1539_vm5, %v1538_v38, 0  ;;  %v1536_v34 = vor.u32 8388608, %v1535_v44 }
 0x160   : > { %v1340_v15 = vxor.u32 2147483648, %v1339_v39  ;;  %v1542_v52 = vand.u32 31, %v1540_v4  ;;  %v14687_v47 = vand.u32 3, %v1362_v32  ;;  %v14689_v59 = vshrl.u32 %v1540_v4, 5 }
 0x161   : > { %v1470_v57 = vsel %vm1468_vm12, %v1469_v58, %v1465_v17 }
 0x162   : > { %v1341_v41 = vsel %vm1220_vm7, %v1340_v15, %v1339_v39  ;;  %v1471_v33 = vadd.s32 %v1470_v57, %v1466_v53  ;;  %v14683_v37 = vsub.s32 32, %v1542_v52  ;;  %v1545_v36 = vshll.u32 %v20067_v3, %v1542_v52 }
 0x163   : > { %v14679_v46 = vsel %vm14659_vm13, %v13801_v18, %v1341_v41  ;;  %v1548_v56 = vshll.u32 %v20068_v51, %v1542_v52  ;;  %v1554_v55 = vshll.u32 %v20070_v8, %v1542_v52  ;;  %v1551_v62 = vshll.u32 %v20069_v54, %v1542_v52 }
 0x164   : > { %v1346_v61 = vmul.f32 %v14679_v46, %v14679_v46  ;;  %v1472_v45 = vadd.s32 536870912, %v1471_v33  ;;  %v1546_v42 = vshrl.u32 %v20068_v51, %v14683_v37  ;;  %v1549_v31 = vshrl.u32 %v20069_v54, %v14683_v37 }
 0x165   : > { %v1555_v49 = vshrl.u32 %v20071_v7, %v14683_v37  ;;  %v1552_v14 = vshrl.u32 %v20070_v8, %v14683_v37  ;;  %v19732_v39 = vand.u32 2147483647, %v13807_v21  ;;  %vm1368_vm1 = vcmp.eq.s32.totalorder %v14687_v47, 2 }
 0x166   : > { %v1347_v50 = vmul.f32 -0.001358992, %v1346_v61  ;;  %v1354_v13 = vmul.f32 -0.00019511016, %v1346_v61  ;;  %v1473_v12 = vshrl.u32 %v1472_v45, 30  ;;  %v14703_v38 = vor.u32 %v1546_v42, %v1545_v36 }
 0x167   : > { %v14707_v53 = vor.u32 %v1549_v31, %v1548_v56  ;;  %v1557_v15 = vshll.u32 %v20071_v7, %v1542_v52  ;;  %v1558_v32 = vshrl.u32 %v20072_v0, %v14683_v37  ;;  %v1556_v41 = vor.u32 %v1555_v49, %v1554_v55 }
 0x168   : > { %v1348_v29 = vadd.f32 0.041655596, %v1347_v50  ;;  %v1355_v1 = vadd.f32 0.008332121, %v1354_v13  ;;  %v1474_v17 = vshll.u32 %v1473_v12, 30  ;;  %vm1560_vm6 = vcmp.lt.s32.totalorder %v14689_v59, 1 }
 0x169   : > { %vm1365_vm7 = vcmp.eq.s32.totalorder %v14687_v47, 0  ;;  %v1553_v44 = vor.u32 %v1552_v14, %v1551_v62  ;;  %vm1563_vm4 = vcmp.lt.s32.totalorder %v14689_v59, 4  ;;  %v14718_v36 = vshll.u32 %v1536_v34, 8 }
 0x16a   : > { %v1349_v58 = vmul.f32 %v1348_v29, %v1346_v61  ;;  %v1356_v4 = vmul.f32 %v1355_v1, %v1346_v61  ;;  %v14715_v57 = vsub.s32 %v1471_v33, %v1474_v17  ;;  %vm1364_vm0 = vcmp.lt.s32.totalorder %v14687_v47, 2 }
 0x16b   : > { %vm1561_vm10 = vcmp.lt.s32.totalorder %v14689_v59, 2  ;;  %vm1562_vm2 = vcmp.lt.s32.totalorder %v14689_v59, 3  ;;  %vm1361_vm13 = vweird.f32 %v13801_v18  ;;  %v1559_v42 = vor.u32 %v1558_v32, %v1557_v15 }
 0x16c   : > { %v1350_v52 = vadd.f32 -0.4999988, %v1349_v58  ;;  %v1357_v45 = vadd.f32 -0.16666654, %v1356_v4  ;;  %vm1476_vm12 = vcmp.lt.s32.totalorder %v14715_v57, 0  ;;  %v1477_v33 = vsub.s32 0, %v14715_v57 }
 0x16d   : > { %v1568_v56 = vsel %vm1560_vm6, %v14703_v38, %v14707_v53  ;;  %v20101_v13 = vand.u32 2147483647, %v13803_v19  ;;  %v1467_v49 = vadd.s32 %v14655_v63, %v14653_v9  ;;  %v1569_v34 = vsel %vm1563_vm4, %v1556_v41, 920167782 }
 0x16e   : > { %v1351_v31 = vmul.f32 %v1350_v52, %v1346_v61  ;;  %v1358_v50 = vmul.f32 %v1357_v45, %v1346_v61  ;;  %v1478_v62 = vsel %vm1476_vm12, %v1477_v33, %v14715_v57  ;;  %v1497_v14 = vsub.s32 4, %v1473_v12 }
 0x16f   : > { %vm14732_vm5 = vcmp.le.f32.partialorder %v20101_v13, 0.7853982  ;;  %v1570_v29 = vsel %vm1562_vm2, %v1553_v44, %v1569_v34  ;;  %v1686_v61 = vand.u32 2139095040, %v13807_v21  ;;  %v1479_v15 = vclz %v1478_v62 }
 0x170   : > { %v14744_v1 = vadd.f32 1.0, %v1351_v31  ;;  %v1359_v17 = vadd.f32 1.0, %v1358_v50  ;;  %v1571_v32 = vsel %vm1561_vm10, %v1568_v56, %v1570_v29  ;;  %v1573_v9 = vsel %vm1563_vm4, %v1559_v42, 1326507024 }
 0x171   : > { %v1577_v63 = vand.u32 65535, %v14718_v36  ;;  %v1602_v58 = vshrl.u32 %v1571_v32, 16  ;;  %v14753_v4 = vand.u32 8388607, %v19732_v39  ;;  %v13052_v33 = vadd.s32 4294967294, %v1479_v15 }
 0x172   : > { %20104 = vst [vmem:[#allocation63_spill] sm:$0xff] %v14744_v1  ;;  %v14756_v52 = vmul.f32 %v1359_v17, %v14679_v46  ;;  %v19730_v45 = vxor.u32 2147483648, %v14744_v1  ;;  %v1572_v56 = vsel %vm1560_vm6, %v14707_v53, %v1553_v44  ;;  %v1544_v42 = vshrl.u32 %v20067_v3, %v14683_v37 }
 0x173   : > { %v1574_v31 = vsel %vm1562_vm2, %v1556_v41, %v1573_v9  ;;  %v1578_v50 = vshrl.u32 %v14718_v36, 16  ;;  %v1687_v13 = vshrl.u32 %v1686_v61, 23  ;;  %vm13053_vm12 = vcmp.lt.s32.totalorder %v13052_v33, 0 }
 0x174   : > { %20105 = vst [vmem:[#allocation64_spill] sm:$0xff] %v14756_v52  ;;  %v19731_v34 = vxor.u32 2147483648, %v14756_v52  ;;  %v1370_v46 = vsel %vm1368_vm1, %v19730_v45, %v14756_v52  ;;  %v1498_v62 = vsel %vm1375_vm9, %v1497_v14, %v1473_v12  ;;  %v1482_v29 = vsel %vm13053_vm12, 0, %v13052_v33 }
 0x175   : > { %v1575_v37 = vsel %vm1561_vm10, %v1572_v56, %v1574_v31  ;;  %v1601_v41 = vand.u32 65535, %v1571_v32  ;;  %v1604_v17 = vmul.u32 %v1602_v58, %v1577_v63  ;;  %v1483_v15 = vsub.s32 32, %v1482_v29 }
 0x176   : > { %v1367_v61 = vsel %vm1365_vm7, %v14744_v1, %v19731_v34  ;;  %v1484_v9 = vshll.u32 %v14715_v57, %v1482_v29  ;;  %v1487_v45 = vsub.s32 4294967266, %v1482_v29  ;;  %v14787_v14 = vsel %vm14732_vm5, 0, %v1498_v62 }
 0x177   : > { %v1371_v12 = vsel %vm1364_vm0, %v1367_v61, %v1370_v46  ;;  %v1565_v32 = vsel %vm1563_vm4, %v1553_v44, 2102212464  ;;  %v13057_v33 = vadd.s32 4294967169, %v1687_v13  ;;  %v1485_v31 = vshrl.u32 %v1467_v49, %v1483_v15 }
 0x178   : > { %v1372_v56 = vsel %vm1361_vm13, nan, %v1371_v12  ;;  %v1488_v34 = vadd.s32 127, %v1487_v45  ;;  %v1579_v39 = vand.u32 65535, %v1575_v37  ;;  %v1580_v11 = vshrl.u32 %v1575_v37, 16 }
 0x179   : > { %v1603_v57 = vmul.u32 %v1601_v41, %v1577_v63  ;;  %v1605_v29 = vmul.u32 %v1601_v41, %v1578_v50  ;;  %v1607_v1 = vshll.u32 %v1604_v17, 16  ;;  %6648 = vst [vmem:[%s14173_s11 + $0x28] sm:$0xff] %v1372_v56  ;;  %v1486_v47 = vor.u32 %v1485_v31, %v1484_v9 }
 0x17a   : > { %v1489_v46 = vshll.u32 %v1488_v34, 23  ;;  %v1564_v62 = vsel %vm1560_vm6, %v1544_v42, %v14703_v38  ;;  %v1583_v61 = vmul.u32 %v1579_v39, %v1578_v50  ;;  %v1566_v44 = vsel %vm1562_vm2, %v14707_v53, %v1565_v32 }
 0x17b   : > { %v1581_v13 = vmul.u32 %v1579_v39, %v1577_v63  ;;  %v1582_v49 = vmul.u32 %v1580_v11, %v1577_v63  ;;  %v1606_v45 = vmul.u32 %v1602_v58, %v1578_v50  ;;  %v1493_v37 = vcvt.s32.f32 %v1486_v47 }
 0x17c   : > { %v1490_v15 = vor.u32 4788187, %v1489_v46  ;;  %v1584_v12 = vmul.u32 %v1580_v11, %v1578_v50  ;;  %v1609_v41 = vshll.u32 %v1605_v29, 16  ;;  %v1587_v56 = vshll.u32 %v1583_v61, 16 }
 0x17d   : > { %v1585_v18 = vshll.u32 %v1582_v49, 16  ;;  %v1608_v9 = vshrl.u32 %v1604_v17, 16  ;;  %vm1611_vm1 = vc.u32 %v1603_v57, %v1607_v1  ;;  %v1613_v38 = vadd.s32 %v1607_v1, %v1603_v57 }
 0x17e   : > { %v1491_v34 = vand.u32 2147483647, %v1490_v15  ;;  %v1612_v31 = vsel %vm1611_vm1, 1, %v20073_v43  ;;  %v1693_v42 = vadd.s32 1, %v13057_v33  ;;  %v1586_v52 = vshrl.u32 %v1582_v49, 16 }
 0x17f   : > { %vm1589_vm6 = vc.u32 %v1581_v13, %v1585_v18  ;;  %v1591_v16 = vadd.s32 %v1585_v18, %v1581_v13  ;;  %v1614_v53 = vadd.s32 %v1612_v31, %v1606_v45  ;;  %v1610_v58 = vshrl.u32 %v1605_v29, 16 }
 0x180   : > { %v1494_v39 = vmul.f32 %v1493_v37, %v1491_v34  ;;  %v1590_v63 = vsel %vm1589_vm6, 1, %v20073_v43  ;;  %vm1615_vm7 = vc.u32 %v1613_v38, %v1609_v41  ;;  %vm1694_vm0 = vcmp.gt.s32.totalorder %v1693_v42, 0 }
 0x181   : > { %v1592_v11 = vadd.s32 %v1590_v63, %v1584_v12  ;;  %vm1593_vm4 = vc.u32 %v1591_v16, %v1587_v56  ;;  %v1616_v50 = vsel %vm1615_vm7, 1, %v20073_v43  ;;  %v1695_v1 = vsel %vm1694_vm0, %v1693_v42, 0 }
 0x182   : > { %v1495_v17 = vxor.u32 2147483648, %v1494_v39  ;;  %v1594_v32 = vsel %vm1593_vm4, 1, %v20073_v43  ;;  %v1618_v47 = vadd.s32 %v1616_v50, %v1614_v53  ;;  %v1567_v33 = vsel %vm1561_vm10, %v1564_v62, %v1566_v44 }
 0x183   : > { %v1588_v18 = vshrl.u32 %v1583_v61, 16  ;;  %v1596_v57 = vadd.s32 %v1594_v32, %v1592_v11  ;;  %v1697_v46 = vand.u32 31, %v1695_v1  ;;  %v1517_v13 = vadd.s32 3, %v14787_v14 }
 0x184   : > { %v1496_v29 = vsel %vm1375_vm9, %v1495_v17, %v1494_v39  ;;  %v1619_v16 = vadd.s32 %v1618_v47, %v1608_v9  ;;  %v14812_v15 = vadd.s32 %v1613_v38, %v1609_v41  ;;  %v1621_v61 = vmul.u32 %v14718_v36, %v1567_v33 }
 0x185   : > { %v1499_v49 = vsel %vm14732_vm5, %v13803_v19, %v1496_v29  ;;  %v1597_v45 = vadd.s32 %v1596_v57, %v1586_v52  ;;  %v14814_v37 = vsub.s32 32, %v1697_v46  ;;  %v1691_v44 = vor.u32 8388608, %v14753_v4 }
 0x186   : > { %v1501_v59 = vmul.f32 %v1499_v49, %v1499_v49  ;;  %v1620_v62 = vadd.s32 %v1619_v16, %v1610_v58  ;;  %v1700_v56 = vshll.u32 %v20067_v3, %v1697_v46  ;;  %v1703_v55 = vshll.u32 %v20068_v51, %v1697_v46 }
 0x187   : > { %v14818_v12 = vadd.s32 %v1597_v45, %v1588_v18  ;;  %v1701_v9 = vshrl.u32 %v20068_v51, %v14814_v37  ;;  %v1704_v31 = vshrl.u32 %v20069_v54, %v14814_v37  ;;  %v14826_v38 = vand.u32 3, %v1517_v13 }
 0x188   : > { %v1502_v52 = vmul.f32 -0.001358992, %v1501_v59  ;;  %v1509_v41 = vmul.f32 -0.00019511016, %v1501_v59  ;;  %v1624_v34 = vadd.s32 1, %v1620_v62  ;;  %v14830_v36 = vshrl.u32 %v1695_v1, 5 }
 0x189   : > { %vm1623_vm9 = vc.u32 %v14818_v12, %v14812_v15  ;;  %v1706_v4 = vshll.u32 %v20069_v54, %v1697_v46  ;;  %v1707_v63 = vshrl.u32 %v20070_v8, %v14814_v37  ;;  %v14835_v11 = vor.u32 %v1701_v9, %v1700_v56 }
 0x18a   : > { %v1503_v42 = vadd.f32 0.041655596, %v1502_v52  ;;  %v1510_v53 = vadd.f32 0.008332121, %v1509_v41  ;;  %v1625_v39 = vsel %vm1623_vm9, %v1624_v34, %v1620_v62  ;;  %v1709_v50 = vshll.u32 %v20070_v8, %v1697_v46 }
 0x18b   : > { %v1626_v58 = vadd.s32 %v1625_v39, %v1621_v61  ;;  %v1710_v17 = vshrl.u32 %v20071_v7, %v14814_v37  ;;  %v14840_v1 = vor.u32 %v1704_v31, %v1703_v55  ;;  %v1712_v33 = vshll.u32 %v20071_v7, %v1697_v46 }
 0x18c   : > { %v1504_v32 = vmul.f32 %v1503_v42, %v1501_v59  ;;  %v1511_v47 = vmul.f32 %v1510_v53, %v1501_v59  ;;  %v1713_v29 = vshrl.u32 %v20072_v0, %v14814_v37  ;;  %vm1715_vm10 = vcmp.lt.s32.totalorder %v14830_v36, 1 }
 0x18d   : > { %v1627_v18 = vadd.s32 536870912, %v1626_v58  ;;  %v1711_v57 = vor.u32 %v1710_v17, %v1709_v50  ;;  %v14846_v45 = vor.u32 %v1707_v63, %v1706_v4  ;;  %v14848_v62 = vshll.u32 %v1691_v44, 8 }
 0x18e   : > { %v1505_v13 = vadd.f32 -0.4999988, %v1504_v32  ;;  %v1512_v16 = vadd.f32 -0.16666654, %v1511_v47  ;;  %vm1716_vm2 = vcmp.lt.s32.totalorder %v14830_v36, 2  ;;  %vm1717_vm5 = vcmp.lt.s32.totalorder %v14830_v36, 3 }
 0x18f   : > { %v14850_v61 = vshrl.u32 %v1627_v18, 30  ;;  %vm1718_vm12 = vcmp.lt.s32.totalorder %v14830_v36, 4  ;;  %v1714_v9 = vor.u32 %v1713_v29, %v1712_v33  ;;  %v1723_v55 = vsel %vm1715_vm10, %v14835_v11, %v14840_v1 }
 0x190   : > { %v1506_v46 = vmul.f32 %v1505_v13, %v1501_v59  ;;  %v1513_v56 = vmul.f32 %v1512_v16, %v1501_v59  ;;  %vm1519_vm1 = vcmp.lt.s32.totalorder %v14826_v38, 2  ;;  %v1724_v52 = vsel %vm1718_vm12, %v1711_v57, 920167782 }
 0x191   : > { %v1629_v44 = vshll.u32 %v14850_v61, 30  ;;  %vm1520_vm6 = vcmp.eq.s32.totalorder %v14826_v38, 0  ;;  %v1725_v59 = vsel %vm1717_vm5, %v14846_v45, %v1724_v52  ;;  %vm1523_vm7 = vcmp.eq.s32.totalorder %v14826_v38, 2 }
 0x192   : > { %v14863_v41 = vadd.f32 1.0, %v1506_v46  ;;  %v1514_v34 = vadd.f32 1.0, %v1513_v56  ;;  %v1726_v4 = vsel %vm1716_vm2, %v1723_v55, %v1725_v59  ;;  %v1727_v42 = vsel %vm1715_vm10, %v14840_v1, %v14846_v45 }
 0x193   : > { %v1630_v31 = vsub.s32 %v1626_v58, %v1629_v44  ;;  %v1728_v63 = vsel %vm1718_vm12, %v1714_v9, 1326507024  ;;  %v1732_v50 = vand.u32 65535, %v14848_v62  ;;  %v1733_v32 = vshrl.u32 %v14848_v62, 16 }
 0x194   : > { %20106 = vst [vmem:[#allocation65_spill] sm:$0xff] %v14863_v41  ;;  %v14876_v53 = vmul.f32 %v1514_v34, %v1499_v49  ;;  %v19740_v39 = vxor.u32 2147483648, %v14863_v41  ;;  %v1729_v58 = vsel %vm1717_vm5, %v1711_v57, %v1728_v63  ;;  %v1757_v18 = vshrl.u32 %v1726_v4, 16 }
 0x195   : > { %vm1631_vm4 = vcmp.lt.s32.totalorder %v1630_v31, 0  ;;  %v1632_v17 = vsub.s32 0, %v1630_v31  ;;  %v1730_v33 = vsel %vm1716_vm2, %v1727_v42, %v1729_v58  ;;  %vm19752_vm0 = vweird.f32 %v13803_v19 }
 0x196   : > { %v19741_v47 = vxor.u32 2147483648, %v14876_v53  ;;  %v1525_v49 = vsel %vm1523_vm7, %v19740_v39, %v14876_v53  ;;  %v1734_v13 = vand.u32 65535, %v1730_v33  ;;  %v1735_v16 = vshrl.u32 %v1730_v33, 16 }
 0x197   : > { %v1633_v29 = vsel %vm1631_vm4, %v1632_v17, %v1630_v31  ;;  %v1756_v56 = vand.u32 65535, %v1726_v4  ;;  %v14897_v9 = vmul.u32 %v1757_v18, %v1732_v50  ;;  %v1622_v63 = vadd.s32 %v14812_v15, %v14818_v12 }
 0x198   : > { %v1522_v57 = vsel %vm1520_vm6, %v14863_v41, %v19741_v47  ;;  %v1634_v46 = vclz %v1633_v29  ;;  %v1736_v44 = vmul.u32 %v1734_v13, %v1732_v50  ;;  %v1737_v52 = vmul.u32 %v1735_v16, %v1732_v50 }
 0x199   : > { %v1526_v55 = vsel %vm1519_vm1, %v1522_v57, %v1525_v49  ;;  %v1738_v34 = vmul.u32 %v1734_v13, %v1733_v32  ;;  %v1739_v17 = vmul.u32 %v1735_v16, %v1733_v32  ;;  %v1758_v33 = vmul.u32 %v1756_v56, %v1732_v50 }
 0x19a   : > { %v1527_v59 = vsel %vm19752_vm0, nan, %v1526_v55  ;;  %v13055_v42 = vadd.s32 4294967294, %v1634_v46  ;;  %v1740_v58 = vshll.u32 %v1737_v52, 16  ;;  %v1760_v29 = vmul.u32 %v1756_v56, %v1733_v32 }
 0x19b   : > { %6649 = vst [vmem:[%s14173_s11 + $0x30] sm:$0xff] %v1527_v59  ;;  %v1742_v4 = vshll.u32 %v1738_v34, 16  ;;  %v1762_v49 = vshll.u32 %v14897_v9, 16  ;;  %vm1530_vm1 = vcmp.lt.s32.totalorder %v13805_v20, 0  ;;  %v1699_v15 = vshrl.u32 %v20067_v3, %v14814_v37 }
 0x19c   : > { %vm13056_vm9 = vcmp.lt.s32.totalorder %v13055_v42, 0  ;;  %vm1744_vm6 = vc.u32 %v1736_v44, %v1740_v58  ;;  %v1746_v38 = vadd.s32 %v1740_v58, %v1736_v44  ;;  %v1761_v16 = vmul.u32 %v1757_v18, %v1733_v32 }
 0x19d   : > { %v1637_v39 = vsel %vm13056_vm9, 0, %v13055_v42  ;;  %v1745_v46 = vsel %vm1744_vm6, 1, %v20073_v43  ;;  %v1741_v56 = vshrl.u32 %v1737_v52, 16  ;;  %v1652_v44 = vsub.s32 4, %v14850_v61 }
 0x19e   : > { %v1638_v13 = vsub.s32 32, %v1637_v39  ;;  %v1639_v57 = vshll.u32 %v1630_v31, %v1637_v39  ;;  %v1642_v47 = vsub.s32 4294967266, %v1637_v39  ;;  %v1747_v12 = vadd.s32 %v1745_v46, %v1739_v17 }
 0x19f   : > { %vm1748_vm7 = vc.u32 %v1746_v38, %v1742_v4  ;;  %v1764_v42 = vshll.u32 %v1760_v29, 16  ;;  %vm1766_vm4 = vc.u32 %v1758_v33, %v1762_v49  ;;  %v1720_v37 = vsel %vm1718_vm12, %v14846_v45, 2102212464 }
 0x1a0   : > { %v1640_v55 = vshrl.u32 %v1622_v63, %v1638_v13  ;;  %v1643_v50 = vadd.s32 127, %v1642_v47  ;;  %v1749_v59 = vsel %vm1748_vm7, 1, %v20073_v43  ;;  %v1767_v19 = vsel %vm1766_vm4, 1, %v20073_v43 }
 0x1a1   : > { %v1751_v58 = vadd.s32 %v1749_v59, %v1747_v12  ;;  %v1768_v32 = vadd.s32 %v1762_v49, %v1758_v33  ;;  %v1769_v18 = vadd.s32 %v1767_v19, %v1761_v16  ;;  %v1841_v47 = vand.u32 2139095040, %v13809_v60 }
 0x1a2   : > { %v1641_v31 = vor.u32 %v1640_v55, %v1639_v57  ;;  %v1644_v39 = vshll.u32 %v1643_v50, 23  ;;  %v1743_v17 = vshrl.u32 %v1738_v34, 16  ;;  %v1653_v38 = vsel %vm1530_vm1, %v1652_v44, %v14850_v61 }
 0x1a3   : > { %v1752_v4 = vadd.s32 %v1751_v58, %v1741_v56  ;;  %v1763_v13 = vshrl.u32 %v14897_v9, 16  ;;  %vm1770_vm9 = vc.u32 %v1768_v32, %v1764_v42  ;;  %v1842_v57 = vshrl.u32 %v1841_v47, 23 }
 0x1a4   : > { %v1645_v52 = vor.u32 4788187, %v1644_v39  ;;  %v1648_v63 = vcvt.s32.f32 %v1641_v31  ;;  %v1719_v45 = vsel %vm1715_vm10, %v1699_v15, %v14835_v11  ;;  %v1721_v19 = vsel %vm1717_vm5, %v14840_v1, %v1720_v37 }
 0x1a5   : > { %v1771_v34 = vsel %vm1770_vm9, 1, %v20073_v43  ;;  %v20107_v33 = vand.u32 2147483647, %v13805_v20  ;;  %v1765_v61 = vshrl.u32 %v1760_v29, 16  ;;  %v13060_v12 = vadd.s32 4294967169, %v1842_v57 }
 0x1a6   : > { %v1646_v46 = vand.u32 2147483647, %v1645_v52  ;;  %v1773_v9 = vadd.s32 %v1771_v34, %v1769_v18  ;;  %v14939_v11 = vadd.s32 %v1752_v4, %v1743_v17  ;;  %v14941_v15 = vadd.s32 %v1768_v32, %v1764_v42 }
 0x1a7   : > { %vm14931_vm12 = vcmp.le.f32.partialorder %v20107_v33, 0.7853982  ;;  %v1722_v1 = vsel %vm1716_vm2, %v1719_v45, %v1721_v19  ;;  %v1848_v56 = vadd.s32 1, %v13060_v12  ;;  %v19743_v31 = vand.u32 2147483647, %v13809_v60 }
 0x1a8   : > { %v1649_v16 = vmul.f32 %v1648_v63, %v1646_v46  ;;  %v14937_v55 = vsel %vm14931_vm12, 0, %v1653_v38  ;;  %v1774_v50 = vadd.s32 %v1773_v9, %v1763_v13  ;;  %v1776_v58 = vmul.u32 %v14848_v62, %v1722_v1 }
 0x1a9   : > { %v1672_v59 = vadd.s32 3, %v14937_v55  ;;  %vm1849_vm10 = vcmp.gt.s32.totalorder %v1848_v56, 0  ;;  %vm1778_vm5 = vc.u32 %v14939_v11, %v14941_v15  ;;  %v1845_v62 = vand.u32 8388607, %v19743_v31 }
 0x1aa   : > { %v1650_v44 = vxor.u32 2147483648, %v1649_v16  ;;  %v1775_v29 = vadd.s32 %v1774_v50, %v1765_v61  ;;  %v1850_v42 = vsel %vm1849_vm10, %v1848_v56, 0  ;;  %vm19751_vm7 = vweird.f32 %v13805_v20 }
 0x1ab   : > { %v1852_v32 = vand.u32 31, %v1850_v42  ;;  %v14955_v47 = vand.u32 3, %v1672_v59  ;;  %v14961_v13 = vshrl.u32 %v1850_v42, 5  ;;  %v1846_v59 = vor.u32 8388608, %v1845_v62 }
 0x1ac   : > { %v1651_v39 = vsel %vm1530_vm1, %v1650_v44, %v1649_v16  ;;  %v1779_v37 = vadd.s32 1, %v1775_v29  ;;  %vm1840_vm0 = vcmp.lt.s32.totalorder %v13809_v60, 0 }
 0x1ad   : > { %v1654_v36 = vsel %vm14931_vm12, %v13805_v20, %v1651_v39  ;;  %v14957_v63 = vsub.s32 32, %v1852_v32  ;;  %v1855_v57 = vshll.u32 %v20067_v3, %v1852_v32  ;;  %v1858_v46 = vshll.u32 %v20068_v51, %v1852_v32 }
 0x1ae   : > { %v1656_v18 = vmul.f32 %v1654_v36, %v1654_v36  ;;  %v1780_v52 = vsel %vm1778_vm5, %v1779_v37, %v1775_v29  ;;  %vm1678_vm2 = vcmp.eq.s32.totalorder %v14955_v47, 2  ;;  %v1861_v9 = vshll.u32 %v20069_v54, %v1852_v32 }
 0x1af   : > { %v1781_v38 = vadd.s32 %v1780_v52, %v1776_v58  ;;  %v1856_v49 = vshrl.u32 %v20068_v51, %v14957_v63  ;;  %v1859_v61 = vshrl.u32 %v20069_v54, %v14957_v63  ;;  %v1862_v12 = vshrl.u32 %v20070_v8, %v14957_v63 }
 0x1b0   : > { %v1657_v17 = vmul.f32 -0.001358992, %v1656_v18  ;;  %v1664_v4 = vmul.f32 -0.00019511016, %v1656_v18  ;;  %v1864_v16 = vshll.u32 %v20070_v8, %v1852_v32  ;;  %v1865_v44 = vshrl.u32 %v20071_v7, %v14957_v63 }
 0x1b1   : > { %v1782_v33 = vadd.s32 536870912, %v1781_v38  ;;  %vm1675_vm6 = vcmp.eq.s32.totalorder %v14955_v47, 0  ;;  %v1867_v29 = vshll.u32 %v20071_v7, %v1852_v32  ;;  %v1868_v39 = vshrl.u32 %v20072_v0, %v14957_v63 }
 0x1b2   : > { %v1658_v19 = vadd.f32 0.041655596, %v1657_v17  ;;  %v1665_v34 = vadd.f32 0.008332121, %v1664_v4  ;;  %v1996_v58 = vand.u32 2139095040, %v13811_v22  ;;  %vm1674_vm1 = vcmp.lt.s32.totalorder %v14955_v47, 2 }
 0x1b3   : > { %v14975_v56 = vshrl.u32 %v1782_v33, 30  ;;  %v1857_v17 = vor.u32 %v1856_v49, %v1855_v57  ;;  %v14987_v4 = vor.u32 %v1859_v61, %v1858_v46  ;;  %v1866_v62 = vor.u32 %v1865_v44, %v1864_v16 }
 0x1b4   : > { %v1659_v1 = vmul.f32 %v1658_v19, %v1656_v18  ;;  %v1666_v50 = vmul.f32 %v1665_v34, %v1656_v18  ;;  %v1863_v19 = vor.u32 %v1862_v12, %v1861_v9  ;;  %v1869_v34 = vor.u32 %v1868_v39, %v1867_v29 }
 0x1b5   : > { %v1784_v52 = vshll.u32 %v14975_v56, 30  ;;  %vm1870_vm4 = vcmp.lt.s32.totalorder %v14961_v13, 1  ;;  %vm1871_vm9 = vcmp.lt.s32.totalorder %v14961_v13, 2  ;;  %vm1872_vm12 = vcmp.lt.s32.totalorder %v14961_v13, 3 }
 0x1b6   : > { %v1660_v42 = vadd.f32 -0.4999988, %v1659_v1  ;;  %v1667_v37 = vadd.f32 -0.16666654, %v1666_v50  ;;  %vm1873_vm10 = vcmp.lt.s32.totalorder %v14961_v13, 4  ;;  %v14993_v1 = vshll.u32 %v1846_v59, 8 }
 0x1b7   : > { %v1785_v31 = vsub.s32 %v1781_v38, %v1784_v52  ;;  %v1879_v38 = vsel %vm1873_vm10, %v1866_v62, 920167782  ;;  %v1882_v61 = vsel %vm1870_vm4, %v14987_v4, %v1863_v19  ;;  %v1883_v9 = vsel %vm1873_vm10, %v1869_v34, 1326507024 }
 0x1b8   : > { %v1661_v32 = vmul.f32 %v1660_v42, %v1656_v18  ;;  %v1668_v33 = vmul.f32 %v1667_v37, %v1656_v18  ;;  %v1878_v18 = vsel %vm1870_vm4, %v1857_v17, %v14987_v4  ;;  %v1997_v44 = vshrl.u32 %v1996_v58, 23 }
 0x1b9   : > { %vm1786_vm5 = vcmp.lt.s32.totalorder %v1785_v31, 0  ;;  %v1787_v49 = vsub.s32 0, %v1785_v31  ;;  %v1880_v29 = vsel %vm1872_vm12, %v1863_v19, %v1879_v38  ;;  %v1884_v39 = vsel %vm1872_vm12, %v1866_v62, %v1883_v9 }
 0x1ba   : > { %v14995_v57 = vadd.f32 1.0, %v1661_v32  ;;  %v1669_v46 = vadd.f32 1.0, %v1668_v33  ;;  %v1887_v42 = vand.u32 65535, %v14993_v1  ;;  %v1881_v58 = vsel %vm1871_vm9, %v1878_v18, %v1880_v29 }
 0x1bb   : > { %v1788_v50 = vsel %vm1786_vm5, %v1787_v49, %v1785_v31  ;;  %v1885_v52 = vsel %vm1871_vm9, %v1882_v61, %v1884_v39  ;;  %v1888_v32 = vshrl.u32 %v14993_v1, 16  ;;  %v1777_v49 = vadd.s32 %v14941_v15, %v14939_v11 }
 0x1bc   : > { %20110 = vst [vmem:[#allocation66_spill] sm:$0xff] %v14995_v57  ;;  %v15007_v12 = vmul.f32 %v1669_v46, %v1654_v36  ;;  %v19744_v16 = vxor.u32 2147483648, %v14995_v57  ;;  %v1789_v59 = vclz %v1788_v50  ;;  %v1889_v62 = vand.u32 65535, %v1885_v52 }
 0x1bd   : > { %v1890_v33 = vshrl.u32 %v1885_v52, 16  ;;  %v1854_v18 = vshrl.u32 %v20067_v3, %v14957_v63  ;;  %v13063_v38 = vadd.s32 4294967169, %v1997_v44  ;;  %v1911_v9 = vand.u32 65535, %v1881_v58 }
 0x1be   : > { %20111 = vst [vmem:[#allocation67_spill] sm:$0xff] %v15007_v12  ;;  %v19745_v37 = vxor.u32 2147483648, %v15007_v12  ;;  %v1680_v36 = vsel %vm1678_vm2, %v19744_v16, %v15007_v12  ;;  %v13058_v34 = vadd.s32 4294967294, %v1789_v59  ;;  %v1912_v50 = vshrl.u32 %v1881_v58, 16 }
 0x1bf   : > { %v1891_v39 = vmul.u32 %v1889_v62, %v1887_v42  ;;  %v1892_v52 = vmul.u32 %v1890_v33, %v1887_v42  ;;  %v1807_v63 = vsub.s32 4, %v14975_v56  ;;  %v1874_v47 = vsel %vm1870_vm4, %v1854_v18, %v1857_v17 }
 0x1c0   : > { %v1677_v46 = vsel %vm1675_vm6, %v14995_v57, %v19745_v37  ;;  %vm13059_vm2 = vcmp.lt.s32.totalorder %v13058_v34, 0  ;;  %vm1685_vm6 = vcmp.lt.s32.totalorder %v13807_v21, 0  ;;  %v1893_v37 = vmul.u32 %v1889_v62, %v1888_v32 }
 0x1c1   : > { %v1681_v61 = vsel %vm1674_vm1, %v1677_v46, %v1680_v36  ;;  %v1792_v29 = vsel %vm13059_vm2, 0, %v13058_v34  ;;  %v1875_v44 = vsel %vm1873_vm10, %v1863_v19, 2102212464  ;;  %v2003_v36 = vadd.s32 1, %v13063_v38 }
 0x1c2   : > { %v1682_v59 = vsel %vm19751_vm7, nan, %v1681_v61  ;;  %v1793_v11 = vsub.s32 32, %v1792_v29  ;;  %v1794_v15 = vshll.u32 %v1785_v31, %v1792_v29  ;;  %v1797_v16 = vsub.s32 4294967266, %v1792_v29 }
 0x1c3   : > { %6650 = vst [vmem:[%s14173_s11 + $0x38] sm:$0xff] %v1682_v59  ;;  %v1894_v46 = vmul.u32 %v1890_v33, %v1888_v32  ;;  %v1895_v61 = vshll.u32 %v1892_v52, 16  ;;  %v1896_v45 = vshrl.u32 %v1892_v52, 16  ;;  %v1897_v20 = vshll.u32 %v1893_v37, 16 }
 0x1c4   : > { %v1795_v58 = vshrl.u32 %v1777_v49, %v1793_v11  ;;  %v1798_v34 = vadd.s32 127, %v1797_v16  ;;  %v1913_v57 = vmul.u32 %v1911_v9, %v1887_v42  ;;  %v1914_v31 = vmul.u32 %v1912_v50, %v1887_v42 }
 0x1c5   : > { %v20112_v62 = vand.u32 2147483647, %v13807_v21  ;;  %vm1899_vm4 = vc.u32 %v1891_v39, %v1895_v61  ;;  %v1901_v18 = vadd.s32 %v1895_v61, %v1891_v39  ;;  %v1915_v49 = vmul.u32 %v1911_v9, %v1888_v32 }
 0x1c6   : > { %v1796_v29 = vor.u32 %v1795_v58, %v1794_v15  ;;  %v1799_v17 = vshll.u32 %v1798_v34, 23  ;;  %v1900_v19 = vsel %vm1899_vm4, 1, %v20073_v43  ;;  %v1916_v16 = vmul.u32 %v1912_v50, %v1888_v32 }
 0x1c7   : > { %vm15048_vm1 = vcmp.le.f32.partialorder %v20112_v62, 0.7853982  ;;  %v1917_v33 = vshll.u32 %v1914_v31, 16  ;;  %v1902_v11 = vadd.s32 %v1900_v19, %v1894_v46  ;;  %vm1903_vm10 = vc.u32 %v1901_v18, %v1897_v20 }
 0x1c8   : > { %v1800_v38 = vor.u32 4788187, %v1799_v17  ;;  %v1803_v52 = vcvt.s32.f32 %v1796_v29  ;;  %v1876_v42 = vsel %vm1872_vm12, %v14987_v4, %v1875_v44  ;;  %v1898_v62 = vshrl.u32 %v1893_v37, 16 }
 0x1c9   : > { %v1904_v12 = vsel %vm1903_vm10, 1, %v20073_v43  ;;  %v1919_v15 = vshll.u32 %v1915_v49, 16  ;;  %vm1921_vm5 = vc.u32 %v1913_v57, %v1917_v33  ;;  %v1923_v39 = vadd.s32 %v1917_v33, %v1913_v57 }
 0x1ca   : > { %v1801_v58 = vand.u32 2147483647, %v1800_v38  ;;  %v1906_v34 = vadd.s32 %v1904_v12, %v1902_v11  ;;  %v1808_v32 = vsel %vm1685_vm6, %v1807_v63, %v14975_v56  ;;  %v1918_v9 = vshrl.u32 %v1914_v31, 16 }
 0x1cb   : > { %v1922_v50 = vsel %vm1921_vm5, 1, %v20073_v43  ;;  %vm2004_vm2 = vcmp.gt.s32.totalorder %v2003_v36, 0  ;;  %vm1925_vm12 = vc.u32 %v1923_v39, %v1919_v15  ;;  %v1877_v4 = vsel %vm1871_vm9, %v1874_v47, %v1876_v42 }
 0x1cc   : > { %v1804_v20 = vmul.f32 %v1803_v52, %v1801_v58  ;;  %v1907_v46 = vadd.s32 %v1906_v34, %v1896_v45  ;;  %v1924_v61 = vadd.s32 %v1922_v50, %v1916_v16  ;;  %v1926_v37 = vsel %vm1925_vm12, 1, %v20073_v43 }
 0x1cd   : > { %v15064_v12 = vadd.s32 %v1923_v39, %v1919_v15  ;;  %v2005_v57 = vsel %vm2004_vm2, %v2003_v36, 0  ;;  %v1920_v56 = vshrl.u32 %v1915_v49, 16  ;;  %v15070_v31 = vsel %vm15048_vm1, 0, %v1808_v32 }
 0x1ce   : > { %v1805_v44 = vxor.u32 2147483648, %v1804_v20  ;;  %v15066_v29 = vadd.s32 %v1907_v46, %v1898_v62  ;;  %v1928_v63 = vadd.s32 %v1926_v37, %v1924_v61  ;;  %v20115_v45 = vand.u32 2147483647, %v13811_v22 }
 0x1cf   : > { %v2007_v18 = vand.u32 31, %v2005_v57  ;;  %v1931_v19 = vmul.u32 %v14993_v1, %v1877_v4  ;;  %v15077_v36 = vshrl.u32 %v2005_v57, 5  ;;  %vm19769_vm5 = vweird.f32 %v13807_v21 }
 0x1d0   : > { %v2000_v17 = vand.u32 8388607, %v20115_v45  ;;  %v1806_v13 = vsel %vm1685_vm6, %v1805_v44, %v1804_v20  ;;  %v1929_v47 = vadd.s32 %v1928_v63, %v1918_v9  ;;  %vm1933_vm9 = vc.u32 %v15066_v29, %v15064_v12 }
 0x1d1   : > { %v1809_v49 = vsel %vm15048_vm1, %v13807_v21, %v1806_v13  ;;  %v15084_v16 = vsub.s32 32, %v2007_v18  ;;  %v2010_v33 = vshll.u32 %v20067_v3, %v2007_v18  ;;  %v2013_v11 = vshll.u32 %v20068_v51, %v2007_v18 }
 0x1d2   : > { %v1811_v38 = vmul.f32 %v1809_v49, %v1809_v49  ;;  %v1930_v52 = vadd.s32 %v1929_v47, %v1920_v56  ;;  %v2016_v42 = vshll.u32 %v20069_v54, %v2007_v18  ;;  %v2019_v15 = vshll.u32 %v20070_v8, %v2007_v18 }
 0x1d3   : > { %v2011_v1 = vshrl.u32 %v20068_v51, %v15084_v16  ;;  %v2014_v59 = vshrl.u32 %v20069_v54, %v15084_v16  ;;  %v2017_v62 = vshrl.u32 %v20070_v8, %v15084_v16  ;;  %v2020_v32 = vshrl.u32 %v20071_v7, %v15084_v16 }
 0x1d4   : > { %v1812_v58 = vmul.f32 -0.001358992, %v1811_v38  ;;  %v1819_v34 = vmul.f32 -0.00019511016, %v1811_v38  ;;  %v1934_v39 = vadd.s32 1, %v1930_v52  ;;  %v1827_v9 = vadd.s32 3, %v15070_v31 }
 0x1d5   : > { %v2001_v50 = vor.u32 8388608, %v2000_v17  ;;  %v15099_v20 = vor.u32 %v2011_v1, %v2010_v33  ;;  %v2022_v37 = vshll.u32 %v20071_v7, %v2007_v18  ;;  %v15105_v44 = vor.u32 %v2014_v59, %v2013_v11 }
 0x1d6   : > { %v1813_v46 = vadd.f32 0.041655596, %v1812_v58  ;;  %v1820_v61 = vadd.f32 0.008332121, %v1819_v34  ;;  %v1935_v4 = vsel %vm1933_vm9, %v1934_v39, %v1930_v52  ;;  %v2021_v56 = vor.u32 %v2020_v32, %v2019_v15 }
 0x1d7   : > { %v1936_v57 = vadd.s32 %v1935_v4, %v1931_v19  ;;  %v2023_v63 = vshrl.u32 %v20072_v0, %v15084_v16  ;;  %v15109_v17 = vor.u32 %v2017_v62, %v2016_v42  ;;  %vm2025_vm6 = vcmp.lt.s32.totalorder %v15077_v36, 1 }
 0x1d8   : > { %v1814_v45 = vmul.f32 %v1813_v46, %v1811_v38  ;;  %v1821_v13 = vmul.f32 %v1820_v61, %v1811_v38  ;;  %v1828_v47 = vand.u32 3, %v1827_v9  ;;  %vm2027_vm1 = vcmp.lt.s32.totalorder %v15077_v36, 3 }
 0x1d9   : > { %v1937_v33 = vadd.s32 536870912, %v1936_v57  ;;  %vm2028_vm4 = vcmp.lt.s32.totalorder %v15077_v36, 4  ;;  %v2024_v52 = vor.u32 %v2023_v63, %v2022_v37  ;;  %vm2026_vm10 = vcmp.lt.s32.totalorder %v15077_v36, 2 }
 0x1da   : > { %v1815_v18 = vadd.f32 -0.4999988, %v1814_v45  ;;  %v1822_v19 = vadd.f32 -0.16666654, %v1821_v13  ;;  %v2033_v42 = vsel %vm2025_vm6, %v15099_v20, %v15105_v44  ;;  %v2034_v1 = vsel %vm2028_vm4, %v2021_v56, 920167782 }
 0x1db   : > { %v15115_v11 = vshrl.u32 %v1937_v33, 30  ;;  %v15123_v59 = vshll.u32 %v2001_v50, 8  ;;  %v2035_v58 = vsel %vm2027_vm1, %v15109_v17, %v2034_v1  ;;  %vm1830_vm2 = vcmp.eq.s32.totalorder %v1828_v47, 0 }
 0x1dc   : > { %v1816_v62 = vmul.f32 %v1815_v18, %v1811_v38  ;;  %v1823_v15 = vmul.f32 %v1822_v19, %v1811_v38  ;;  %v2036_v39 = vsel %vm2026_vm10, %v2033_v42, %v2035_v58  ;;  %v2037_v32 = vsel %vm2025_vm6, %v15105_v44, %v15109_v17 }
 0x1dd   : > { %v1939_v34 = vshll.u32 %v15115_v11, 30  ;;  %vm1833_vm12 = vcmp.eq.s32.totalorder %v1828_v47, 2  ;;  %v2038_v50 = vsel %vm2028_vm4, %v2024_v52, 1326507024  ;;  %v2042_v4 = vand.u32 65535, %v15123_v59 }
 0x1de   : > { %v15136_v9 = vadd.f32 1.0, %v1816_v62  ;;  %v1824_v38 = vadd.f32 1.0, %v1823_v15  ;;  %v2039_v61 = vsel %vm2027_vm1, %v2021_v56, %v2038_v50  ;;  %v2043_v37 = vshrl.u32 %v15123_v59, 16 }
 0x1df   : > { %v15140_v46 = vsub.s32 %v1936_v57, %v1939_v34  ;;  %v2040_v13 = vsel %vm2026_vm10, %v2037_v32, %v2039_v61  ;;  %v2067_v33 = vshrl.u32 %v2036_v39, 16  ;;  %vm1829_vm7 = vcmp.lt.s32.totalorder %v1828_v47, 2 }
 0x1e0   : > { %20116 = vst [vmem:[#allocation68_spill] sm:$0xff] %v15136_v9  ;;  %v15146_v63 = vmul.f32 %v1824_v38, %v1809_v49  ;;  %v19753_v45 = vxor.u32 2147483648, %v15136_v9  ;;  %v2044_v18 = vand.u32 65535, %v2040_v13  ;;  %v2045_v19 = vshrl.u32 %v2040_v13, 16 }
 0x1e1   : > { %vm1941_vm9 = vcmp.lt.s32.totalorder %v15140_v46, 0  ;;  %v1942_v57 = vsub.s32 0, %v15140_v46  ;;  %v2066_v52 = vand.u32 65535, %v2036_v39  ;;  %v2069_v32 = vmul.u32 %v2067_v33, %v2042_v4 }
 0x1e2   : > { %20117 = vst [vmem:[#allocation69_spill] sm:$0xff] %v15146_v63  ;;  %v19754_v56 = vxor.u32 2147483648, %v15146_v63  ;;  %v1835_v49 = vsel %vm1833_vm12, %v19753_v45, %v15146_v63  ;;  %v2046_v1 = vmul.u32 %v2044_v18, %v2042_v4  ;;  %v2047_v62 = vmul.u32 %v2045_v19, %v2042_v4 }
 0x1e3   : > { %v1943_v42 = vsel %vm1941_vm9, %v1942_v57, %v15140_v46  ;;  %v2048_v15 = vmul.u32 %v2044_v18, %v2043_v37  ;;  %v2151_v38 = vand.u32 2139095040, %v13813_v23  ;;  %v2049_v61 = vmul.u32 %v2045_v19, %v2043_v37 }
 0x1e4   : > { %v1832_v58 = vsel %vm1830_vm2, %v15136_v9, %v19754_v56  ;;  %v1944_v34 = vclz %v1943_v42  ;;  %v2050_v39 = vshll.u32 %v2047_v62, 16  ;;  %v1932_v18 = vadd.s32 %v15064_v12, %v15066_v29 }
 0x1e5   : > { %v1836_v50 = vsel %vm1829_vm7, %v1832_v58, %v1835_v49  ;;  %v2052_v13 = vshll.u32 %v2048_v15, 16  ;;  %v2009_v47 = vshrl.u32 %v20067_v3, %v15084_v16  ;;  %v1962_v56 = vsub.s32 4, %v15115_v11 }
 0x1e6   : > { %v1837_v57 = vsel %vm19769_vm5, nan, %v1836_v50  ;;  %v13061_v45 = vadd.s32 4294967294, %v1944_v34  ;;  %vm2054_vm2 = vc.u32 %v2046_v1, %v2050_v39  ;;  %v2056_v42 = vadd.s32 %v2050_v39, %v2046_v1 }
 0x1e7   : > { %v2068_v9 = vmul.u32 %v2066_v52, %v2042_v4  ;;  %6651 = vst [vmem:[%s14173_s11 + $0x40] sm:$0xff] %v1837_v57  ;;  %v20118_v19 = vand.u32 2147483647, %v13809_v60  ;;  %v2051_v58 = vshrl.u32 %v2047_v62, 16  ;;  %v2055_v12 = vsel %vm2054_vm2, 1, %v20073_v43 }
 0x1e8   : > { %vm13062_vm12 = vcmp.lt.s32.totalorder %v13061_v45, 0  ;;  %v2070_v29 = vmul.u32 %v2066_v52, %v2043_v37  ;;  %v2057_v50 = vadd.s32 %v2055_v12, %v2049_v61  ;;  %vm2058_vm9 = vc.u32 %v2056_v42, %v2052_v13 }
 0x1e9   : > { %vm15175_vm7 = vcmp.le.f32.partialorder %v20118_v19, 0.7853982  ;;  %v1947_v34 = vsel %vm13062_vm12, 0, %v13061_v45  ;;  %v2072_v16 = vshll.u32 %v2069_v32, 16  ;;  %v2059_v39 = vsel %vm2058_vm9, 1, %v20073_v43 }
 0x1ea   : > { %v1948_v21 = vsub.s32 32, %v1947_v34  ;;  %v1949_v1 = vshll.u32 %v15140_v46, %v1947_v34  ;;  %v1952_v4 = vsub.s32 4294967266, %v1947_v34  ;;  %v2029_v57 = vsel %vm2025_vm6, %v2009_v47, %v15099_v20 }
 0x1eb   : > { %v2030_v62 = vsel %vm2028_vm4, %v15109_v17, 2102212464  ;;  %v2061_v19 = vadd.s32 %v2059_v39, %v2057_v50  ;;  %v2071_v52 = vmul.u32 %v2067_v33, %v2043_v37  ;;  %v1963_v13 = vsel %vm1840_vm0, %v1962_v56, %v15115_v11 }
 0x1ec   : > { %v1950_v45 = vshrl.u32 %v1932_v18, %v1948_v21  ;;  %v1953_v61 = vadd.s32 127, %v1952_v4  ;;  %v2074_v46 = vshll.u32 %v2070_v29, 16  ;;  %v2053_v42 = vshrl.u32 %v2048_v15, 16 }
 0x1ed   : > { %v2062_v12 = vadd.s32 %v2061_v19, %v2051_v58  ;;  %vm2076_vm2 = vc.u32 %v2068_v9, %v2072_v16  ;;  %v2078_v34 = vadd.s32 %v2072_v16, %v2068_v9  ;;  %v2152_v47 = vshrl.u32 %v2151_v38, 23 }
 0x1ee   : > { %v1951_v63 = vor.u32 %v1950_v45, %v1949_v1  ;;  %v1954_v41 = vshll.u32 %v1953_v61, 23  ;;  %v2077_v20 = vsel %vm2076_vm2, 1, %v20073_v43  ;;  %v2031_v17 = vsel %vm2027_vm1, %v15105_v44, %v2030_v62 }
 0x1ef   : > { %v2073_v21 = vshrl.u32 %v2069_v32, 16  ;;  %v2079_v37 = vadd.s32 %v2077_v20, %v2071_v52  ;;  %vm2080_vm6 = vc.u32 %v2078_v34, %v2074_v46  ;;  %v13066_v56 = vadd.s32 4294967169, %v2152_v47 }
 0x1f0   : > { %v1955_v33 = vor.u32 4788187, %v1954_v41  ;;  %v1958_v18 = vcvt.s32.f32 %v1951_v63  ;;  %v2081_v11 = vsel %vm2080_vm6, 1, %v20073_v43  ;;  %v15198_v9 = vsel %vm15175_vm7, 0, %v1963_v13 }
 0x1f1   : > { %v2075_v15 = vshrl.u32 %v2070_v29, 16  ;;  %v2083_v58 = vadd.s32 %v2081_v11, %v2079_v37  ;;  %v2063_v38 = vadd.s32 %v2062_v12, %v2053_v42  ;;  %v2082_v16 = vadd.s32 %v2078_v34, %v2074_v46 }
 0x1f2   : > { %v1956_v50 = vand.u32 2147483647, %v1955_v33  ;;  %v2158_v1 = vadd.s32 1, %v13066_v56  ;;  %v2032_v44 = vsel %vm2026_vm10, %v2029_v57, %v2031_v17  ;;  %v1982_v41 = vadd.s32 3, %v15198_v9 }
 0x1f3   : > { %v2084_v32 = vadd.s32 %v2083_v58, %v2073_v21  ;;  %v19764_v39 = vand.u32 2147483647, %v13813_v23  ;;  %v2086_v29 = vmul.u32 %v15123_v59, %v2032_v44  ;;  %vm2088_vm4 = vc.u32 %v2063_v38, %v2082_v16 }
 0x1f4   : > { %v1959_v4 = vmul.f32 %v1958_v18, %v1956_v50  ;;  %vm2159_vm1 = vcmp.gt.s32.totalorder %v2158_v1, 0  ;;  %v15214_v13 = vand.u32 3, %v1982_v41  ;;  %v15216_v46 = vadd.s32 %v2082_v16, %v2063_v38 }
 0x1f5   : > { %v2085_v63 = vadd.s32 %v2084_v32, %v2075_v15  ;;  %v2160_v62 = vsel %vm2159_vm1, %v2158_v1, 0  ;;  %v2155_v34 = vand.u32 8388607, %v19764_v39  ;;  %v2306_v44 = vand.u32 2139095040, %v13815_v24 }
 0x1f6   : > { %v1960_v19 = vxor.u32 2147483648, %v1959_v4  ;;  %v2162_v52 = vand.u32 31, %v2160_v62  ;;  %v15231_v56 = vshrl.u32 %v2160_v62, 5  ;;  %vm1985_vm10 = vcmp.eq.s32.totalorder %v15214_v13, 0 }
 0x1f7   : > { %v2089_v45 = vadd.s32 1, %v2085_v63  ;;  %v2156_v32 = vor.u32 8388608, %v2155_v34  ;;  %vm1984_vm9 = vcmp.lt.s32.totalorder %v15214_v13, 2  ;;  %vm19768_vm6 = vweird.f32 %v13809_v60 }
 0x1f8   : > { %v1961_v61 = vsel %vm1840_vm0, %v1960_v19, %v1959_v4  ;;  %v15207_v36 = vsub.s32 32, %v2162_v52  ;;  %v2165_v20 = vshll.u32 %v20067_v3, %v2162_v52  ;;  %v2168_v49 = vshll.u32 %v20068_v51, %v2162_v52 }
 0x1f9   : > { %v15212_v57 = vsel %vm15175_vm7, %v13809_v60, %v1961_v61  ;;  %v2090_v42 = vsel %vm2088_vm4, %v2089_v45, %v2085_v63  ;;  %v2174_v21 = vshll.u32 %v20070_v8, %v2162_v52  ;;  %v2171_v15 = vshll.u32 %v20069_v54, %v2162_v52 }
 0x1fa   : > { %v1966_v59 = vmul.f32 %v15212_v57, %v15212_v57  ;;  %v2091_v12 = vadd.s32 %v2090_v42, %v2086_v29  ;;  %v2166_v47 = vshrl.u32 %v20068_v51, %v15207_v36  ;;  %v2169_v17 = vshrl.u32 %v20069_v54, %v15207_v36 }
 0x1fb   : > { %v2175_v11 = vshrl.u32 %v20071_v7, %v15207_v36  ;;  %v2172_v58 = vshrl.u32 %v20070_v8, %v15207_v36  ;;  %v2177_v50 = vshll.u32 %v20071_v7, %v2162_v52  ;;  %vm1988_vm0 = vcmp.eq.s32.totalorder %v15214_v13, 2 }
 0x1fc   : > { %v1967_v37 = vmul.f32 -0.001358992, %v1966_v59  ;;  %v1974_v33 = vmul.f32 -0.00019511016, %v1966_v59  ;;  %v2092_v18 = vadd.s32 536870912, %v2091_v12  ;;  %v15241_v4 = vor.u32 %v2166_v47, %v2165_v20 }
 0x1fd   : > { %v2176_v41 = vor.u32 %v2175_v11, %v2174_v21  ;;  %v2178_v63 = vshrl.u32 %v20072_v0, %v15207_v36  ;;  %v15246_v52 = vor.u32 %v2169_v17, %v2168_v49  ;;  %v2173_v45 = vor.u32 %v2172_v58, %v2171_v15 }
 0x1fe   : > { %v1968_v38 = vadd.f32 0.041655596, %v1967_v37  ;;  %v1975_v16 = vadd.f32 0.008332121, %v1974_v33  ;;  %v15237_v1 = vshrl.u32 %v2092_v18, 30  ;;  %vm2180_vm7 = vcmp.lt.s32.totalorder %v15231_v56, 1 }
 0x1ff   : > { %v2179_v61 = vor.u32 %v2178_v63, %v2177_v50  ;;  %vm2183_vm12 = vcmp.lt.s32.totalorder %v15231_v56, 4  ;;  %vm2182_vm2 = vcmp.lt.s32.totalorder %v15231_v56, 3  ;;  %vm2181_vm1 = vcmp.lt.s32.totalorder %v15231_v56, 2 }
 0x200   : > { %v1969_v62 = vmul.f32 %v1968_v38, %v1966_v59  ;;  %v1976_v19 = vmul.f32 %v1975_v16, %v1966_v59  ;;  %v2094_v29 = vshll.u32 %v15237_v1, 30  ;;  %v2189_v47 = vsel %vm2183_vm12, %v2176_v41, 920167782 }
 0x201   : > { %v15259_v49 = vshll.u32 %v2156_v32, 8  ;;  %v2307_v17 = vshrl.u32 %v2306_v44, 23  ;;  %v2190_v18 = vsel %vm2182_vm2, %v2173_v45, %v2189_v47  ;;  %v2192_v11 = vsel %vm2180_vm7, %v15246_v52, %v2173_v45 }
 0x202   : > { %v1970_v42 = vadd.f32 -0.4999988, %v1969_v62  ;;  %v1977_v34 = vadd.f32 -0.16666654, %v1976_v19  ;;  %v15252_v20 = vsub.s32 %v2091_v12, %v2094_v29  ;;  %v2188_v12 = vsel %vm2180_vm7, %v15241_v4, %v15246_v52 }
 0x203   : > { %v2193_v15 = vsel %vm2183_vm12, %v2179_v61, 1326507024  ;;  %v2197_v32 = vand.u32 65535, %v15259_v49  ;;  %v2198_v63 = vshrl.u32 %v15259_v49, 16  ;;  %v2191_v29 = vsel %vm2181_vm1, %v2188_v12, %v2190_v18 }
 0x204   : > { %v1971_v21 = vmul.f32 %v1970_v42, %v1966_v59  ;;  %v1978_v37 = vmul.f32 %v1977_v34, %v1966_v59  ;;  %vm2096_vm4 = vcmp.lt.s32.totalorder %v15252_v20, 0  ;;  %v2097_v33 = vsub.s32 0, %v15252_v20 }
 0x205   : > { %v2194_v44 = vsel %vm2182_vm2, %v2176_v41, %v2193_v15  ;;  %v2221_v18 = vand.u32 65535, %v2191_v29  ;;  %vm2150_vm5 = vcmp.lt.s32.totalorder %v13813_v23, 0 }
 0x206   : > { %v15274_v59 = vadd.f32 1.0, %v1971_v21  ;;  %v1979_v58 = vadd.f32 1.0, %v1978_v37  ;;  %v2098_v50 = vsel %vm2096_vm4, %v2097_v33, %v15252_v20  ;;  %v2195_v61 = vsel %vm2181_vm1, %v2192_v11, %v2194_v44 }
 0x207   : > { %v2099_v16 = vclz %v2098_v50  ;;  %v2199_v34 = vand.u32 65535, %v2195_v61  ;;  %v2200_v47 = vshrl.u32 %v2195_v61, 16  ;;  %v13069_v21 = vadd.s32 4294967169, %v2307_v17 }
 0x208   : > { %20121 = vst [vmem:[#allocation70_spill] sm:$0xff] %v15274_v59  ;;  %v15283_v62 = vmul.f32 %v1979_v58, %v15212_v57  ;;  %v19762_v19 = vxor.u32 2147483648, %v15274_v59  ;;  %v2117_v37 = vsub.s32 4, %v15237_v1  ;;  %v2164_v33 = vshrl.u32 %v20067_v3, %v15207_v36 }
 0x209   : > { %v13064_v42 = vadd.s32 4294967294, %v2099_v16  ;;  %v2202_v12 = vmul.u32 %v2200_v47, %v2197_v32  ;;  %v2222_v11 = vshrl.u32 %v2191_v29, 16  ;;  %v2201_v58 = vmul.u32 %v2199_v34, %v2197_v32 }
 0x20a   : > { %v19763_v41 = vxor.u32 2147483648, %v15283_v62  ;;  %v1990_v57 = vsel %vm1988_vm0, %v19762_v19, %v15283_v62  ;;  %v2203_v50 = vmul.u32 %v2199_v34, %v2198_v63  ;;  %vm1995_vm0 = vcmp.lt.s32.totalorder %v13811_v22, 0 }
 0x20b   : > { %vm13065_vm4 = vcmp.lt.s32.totalorder %v13064_v42, 0  ;;  %v2184_v19 = vsel %vm2180_vm7, %v2164_v33, %v15241_v4  ;;  %v2313_v34 = vadd.s32 1, %v13069_v21  ;;  %v2206_v39 = vshrl.u32 %v2202_v12, 16 }
 0x20c   : > { %v1987_v17 = vsel %vm1985_vm10, %v15274_v59, %v19763_v41  ;;  %v2102_v15 = vsel %vm13065_vm4, 0, %v13064_v42  ;;  %v2185_v42 = vsel %vm2183_vm12, %v2173_v45, 2102212464  ;;  %v2205_v41 = vshll.u32 %v2202_v12, 16 }
 0x20d   : > { %v1991_v16 = vsel %vm1984_vm9, %v1987_v17, %v1990_v57  ;;  %v2103_v36 = vsub.s32 32, %v2102_v15  ;;  %v2104_v44 = vshll.u32 %v15252_v20, %v2102_v15  ;;  %v2107_v61 = vsub.s32 4294967266, %v2102_v15 }
 0x20e   : > { %v1992_v29 = vsel %vm19768_vm6, nan, %v1991_v16  ;;  %v2204_v17 = vmul.u32 %v2200_v47, %v2198_v63  ;;  %v2207_v20 = vshll.u32 %v2203_v50, 16  ;;  %v2223_v15 = vmul.u32 %v2221_v18, %v2197_v32 }
 0x20f   : > { %v2105_v13 = vshrl.u32 %v15216_v46, %v2103_v36  ;;  %v2108_v57 = vadd.s32 127, %v2107_v61  ;;  %6652 = vst [vmem:[%s14173_s11 + $0x48] sm:$0xff] %v1992_v29  ;;  %v2224_v38 = vmul.u32 %v2222_v11, %v2197_v32  ;;  %v20122_v16 = vand.u32 2147483647, %v13811_v22 }
 0x210   : > { %vm2209_vm7 = vc.u32 %v2201_v58, %v2205_v41  ;;  %v2211_v45 = vadd.s32 %v2205_v41, %v2201_v58  ;;  %v2225_v21 = vmul.u32 %v2221_v18, %v2198_v63  ;;  %v2226_v47 = vmul.u32 %v2222_v11, %v2198_v63 }
 0x211   : > { %vm15319_vm10 = vcmp.le.f32.partialorder %v20122_v16, 0.7853982  ;;  %v2106_v4 = vor.u32 %v2105_v13, %v2104_v44  ;;  %v2109_v33 = vshll.u32 %v2108_v57, 23  ;;  %v2210_v46 = vsel %vm2209_vm7, 1, %v20073_v43 }
 0x212   : > { %v2227_v36 = vshll.u32 %v2224_v38, 16  ;;  %v2212_v29 = vadd.s32 %v2210_v46, %v2204_v17  ;;  %vm2213_vm12 = vc.u32 %v2211_v45, %v2207_v20  ;;  %v2186_v32 = vsel %vm2182_vm2, %v15246_v52, %v2185_v42 }
 0x213   : > { %v2110_v61 = vor.u32 4788187, %v2109_v33  ;;  %v2113_v12 = vcvt.s32.f32 %v2106_v4  ;;  %v2208_v16 = vshrl.u32 %v2203_v50, 16  ;;  %v2214_v59 = vsel %vm2213_vm12, 1, %v20073_v43 }
 0x214   : > { %v2229_v44 = vshll.u32 %v2225_v21, 16  ;;  %v2216_v57 = vadd.s32 %v2214_v59, %v2212_v29  ;;  %vm2231_vm9 = vc.u32 %v2223_v15, %v2227_v36  ;;  %v2233_v41 = vadd.s32 %v2227_v36, %v2223_v15 }
 0x215   : > { %v2111_v13 = vand.u32 2147483647, %v2110_v61  ;;  %v2118_v63 = vsel %vm1995_vm0, %v2117_v37, %v15237_v1  ;;  %v2228_v18 = vshrl.u32 %v2224_v38, 16  ;;  %v2232_v11 = vsel %vm2231_vm9, 1, %v20073_v43 }
 0x216   : > { %vm2314_vm4 = vcmp.gt.s32.totalorder %v2313_v34, 0  ;;  %v2217_v17 = vadd.s32 %v2216_v57, %v2206_v39  ;;  %v2234_v20 = vadd.s32 %v2232_v11, %v2226_v47  ;;  %vm2235_vm2 = vc.u32 %v2233_v41, %v2229_v44 }
 0x217   : > { %v2114_v58 = vmul.f32 %v2113_v12, %v2111_v13  ;;  %v2187_v52 = vsel %vm2181_vm1, %v2184_v19, %v2186_v32  ;;  %v2236_v50 = vsel %vm2235_vm2, 1, %v20073_v43  ;;  %v15335_v59 = vadd.s32 %v2233_v41, %v2229_v44 }
 0x218   : > { %v2315_v42 = vsel %vm2314_vm4, %v2313_v34, 0  ;;  %v15337_v4 = vadd.s32 %v2217_v17, %v2208_v16  ;;  %v2230_v1 = vshrl.u32 %v2225_v21, 16  ;;  %v2238_v38 = vadd.s32 %v2236_v50, %v2234_v20 }
 0x219   : > { %v2115_v15 = vxor.u32 2147483648, %v2114_v58  ;;  %v15341_v37 = vsel %vm15319_vm10, 0, %v2118_v63  ;;  %v20126_v39 = vand.u32 2147483647, %v13815_v24  ;;  %v2317_v45 = vand.u32 31, %v2315_v42 }
 0x21a   : > { %20125 = vst [vmem:[#allocation71_spill] sm:$0xff] %v15341_v37  ;;  %v2239_v19 = vadd.s32 %v2238_v38, %v2228_v18  ;;  %v2241_v46 = vmul.u32 %v15259_v49, %v2187_v52  ;;  %v15348_v34 = vshrl.u32 %v2315_v42, 5  ;;  %vm2243_vm1 = vc.u32 %v15337_v4, %v15335_v59 }
 0x21b   : > { %v2310_v33 = vand.u32 8388607, %v20126_v39  ;;  %v2116_v56 = vsel %vm1995_vm0, %v2115_v15, %v2114_v58  ;;  %v15355_v47 = vsub.s32 32, %v2317_v45  ;;  %v2320_v36 = vshll.u32 %v20067_v3, %v2317_v45 }
 0x21c   : > { %v2119_v21 = vsel %vm15319_vm10, %v13811_v22, %v2116_v56  ;;  %v2240_v12 = vadd.s32 %v2239_v19, %v2230_v1  ;;  %v2323_v29 = vshll.u32 %v20068_v51, %v2317_v45  ;;  %v2326_v32 = vshll.u32 %v20069_v54, %v2317_v45 }
 0x21d   : > { %v2121_v61 = vmul.f32 %v2119_v21, %v2119_v21  ;;  %v2321_v49 = vshrl.u32 %v20068_v51, %v15355_v47  ;;  %v2324_v60 = vshrl.u32 %v20069_v54, %v15355_v47  ;;  %v2327_v16 = vshrl.u32 %v20070_v8, %v15355_v47 }
 0x21e   : > { %v2329_v44 = vshll.u32 %v20070_v8, %v2317_v45  ;;  %v2244_v41 = vadd.s32 1, %v2240_v12  ;;  %v2330_v63 = vshrl.u32 %v20071_v7, %v15355_v47  ;;  %v2137_v18 = vadd.s32 3, %v15341_v37 }
 0x21f   : > { %v2122_v13 = vmul.f32 -0.001358992, %v2121_v61  ;;  %v2129_v57 = vmul.f32 -0.00019511016, %v2121_v61  ;;  %v2311_v11 = vor.u32 8388608, %v2310_v33  ;;  %v15370_v58 = vor.u32 %v2321_v49, %v2320_v36 }
 0x220   : > { %v2245_v52 = vsel %vm2243_vm1, %v2244_v41, %v2240_v12  ;;  %v2332_v50 = vshll.u32 %v20071_v7, %v2317_v45  ;;  %v15376_v15 = vor.u32 %v2324_v60, %v2323_v29  ;;  %v2331_v1 = vor.u32 %v2330_v63, %v2329_v44 }
 0x221   : > { %v2123_v17 = vadd.f32 0.041655596, %v2122_v13  ;;  %v2130_v20 = vadd.f32 0.008332121, %v2129_v57  ;;  %v2246_v42 = vadd.s32 %v2245_v52, %v2241_v46  ;;  %v2333_v38 = vshrl.u32 %v20072_v0, %v15355_v47 }
 0x222   : > { %v15380_v33 = vor.u32 %v2327_v16, %v2326_v32  ;;  %vm2335_vm0 = vcmp.lt.s32.totalorder %v15348_v34, 1  ;;  %v2138_v19 = vand.u32 3, %v2137_v18  ;;  %vm2337_vm10 = vcmp.lt.s32.totalorder %v15348_v34, 3 }
 0x223   : > { %v2124_v39 = vmul.f32 %v2123_v17, %v2121_v61  ;;  %v2131_v56 = vmul.f32 %v2130_v20, %v2121_v61  ;;  %v2247_v36 = vadd.s32 536870912, %v2246_v42  ;;  %vm2338_vm7 = vcmp.lt.s32.totalorder %v15348_v34, 4 }
 0x224   : > { %v2334_v12 = vor.u32 %v2333_v38, %v2332_v50  ;;  %vm2336_vm12 = vcmp.lt.s32.totalorder %v15348_v34, 2  ;;  %v2343_v32 = vsel %vm2335_vm0, %v15370_v58, %v15376_v15  ;;  %v2344_v49 = vsel %vm2338_vm7, %v2331_v1, 920167782 }
 0x225   : > { %v2125_v45 = vadd.f32 -0.4999988, %v2124_v39  ;;  %v2132_v46 = vadd.f32 -0.16666654, %v2131_v56  ;;  %v15386_v29 = vshrl.u32 %v2247_v36, 30  ;;  %v15394_v60 = vshll.u32 %v2311_v11, 8 }
 0x226   : > { %vm19785_vm9 = vweird.f32 %v13811_v22  ;;  %v2345_v13 = vsel %vm2337_vm10, %v15380_v33, %v2344_v49  ;;  %vm2140_vm4 = vcmp.eq.s32.totalorder %v2138_v19, 0  ;;  %v2347_v63 = vsel %vm2335_vm0, %v15376_v15, %v15380_v33 }
 0x227   : > { %v2126_v16 = vmul.f32 %v2125_v45, %v2121_v61  ;;  %v2133_v44 = vmul.f32 %v2132_v46, %v2121_v61  ;;  %v2249_v57 = vshll.u32 %v15386_v29, 30  ;;  %v2346_v41 = vsel %vm2336_vm12, %v2343_v32, %v2345_v13 }
 0x228   : > { %vm2143_vm2 = vcmp.eq.s32.totalorder %v2138_v19, 2  ;;  %v2348_v11 = vsel %vm2338_vm7, %v2334_v12, 1326507024  ;;  %v2352_v52 = vand.u32 65535, %v15394_v60  ;;  %v2353_v50 = vshrl.u32 %v15394_v60, 16 }
 0x229   : > { %v15407_v18 = vadd.f32 1.0, %v2126_v16  ;;  %v2134_v61 = vadd.f32 1.0, %v2133_v44  ;;  %v15411_v17 = vsub.s32 %v2246_v42, %v2249_v57  ;;  %v2349_v20 = vsel %vm2337_vm10, %v2331_v1, %v2348_v11 }
 0x22a   : > { %v2350_v56 = vsel %vm2336_vm12, %v2347_v63, %v2349_v20  ;;  %v2377_v36 = vshrl.u32 %v2346_v41, 16  ;;  %vm2139_vm6 = vcmp.lt.s32.totalorder %v2138_v19, 2  ;;  %v2376_v12 = vand.u32 65535, %v2346_v41 }
 0x22b   : > { %20127 = vst [vmem:[#allocation72_spill] sm:$0xff] %v15407_v18  ;;  %v15417_v38 = vmul.f32 %v2134_v61, %v2119_v21  ;;  %v19770_v39 = vxor.u32 2147483648, %v15407_v18  ;;  %vm2251_vm1 = vcmp.lt.s32.totalorder %v15411_v17, 0  ;;  %v2252_v42 = vsub.s32 0, %v15411_v17 }
 0x22c   : > { %v2354_v45 = vand.u32 65535, %v2350_v56  ;;  %v2355_v46 = vshrl.u32 %v2350_v56, 16  ;;  %v2379_v63 = vmul.u32 %v2377_v36, %v2352_v52  ;;  %v2461_v61 = vand.u32 2139095040, %v13817_v25 }
 0x22d   : > { %20128 = vst [vmem:[#allocation73_spill] sm:$0xff] %v15417_v38  ;;  %v19771_v1 = vxor.u32 2147483648, %v15417_v38  ;;  %v2145_v21 = vsel %vm2143_vm2, %v19770_v39, %v15417_v38  ;;  %v2253_v32 = vsel %vm2251_vm1, %v2252_v42, %v15411_v17  ;;  %v2319_v19 = vshrl.u32 %v20067_v3, %v15355_v47 }
 0x22e   : > { %v2356_v49 = vmul.u32 %v2354_v45, %v2352_v52  ;;  %v2357_v16 = vmul.u32 %v2355_v46, %v2352_v52  ;;  %v2358_v44 = vmul.u32 %v2354_v45, %v2353_v50  ;;  %v2254_v57 = vclz %v2253_v32 }
 0x22f   : > { %v2142_v13 = vsel %vm2140_vm4, %v15407_v18, %v19771_v1  ;;  %v2359_v20 = vmul.u32 %v2355_v46, %v2353_v50  ;;  %v2242_v45 = vadd.s32 %v15335_v59, %v15337_v4  ;;  %v2272_v1 = vsub.s32 4, %v15386_v29 }
 0x230   : > { %v2146_v11 = vsel %vm2139_vm6, %v2142_v13, %v2145_v21  ;;  %v2360_v41 = vshll.u32 %v2357_v16, 16  ;;  %v2362_v56 = vshll.u32 %v2358_v44, 16  ;;  %v13067_v39 = vadd.s32 4294967294, %v2254_v57 }
 0x231   : > { %v2147_v42 = vsel %vm19785_vm9, nan, %v2146_v11  ;;  %v2378_v18 = vmul.u32 %v2376_v12, %v2352_v52  ;;  %v20129_v46 = vand.u32 2147483647, %v13813_v23  ;;  %v2361_v13 = vshrl.u32 %v2357_v16, 16 }
 0x232   : > { %vm2364_vm4 = vc.u32 %v2356_v49, %v2360_v41  ;;  %v2366_v32 = vadd.s32 %v2360_v41, %v2356_v49  ;;  %6653 = vst [vmem:[%s14173_s11 + $0x50] sm:$0xff] %v2147_v42  ;;  %vm13068_vm2 = vcmp.lt.s32.totalorder %v13067_v39, 0  ;;  %v2380_v4 = vmul.u32 %v2376_v12, %v2353_v50 }
 0x233   : > { %vm15446_vm6 = vcmp.le.f32.partialorder %v20129_v46, 0.7853982  ;;  %v2365_v59 = vsel %vm2364_vm4, 1, %v20073_v43  ;;  %v2257_v57 = vsel %vm13068_vm2, 0, %v13067_v39  ;;  %v2382_v47 = vshll.u32 %v2379_v63, 16 }
 0x234   : > { %v2367_v11 = vadd.s32 %v2365_v59, %v2359_v20  ;;  %vm2368_vm1 = vc.u32 %v2366_v32, %v2362_v56  ;;  %v2258_v22 = vsub.s32 32, %v2257_v57  ;;  %v2259_v49 = vshll.u32 %v15411_v17, %v2257_v57 }
 0x235   : > { %v2262_v52 = vsub.s32 4294967266, %v2257_v57  ;;  %v2369_v41 = vsel %vm2368_vm1, 1, %v20073_v43  ;;  %v2339_v42 = vsel %vm2335_vm0, %v2319_v19, %v15370_v58  ;;  %v2340_v16 = vsel %vm2338_vm7, %v15380_v33, 2102212464 }
 0x236   : > { %v2371_v46 = vadd.s32 %v2369_v41, %v2367_v11  ;;  %v2381_v12 = vmul.u32 %v2377_v36, %v2353_v50  ;;  %v2260_v39 = vshrl.u32 %v2242_v45, %v2258_v22  ;;  %v2273_v56 = vsel %vm2150_vm5, %v2272_v1, %v15386_v29 }
 0x237   : > { %v2263_v20 = vadd.s32 127, %v2262_v52  ;;  %v2384_v17 = vshll.u32 %v2380_v4, 16  ;;  %v2363_v32 = vshrl.u32 %v2358_v44, 16  ;;  %vm2386_vm4 = vc.u32 %v2378_v18, %v2382_v47 }
 0x238   : > { %v2372_v59 = vadd.s32 %v2371_v46, %v2361_v13  ;;  %v2388_v57 = vadd.s32 %v2382_v47, %v2378_v18  ;;  %v2261_v38 = vor.u32 %v2260_v39, %v2259_v49  ;;  %v2387_v58 = vsel %vm2386_vm4, 1, %v20073_v43 }
 0x239   : > { %v2264_v37 = vshll.u32 %v2263_v20, 23  ;;  %v2462_v19 = vshrl.u32 %v2461_v61, 23  ;;  %v2341_v33 = vsel %vm2337_vm10, %v15376_v15, %v2340_v16  ;;  %v2383_v22 = vshrl.u32 %v2379_v63, 16 }
 0x23a   : > { %v2389_v50 = vadd.s32 %v2387_v58, %v2381_v12  ;;  %vm2390_vm0 = vc.u32 %v2388_v57, %v2384_v17  ;;  %v2268_v45 = vcvt.s32.f32 %v2261_v38  ;;  %v15469_v18 = vsel %vm15446_vm6, 0, %v2273_v56 }
 0x23b   : > { %v2265_v36 = vor.u32 4788187, %v2264_v37  ;;  %v2391_v29 = vsel %vm2390_vm0, 1, %v20073_v43  ;;  %v13072_v1 = vadd.s32 4294967169, %v2462_v19  ;;  %v2385_v44 = vshrl.u32 %v2380_v4, 16 }
 0x23c   : > { %v2393_v13 = vadd.s32 %v2391_v29, %v2389_v50  ;;  %v2373_v61 = vadd.s32 %v2372_v59, %v2363_v32  ;;  %v2392_v47 = vadd.s32 %v2388_v57, %v2384_v17  ;;  %v2342_v15 = vsel %vm2336_vm12, %v2339_v42, %v2341_v33 }
 0x23d   : > { %v2266_v11 = vand.u32 2147483647, %v2265_v36  ;;  %v2468_v49 = vadd.s32 1, %v13072_v1  ;;  %v2292_v37 = vadd.s32 3, %v15469_v18  ;;  %v19780_v41 = vand.u32 2147483647, %v13817_v25 }
 0x23e   : > { %v2394_v63 = vadd.s32 %v2393_v13, %v2383_v22  ;;  %v2396_v4 = vmul.u32 %v15394_v60, %v2342_v15  ;;  %vm2398_vm7 = vc.u32 %v2373_v61, %v2392_v47  ;;  %v15487_v17 = vadd.s32 %v2392_v47, %v2373_v61 }
 0x23f   : > { %v2269_v52 = vmul.f32 %v2268_v45, %v2266_v11  ;;  %vm2469_vm10 = vcmp.gt.s32.totalorder %v2468_v49, 0  ;;  %v15485_v56 = vand.u32 3, %v2292_v37  ;;  %v2465_v57 = vand.u32 8388607, %v19780_v41 }
 0x240   : > { %v2395_v38 = vadd.s32 %v2394_v63, %v2385_v44  ;;  %v2470_v16 = vsel %vm2469_vm10, %v2468_v49, 0  ;;  %v2616_v15 = vand.u32 2139095040, %v13819_v26  ;;  %vm19784_vm0 = vweird.f32 %v13813_v23 }
 0x241   : > { %v2270_v46 = vxor.u32 2147483648, %v2269_v52  ;;  %v2472_v12 = vand.u32 31, %v2470_v16  ;;  %v15502_v1 = vshrl.u32 %v2470_v16, 5  ;;  %v2466_v63 = vor.u32 8388608, %v2465_v57 }
 0x242   : > { %v2399_v39 = vadd.s32 1, %v2395_v38  ;;  %vm2295_vm12 = vcmp.eq.s32.totalorder %v15485_v56, 0  ;;  %vm2294_vm1 = vcmp.lt.s32.totalorder %v15485_v56, 2  ;;  %vm2460_vm9 = vcmp.lt.s32.totalorder %v13817_v25, 0 }
 0x243   : > { %v2271_v20 = vsel %vm2150_vm5, %v2270_v46, %v2269_v52  ;;  %v15478_v34 = vsub.s32 32, %v2472_v12  ;;  %v2475_v58 = vshll.u32 %v20067_v3, %v2472_v12  ;;  %v2478_v21 = vshll.u32 %v20068_v51, %v2472_v12 }
 0x244   : > { %v15483_v42 = vsel %vm15446_vm6, %v13813_v23, %v2271_v20  ;;  %v2400_v32 = vsel %vm2398_vm7, %v2399_v39, %v2395_v38  ;;  %v2484_v22 = vshll.u32 %v20070_v8, %v2472_v12  ;;  %v2481_v44 = vshll.u32 %v20069_v54, %v2472_v12 }
 0x245   : > { %v2276_v60 = vmul.f32 %v15483_v42, %v15483_v42  ;;  %v2401_v59 = vadd.s32 %v2400_v32, %v2396_v4  ;;  %v2476_v19 = vshrl.u32 %v20068_v51, %v15478_v34  ;;  %v2479_v33 = vshrl.u32 %v20069_v54, %v15478_v34 }
 0x246   : > { %v2485_v29 = vshrl.u32 %v20071_v7, %v15478_v34  ;;  %v2482_v13 = vshrl.u32 %v20070_v8, %v15478_v34  ;;  %v2487_v11 = vshll.u32 %v20071_v7, %v2472_v12  ;;  %vm2298_vm5 = vcmp.eq.s32.totalorder %v15485_v56, 2 }
 0x247   : > { %v2277_v50 = vmul.f32 -0.001358992, %v2276_v60  ;;  %v2284_v36 = vmul.f32 -0.00019511016, %v2276_v60  ;;  %v2402_v45 = vadd.s32 536870912, %v2401_v59  ;;  %v15512_v52 = vor.u32 %v2476_v19, %v2475_v58 }
 0x248   : > { %v2486_v37 = vor.u32 %v2485_v29, %v2484_v22  ;;  %v2488_v38 = vshrl.u32 %v20072_v0, %v15478_v34  ;;  %v15517_v12 = vor.u32 %v2479_v33, %v2478_v21  ;;  %v2483_v39 = vor.u32 %v2482_v13, %v2481_v44 }
 0x249   : > { %v2278_v61 = vadd.f32 0.041655596, %v2277_v50  ;;  %v2285_v47 = vadd.f32 0.008332121, %v2284_v36  ;;  %v15508_v49 = vshrl.u32 %v2402_v45, 30  ;;  %vm2490_vm6 = vcmp.lt.s32.totalorder %v15502_v1, 1 }
 0x24a   : > { %v2489_v20 = vor.u32 %v2488_v38, %v2487_v11  ;;  %vm2493_vm2 = vcmp.lt.s32.totalorder %v15502_v1, 4  ;;  %vm2492_vm4 = vcmp.lt.s32.totalorder %v15502_v1, 3  ;;  %vm2491_vm10 = vcmp.lt.s32.totalorder %v15502_v1, 2 }
 0x24b   : > { %v2279_v16 = vmul.f32 %v2278_v61, %v2276_v60  ;;  %v2286_v46 = vmul.f32 %v2285_v47, %v2276_v60  ;;  %v2404_v4 = vshll.u32 %v15508_v49, 30  ;;  %v2499_v19 = vsel %vm2493_vm2, %v2486_v37, 920167782 }
 0x24c   : > { %v15530_v21 = vshll.u32 %v2466_v63, 8  ;;  %v2617_v33 = vshrl.u32 %v2616_v15, 23  ;;  %v2500_v45 = vsel %vm2492_vm4, %v2483_v39, %v2499_v19  ;;  %v2502_v29 = vsel %vm2490_vm6, %v15517_v12, %v2483_v39 }
 0x24d   : > { %v2280_v32 = vadd.f32 -0.4999988, %v2279_v16  ;;  %v2287_v57 = vadd.f32 -0.16666654, %v2286_v46  ;;  %v15523_v58 = vsub.s32 %v2401_v59, %v2404_v4  ;;  %v2498_v59 = vsel %vm2490_vm6, %v15512_v52, %v15517_v12 }
 0x24e   : > { %v2503_v44 = vsel %vm2493_vm2, %v2489_v20, 1326507024  ;;  %v2507_v63 = vand.u32 65535, %v15530_v21  ;;  %v2508_v38 = vshrl.u32 %v15530_v21, 16  ;;  %v2501_v4 = vsel %vm2491_vm10, %v2498_v59, %v2500_v45 }
 0x24f   : > { %v2281_v22 = vmul.f32 %v2280_v32, %v2276_v60  ;;  %v2288_v50 = vmul.f32 %v2287_v57, %v2276_v60  ;;  %vm2406_vm7 = vcmp.lt.s32.totalorder %v15523_v58, 0  ;;  %v2407_v36 = vsub.s32 0, %v15523_v58 }
 0x250   : > { %v2504_v15 = vsel %vm2492_vm4, %v2486_v37, %v2503_v44  ;;  %v2531_v45 = vand.u32 65535, %v2501_v4 }
 0x251   : > { %v15545_v60 = vadd.f32 1.0, %v2281_v22  ;;  %v2289_v13 = vadd.f32 1.0, %v2288_v50  ;;  %v2408_v11 = vsel %vm2406_vm7, %v2407_v36, %v15523_v58  ;;  %v2505_v20 = vsel %vm2491_vm10, %v2502_v29, %v2504_v15 }
 0x252   : > { %v2409_v47 = vclz %v2408_v11  ;;  %v2509_v57 = vand.u32 65535, %v2505_v20  ;;  %v2510_v19 = vshrl.u32 %v2505_v20, 16  ;;  %v13075_v22 = vadd.s32 4294967169, %v2617_v33 }
 0x253   : > { %20132 = vst [vmem:[#allocation74_spill] sm:$0xff] %v15545_v60  ;;  %v15554_v16 = vmul.f32 %v2289_v13, %v15483_v42  ;;  %v19778_v46 = vxor.u32 2147483648, %v15545_v60  ;;  %v2427_v50 = vsub.s32 4, %v15508_v49  ;;  %v2474_v36 = vshrl.u32 %v20067_v3, %v15478_v34 }
 0x254   : > { %v13070_v32 = vadd.s32 4294967294, %v2409_v47  ;;  %v2512_v59 = vmul.u32 %v2510_v19, %v2507_v63  ;;  %v2532_v29 = vshrl.u32 %v2501_v4, 16  ;;  %v2511_v13 = vmul.u32 %v2509_v57, %v2507_v63 }
 0x255   : > { %20133 = vst [vmem:[#allocation75_spill] sm:$0xff] %v15554_v16  ;;  %v19779_v37 = vxor.u32 2147483648, %v15554_v16  ;;  %v2300_v42 = vsel %vm2298_vm5, %v19778_v46, %v15554_v16  ;;  %v2513_v11 = vmul.u32 %v2509_v57, %v2508_v38  ;;  %vm2305_vm5 = vcmp.lt.s32.totalorder %v13815_v24, 0 }
 0x256   : > { %vm13071_vm7 = vcmp.lt.s32.totalorder %v13070_v32, 0  ;;  %v2494_v46 = vsel %vm2490_vm6, %v2474_v36, %v15512_v52  ;;  %v2623_v57 = vadd.s32 1, %v13075_v22  ;;  %v2516_v41 = vshrl.u32 %v2512_v59, 16 }
 0x257   : > { %v2297_v33 = vsel %vm2295_vm12, %v15545_v60, %v19779_v37  ;;  %v2412_v44 = vsel %vm13071_vm7, 0, %v13070_v32  ;;  %v2495_v32 = vsel %vm2493_vm2, %v2483_v39, 2102212464  ;;  %v2515_v37 = vshll.u32 %v2512_v59, 16 }
 0x258   : > { %v2301_v47 = vsel %vm2294_vm1, %v2297_v33, %v2300_v42  ;;  %v2413_v34 = vsub.s32 32, %v2412_v44  ;;  %v2414_v15 = vshll.u32 %v15523_v58, %v2412_v44  ;;  %v2417_v20 = vsub.s32 4294967266, %v2412_v44 }
 0x259   : > { %v2302_v4 = vsel %vm19784_vm0, nan, %v2301_v47  ;;  %v2514_v33 = vmul.u32 %v2510_v19, %v2508_v38  ;;  %v2517_v58 = vshll.u32 %v2513_v11, 16  ;;  %v2533_v44 = vmul.u32 %v2531_v45, %v2507_v63 }
 0x25a   : > { %v2415_v56 = vshrl.u32 %v15487_v17, %v2413_v34  ;;  %v2418_v42 = vadd.s32 127, %v2417_v20  ;;  %6654 = vst [vmem:[%s14173_s11 + $0x58] sm:$0xff] %v2302_v4  ;;  %v2534_v61 = vmul.u32 %v2532_v29, %v2507_v63  ;;  %v20134_v47 = vand.u32 2147483647, %v13815_v24 }
 0x25b   : > { %vm2519_vm6 = vc.u32 %v2511_v13, %v2515_v37  ;;  %v2521_v39 = vadd.s32 %v2515_v37, %v2511_v13  ;;  %v2535_v22 = vmul.u32 %v2531_v45, %v2508_v38  ;;  %v2536_v19 = vmul.u32 %v2532_v29, %v2508_v38 }
 0x25c   : > { %vm15590_vm12 = vcmp.le.f32.partialorder %v20134_v47, 0.7853982  ;;  %v2416_v52 = vor.u32 %v2415_v56, %v2414_v15  ;;  %v2419_v36 = vshll.u32 %v2418_v42, 23  ;;  %v2520_v17 = vsel %vm2519_vm6, 1, %v20073_v43 }
 0x25d   : > { %v2537_v34 = vshll.u32 %v2534_v61, 16  ;;  %v2522_v4 = vadd.s32 %v2520_v17, %v2514_v33  ;;  %vm2523_vm2 = vc.u32 %v2521_v39, %v2517_v58  ;;  %v2496_v63 = vsel %vm2492_vm4, %v15517_v12, %v2495_v32 }
 0x25e   : > { %v2420_v20 = vor.u32 4788187, %v2419_v36  ;;  %v2423_v59 = vcvt.s32.f32 %v2416_v52  ;;  %v2518_v47 = vshrl.u32 %v2513_v11, 16  ;;  %v2524_v60 = vsel %vm2523_vm2, 1, %v20073_v43 }
 0x25f   : > { %v2539_v15 = vshll.u32 %v2535_v22, 16  ;;  %v2526_v42 = vadd.s32 %v2524_v60, %v2522_v4  ;;  %vm2541_vm1 = vc.u32 %v2533_v44, %v2537_v34  ;;  %v2543_v37 = vadd.s32 %v2537_v34, %v2533_v44 }
 0x260   : > { %v2421_v56 = vand.u32 2147483647, %v2420_v20  ;;  %v2428_v38 = vsel %vm2305_vm5, %v2427_v50, %v15508_v49  ;;  %v2538_v45 = vshrl.u32 %v2534_v61, 16  ;;  %v2542_v29 = vsel %vm2541_vm1, 1, %v20073_v43 }
 0x261   : > { %vm2624_vm7 = vcmp.gt.s32.totalorder %v2623_v57, 0  ;;  %v2527_v33 = vadd.s32 %v2526_v42, %v2516_v41  ;;  %v2544_v58 = vadd.s32 %v2542_v29, %v2536_v19  ;;  %vm2545_vm4 = vc.u32 %v2543_v37, %v2539_v15 }
 0x262   : > { %v2424_v13 = vmul.f32 %v2423_v59, %v2421_v56  ;;  %v2497_v12 = vsel %vm2491_vm10, %v2494_v46, %v2496_v63  ;;  %v2546_v11 = vsel %vm2545_vm4, 1, %v20073_v43  ;;  %v15606_v60 = vadd.s32 %v2543_v37, %v2539_v15 }
 0x263   : > { %v2625_v32 = vsel %vm2624_vm7, %v2623_v57, 0  ;;  %v15608_v52 = vadd.s32 %v2527_v33, %v2518_v47  ;;  %v2540_v49 = vshrl.u32 %v2535_v22, 16  ;;  %v2548_v61 = vadd.s32 %v2546_v11, %v2544_v58 }
 0x264   : > { %v2425_v44 = vxor.u32 2147483648, %v2424_v13  ;;  %v15612_v50 = vsel %vm15590_vm12, 0, %v2428_v38  ;;  %v20137_v41 = vand.u32 2147483647, %v13819_v26  ;;  %v2627_v39 = vand.u32 31, %v2625_v32 }
 0x265   : > { %v2549_v46 = vadd.s32 %v2548_v61, %v2538_v45  ;;  %v2551_v17 = vmul.u32 %v15530_v21, %v2497_v12  ;;  %v15619_v57 = vshrl.u32 %v2625_v32, 5  ;;  %vm2553_vm10 = vc.u32 %v15608_v52, %v15606_v60 }
 0x266   : > { %v2620_v36 = vand.u32 8388607, %v20137_v41  ;;  %v2426_v1 = vsel %vm2305_vm5, %v2425_v44, %v2424_v13  ;;  %v15626_v19 = vsub.s32 32, %v2627_v39  ;;  %v2630_v34 = vshll.u32 %v20067_v3, %v2627_v39 }
 0x267   : > { %v2429_v22 = vsel %vm15590_vm12, %v13815_v24, %v2426_v1  ;;  %v2550_v59 = vadd.s32 %v2549_v46, %v2540_v49  ;;  %v2633_v4 = vshll.u32 %v20068_v51, %v2627_v39  ;;  %v2636_v63 = vshll.u32 %v20069_v54, %v2627_v39 }
 0x268   : > { %v2431_v20 = vmul.f32 %v2429_v22, %v2429_v22  ;;  %v2631_v21 = vshrl.u32 %v20068_v51, %v15626_v19  ;;  %v2634_v23 = vshrl.u32 %v20069_v54, %v15626_v19  ;;  %v2637_v47 = vshrl.u32 %v20070_v8, %v15626_v19 }
 0x269   : > { %v2639_v15 = vshll.u32 %v20070_v8, %v2627_v39  ;;  %v2554_v37 = vadd.s32 1, %v2550_v59  ;;  %v2640_v38 = vshrl.u32 %v20071_v7, %v15626_v19  ;;  %v2447_v45 = vadd.s32 3, %v15612_v50 }
 0x26a   : > { %v2432_v56 = vmul.f32 -0.001358992, %v2431_v20  ;;  %v2439_v42 = vmul.f32 -0.00019511016, %v2431_v20  ;;  %v2621_v29 = vor.u32 8388608, %v2620_v36  ;;  %v15641_v13 = vor.u32 %v2631_v21, %v2630_v34 }
 0x26b   : > { %v2555_v12 = vsel %vm2553_vm10, %v2554_v37, %v2550_v59  ;;  %v2642_v11 = vshll.u32 %v20071_v7, %v2627_v39  ;;  %v15647_v44 = vor.u32 %v2634_v23, %v2633_v4  ;;  %v2641_v49 = vor.u32 %v2640_v38, %v2639_v15 }
 0x26c   : > { %v2433_v33 = vadd.f32 0.041655596, %v2432_v56  ;;  %v2440_v58 = vadd.f32 0.008332121, %v2439_v42  ;;  %v2556_v32 = vadd.s32 %v2555_v12, %v2551_v17  ;;  %v2643_v61 = vshrl.u32 %v20072_v0, %v15626_v19 }
 0x26d   : > { %v15651_v36 = vor.u32 %v2637_v47, %v2636_v63  ;;  %vm2645_vm5 = vcmp.lt.s32.totalorder %v15619_v57, 1  ;;  %v2448_v46 = vand.u32 3, %v2447_v45  ;;  %vm2647_vm12 = vcmp.lt.s32.totalorder %v15619_v57, 3 }
 0x26e   : > { %v2434_v41 = vmul.f32 %v2433_v33, %v2431_v20  ;;  %v2441_v1 = vmul.f32 %v2440_v58, %v2431_v20  ;;  %v2557_v34 = vadd.s32 536870912, %v2556_v32  ;;  %vm2648_vm6 = vcmp.lt.s32.totalorder %v15619_v57, 4 }
 0x26f   : > { %v2644_v59 = vor.u32 %v2643_v61, %v2642_v11  ;;  %vm2646_vm2 = vcmp.lt.s32.totalorder %v15619_v57, 2  ;;  %v2653_v63 = vsel %vm2645_vm5, %v15641_v13, %v15647_v44  ;;  %v2654_v21 = vsel %vm2648_vm6, %v2641_v49, 920167782 }
 0x270   : > { %v2435_v39 = vadd.f32 -0.4999988, %v2434_v41  ;;  %v2442_v17 = vadd.f32 -0.16666654, %v2441_v1  ;;  %v15657_v4 = vshrl.u32 %v2557_v34, 30  ;;  %v15665_v23 = vshll.u32 %v2621_v29, 8 }
 0x271   : > { %vm19802_vm1 = vweird.f32 %v13815_v24  ;;  %v2655_v56 = vsel %vm2647_vm12, %v15651_v36, %v2654_v21  ;;  %vm2450_vm7 = vcmp.eq.s32.totalorder %v2448_v46, 0  ;;  %v2657_v38 = vsel %vm2645_vm5, %v15647_v44, %v15651_v36 }
 0x272   : > { %v2436_v47 = vmul.f32 %v2435_v39, %v2431_v20  ;;  %v2443_v15 = vmul.f32 %v2442_v17, %v2431_v20  ;;  %v2559_v42 = vshll.u32 %v15657_v4, 30  ;;  %v2656_v37 = vsel %vm2646_vm2, %v2653_v63, %v2655_v56 }
 0x273   : > { %vm2453_vm4 = vcmp.eq.s32.totalorder %v2448_v46, 2  ;;  %v2658_v29 = vsel %vm2648_vm6, %v2644_v59, 1326507024  ;;  %v2662_v12 = vand.u32 65535, %v15665_v23  ;;  %v2663_v11 = vshrl.u32 %v15665_v23, 16 }
 0x274   : > { %v15678_v45 = vadd.f32 1.0, %v2436_v47  ;;  %v2444_v20 = vadd.f32 1.0, %v2443_v15  ;;  %v15682_v33 = vsub.s32 %v2556_v32, %v2559_v42  ;;  %v2659_v58 = vsel %vm2647_vm12, %v2641_v49, %v2658_v29 }
 0x275   : > { %v2660_v1 = vsel %vm2646_vm2, %v2657_v38, %v2659_v58  ;;  %v2687_v34 = vshrl.u32 %v2656_v37, 16  ;;  %vm2449_vm0 = vcmp.lt.s32.totalorder %v2448_v46, 2  ;;  %v2686_v59 = vand.u32 65535, %v2656_v37 }
 0x276   : > { %20138 = vst [vmem:[#allocation76_spill] sm:$0xff] %v15678_v45  ;;  %v15688_v61 = vmul.f32 %v2444_v20, %v2429_v22  ;;  %v19786_v41 = vxor.u32 2147483648, %v15678_v45  ;;  %vm2561_vm10 = vcmp.lt.s32.totalorder %v15682_v33, 0  ;;  %v2562_v32 = vsub.s32 0, %v15682_v33 }
 0x277   : > { %v2664_v39 = vand.u32 65535, %v2660_v1  ;;  %v2665_v17 = vshrl.u32 %v2660_v1, 16  ;;  %v2689_v38 = vmul.u32 %v2687_v34, %v2662_v12  ;;  %v2771_v20 = vand.u32 2139095040, %v13821_v27 }
 0x278   : > { %20139 = vst [vmem:[#allocation77_spill] sm:$0xff] %v15688_v61  ;;  %v19787_v49 = vxor.u32 2147483648, %v15688_v61  ;;  %v2455_v22 = vsel %vm2453_vm4, %v19786_v41, %v15688_v61  ;;  %v2563_v63 = vsel %vm2561_vm10, %v2562_v32, %v15682_v33  ;;  %v2629_v46 = vshrl.u32 %v20067_v3, %v15626_v19 }
 0x279   : > { %v2666_v21 = vmul.u32 %v2664_v39, %v2662_v12  ;;  %v2667_v47 = vmul.u32 %v2665_v17, %v2662_v12  ;;  %v2668_v15 = vmul.u32 %v2664_v39, %v2663_v11  ;;  %v2564_v42 = vclz %v2563_v63 }
 0x27a   : > { %v2452_v56 = vsel %vm2450_vm7, %v15678_v45, %v19787_v49  ;;  %v2669_v58 = vmul.u32 %v2665_v17, %v2663_v11  ;;  %v2552_v39 = vadd.s32 %v15606_v60, %v15608_v52  ;;  %v2582_v49 = vsub.s32 4, %v15657_v4 }
 0x27b   : > { %v2456_v29 = vsel %vm2449_vm0, %v2452_v56, %v2455_v22  ;;  %v2670_v37 = vshll.u32 %v2667_v47, 16  ;;  %v2672_v1 = vshll.u32 %v2668_v15, 16  ;;  %v13073_v41 = vadd.s32 4294967294, %v2564_v42 }
 0x27c   : > { %v2457_v32 = vsel %vm19802_vm1, nan, %v2456_v29  ;;  %v2688_v45 = vmul.u32 %v2686_v59, %v2662_v12  ;;  %v20140_v17 = vand.u32 2147483647, %v13817_v25  ;;  %v2671_v56 = vshrl.u32 %v2667_v47, 16 }
 0x27d   : > { %vm2674_vm7 = vc.u32 %v2666_v21, %v2670_v37  ;;  %v2676_v63 = vadd.s32 %v2670_v37, %v2666_v21  ;;  %6655 = vst [vmem:[%s14173_s11 + $0x60] sm:$0xff] %v2457_v32  ;;  %vm13074_vm4 = vcmp.lt.s32.totalorder %v13073_v41, 0  ;;  %v2690_v52 = vmul.u32 %v2686_v59, %v2663_v11 }
 0x27e   : > { %vm15717_vm0 = vcmp.le.f32.partialorder %v20140_v17, 0.7853982  ;;  %v2675_v60 = vsel %vm2674_vm7, 1, %v20073_v43  ;;  %v2567_v42 = vsel %vm13074_vm4, 0, %v13073_v41  ;;  %v2692_v19 = vshll.u32 %v2689_v38, 16 }
 0x27f   : > { %v2677_v29 = vadd.s32 %v2675_v60, %v2669_v58  ;;  %vm2678_vm10 = vc.u32 %v2676_v63, %v2672_v1  ;;  %v2568_v24 = vsub.s32 32, %v2567_v42  ;;  %v2569_v21 = vshll.u32 %v15682_v33, %v2567_v42 }
 0x280   : > { %v2572_v12 = vsub.s32 4294967266, %v2567_v42  ;;  %v2679_v37 = vsel %vm2678_vm10, 1, %v20073_v43  ;;  %v2649_v32 = vsel %vm2645_vm5, %v2629_v46, %v15641_v13  ;;  %v2650_v47 = vsel %vm2648_vm6, %v15651_v36, 2102212464 }
 0x281   : > { %v2681_v17 = vadd.s32 %v2679_v37, %v2677_v29  ;;  %v2691_v59 = vmul.u32 %v2687_v34, %v2663_v11  ;;  %v2570_v41 = vshrl.u32 %v2552_v39, %v2568_v24  ;;  %v2583_v1 = vsel %vm2460_vm9, %v2582_v49, %v15657_v4 }
 0x282   : > { %v2573_v58 = vadd.s32 127, %v2572_v12  ;;  %v2694_v33 = vshll.u32 %v2690_v52, 16  ;;  %v2673_v63 = vshrl.u32 %v2668_v15, 16  ;;  %vm2696_vm7 = vc.u32 %v2688_v45, %v2692_v19 }
 0x283   : > { %v2682_v60 = vadd.s32 %v2681_v17, %v2671_v56  ;;  %v2698_v42 = vadd.s32 %v2692_v19, %v2688_v45  ;;  %v2571_v61 = vor.u32 %v2570_v41, %v2569_v21  ;;  %v2697_v13 = vsel %vm2696_vm7, 1, %v20073_v43 }
 0x284   : > { %v2574_v16 = vshll.u32 %v2573_v58, 23  ;;  %v2772_v46 = vshrl.u32 %v2771_v20, 23  ;;  %v2651_v36 = vsel %vm2647_vm12, %v15647_v44, %v2650_v47  ;;  %v2693_v24 = vshrl.u32 %v2689_v38, 16 }
 0x285   : > { %v2699_v11 = vadd.s32 %v2697_v13, %v2691_v59  ;;  %vm2700_vm5 = vc.u32 %v2698_v42, %v2694_v33  ;;  %v2578_v39 = vcvt.s32.f32 %v2571_v61  ;;  %v15740_v45 = vsel %vm15717_vm0, 0, %v2583_v1 }
 0x286   : > { %v2575_v34 = vor.u32 4788187, %v2574_v16  ;;  %v2701_v4 = vsel %vm2700_vm5, 1, %v20073_v43  ;;  %v13078_v49 = vadd.s32 4294967169, %v2772_v46  ;;  %v2695_v15 = vshrl.u32 %v2690_v52, 16 }
 0x287   : > { %v2703_v56 = vadd.s32 %v2701_v4, %v2699_v11  ;;  %v2683_v20 = vadd.s32 %v2682_v60, %v2673_v63  ;;  %v2702_v19 = vadd.s32 %v2698_v42, %v2694_v33  ;;  %v2652_v44 = vsel %vm2646_vm2, %v2649_v32, %v2651_v36 }
 0x288   : > { %v2576_v29 = vand.u32 2147483647, %v2575_v34  ;;  %v2778_v21 = vadd.s32 1, %v13078_v49  ;;  %v2602_v16 = vadd.s32 3, %v15740_v45  ;;  %v19797_v37 = vand.u32 2147483647, %v13821_v27 }
 0x289   : > { %v2704_v38 = vadd.s32 %v2703_v56, %v2693_v24  ;;  %v2706_v52 = vmul.u32 %v15665_v23, %v2652_v44  ;;  %vm2708_vm6 = vc.u32 %v2683_v20, %v2702_v19  ;;  %v15758_v33 = vadd.s32 %v2702_v19, %v2683_v20 }
 0x28a   : > { %v2579_v12 = vmul.f32 %v2578_v39, %v2576_v29  ;;  %vm2779_vm12 = vcmp.gt.s32.totalorder %v2778_v21, 0  ;;  %v15756_v1 = vand.u32 3, %v2602_v16  ;;  %v2775_v42 = vand.u32 8388607, %v19797_v37 }
 0x28b   : > { %v2705_v61 = vadd.s32 %v2704_v38, %v2695_v15  ;;  %v2780_v47 = vsel %vm2779_vm12, %v2778_v21, 0  ;;  %v2926_v44 = vand.u32 2139095040, %v13823_v2  ;;  %vm19801_vm5 = vweird.f32 %v13817_v25 }
 0x28c   : > { %v2580_v17 = vxor.u32 2147483648, %v2579_v12  ;;  %v2782_v59 = vand.u32 31, %v2780_v47  ;;  %v15773_v49 = vshrl.u32 %v2780_v47, 5  ;;  %v2776_v38 = vor.u32 8388608, %v2775_v42 }
 0x28d   : > { %v2709_v41 = vadd.s32 1, %v2705_v61  ;;  %vm2605_vm2 = vcmp.eq.s32.totalorder %v15756_v1, 0  ;;  %vm2604_vm10 = vcmp.lt.s32.totalorder %v15756_v1, 2  ;;  %vm2770_vm1 = vcmp.lt.s32.totalorder %v13821_v27, 0 }
 0x28e   : > { %v2581_v58 = vsel %vm2460_vm9, %v2580_v17, %v2579_v12  ;;  %v15749_v57 = vsub.s32 32, %v2782_v59  ;;  %v2785_v13 = vshll.u32 %v20067_v3, %v2782_v59  ;;  %v2788_v22 = vshll.u32 %v20068_v51, %v2782_v59 }
 0x28f   : > { %v15754_v32 = vsel %vm15717_vm0, %v13817_v25, %v2581_v58  ;;  %v2710_v63 = vsel %vm2708_vm6, %v2709_v41, %v2705_v61  ;;  %v2794_v24 = vshll.u32 %v20070_v8, %v2782_v59  ;;  %v2791_v15 = vshll.u32 %v20069_v54, %v2782_v59 }
 0x290   : > { %v2586_v23 = vmul.f32 %v15754_v32, %v15754_v32  ;;  %v2711_v60 = vadd.s32 %v2710_v63, %v2706_v52  ;;  %v2786_v46 = vshrl.u32 %v20068_v51, %v15749_v57  ;;  %v2789_v36 = vshrl.u32 %v20069_v54, %v15749_v57 }
 0x291   : > { %v2795_v4 = vshrl.u32 %v20071_v7, %v15749_v57  ;;  %v2792_v56 = vshrl.u32 %v20070_v8, %v15749_v57  ;;  %v2797_v29 = vshll.u32 %v20071_v7, %v2782_v59  ;;  %vm2608_vm9 = vcmp.eq.s32.totalorder %v15756_v1, 2 }
 0x292   : > { %v2587_v11 = vmul.f32 -0.001358992, %v2586_v23  ;;  %v2594_v34 = vmul.f32 -0.00019511016, %v2586_v23  ;;  %v2712_v39 = vadd.s32 536870912, %v2711_v60  ;;  %v15783_v12 = vor.u32 %v2786_v46, %v2785_v13 }
 0x293   : > { %v2796_v16 = vor.u32 %v2795_v4, %v2794_v24  ;;  %v2798_v61 = vshrl.u32 %v20072_v0, %v15749_v57  ;;  %v15788_v59 = vor.u32 %v2789_v36, %v2788_v22  ;;  %v2793_v41 = vor.u32 %v2792_v56, %v2791_v15 }
 0x294   : > { %v2588_v20 = vadd.f32 0.041655596, %v2587_v11  ;;  %v2595_v19 = vadd.f32 0.008332121, %v2594_v34  ;;  %v15779_v21 = vshrl.u32 %v2712_v39, 30  ;;  %vm2800_vm0 = vcmp.lt.s32.totalorder %v15773_v49, 1 }
 0x295   : > { %v2799_v58 = vor.u32 %v2798_v61, %v2797_v29  ;;  %vm2803_vm4 = vcmp.lt.s32.totalorder %v15773_v49, 4  ;;  %vm2802_vm7 = vcmp.lt.s32.totalorder %v15773_v49, 3  ;;  %vm2801_vm12 = vcmp.lt.s32.totalorder %v15773_v49, 2 }
 0x296   : > { %v2589_v47 = vmul.f32 %v2588_v20, %v2586_v23  ;;  %v2596_v17 = vmul.f32 %v2595_v19, %v2586_v23  ;;  %v2714_v52 = vshll.u32 %v15779_v21, 30  ;;  %v2809_v46 = vsel %vm2803_vm4, %v2796_v16, 920167782 }
 0x297   : > { %v15801_v22 = vshll.u32 %v2776_v38, 8  ;;  %v2927_v36 = vshrl.u32 %v2926_v44, 23  ;;  %v2810_v39 = vsel %vm2802_vm7, %v2793_v41, %v2809_v46  ;;  %v2812_v4 = vsel %vm2800_vm0, %v15788_v59, %v2793_v41 }
 0x298   : > { %v2590_v63 = vadd.f32 -0.4999988, %v2589_v47  ;;  %v2597_v42 = vadd.f32 -0.16666654, %v2596_v17  ;;  %v15794_v13 = vsub.s32 %v2711_v60, %v2714_v52  ;;  %v2808_v60 = vsel %vm2800_vm0, %v15783_v12, %v15788_v59 }
 0x299   : > { %v2813_v15 = vsel %vm2803_vm4, %v2799_v58, 1326507024  ;;  %v2817_v38 = vand.u32 65535, %v15801_v22  ;;  %v2818_v61 = vshrl.u32 %v15801_v22, 16  ;;  %v2811_v52 = vsel %vm2801_vm12, %v2808_v60, %v2810_v39 }
 0x29a   : > { %v2591_v24 = vmul.f32 %v2590_v63, %v2586_v23  ;;  %v2598_v11 = vmul.f32 %v2597_v42, %v2586_v23  ;;  %vm2716_vm6 = vcmp.lt.s32.totalorder %v15794_v13, 0  ;;  %v2717_v34 = vsub.s32 0, %v15794_v13 }
 0x29b   : > { %v2814_v44 = vsel %vm2802_vm7, %v2796_v16, %v2813_v15  ;;  %v2841_v39 = vand.u32 65535, %v2811_v52 }
 0x29c   : > { %v15816_v23 = vadd.f32 1.0, %v2591_v24  ;;  %v2599_v56 = vadd.f32 1.0, %v2598_v11  ;;  %v2718_v29 = vsel %vm2716_vm6, %v2717_v34, %v15794_v13  ;;  %v2815_v58 = vsel %vm2801_vm12, %v2812_v4, %v2814_v44 }
 0x29d   : > { %v2719_v19 = vclz %v2718_v29  ;;  %v2819_v42 = vand.u32 65535, %v2815_v58  ;;  %v2820_v46 = vshrl.u32 %v2815_v58, 16  ;;  %v13081_v24 = vadd.s32 4294967169, %v2927_v36 }
 0x29e   : > { %20143 = vst [vmem:[#allocation78_spill] sm:$0xff] %v15816_v23  ;;  %v15825_v47 = vmul.f32 %v2599_v56, %v15754_v32  ;;  %v19795_v17 = vxor.u32 2147483648, %v15816_v23  ;;  %v2737_v11 = vsub.s32 4, %v15779_v21  ;;  %v2784_v34 = vshrl.u32 %v20067_v3, %v15749_v57 }
 0x29f   : > { %v13076_v63 = vadd.s32 4294967294, %v2719_v19  ;;  %v2822_v60 = vmul.u32 %v2820_v46, %v2817_v38  ;;  %v2842_v4 = vshrl.u32 %v2811_v52, 16  ;;  %v2821_v56 = vmul.u32 %v2819_v42, %v2817_v38 }
 0x2a0   : > { %20144 = vst [vmem:[#allocation79_spill] sm:$0xff] %v15825_v47  ;;  %v19796_v16 = vxor.u32 2147483648, %v15825_v47  ;;  %v2610_v32 = vsel %vm2608_vm9, %v19795_v17, %v15825_v47  ;;  %v2823_v29 = vmul.u32 %v2819_v42, %v2818_v61  ;;  %vm2615_vm9 = vcmp.lt.s32.totalorder %v13819_v26, 0 }
 0x2a1   : > { %vm13077_vm6 = vcmp.lt.s32.totalorder %v13076_v63, 0  ;;  %v2804_v17 = vsel %vm2800_vm0, %v2784_v34, %v15783_v12  ;;  %v2933_v42 = vadd.s32 1, %v13081_v24  ;;  %v2826_v37 = vshrl.u32 %v2822_v60, 16 }
 0x2a2   : > { %v2607_v36 = vsel %vm2605_vm2, %v15816_v23, %v19796_v16  ;;  %v2722_v15 = vsel %vm13077_vm6, 0, %v13076_v63  ;;  %v2805_v63 = vsel %vm2803_vm4, %v2793_v41, 2102212464  ;;  %v2825_v16 = vshll.u32 %v2822_v60, 16 }
 0x2a3   : > { %v2611_v19 = vsel %vm2604_vm10, %v2607_v36, %v2610_v32  ;;  %v2723_v57 = vsub.s32 32, %v2722_v15  ;;  %v2724_v44 = vshll.u32 %v15794_v13, %v2722_v15  ;;  %v2727_v58 = vsub.s32 4294967266, %v2722_v15 }
 0x2a4   : > { %v2612_v52 = vsel %vm19801_vm5, nan, %v2611_v19  ;;  %v2824_v36 = vmul.u32 %v2820_v46, %v2818_v61  ;;  %v2827_v13 = vshll.u32 %v2823_v29, 16  ;;  %v2843_v15 = vmul.u32 %v2841_v39, %v2817_v38 }
 0x2a5   : > { %v2725_v1 = vshrl.u32 %v15758_v33, %v2723_v57  ;;  %v2728_v32 = vadd.s32 127, %v2727_v58  ;;  %6656 = vst [vmem:[%s14173_s11 + $0x68] sm:$0xff] %v2612_v52  ;;  %v2844_v20 = vmul.u32 %v2842_v4, %v2817_v38  ;;  %v20145_v19 = vand.u32 2147483647, %v13819_v26 }
 0x2a6   : > { %vm2829_vm0 = vc.u32 %v2821_v56, %v2825_v16  ;;  %v2831_v41 = vadd.s32 %v2825_v16, %v2821_v56  ;;  %v2845_v24 = vmul.u32 %v2841_v39, %v2818_v61  ;;  %v2846_v46 = vmul.u32 %v2842_v4, %v2818_v61 }
 0x2a7   : > { %vm15861_vm2 = vcmp.le.f32.partialorder %v20145_v19, 0.7853982  ;;  %v2726_v12 = vor.u32 %v2725_v1, %v2724_v44  ;;  %v2729_v34 = vshll.u32 %v2728_v32, 23  ;;  %v2830_v33 = vsel %vm2829_vm0, 1, %v20073_v43 }
 0x2a8   : > { %v2847_v57 = vshll.u32 %v2844_v20, 16  ;;  %v2832_v52 = vadd.s32 %v2830_v33, %v2824_v36  ;;  %vm2833_vm4 = vc.u32 %v2831_v41, %v2827_v13  ;;  %v2806_v38 = vsel %vm2802_vm7, %v15788_v59, %v2805_v63 }
 0x2a9   : > { %v2730_v58 = vor.u32 4788187, %v2729_v34  ;;  %v2733_v60 = vcvt.s32.f32 %v2726_v12  ;;  %v2828_v19 = vshrl.u32 %v2823_v29, 16  ;;  %v2834_v23 = vsel %vm2833_vm4, 1, %v20073_v43 }
 0x2aa   : > { %v2849_v44 = vshll.u32 %v2845_v24, 16  ;;  %v2836_v32 = vadd.s32 %v2834_v23, %v2832_v52  ;;  %vm2851_vm10 = vc.u32 %v2843_v15, %v2847_v57  ;;  %v2853_v16 = vadd.s32 %v2847_v57, %v2843_v15 }
 0x2ab   : > { %v2731_v1 = vand.u32 2147483647, %v2730_v58  ;;  %v2738_v61 = vsel %vm2615_vm9, %v2737_v11, %v15779_v21  ;;  %v2848_v39 = vshrl.u32 %v2844_v20, 16  ;;  %v2852_v4 = vsel %vm2851_vm10, 1, %v20073_v43 }
 0x2ac   : > { %vm2934_vm6 = vcmp.gt.s32.totalorder %v2933_v42, 0  ;;  %v2837_v36 = vadd.s32 %v2836_v32, %v2826_v37  ;;  %v2854_v13 = vadd.s32 %v2852_v4, %v2846_v46  ;;  %vm2855_vm7 = vc.u32 %v2853_v16, %v2849_v44 }
 0x2ad   : > { %v2734_v56 = vmul.f32 %v2733_v60, %v2731_v1  ;;  %v2807_v59 = vsel %vm2801_vm12, %v2804_v17, %v2806_v38  ;;  %v2856_v29 = vsel %vm2855_vm7, 1, %v20073_v43  ;;  %v15877_v23 = vadd.s32 %v2853_v16, %v2849_v44 }
 0x2ae   : > { %v2935_v63 = vsel %vm2934_vm6, %v2933_v42, 0  ;;  %v15879_v12 = vadd.s32 %v2837_v36, %v2828_v19  ;;  %v2850_v21 = vshrl.u32 %v2845_v24, 16  ;;  %v2858_v20 = vadd.s32 %v2856_v29, %v2854_v13 }
 0x2af   : > { %v2735_v15 = vxor.u32 2147483648, %v2734_v56  ;;  %v15883_v11 = vsel %vm15861_vm2, 0, %v2738_v61  ;;  %v20148_v37 = vand.u32 2147483647, %v13823_v2  ;;  %v2937_v41 = vand.u32 31, %v2935_v63 }
 0x2b0   : > { %v2859_v17 = vadd.s32 %v2858_v20, %v2848_v39  ;;  %v2861_v33 = vmul.u32 %v15801_v22, %v2807_v59  ;;  %v15890_v42 = vshrl.u32 %v2935_v63, 5  ;;  %vm2863_vm12 = vc.u32 %v15879_v12, %v15877_v23 }
 0x2b1   : > { %v2930_v34 = vand.u32 8388607, %v20148_v37  ;;  %v2736_v49 = vsel %vm2615_vm9, %v2735_v15, %v2734_v56  ;;  %v15897_v46 = vsub.s32 32, %v2937_v41  ;;  %v2940_v57 = vshll.u32 %v20067_v3, %v2937_v41 }
 0x2b2   : > { %v2739_v24 = vsel %vm15861_vm2, %v13819_v26, %v2736_v49  ;;  %v2860_v60 = vadd.s32 %v2859_v17, %v2850_v21  ;;  %v2943_v52 = vshll.u32 %v20068_v51, %v2937_v41  ;;  %v2946_v38 = vshll.u32 %v20069_v54, %v2937_v41 }
 0x2b3   : > { %v2741_v58 = vmul.f32 %v2739_v24, %v2739_v24  ;;  %v2941_v22 = vshrl.u32 %v20068_v51, %v15897_v46  ;;  %v2944_v25 = vshrl.u32 %v20069_v54, %v15897_v46  ;;  %v2947_v19 = vshrl.u32 %v20070_v8, %v15897_v46 }
 0x2b4   : > { %v2949_v44 = vshll.u32 %v20070_v8, %v2937_v41  ;;  %v2864_v16 = vadd.s32 1, %v2860_v60  ;;  %v2950_v61 = vshrl.u32 %v20071_v7, %v15897_v46  ;;  %v2757_v39 = vadd.s32 3, %v15883_v11 }
 0x2b5   : > { %v2742_v1 = vmul.f32 -0.001358992, %v2741_v58  ;;  %v2749_v32 = vmul.f32 -0.00019511016, %v2741_v58  ;;  %v2931_v4 = vor.u32 8388608, %v2930_v34  ;;  %v15912_v56 = vor.u32 %v2941_v22, %v2940_v57 }
 0x2b6   : > { %v2865_v59 = vsel %vm2863_vm12, %v2864_v16, %v2860_v60  ;;  %v2952_v29 = vshll.u32 %v20071_v7, %v2937_v41  ;;  %v15918_v15 = vor.u32 %v2944_v25, %v2943_v52  ;;  %v2951_v21 = vor.u32 %v2950_v61, %v2949_v44 }
 0x2b7   : > { %v2743_v36 = vadd.f32 0.041655596, %v2742_v1  ;;  %v2750_v13 = vadd.f32 0.008332121, %v2749_v32  ;;  %v2866_v63 = vadd.s32 %v2865_v59, %v2861_v33  ;;  %v2953_v20 = vshrl.u32 %v20072_v0, %v15897_v46 }
 0x2b8   : > { %v15922_v34 = vor.u32 %v2947_v19, %v2946_v38  ;;  %vm2955_vm9 = vcmp.lt.s32.totalorder %v15890_v42, 1  ;;  %v2758_v17 = vand.u32 3, %v2757_v39  ;;  %vm2957_vm2 = vcmp.lt.s32.totalorder %v15890_v42, 3 }
 0x2b9   : > { %v2744_v37 = vmul.f32 %v2743_v36, %v2741_v58  ;;  %v2751_v49 = vmul.f32 %v2750_v13, %v2741_v58  ;;  %v2867_v57 = vadd.s32 536870912, %v2866_v63  ;;  %vm2958_vm0 = vcmp.lt.s32.totalorder %v15890_v42, 4 }
 0x2ba   : > { %v2954_v60 = vor.u32 %v2953_v20, %v2952_v29  ;;  %vm2956_vm4 = vcmp.lt.s32.totalorder %v15890_v42, 2  ;;  %v2963_v38 = vsel %vm2955_vm9, %v15912_v56, %v15918_v15  ;;  %v2964_v22 = vsel %vm2958_vm0, %v2951_v21, 920167782 }
 0x2bb   : > { %v2745_v41 = vadd.f32 -0.4999988, %v2744_v37  ;;  %v2752_v33 = vadd.f32 -0.16666654, %v2751_v49  ;;  %v15928_v52 = vshrl.u32 %v2867_v57, 30  ;;  %v15936_v25 = vshll.u32 %v2931_v4, 8 }
 0x2bc   : > { %vm19821_vm10 = vweird.f32 %v13819_v26  ;;  %v2965_v1 = vsel %vm2957_vm2, %v15922_v34, %v2964_v22  ;;  %vm2760_vm6 = vcmp.eq.s32.totalorder %v2758_v17, 0  ;;  %v2967_v61 = vsel %vm2955_vm9, %v15918_v15, %v15922_v34 }
 0x2bd   : > { %v2746_v19 = vmul.f32 %v2745_v41, %v2741_v58  ;;  %v2753_v44 = vmul.f32 %v2752_v33, %v2741_v58  ;;  %v2869_v32 = vshll.u32 %v15928_v52, 30  ;;  %v2966_v16 = vsel %vm2956_vm4, %v2963_v38, %v2965_v1 }
 0x2be   : > { %vm2763_vm7 = vcmp.eq.s32.totalorder %v2758_v17, 2  ;;  %v2968_v4 = vsel %vm2958_vm0, %v2954_v60, 1326507024  ;;  %v2972_v59 = vand.u32 65535, %v15936_v25  ;;  %v2973_v29 = vshrl.u32 %v15936_v25, 16 }
 0x2bf   : > { %v15949_v39 = vadd.f32 1.0, %v2746_v19  ;;  %v2754_v58 = vadd.f32 1.0, %v2753_v44  ;;  %v15953_v36 = vsub.s32 %v2866_v63, %v2869_v32  ;;  %v2969_v13 = vsel %vm2957_vm2, %v2951_v21, %v2968_v4 }
 0x2c0   : > { %v2970_v49 = vsel %vm2956_vm4, %v2967_v61, %v2969_v13  ;;  %v2997_v57 = vshrl.u32 %v2966_v16, 16  ;;  %vm2759_vm5 = vcmp.lt.s32.totalorder %v2758_v17, 2  ;;  %v2996_v60 = vand.u32 65535, %v2966_v16 }
 0x2c1   : > { %20149 = vst [vmem:[#allocation80_spill] sm:$0xff] %v15949_v39  ;;  %v15959_v20 = vmul.f32 %v2754_v58, %v2739_v24  ;;  %v19803_v37 = vxor.u32 2147483648, %v15949_v39  ;;  %vm2871_vm12 = vcmp.lt.s32.totalorder %v15953_v36, 0  ;;  %v2872_v63 = vsub.s32 0, %v15953_v36 }
 0x2c2   : > { %v2974_v41 = vand.u32 65535, %v2970_v49  ;;  %v2975_v33 = vshrl.u32 %v2970_v49, 16  ;;  %v2999_v61 = vmul.u32 %v2997_v57, %v2972_v59  ;;  %v3081_v58 = vand.u32 2139095040, %v13825_v28 }
 0x2c3   : > { %20150 = vst [vmem:[#allocation81_spill] sm:$0xff] %v15959_v20  ;;  %v19804_v21 = vxor.u32 2147483648, %v15959_v20  ;;  %v2765_v24 = vsel %vm2763_vm7, %v19803_v37, %v15959_v20  ;;  %v2873_v38 = vsel %vm2871_vm12, %v2872_v63, %v15953_v36  ;;  %v2939_v17 = vshrl.u32 %v20067_v3, %v15897_v46 }
 0x2c4   : > { %v2976_v22 = vmul.u32 %v2974_v41, %v2972_v59  ;;  %v2977_v19 = vmul.u32 %v2975_v33, %v2972_v59  ;;  %v2978_v44 = vmul.u32 %v2974_v41, %v2973_v29  ;;  %v2874_v32 = vclz %v2873_v38 }
 0x2c5   : > { %v2762_v1 = vsel %vm2760_vm6, %v15949_v39, %v19804_v21  ;;  %v2979_v13 = vmul.u32 %v2975_v33, %v2973_v29  ;;  %v2862_v41 = vadd.s32 %v15877_v23, %v15879_v12  ;;  %v2892_v21 = vsub.s32 4, %v15928_v52 }
 0x2c6   : > { %v2766_v4 = vsel %vm2759_vm5, %v2762_v1, %v2765_v24  ;;  %v2980_v16 = vshll.u32 %v2977_v19, 16  ;;  %v2982_v49 = vshll.u32 %v2978_v44, 16  ;;  %v13079_v37 = vadd.s32 4294967294, %v2874_v32 }
 0x2c7   : > { %v2767_v63 = vsel %vm19821_vm10, nan, %v2766_v4  ;;  %v2998_v39 = vmul.u32 %v2996_v60, %v2972_v59  ;;  %v20151_v33 = vand.u32 2147483647, %v13821_v27  ;;  %v2981_v1 = vshrl.u32 %v2977_v19, 16 }
 0x2c8   : > { %vm2984_vm6 = vc.u32 %v2976_v22, %v2980_v16  ;;  %v2986_v38 = vadd.s32 %v2980_v16, %v2976_v22  ;;  %6657 = vst [vmem:[%s14173_s11 + $0x70] sm:$0xff] %v2767_v63  ;;  %vm13080_vm7 = vcmp.lt.s32.totalorder %v13079_v37, 0  ;;  %v3000_v12 = vmul.u32 %v2996_v60, %v2973_v29 }
 0x2c9   : > { %vm15988_vm5 = vcmp.le.f32.partialorder %v20151_v33, 0.7853982  ;;  %v2985_v23 = vsel %vm2984_vm6, 1, %v20073_v43  ;;  %v2877_v32 = vsel %vm13080_vm7, 0, %v13079_v37  ;;  %v3002_v46 = vshll.u32 %v2999_v61, 16 }
 0x2ca   : > { %v2987_v4 = vadd.s32 %v2985_v23, %v2979_v13  ;;  %vm2988_vm12 = vc.u32 %v2986_v38, %v2982_v49  ;;  %v2878_v26 = vsub.s32 32, %v2877_v32  ;;  %v2879_v22 = vshll.u32 %v15953_v36, %v2877_v32 }
 0x2cb   : > { %v2882_v59 = vsub.s32 4294967266, %v2877_v32  ;;  %v2989_v16 = vsel %vm2988_vm12, 1, %v20073_v43  ;;  %v2959_v63 = vsel %vm2955_vm9, %v2939_v17, %v15912_v56  ;;  %v2960_v19 = vsel %vm2958_vm0, %v15922_v34, 2102212464 }
 0x2cc   : > { %v2991_v33 = vadd.s32 %v2989_v16, %v2987_v4  ;;  %v3001_v60 = vmul.u32 %v2997_v57, %v2973_v29  ;;  %v2880_v37 = vshrl.u32 %v2862_v41, %v2878_v26  ;;  %v2893_v49 = vsel %vm2770_vm1, %v2892_v21, %v15928_v52 }
 0x2cd   : > { %v2883_v13 = vadd.s32 127, %v2882_v59  ;;  %v3004_v36 = vshll.u32 %v3000_v12, 16  ;;  %v2983_v38 = vshrl.u32 %v2978_v44, 16  ;;  %vm3006_vm6 = vc.u32 %v2998_v39, %v3002_v46 }
 0x2ce   : > { %v2992_v23 = vadd.s32 %v2991_v33, %v2981_v1  ;;  %v3008_v32 = vadd.s32 %v3002_v46, %v2998_v39  ;;  %v2881_v20 = vor.u32 %v2880_v37, %v2879_v22  ;;  %v3007_v56 = vsel %vm3006_vm6, 1, %v20073_v43 }
 0x2cf   : > { %v2884_v47 = vshll.u32 %v2883_v13, 23  ;;  %v3082_v17 = vshrl.u32 %v3081_v58, 23  ;;  %v2961_v34 = vsel %vm2957_vm2, %v15918_v15, %v2960_v19  ;;  %v3003_v26 = vshrl.u32 %v2999_v61, 16 }
 0x2d0   : > { %v3009_v29 = vadd.s32 %v3007_v56, %v3001_v60  ;;  %vm3010_vm9 = vc.u32 %v3008_v32, %v3004_v36  ;;  %v2888_v41 = vcvt.s32.f32 %v2881_v20  ;;  %v16011_v39 = vsel %vm15988_vm5, 0, %v2893_v49 }
 0x2d1   : > { %v2885_v57 = vor.u32 4788187, %v2884_v47  ;;  %v3011_v52 = vsel %vm3010_vm9, 1, %v20073_v43  ;;  %v13084_v21 = vadd.s32 4294967169, %v3082_v17  ;;  %20154 = vst [vmem:[#allocation82_spill] sm:$0xff] %v16011_v39  ;;  %v3005_v44 = vshrl.u32 %v3000_v12, 16 }
 0x2d2   : > { %v3013_v1 = vadd.s32 %v3011_v52, %v3009_v29  ;;  %v2993_v58 = vadd.s32 %v2992_v23, %v2983_v38  ;;  %v3012_v46 = vadd.s32 %v3008_v32, %v3004_v36  ;;  %v2962_v15 = vsel %vm2956_vm4, %v2959_v63, %v2961_v34 }
 0x2d3   : > { %v2886_v4 = vand.u32 2147483647, %v2885_v57  ;;  %v3088_v22 = vadd.s32 1, %v13084_v21  ;;  %v2912_v47 = vadd.s32 3, %v16011_v39  ;;  %v19814_v16 = vand.u32 2147483647, %v13825_v28 }
 0x2d4   : > { %v3014_v61 = vadd.s32 %v3013_v1, %v3003_v26  ;;  %v3016_v12 = vmul.u32 %v15936_v25, %v2962_v15  ;;  %vm3018_vm0 = vc.u32 %v2993_v58, %v3012_v46  ;;  %v16029_v36 = vadd.s32 %v3012_v46, %v2993_v58  ;;  %v20155_v15 = vld [vmem:[#allocation31_spill] sm:$0xff] }
 0x2d5   : > { %v2889_v59 = vmul.f32 %v2888_v41, %v2886_v4  ;;  %vm3089_vm2 = vcmp.gt.s32.totalorder %v3088_v22, 0  ;;  %v16027_v49 = vand.u32 3, %v2912_v47  ;;  %v3085_v32 = vand.u32 8388607, %v19814_v16 }
 0x2d6   : > { %v3015_v20 = vadd.s32 %v3014_v61, %v3005_v44  ;;  %v3090_v19 = vsel %vm3089_vm2, %v3088_v22, 0  ;;  %v3236_v61 = vand.u32 2139095040, %v20155_v15  ;;  %vm19820_vm9 = vweird.f32 %v13821_v27 }
 0x2d7   : > { %v2890_v33 = vxor.u32 2147483648, %v2889_v59  ;;  %v3092_v60 = vand.u32 31, %v3090_v19  ;;  %v16044_v21 = vshrl.u32 %v3090_v19, 5  ;;  %vm2915_vm4 = vcmp.eq.s32.totalorder %v16027_v49, 0 }
 0x2d8   : > { %v3019_v37 = vadd.s32 1, %v3015_v20  ;;  %vm2914_vm12 = vcmp.lt.s32.totalorder %v16027_v49, 2  ;;  %vm3080_vm10 = vcmp.lt.s32.totalorder %v13825_v28, 0 }
 0x2d9   : > { %v2891_v13 = vsel %vm2770_vm1, %v2890_v33, %v2889_v59  ;;  %v16020_v42 = vsub.s32 32, %v3092_v60  ;;  %v3095_v56 = vshll.u32 %v20067_v3, %v3092_v60  ;;  %v3098_v24 = vshll.u32 %v20068_v51, %v3092_v60 }
 0x2da   : > { %v16025_v63 = vsel %vm15988_vm5, %v13821_v27, %v2891_v13  ;;  %v3020_v38 = vsel %vm3018_vm0, %v3019_v37, %v3015_v20  ;;  %v3104_v26 = vshll.u32 %v20070_v8, %v3092_v60  ;;  %v3101_v44 = vshll.u32 %v20069_v54, %v3092_v60 }
 0x2db   : > { %v2896_v25 = vmul.f32 %v16025_v63, %v16025_v63  ;;  %v3021_v23 = vadd.s32 %v3020_v38, %v3016_v12  ;;  %v3096_v17 = vshrl.u32 %v20068_v51, %v16020_v42  ;;  %v3099_v34 = vshrl.u32 %v20069_v54, %v16020_v42 }
 0x2dc   : > { %v3105_v52 = vshrl.u32 %v20071_v7, %v16020_v42  ;;  %v3102_v1 = vshrl.u32 %v20070_v8, %v16020_v42  ;;  %v3107_v4 = vshll.u32 %v20071_v7, %v3092_v60  ;;  %vm2918_vm1 = vcmp.eq.s32.totalorder %v16027_v49, 2 }
 0x2dd   : > { %v2897_v29 = vmul.f32 -0.001358992, %v2896_v25  ;;  %v2904_v57 = vmul.f32 -0.00019511016, %v2896_v25  ;;  %v3022_v41 = vadd.s32 536870912, %v3021_v23  ;;  %v3086_v59 = vor.u32 8388608, %v3085_v32 }
 0x2de   : > { %v16054_v47 = vor.u32 %v3096_v17, %v3095_v56  ;;  %v3106_v20 = vor.u32 %v3105_v52, %v3104_v26  ;;  %v3108_v19 = vshrl.u32 %v20072_v0, %v16020_v42  ;;  %v16059_v60 = vor.u32 %v3099_v34, %v3098_v24 }
 0x2df   : > { %v2898_v58 = vadd.f32 0.041655596, %v2897_v29  ;;  %v2905_v46 = vadd.f32 0.008332121, %v2904_v57  ;;  %v16050_v22 = vshrl.u32 %v3022_v41, 30  ;;  %v3103_v13 = vor.u32 %v3102_v1, %v3101_v44 }
 0x2e0   : > { %v3109_v38 = vor.u32 %v3108_v19, %v3107_v4  ;;  %vm3110_vm5 = vcmp.lt.s32.totalorder %v16044_v21, 1  ;;  %vm3113_vm7 = vcmp.lt.s32.totalorder %v16044_v21, 4  ;;  %vm3112_vm6 = vcmp.lt.s32.totalorder %v16044_v21, 3 }
 0x2e1   : > { %v2899_v33 = vmul.f32 %v2898_v58, %v2896_v25  ;;  %v2906_v12 = vmul.f32 %v2905_v46, %v2896_v25  ;;  %v3024_v37 = vshll.u32 %v16050_v22, 30  ;;  %vm3111_vm2 = vcmp.lt.s32.totalorder %v16044_v21, 2 }
 0x2e2   : > { %v3119_v24 = vsel %vm3113_vm7, %v3106_v20, 920167782  ;;  %v16072_v34 = vshll.u32 %v3086_v59, 8  ;;  %v3237_v26 = vshrl.u32 %v3236_v61, 23  ;;  %v3122_v44 = vsel %vm3110_vm5, %v16059_v60, %v3103_v13 }
 0x2e3   : > { %v2900_v32 = vadd.f32 -0.4999988, %v2899_v33  ;;  %v2907_v56 = vadd.f32 -0.16666654, %v2906_v12  ;;  %v16065_v17 = vsub.s32 %v3021_v23, %v3024_v37  ;;  %v3118_v23 = vsel %vm3110_vm5, %v16054_v47, %v16059_v60 }
 0x2e4   : > { %v3120_v52 = vsel %vm3112_vm6, %v3103_v13, %v3119_v24  ;;  %v3123_v1 = vsel %vm3113_vm7, %v3109_v38, 1326507024  ;;  %v3127_v19 = vand.u32 65535, %v16072_v34  ;;  %v3128_v33 = vshrl.u32 %v16072_v34, 16 }
 0x2e5   : > { %v2901_v29 = vmul.f32 %v2900_v32, %v2896_v25  ;;  %v2908_v57 = vmul.f32 %v2907_v56, %v2896_v25  ;;  %vm3026_vm0 = vcmp.lt.s32.totalorder %v16065_v17, 0  ;;  %v3027_v41 = vsub.s32 0, %v16065_v17 }
 0x2e6   : > { %v3124_v59 = vsel %vm3112_vm6, %v3106_v20, %v3123_v1  ;;  %v3121_v38 = vsel %vm3111_vm2, %v3118_v23, %v3120_v52  ;;  %v3094_v23 = vshrl.u32 %v20067_v3, %v16020_v42 }
 0x2e7   : > { %v16087_v25 = vadd.f32 1.0, %v2901_v29  ;;  %v2909_v4 = vadd.f32 1.0, %v2908_v57  ;;  %v3028_v58 = vsel %vm3026_vm0, %v3027_v41, %v16065_v17  ;;  %v3125_v32 = vsel %vm3111_vm2, %v3122_v44, %v3124_v59 }
 0x2e8   : > { %v3029_v61 = vclz %v3028_v58  ;;  %v3129_v24 = vand.u32 65535, %v3125_v32  ;;  %v3130_v29 = vshrl.u32 %v3125_v32, 16  ;;  %v13087_v57 = vadd.s32 4294967169, %v3237_v26 }
 0x2e9   : > { %20156 = vst [vmem:[#allocation83_spill] sm:$0xff] %v16087_v25  ;;  %v16096_v12 = vmul.f32 %v2909_v4, %v16025_v63  ;;  %v19812_v37 = vxor.u32 2147483648, %v16087_v25  ;;  %v3047_v41 = vsub.s32 4, %v16050_v22  ;;  %v3151_v44 = vand.u32 65535, %v3121_v38 }
 0x2ea   : > { %v13082_v56 = vadd.s32 4294967294, %v3029_v61  ;;  %v3132_v52 = vmul.u32 %v3130_v29, %v3127_v19  ;;  %v3152_v1 = vshrl.u32 %v3121_v38, 16  ;;  %v3131_v58 = vmul.u32 %v3129_v24, %v3127_v19 }
 0x2eb   : > { %20157 = vst [vmem:[#allocation84_spill] sm:$0xff] %v16096_v12  ;;  %v19813_v20 = vxor.u32 2147483648, %v16096_v12  ;;  %v2920_v63 = vsel %vm2918_vm1, %v19812_v37, %v16096_v12  ;;  %v3133_v61 = vmul.u32 %v3129_v24, %v3128_v33  ;;  %vm2925_vm1 = vcmp.lt.s32.totalorder %v13823_v2, 0 }
 0x2ec   : > { %vm13083_vm0 = vcmp.lt.s32.totalorder %v13082_v56, 0  ;;  %v3243_v24 = vadd.s32 1, %v13087_v57  ;;  %v3135_v16 = vshll.u32 %v3132_v52, 16  ;;  %v3136_v46 = vshrl.u32 %v3132_v52, 16 }
 0x2ed   : > { %v2917_v26 = vsel %vm2915_vm4, %v16087_v25, %v19813_v20  ;;  %v3032_v4 = vsel %vm13083_vm0, 0, %v13082_v56  ;;  %v3114_v20 = vsel %vm3110_vm5, %v3094_v23, %v16054_v47  ;;  %v3115_v56 = vsel %vm3113_vm7, %v3103_v13, 2102212464 }
 0x2ee   : > { %v2921_v59 = vsel %vm2914_vm12, %v2917_v26, %v2920_v63  ;;  %v3033_v42 = vsub.s32 32, %v3032_v4  ;;  %v3034_v32 = vshll.u32 %v16065_v17, %v3032_v4  ;;  %v3037_v37 = vsub.s32 4294967266, %v3032_v4 }
 0x2ef   : > { %v2922_v38 = vsel %vm19820_vm9, nan, %v2921_v59  ;;  %v3134_v26 = vmul.u32 %v3130_v29, %v3128_v33  ;;  %v3137_v17 = vshll.u32 %v3133_v61, 16  ;;  %v3153_v4 = vmul.u32 %v3151_v44, %v3127_v19 }
 0x2f0   : > { %v3035_v49 = vshrl.u32 %v16029_v36, %v3033_v42  ;;  %v3038_v63 = vadd.s32 127, %v3037_v37  ;;  %6658 = vst [vmem:[%s14173_s11 + $0x78] sm:$0xff] %v2922_v38  ;;  %v3154_v25 = vmul.u32 %v3152_v1, %v3127_v19  ;;  %v20158_v59 = vand.u32 2147483647, %v13823_v2 }
 0x2f1   : > { %vm3139_vm5 = vc.u32 %v3131_v58, %v3135_v16  ;;  %v3141_v13 = vadd.s32 %v3135_v16, %v3131_v58  ;;  %v3155_v37 = vmul.u32 %v3151_v44, %v3128_v33  ;;  %v3156_v29 = vmul.u32 %v3152_v1, %v3128_v33 }
 0x2f2   : > { %vm16132_vm4 = vcmp.le.f32.partialorder %v20158_v59, 0.7853982  ;;  %v3036_v47 = vor.u32 %v3035_v49, %v3034_v32  ;;  %v3039_v23 = vshll.u32 %v3038_v63, 23  ;;  %v3140_v36 = vsel %vm3139_vm5, 1, %v20073_v43 }
 0x2f3   : > { %v3157_v57 = vshll.u32 %v3154_v25, 16  ;;  %v3142_v38 = vadd.s32 %v3140_v36, %v3134_v26  ;;  %vm3143_vm7 = vc.u32 %v3141_v13, %v3137_v17  ;;  %v3116_v19 = vsel %vm3112_vm6, %v16059_v60, %v3115_v56 }
 0x2f4   : > { %v3040_v42 = vor.u32 4788187, %v3039_v23  ;;  %v3043_v52 = vcvt.s32.f32 %v3036_v47  ;;  %v3138_v59 = vshrl.u32 %v3133_v61, 16  ;;  %v3144_v12 = vsel %vm3143_vm7, 1, %v20073_v43 }
 0x2f5   : > { %v3159_v32 = vshll.u32 %v3155_v37, 16  ;;  %v3146_v63 = vadd.s32 %v3144_v12, %v3142_v38  ;;  %vm3161_vm12 = vc.u32 %v3153_v4, %v3157_v57  ;;  %v3163_v16 = vadd.s32 %v3157_v57, %v3153_v4 }
 0x2f6   : > { %v3041_v49 = vand.u32 2147483647, %v3040_v42  ;;  %v3048_v33 = vsel %vm2925_vm1, %v3047_v41, %v16050_v22  ;;  %v3158_v44 = vshrl.u32 %v3154_v25, 16  ;;  %v3162_v1 = vsel %vm3161_vm12, 1, %v20073_v43 }
 0x2f7   : > { %vm3244_vm0 = vcmp.gt.s32.totalorder %v3243_v24, 0  ;;  %v3147_v26 = vadd.s32 %v3146_v63, %v3136_v46  ;;  %v3164_v17 = vadd.s32 %v3162_v1, %v3156_v29  ;;  %vm3165_vm6 = vc.u32 %v3163_v16, %v3159_v32 }
 0x2f8   : > { %v3044_v58 = vmul.f32 %v3043_v52, %v3041_v49  ;;  %v3117_v60 = vsel %vm3111_vm2, %v3114_v20, %v3116_v19  ;;  %v3166_v61 = vsel %vm3165_vm6, 1, %v20073_v43  ;;  %v16148_v12 = vadd.s32 %v3163_v16, %v3159_v32 }
 0x2f9   : > { %v3245_v56 = vsel %vm3244_vm0, %v3243_v24, 0  ;;  %v16150_v47 = vadd.s32 %v3147_v26, %v3138_v59  ;;  %v3160_v22 = vshrl.u32 %v3155_v37, 16  ;;  %v3168_v25 = vadd.s32 %v3166_v61, %v3164_v17 }
 0x2fa   : > { %v3045_v4 = vxor.u32 2147483648, %v3044_v58  ;;  %v16154_v41 = vsel %vm16132_vm4, 0, %v3048_v33  ;;  %v20162_v46 = vand.u32 2147483647, %v20155_v15  ;;  %v3247_v13 = vand.u32 31, %v3245_v56 }
 0x2fb   : > { %20161 = vst [vmem:[#allocation85_spill] sm:$0xff] %v16154_v41  ;;  %v3169_v20 = vadd.s32 %v3168_v25, %v3158_v44  ;;  %v3171_v36 = vmul.u32 %v16072_v34, %v3117_v60  ;;  %v16161_v24 = vshrl.u32 %v3245_v56, 5  ;;  %vm3173_vm2 = vc.u32 %v16150_v47, %v16148_v12 }
 0x2fc   : > { %v3240_v23 = vand.u32 8388607, %v20162_v46  ;;  %v3046_v21 = vsel %vm2925_vm1, %v3045_v4, %v3044_v58  ;;  %v16168_v29 = vsub.s32 32, %v3247_v13  ;;  %v3250_v57 = vshll.u32 %v20067_v3, %v3247_v13 }
 0x2fd   : > { %v3049_v37 = vsel %vm16132_vm4, %v13823_v2, %v3046_v21  ;;  %v3170_v52 = vadd.s32 %v3169_v20, %v3160_v22  ;;  %v3253_v38 = vshll.u32 %v20068_v51, %v3247_v13  ;;  %v3256_v19 = vshll.u32 %v20069_v54, %v3247_v13 }
 0x2fe   : > { %v3051_v42 = vmul.f32 %v3049_v37, %v3049_v37  ;;  %v3251_v34 = vshrl.u32 %v20068_v51, %v16168_v29  ;;  %v3254_v27 = vshrl.u32 %v20069_v54, %v16168_v29  ;;  %v3257_v59 = vshrl.u32 %v20070_v8, %v16168_v29 }
 0x2ff   : > { %v3259_v32 = vshll.u32 %v20070_v8, %v3247_v13  ;;  %v3174_v16 = vadd.s32 1, %v3170_v52  ;;  %v3260_v33 = vshrl.u32 %v20071_v7, %v16168_v29  ;;  %v3067_v44 = vadd.s32 3, %v16154_v41 }
 0x300   : > { %v3052_v49 = vmul.f32 -0.001358992, %v3051_v42  ;;  %v3059_v63 = vmul.f32 -0.00019511016, %v3051_v42  ;;  %v3241_v1 = vor.u32 8388608, %v3240_v23  ;;  %v16183_v58 = vor.u32 %v3251_v34, %v3250_v57 }
 0x301   : > { %v3175_v60 = vsel %vm3173_vm2, %v3174_v16, %v3170_v52  ;;  %v3262_v61 = vshll.u32 %v20071_v7, %v3247_v13  ;;  %v16189_v4 = vor.u32 %v3254_v27, %v3253_v38  ;;  %v3261_v22 = vor.u32 %v3260_v33, %v3259_v32 }
 0x302   : > { %v3053_v26 = vadd.f32 0.041655596, %v3052_v49  ;;  %v3060_v17 = vadd.f32 0.008332121, %v3059_v63  ;;  %v3176_v56 = vadd.s32 %v3175_v60, %v3171_v36  ;;  %v3263_v25 = vshrl.u32 %v20072_v0, %v16168_v29 }
 0x303   : > { %v16193_v23 = vor.u32 %v3257_v59, %v3256_v19  ;;  %vm3265_vm1 = vcmp.lt.s32.totalorder %v16161_v24, 1  ;;  %v3068_v20 = vand.u32 3, %v3067_v44  ;;  %vm3267_vm4 = vcmp.lt.s32.totalorder %v16161_v24, 3 }
 0x304   : > { %v3054_v46 = vmul.f32 %v3053_v26, %v3051_v42  ;;  %v3061_v21 = vmul.f32 %v3060_v17, %v3051_v42  ;;  %v3177_v57 = vadd.s32 536870912, %v3176_v56  ;;  %vm3268_vm5 = vcmp.lt.s32.totalorder %v16161_v24, 4 }
 0x305   : > { %v3264_v52 = vor.u32 %v3263_v25, %v3262_v61  ;;  %vm3266_vm7 = vcmp.lt.s32.totalorder %v16161_v24, 2  ;;  %v3273_v19 = vsel %vm3265_vm1, %v16183_v58, %v16189_v4  ;;  %v3274_v34 = vsel %vm3268_vm5, %v3261_v22, 920167782 }
 0x306   : > { %v3055_v13 = vadd.f32 -0.4999988, %v3054_v46  ;;  %v3062_v36 = vadd.f32 -0.16666654, %v3061_v21  ;;  %v16199_v38 = vshrl.u32 %v3177_v57, 30  ;;  %v16207_v27 = vshll.u32 %v3241_v1, 8 }
 0x307   : > { %vm19840_vm12 = vweird.f32 %v13823_v2  ;;  %v3275_v49 = vsel %vm3267_vm4, %v16193_v23, %v3274_v34  ;;  %vm3070_vm0 = vcmp.eq.s32.totalorder %v3068_v20, 0  ;;  %v3277_v33 = vsel %vm3265_vm1, %v16189_v4, %v16193_v23 }
 0x308   : > { %v3056_v59 = vmul.f32 %v3055_v13, %v3051_v42  ;;  %v3063_v32 = vmul.f32 %v3062_v36, %v3051_v42  ;;  %v3179_v63 = vshll.u32 %v16199_v38, 30  ;;  %v3276_v16 = vsel %vm3266_vm7, %v3273_v19, %v3275_v49 }
 0x309   : > { %vm3073_vm6 = vcmp.eq.s32.totalorder %v3068_v20, 2  ;;  %v3278_v1 = vsel %vm3268_vm5, %v3264_v52, 1326507024  ;;  %v3282_v60 = vand.u32 65535, %v16207_v27  ;;  %v3283_v61 = vshrl.u32 %v16207_v27, 16 }
 0x30a   : > { %v16220_v44 = vadd.f32 1.0, %v3056_v59  ;;  %v3064_v42 = vadd.f32 1.0, %v3063_v32  ;;  %v16224_v26 = vsub.s32 %v3176_v56, %v3179_v63  ;;  %v3279_v17 = vsel %vm3267_vm4, %v3261_v22, %v3278_v1 }
 0x30b   : > { %v3280_v21 = vsel %vm3266_vm7, %v3277_v33, %v3279_v17  ;;  %v3307_v57 = vshrl.u32 %v3276_v16, 16  ;;  %vm3069_vm9 = vcmp.lt.s32.totalorder %v3068_v20, 2  ;;  %v3306_v52 = vand.u32 65535, %v3276_v16 }
 0x30c   : > { %20163 = vst [vmem:[#allocation86_spill] sm:$0xff] %v16220_v44  ;;  %v16230_v25 = vmul.f32 %v3064_v42, %v3049_v37  ;;  %v19822_v46 = vxor.u32 2147483648, %v16220_v44  ;;  %vm3181_vm2 = vcmp.lt.s32.totalorder %v16224_v26, 0  ;;  %v3182_v56 = vsub.s32 0, %v16224_v26  ;;  %v20165_v42 = vld [vmem:[#allocation32_spill] sm:$0xff] }
 0x30d   : > { %v3284_v13 = vand.u32 65535, %v3280_v21  ;;  %v3285_v36 = vshrl.u32 %v3280_v21, 16  ;;  %v3309_v33 = vmul.u32 %v3307_v57, %v3282_v60  ;;  %v3391_v1 = vand.u32 2139095040, %v20165_v42 }
 0x30e   : > { %20164 = vst [vmem:[#allocation87_spill] sm:$0xff] %v16230_v25  ;;  %v19824_v22 = vxor.u32 2147483648, %v16230_v25  ;;  %v3075_v37 = vsel %vm3073_vm6, %v19822_v46, %v16230_v25  ;;  %v3183_v19 = vsel %vm3181_vm2, %v3182_v56, %v16224_v26  ;;  %v3249_v20 = vshrl.u32 %v20067_v3, %v16168_v29 }
 0x30f   : > { %v3286_v34 = vmul.u32 %v3284_v13, %v3282_v60  ;;  %v3287_v59 = vmul.u32 %v3285_v36, %v3282_v60  ;;  %v3288_v32 = vmul.u32 %v3284_v13, %v3283_v61  ;;  %v3184_v63 = vclz %v3183_v19 }
 0x310   : > { %v3072_v49 = vsel %vm3070_vm0, %v16220_v44, %v19824_v22  ;;  %v3289_v21 = vmul.u32 %v3285_v36, %v3283_v61  ;;  %v3172_v13 = vadd.s32 %v16148_v12, %v16150_v47  ;;  %v3202_v22 = vsub.s32 4, %v16199_v38 }
 0x311   : > { %v3076_v17 = vsel %vm3069_vm9, %v3072_v49, %v3075_v37  ;;  %v3290_v16 = vshll.u32 %v3287_v59, 16  ;;  %v3292_v46 = vshll.u32 %v3288_v32, 16  ;;  %v13085_v41 = vadd.s32 4294967294, %v3184_v63 }
 0x312   : > { %v3077_v56 = vsel %vm19840_vm12, nan, %v3076_v17  ;;  %v3308_v44 = vmul.u32 %v3306_v52, %v3282_v60  ;;  %v20166_v36 = vand.u32 2147483647, %v13825_v28  ;;  %v3291_v49 = vshrl.u32 %v3287_v59, 16 }
 0x313   : > { %vm3294_vm0 = vc.u32 %v3286_v34, %v3290_v16  ;;  %v3296_v19 = vadd.s32 %v3290_v16, %v3286_v34  ;;  %6659 = vst [vmem:[%s14173_s11 + $0x80] sm:$0xff] %v3077_v56  ;;  %vm13086_vm6 = vcmp.lt.s32.totalorder %v13085_v41, 0  ;;  %v3310_v47 = vmul.u32 %v3306_v52, %v3283_v61 }
 0x314   : > { %vm16259_vm9 = vcmp.le.f32.partialorder %v20166_v36, 0.7853982  ;;  %v3295_v12 = vsel %vm3294_vm0, 1, %v20073_v43  ;;  %v3187_v63 = vsel %vm13086_vm6, 0, %v13085_v41  ;;  %v3312_v29 = vshll.u32 %v3309_v33, 16 }
 0x315   : > { %v3297_v17 = vadd.s32 %v3295_v12, %v3289_v21  ;;  %vm3298_vm2 = vc.u32 %v3296_v19, %v3292_v46  ;;  %v3188_v2 = vsub.s32 32, %v3187_v63  ;;  %v3189_v34 = vshll.u32 %v16224_v26, %v3187_v63 }
 0x316   : > { %v3192_v60 = vsub.s32 4294967266, %v3187_v63  ;;  %v3299_v16 = vsel %vm3298_vm2, 1, %v20073_v43  ;;  %v3269_v56 = vsel %vm3265_vm1, %v3249_v20, %v16183_v58  ;;  %v3270_v59 = vsel %vm3268_vm5, %v16193_v23, 2102212464 }
 0x317   : > { %v3301_v36 = vadd.s32 %v3299_v16, %v3297_v17  ;;  %v3311_v52 = vmul.u32 %v3307_v57, %v3283_v61  ;;  %v3190_v41 = vshrl.u32 %v3172_v13, %v3188_v2  ;;  %v3203_v46 = vsel %vm3080_vm10, %v3202_v22, %v16199_v38 }
 0x318   : > { %v3193_v21 = vadd.s32 127, %v3192_v60  ;;  %v3314_v26 = vshll.u32 %v3310_v47, 16  ;;  %v3293_v19 = vshrl.u32 %v3288_v32, 16  ;;  %vm3316_vm0 = vc.u32 %v3308_v44, %v3312_v29 }
 0x319   : > { %v3302_v12 = vadd.s32 %v3301_v36, %v3291_v49  ;;  %v3318_v63 = vadd.s32 %v3312_v29, %v3308_v44  ;;  %v3191_v25 = vor.u32 %v3190_v41, %v3189_v34  ;;  %v3317_v58 = vsel %vm3316_vm0, 1, %v20073_v43 }
 0x31a   : > { %v3194_v39 = vshll.u32 %v3193_v21, 23  ;;  %v3392_v20 = vshrl.u32 %v3391_v1, 23  ;;  %v3271_v23 = vsel %vm3267_vm4, %v16189_v4, %v3270_v59  ;;  %v3313_v2 = vshrl.u32 %v3309_v33, 16 }
 0x31b   : > { %v3319_v61 = vadd.s32 %v3317_v58, %v3311_v52  ;;  %vm3320_vm1 = vc.u32 %v3318_v63, %v3314_v26  ;;  %v3198_v13 = vcvt.s32.f32 %v3191_v25  ;;  %v16282_v44 = vsel %vm16259_vm9, 0, %v3203_v46 }
 0x31c   : > { %v3195_v57 = vor.u32 4788187, %v3194_v39  ;;  %v3321_v38 = vsel %vm3320_vm1, 1, %v20073_v43  ;;  %v13090_v22 = vadd.s32 4294967169, %v3392_v20  ;;  %20169 = vst [vmem:[#allocation88_spill] sm:$0xff] %v16282_v44  ;;  %v3315_v32 = vshrl.u32 %v3310_v47, 16 }
 0x31d   : > { %v3323_v49 = vadd.s32 %v3321_v38, %v3319_v61  ;;  %v3303_v1 = vadd.s32 %v3302_v12, %v3293_v19  ;;  %v3322_v29 = vadd.s32 %v3318_v63, %v3314_v26  ;;  %v3272_v4 = vsel %vm3266_vm7, %v3269_v56, %v3271_v23 }
 0x31e   : > { %v3196_v17 = vand.u32 2147483647, %v3195_v57  ;;  %v3398_v34 = vadd.s32 1, %v13090_v22  ;;  %v3222_v39 = vadd.s32 3, %v16282_v44  ;;  %v19833_v16 = vand.u32 2147483647, %v20165_v42 }
 0x31f   : > { %v3324_v33 = vadd.s32 %v3323_v49, %v3313_v2  ;;  %v3326_v47 = vmul.u32 %v16207_v27, %v3272_v4  ;;  %vm3328_vm5 = vc.u32 %v3303_v1, %v3322_v29  ;;  %v16300_v26 = vadd.s32 %v3322_v29, %v3303_v1  ;;  %v20170_v4 = vld [vmem:[#allocation33_spill] sm:$0xff] }
 0x320   : > { %v3199_v60 = vmul.f32 %v3198_v13, %v3196_v17  ;;  %vm3399_vm4 = vcmp.gt.s32.totalorder %v3398_v34, 0  ;;  %v16298_v46 = vand.u32 3, %v3222_v39  ;;  %v3395_v63 = vand.u32 8388607, %v19833_v16 }
 0x321   : > { %v3325_v25 = vadd.s32 %v3324_v33, %v3315_v32  ;;  %v3400_v59 = vsel %vm3399_vm4, %v3398_v34, 0  ;;  %v3546_v33 = vand.u32 2139095040, %v20170_v4  ;;  %vm19839_vm1 = vweird.f32 %v13825_v28 }
 0x322   : > { %v3200_v36 = vxor.u32 2147483648, %v3199_v60  ;;  %v3402_v52 = vand.u32 31, %v3400_v59  ;;  %v16315_v22 = vshrl.u32 %v3400_v59, 5  ;;  %vm3225_vm7 = vcmp.eq.s32.totalorder %v16298_v46, 0 }
 0x323   : > { %v3329_v41 = vadd.s32 1, %v3325_v25  ;;  %vm3224_vm2 = vcmp.lt.s32.totalorder %v16298_v46, 2  ;;  %vm3390_vm12 = vcmp.lt.s32.totalorder %v20165_v42, 0 }
 0x324   : > { %v3201_v21 = vsel %vm3080_vm10, %v3200_v36, %v3199_v60  ;;  %v16291_v24 = vsub.s32 32, %v3402_v52  ;;  %v3405_v58 = vshll.u32 %v20067_v3, %v3402_v52  ;;  %v3408_v37 = vshll.u32 %v20068_v51, %v3402_v52 }
 0x325   : > { %v16296_v56 = vsel %vm16259_vm9, %v13825_v28, %v3201_v21  ;;  %v3330_v19 = vsel %vm3328_vm5, %v3329_v41, %v3325_v25  ;;  %v3414_v2 = vshll.u32 %v20070_v8, %v3402_v52  ;;  %v3411_v32 = vshll.u32 %v20069_v54, %v3402_v52 }
 0x326   : > { %v3206_v27 = vmul.f32 %v16296_v56, %v16296_v56  ;;  %v3331_v12 = vadd.s32 %v3330_v19, %v3326_v47  ;;  %v3406_v20 = vshrl.u32 %v20068_v51, %v16291_v24  ;;  %v3409_v23 = vshrl.u32 %v20069_v54, %v16291_v24 }
 0x327   : > { %v3415_v38 = vshrl.u32 %v20071_v7, %v16291_v24  ;;  %v3412_v49 = vshrl.u32 %v20070_v8, %v16291_v24  ;;  %v3417_v17 = vshll.u32 %v20071_v7, %v3402_v52  ;;  %vm3228_vm10 = vcmp.eq.s32.totalorder %v16298_v46, 2 }
 0x328   : > { %v3207_v61 = vmul.f32 -0.001358992, %v3206_v27  ;;  %v3214_v57 = vmul.f32 -0.00019511016, %v3206_v27  ;;  %v3332_v13 = vadd.s32 536870912, %v3331_v12  ;;  %v3396_v60 = vor.u32 8388608, %v3395_v63 }
 0x329   : > { %v16325_v39 = vor.u32 %v3406_v20, %v3405_v58  ;;  %v3416_v25 = vor.u32 %v3415_v38, %v3414_v2  ;;  %v3418_v59 = vshrl.u32 %v20072_v0, %v16291_v24  ;;  %v16330_v52 = vor.u32 %v3409_v23, %v3408_v37 }
 0x32a   : > { %v3208_v1 = vadd.f32 0.041655596, %v3207_v61  ;;  %v3215_v29 = vadd.f32 0.008332121, %v3214_v57  ;;  %v16321_v34 = vshrl.u32 %v3332_v13, 30  ;;  %v3413_v21 = vor.u32 %v3412_v49, %v3411_v32 }
 0x32b   : > { %v3419_v19 = vor.u32 %v3418_v59, %v3417_v17  ;;  %vm3420_vm9 = vcmp.lt.s32.totalorder %v16315_v22, 1  ;;  %vm3423_vm6 = vcmp.lt.s32.totalorder %v16315_v22, 4  ;;  %vm3422_vm0 = vcmp.lt.s32.totalorder %v16315_v22, 3 }
 0x32c   : > { %v3209_v36 = vmul.f32 %v3208_v1, %v3206_v27  ;;  %v3216_v47 = vmul.f32 %v3215_v29, %v3206_v27  ;;  %v3334_v41 = vshll.u32 %v16321_v34, 30  ;;  %vm3421_vm4 = vcmp.lt.s32.totalorder %v16315_v22, 2 }
 0x32d   : > { %v3429_v37 = vsel %vm3423_vm6, %v3416_v25, 920167782  ;;  %v16343_v23 = vshll.u32 %v3396_v60, 8  ;;  %v3547_v2 = vshrl.u32 %v3546_v33, 23  ;;  %v3432_v32 = vsel %vm3420_vm9, %v16330_v52, %v3413_v21 }
 0x32e   : > { %v3210_v63 = vadd.f32 -0.4999988, %v3209_v36  ;;  %v3217_v58 = vadd.f32 -0.16666654, %v3216_v47  ;;  %v16336_v20 = vsub.s32 %v3331_v12, %v3334_v41  ;;  %v3428_v12 = vsel %vm3420_vm9, %v16325_v39, %v16330_v52 }
 0x32f   : > { %v3430_v38 = vsel %vm3422_vm0, %v3413_v21, %v3429_v37  ;;  %v3433_v49 = vsel %vm3423_vm6, %v3419_v19, 1326507024  ;;  %v3437_v59 = vand.u32 65535, %v16343_v23  ;;  %v3438_v36 = vshrl.u32 %v16343_v23, 16 }
 0x330   : > { %v3211_v61 = vmul.f32 %v3210_v63, %v3206_v27  ;;  %v3218_v57 = vmul.f32 %v3217_v58, %v3206_v27  ;;  %vm3336_vm5 = vcmp.lt.s32.totalorder %v16336_v20, 0  ;;  %v3337_v13 = vsub.s32 0, %v16336_v20 }
 0x331   : > { %v3434_v60 = vsel %vm3422_vm0, %v3416_v25, %v3433_v49  ;;  %v3431_v19 = vsel %vm3421_vm4, %v3428_v12, %v3430_v38  ;;  %v3404_v12 = vshrl.u32 %v20067_v3, %v16291_v24 }
 0x332   : > { %v16358_v27 = vadd.f32 1.0, %v3211_v61  ;;  %v3219_v17 = vadd.f32 1.0, %v3218_v57  ;;  %v3338_v1 = vsel %vm3336_vm5, %v3337_v13, %v16336_v20  ;;  %v3435_v63 = vsel %vm3421_vm4, %v3432_v32, %v3434_v60 }
 0x333   : > { %v3339_v33 = vclz %v3338_v1  ;;  %v3439_v37 = vand.u32 65535, %v3435_v63  ;;  %v3440_v61 = vshrl.u32 %v3435_v63, 16  ;;  %v13093_v57 = vadd.s32 4294967169, %v3547_v2 }
 0x334   : > { %20171 = vst [vmem:[#allocation89_spill] sm:$0xff] %v16358_v27  ;;  %v16367_v47 = vmul.f32 %v3219_v17, %v16296_v56  ;;  %v19831_v41 = vxor.u32 2147483648, %v16358_v27  ;;  %v3357_v13 = vsub.s32 4, %v16321_v34  ;;  %v3461_v32 = vand.u32 65535, %v3431_v19 }
 0x335   : > { %v13088_v58 = vadd.s32 4294967294, %v3339_v33  ;;  %v3442_v38 = vmul.u32 %v3440_v61, %v3437_v59  ;;  %v3462_v49 = vshrl.u32 %v3431_v19, 16  ;;  %v3441_v1 = vmul.u32 %v3439_v37, %v3437_v59 }
 0x336   : > { %20172 = vst [vmem:[#allocation90_spill] sm:$0xff] %v16367_v47  ;;  %v19832_v25 = vxor.u32 2147483648, %v16367_v47  ;;  %v3230_v56 = vsel %vm3228_vm10, %v19831_v41, %v16367_v47  ;;  %v3443_v33 = vmul.u32 %v3439_v37, %v3438_v36  ;;  %vm3235_vm10 = vcmp.lt.s32.totalorder %v20155_v15, 0 }
 0x337   : > { %vm13089_vm5 = vcmp.lt.s32.totalorder %v13088_v58, 0  ;;  %v3553_v37 = vadd.s32 1, %v13093_v57  ;;  %v3445_v16 = vshll.u32 %v3442_v38, 16  ;;  %v3446_v29 = vshrl.u32 %v3442_v38, 16 }
 0x338   : > { %v3227_v2 = vsel %vm3225_vm7, %v16358_v27, %v19832_v25  ;;  %v3342_v17 = vsel %vm13089_vm5, 0, %v13088_v58  ;;  %v3424_v25 = vsel %vm3420_vm9, %v3404_v12, %v16325_v39  ;;  %v3425_v58 = vsel %vm3423_vm6, %v3413_v21, 2102212464 }
 0x339   : > { %v3231_v60 = vsel %vm3224_vm2, %v3227_v2, %v3230_v56  ;;  %v3343_v24 = vsub.s32 32, %v3342_v17  ;;  %v3344_v63 = vshll.u32 %v16336_v20, %v3342_v17  ;;  %v3347_v41 = vsub.s32 4294967266, %v3342_v17 }
 0x33a   : > { %v3232_v19 = vsel %vm19839_vm1, nan, %v3231_v60  ;;  %v3444_v2 = vmul.u32 %v3440_v61, %v3438_v36  ;;  %v3447_v20 = vshll.u32 %v3443_v33, 16  ;;  %v3463_v17 = vmul.u32 %v3461_v32, %v3437_v59 }
 0x33b   : > { %v3345_v46 = vshrl.u32 %v16300_v26, %v3343_v24  ;;  %v3348_v56 = vadd.s32 127, %v3347_v41  ;;  %6660 = vst [vmem:[%s14173_s11 + $0x88] sm:$0xff] %v3232_v19  ;;  %v3464_v27 = vmul.u32 %v3462_v49, %v3437_v59  ;;  %v20173_v60 = vand.u32 2147483647, %v20155_v15 }
 0x33c   : > { %vm3449_vm9 = vc.u32 %v3441_v1, %v3445_v16  ;;  %v3451_v21 = vadd.s32 %v3445_v16, %v3441_v1  ;;  %v3465_v41 = vmul.u32 %v3461_v32, %v3438_v36  ;;  %v3466_v61 = vmul.u32 %v3462_v49, %v3438_v36 }
 0x33d   : > { %vm16403_vm7 = vcmp.le.f32.partialorder %v20173_v60, 0.7853982  ;;  %v3346_v39 = vor.u32 %v3345_v46, %v3344_v63  ;;  %v3349_v12 = vshll.u32 %v3348_v56, 23  ;;  %v3450_v26 = vsel %vm3449_vm9, 1, %v20073_v43 }
 0x33e   : > { %v3467_v57 = vshll.u32 %v3464_v27, 16  ;;  %v3452_v19 = vadd.s32 %v3450_v26, %v3444_v2  ;;  %vm3453_vm6 = vc.u32 %v3451_v21, %v3447_v20  ;;  %v3426_v59 = vsel %vm3422_vm0, %v16330_v52, %v3425_v58 }
 0x33f   : > { %v3350_v24 = vor.u32 4788187, %v3349_v12  ;;  %v3353_v38 = vcvt.s32.f32 %v3346_v39  ;;  %v3448_v60 = vshrl.u32 %v3443_v33, 16  ;;  %v3454_v47 = vsel %vm3453_vm6, 1, %v20073_v43 }
 0x340   : > { %v3469_v63 = vshll.u32 %v3465_v41, 16  ;;  %v3456_v56 = vadd.s32 %v3454_v47, %v3452_v19  ;;  %vm3471_vm2 = vc.u32 %v3463_v17, %v3467_v57  ;;  %v3473_v16 = vadd.s32 %v3467_v57, %v3463_v17 }
 0x341   : > { %v3351_v46 = vand.u32 2147483647, %v3350_v24  ;;  %v3358_v36 = vsel %vm3235_vm10, %v3357_v13, %v16321_v34  ;;  %v3468_v32 = vshrl.u32 %v3464_v27, 16  ;;  %v3472_v49 = vsel %vm3471_vm2, 1, %v20073_v43 }
 0x342   : > { %vm3554_vm5 = vcmp.gt.s32.totalorder %v3553_v37, 0  ;;  %v3457_v2 = vadd.s32 %v3456_v56, %v3446_v29  ;;  %v3474_v20 = vadd.s32 %v3472_v49, %v3466_v61  ;;  %vm3475_vm0 = vc.u32 %v3473_v16, %v3469_v63 }
 0x343   : > { %v3354_v1 = vmul.f32 %v3353_v38, %v3351_v46  ;;  %v3427_v52 = vsel %vm3421_vm4, %v3424_v25, %v3426_v59  ;;  %v3476_v33 = vsel %vm3475_vm0, 1, %v20073_v43  ;;  %v16419_v47 = vadd.s32 %v3473_v16, %v3469_v63 }
 0x344   : > { %v3555_v58 = vsel %vm3554_vm5, %v3553_v37, 0  ;;  %v16421_v39 = vadd.s32 %v3457_v2, %v3448_v60  ;;  %v3470_v34 = vshrl.u32 %v3465_v41, 16  ;;  %v3478_v27 = vadd.s32 %v3476_v33, %v3474_v20 }
 0x345   : > { %v3355_v17 = vxor.u32 2147483648, %v3354_v1  ;;  %v16425_v13 = vsel %vm16403_vm7, 0, %v3358_v36  ;;  %v20177_v29 = vand.u32 2147483647, %v20170_v4  ;;  %v3557_v21 = vand.u32 31, %v3555_v58 }
 0x346   : > { %20176 = vst [vmem:[#allocation91_spill] sm:$0xff] %v16425_v13  ;;  %v3479_v25 = vadd.s32 %v3478_v27, %v3468_v32  ;;  %v3481_v26 = vmul.u32 %v16343_v23, %v3427_v52  ;;  %v16432_v37 = vshrl.u32 %v3555_v58, 5  ;;  %vm3483_vm4 = vc.u32 %v16421_v39, %v16419_v47 }
 0x347   : > { %v3550_v12 = vand.u32 8388607, %v20177_v29  ;;  %v3356_v22 = vsel %vm3235_vm10, %v3355_v17, %v3354_v1  ;;  %v16439_v61 = vsub.s32 32, %v3557_v21  ;;  %v3560_v57 = vshll.u32 %v20067_v3, %v3557_v21 }
 0x348   : > { %v3359_v41 = vsel %vm16403_vm7, %v20155_v15, %v3356_v22  ;;  %v3480_v38 = vadd.s32 %v3479_v25, %v3470_v34  ;;  %v3563_v19 = vshll.u32 %v20068_v51, %v3557_v21  ;;  %v3566_v59 = vshll.u32 %v20069_v54, %v3557_v21 }
 0x349   : > { %v3361_v24 = vmul.f32 %v3359_v41, %v3359_v41  ;;  %v3561_v23 = vshrl.u32 %v20068_v51, %v16439_v61  ;;  %v3564_v28 = vshrl.u32 %v20069_v54, %v16439_v61  ;;  %v3567_v60 = vshrl.u32 %v20070_v8, %v16439_v61 }
 0x34a   : > { %v3569_v63 = vshll.u32 %v20070_v8, %v3557_v21  ;;  %v3484_v16 = vadd.s32 1, %v3480_v38  ;;  %v3570_v36 = vshrl.u32 %v20071_v7, %v16439_v61  ;;  %v3377_v32 = vadd.s32 3, %v16425_v13 }
 0x34b   : > { %v3362_v46 = vmul.f32 -0.001358992, %v3361_v24  ;;  %v3369_v56 = vmul.f32 -0.00019511016, %v3361_v24  ;;  %v3551_v49 = vor.u32 8388608, %v3550_v12  ;;  %v16454_v1 = vor.u32 %v3561_v23, %v3560_v57 }
 0x34c   : > { %v3485_v52 = vsel %vm3483_vm4, %v3484_v16, %v3480_v38  ;;  %v3572_v33 = vshll.u32 %v20071_v7, %v3557_v21  ;;  %v16460_v17 = vor.u32 %v3564_v28, %v3563_v19  ;;  %v3571_v34 = vor.u32 %v3570_v36, %v3569_v63 }
 0x34d   : > { %v3363_v2 = vadd.f32 0.041655596, %v3362_v46  ;;  %v3370_v20 = vadd.f32 0.008332121, %v3369_v56  ;;  %v3486_v58 = vadd.s32 %v3485_v52, %v3481_v26  ;;  %v3573_v27 = vshrl.u32 %v20072_v0, %v16439_v61 }
 0x34e   : > { %v16464_v12 = vor.u32 %v3567_v60, %v3566_v59  ;;  %vm3575_vm10 = vcmp.lt.s32.totalorder %v16432_v37, 1  ;;  %v3378_v25 = vand.u32 3, %v3377_v32  ;;  %vm3577_vm7 = vcmp.lt.s32.totalorder %v16432_v37, 3 }
 0x34f   : > { %v3364_v29 = vmul.f32 %v3363_v2, %v3361_v24  ;;  %v3371_v22 = vmul.f32 %v3370_v20, %v3361_v24  ;;  %v3487_v57 = vadd.s32 536870912, %v3486_v58  ;;  %vm3578_vm9 = vcmp.lt.s32.totalorder %v16432_v37, 4 }
 0x350   : > { %v3574_v38 = vor.u32 %v3573_v27, %v3572_v33  ;;  %vm3576_vm6 = vcmp.lt.s32.totalorder %v16432_v37, 2  ;;  %v3583_v59 = vsel %vm3575_vm10, %v16454_v1, %v16460_v17  ;;  %v3584_v23 = vsel %vm3578_vm9, %v3571_v34, 920167782 }
 0x351   : > { %v3365_v21 = vadd.f32 -0.4999988, %v3364_v29  ;;  %v3372_v26 = vadd.f32 -0.16666654, %v3371_v22  ;;  %v16470_v19 = vshrl.u32 %v3487_v57, 30  ;;  %v16478_v28 = vshll.u32 %v3551_v49, 8 }
 0x352   : > { %vm19859_vm2 = vweird.f32 %v20155_v15  ;;  %v3585_v46 = vsel %vm3577_vm7, %v16464_v12, %v3584_v23  ;;  %vm3380_vm5 = vcmp.eq.s32.totalorder %v3378_v25, 0  ;;  %v3587_v36 = vsel %vm3575_vm10, %v16460_v17, %v16464_v12 }
 0x353   : > { %v3366_v60 = vmul.f32 %v3365_v21, %v3361_v24  ;;  %v3373_v63 = vmul.f32 %v3372_v26, %v3361_v24  ;;  %v3489_v56 = vshll.u32 %v16470_v19, 30  ;;  %v3586_v16 = vsel %vm3576_vm6, %v3583_v59, %v3585_v46 }
 0x354   : > { %vm3383_vm0 = vcmp.eq.s32.totalorder %v3378_v25, 2  ;;  %v3588_v49 = vsel %vm3578_vm9, %v3574_v38, 1326507024  ;;  %v3592_v52 = vand.u32 65535, %v16478_v28  ;;  %v3593_v33 = vshrl.u32 %v16478_v28, 16 }
 0x355   : > { %v16491_v32 = vadd.f32 1.0, %v3366_v60  ;;  %v3374_v24 = vadd.f32 1.0, %v3373_v63  ;;  %v16495_v2 = vsub.s32 %v3486_v58, %v3489_v56  ;;  %v3589_v20 = vsel %vm3577_vm7, %v3571_v34, %v3588_v49 }
 0x356   : > { %v3590_v22 = vsel %vm3576_vm6, %v3587_v36, %v3589_v20  ;;  %v3617_v57 = vshrl.u32 %v3586_v16, 16  ;;  %vm3379_vm1 = vcmp.lt.s32.totalorder %v3378_v25, 2  ;;  %v3616_v38 = vand.u32 65535, %v3586_v16 }
 0x357   : > { %20178 = vst [vmem:[#allocation92_spill] sm:$0xff] %v16491_v32  ;;  %v16501_v27 = vmul.f32 %v3374_v24, %v3359_v41  ;;  %v19841_v29 = vxor.u32 2147483648, %v16491_v32  ;;  %vm3491_vm4 = vcmp.lt.s32.totalorder %v16495_v2, 0  ;;  %v3492_v58 = vsub.s32 0, %v16495_v2  ;;  %v20180_v24 = vld [vmem:[#allocation34_spill] sm:$0xff] }
 0x358   : > { %v3594_v21 = vand.u32 65535, %v3590_v22  ;;  %v3595_v26 = vshrl.u32 %v3590_v22, 16  ;;  %v3619_v36 = vmul.u32 %v3617_v57, %v3592_v52  ;;  %v3701_v49 = vand.u32 2139095040, %v20180_v24 }
 0x359   : > { %20179 = vst [vmem:[#allocation93_spill] sm:$0xff] %v16501_v27  ;;  %v19843_v34 = vxor.u32 2147483648, %v16501_v27  ;;  %v3385_v41 = vsel %vm3383_vm0, %v19841_v29, %v16501_v27  ;;  %v3493_v59 = vsel %vm3491_vm4, %v3492_v58, %v16495_v2  ;;  %v3559_v25 = vshrl.u32 %v20067_v3, %v16439_v61 }
 0x35a   : > { %v3596_v23 = vmul.u32 %v3594_v21, %v3592_v52  ;;  %v3597_v60 = vmul.u32 %v3595_v26, %v3592_v52  ;;  %v3598_v63 = vmul.u32 %v3594_v21, %v3593_v33  ;;  %v3494_v56 = vclz %v3493_v59 }
 0x35b   : > { %v3382_v46 = vsel %vm3380_vm5, %v16491_v32, %v19843_v34  ;;  %v3599_v22 = vmul.u32 %v3595_v26, %v3593_v33  ;;  %v3482_v21 = vadd.s32 %v16419_v47, %v16421_v39  ;;  %v3512_v34 = vsub.s32 4, %v16470_v19 }
 0x35c   : > { %v3386_v20 = vsel %vm3379_vm1, %v3382_v46, %v3385_v41  ;;  %v3600_v16 = vshll.u32 %v3597_v60, 16  ;;  %v3602_v29 = vshll.u32 %v3598_v63, 16  ;;  %v13091_v13 = vadd.s32 4294967294, %v3494_v56 }
 0x35d   : > { %v3387_v58 = vsel %vm19859_vm2, nan, %v3386_v20  ;;  %v3618_v32 = vmul.u32 %v3616_v38, %v3592_v52  ;;  %v20181_v26 = vand.u32 2147483647, %v20165_v42  ;;  %v3601_v46 = vshrl.u32 %v3597_v60, 16 }
 0x35e   : > { %vm3604_vm5 = vc.u32 %v3596_v23, %v3600_v16  ;;  %v3606_v59 = vadd.s32 %v3600_v16, %v3596_v23  ;;  %6661 = vst [vmem:[%s14173_s11 + $0x90] sm:$0xff] %v3387_v58  ;;  %vm13092_vm0 = vcmp.lt.s32.totalorder %v13091_v13, 0  ;;  %v3620_v39 = vmul.u32 %v3616_v38, %v3593_v33 }
 0x35f   : > { %vm16530_vm1 = vcmp.le.f32.partialorder %v20181_v26, 0.7853982  ;;  %v3605_v47 = vsel %vm3604_vm5, 1, %v20073_v43  ;;  %v3497_v56 = vsel %vm13092_vm0, 0, %v13091_v13  ;;  %v3622_v61 = vshll.u32 %v3619_v36, 16 }
 0x360   : > { %v3607_v20 = vadd.s32 %v3605_v47, %v3599_v22  ;;  %vm3608_vm4 = vc.u32 %v3606_v59, %v3602_v29  ;;  %v3498_v15 = vsub.s32 32, %v3497_v56  ;;  %v3499_v23 = vshll.u32 %v16495_v2, %v3497_v56 }
 0x361   : > { %v3502_v52 = vsub.s32 4294967266, %v3497_v56  ;;  %v3609_v16 = vsel %vm3608_vm4, 1, %v20073_v43  ;;  %v3579_v58 = vsel %vm3575_vm10, %v3559_v25, %v16454_v1  ;;  %v3580_v60 = vsel %vm3578_vm9, %v16464_v12, 2102212464 }
 0x362   : > { %v3611_v26 = vadd.s32 %v3609_v16, %v3607_v20  ;;  %v3621_v38 = vmul.u32 %v3617_v57, %v3593_v33  ;;  %v3500_v13 = vshrl.u32 %v3482_v21, %v3498_v15  ;;  %v3513_v29 = vsel %vm3390_vm12, %v3512_v34, %v16470_v19 }
 0x363   : > { %v3503_v22 = vadd.s32 127, %v3502_v52  ;;  %v3624_v2 = vshll.u32 %v3620_v39, 16  ;;  %v3603_v59 = vshrl.u32 %v3598_v63, 16  ;;  %vm3626_vm5 = vc.u32 %v3618_v32, %v3622_v61 }
 0x364   : > { %v3612_v47 = vadd.s32 %v3611_v26, %v3601_v46  ;;  %v3628_v56 = vadd.s32 %v3622_v61, %v3618_v32  ;;  %v3501_v27 = vor.u32 %v3500_v13, %v3499_v23  ;;  %v3627_v1 = vsel %vm3626_vm5, 1, %v20073_v43 }
 0x365   : > { %v3504_v44 = vshll.u32 %v3503_v22, 23  ;;  %v3702_v25 = vshrl.u32 %v3701_v49, 23  ;;  %v3581_v12 = vsel %vm3577_vm7, %v16460_v17, %v3580_v60  ;;  %v3623_v15 = vshrl.u32 %v3619_v36, 16 }
 0x366   : > { %v3629_v33 = vadd.s32 %v3627_v1, %v3621_v38  ;;  %vm3630_vm10 = vc.u32 %v3628_v56, %v3624_v2  ;;  %v3508_v21 = vcvt.s32.f32 %v3501_v27  ;;  %v16553_v32 = vsel %vm16530_vm1, 0, %v3513_v29 }
 0x367   : > { %v3505_v57 = vor.u32 4788187, %v3504_v44  ;;  %v3631_v19 = vsel %vm3630_vm10, 1, %v20073_v43  ;;  %v13096_v34 = vadd.s32 4294967169, %v3702_v25  ;;  %20184 = vst [vmem:[#allocation94_spill] sm:$0xff] %v16553_v32  ;;  %v3625_v63 = vshrl.u32 %v3620_v39, 16 }
 0x368   : > { %v3633_v46 = vadd.s32 %v3631_v19, %v3629_v33  ;;  %v3613_v49 = vadd.s32 %v3612_v47, %v3603_v59  ;;  %v3632_v61 = vadd.s32 %v3628_v56, %v3624_v2  ;;  %v3582_v17 = vsel %vm3576_vm6, %v3579_v58, %v3581_v12 }
 0x369   : > { %v3506_v20 = vand.u32 2147483647, %v3505_v57  ;;  %v3708_v23 = vadd.s32 1, %v13096_v34  ;;  %v3532_v44 = vadd.s32 3, %v16553_v32  ;;  %v19852_v16 = vand.u32 2147483647, %v20180_v24 }
 0x36a   : > { %v3634_v36 = vadd.s32 %v3633_v46, %v3623_v15  ;;  %v3636_v39 = vmul.u32 %v16478_v28, %v3582_v17  ;;  %vm3638_vm9 = vc.u32 %v3613_v49, %v3632_v61  ;;  %v16571_v2 = vadd.s32 %v3632_v61, %v3613_v49  ;;  %v20185_v17 = vld [vmem:[#allocation35_spill] sm:$0xff] }
 0x36b   : > { %v3509_v52 = vmul.f32 %v3508_v21, %v3506_v20  ;;  %vm3709_vm7 = vcmp.gt.s32.totalorder %v3708_v23, 0  ;;  %v16569_v29 = vand.u32 3, %v3532_v44  ;;  %v3705_v56 = vand.u32 8388607, %v19852_v16 }
 0x36c   : > { %v3635_v27 = vadd.s32 %v3634_v36, %v3625_v63  ;;  %v3710_v60 = vsel %vm3709_vm7, %v3708_v23, 0  ;;  %v3856_v36 = vand.u32 2139095040, %v20185_v17  ;;  %vm19858_vm10 = vweird.f32 %v20165_v42 }
 0x36d   : > { %v3510_v26 = vxor.u32 2147483648, %v3509_v52  ;;  %v3712_v38 = vand.u32 31, %v3710_v60  ;;  %v16586_v34 = vshrl.u32 %v3710_v60, 5  ;;  %vm3535_vm6 = vcmp.eq.s32.totalorder %v16569_v29, 0 }
 0x36e   : > { %v3639_v13 = vadd.s32 1, %v3635_v27  ;;  %vm3534_vm4 = vcmp.lt.s32.totalorder %v16569_v29, 2  ;;  %vm3700_vm2 = vcmp.lt.s32.totalorder %v20180_v24, 0 }
 0x36f   : > { %v3511_v22 = vsel %vm3390_vm12, %v3510_v26, %v3509_v52  ;;  %v16562_v37 = vsub.s32 32, %v3712_v38  ;;  %v3715_v1 = vshll.u32 %v20067_v3, %v3712_v38  ;;  %v3718_v41 = vshll.u32 %v20068_v51, %v3712_v38 }
 0x370   : > { %v16567_v58 = vsel %vm16530_vm1, %v20165_v42, %v3511_v22  ;;  %v3640_v59 = vsel %vm3638_vm9, %v3639_v13, %v3635_v27  ;;  %v3724_v15 = vshll.u32 %v20070_v8, %v3712_v38  ;;  %v3721_v63 = vshll.u32 %v20069_v54, %v3712_v38 }
 0x371   : > { %v3516_v28 = vmul.f32 %v16567_v58, %v16567_v58  ;;  %v3641_v47 = vadd.s32 %v3640_v59, %v3636_v39  ;;  %v3716_v25 = vshrl.u32 %v20068_v51, %v16562_v37  ;;  %v3719_v12 = vshrl.u32 %v20069_v54, %v16562_v37 }
 0x372   : > { %v3725_v19 = vshrl.u32 %v20071_v7, %v16562_v37  ;;  %v3722_v46 = vshrl.u32 %v20070_v8, %v16562_v37  ;;  %v3727_v20 = vshll.u32 %v20071_v7, %v3712_v38  ;;  %vm3538_vm12 = vcmp.eq.s32.totalorder %v16569_v29, 2 }
 0x373   : > { %v3517_v33 = vmul.f32 -0.001358992, %v3516_v28  ;;  %v3524_v57 = vmul.f32 -0.00019511016, %v3516_v28  ;;  %v3642_v21 = vadd.s32 536870912, %v3641_v47  ;;  %v3706_v52 = vor.u32 8388608, %v3705_v56 }
 0x374   : > { %v16596_v44 = vor.u32 %v3716_v25, %v3715_v1  ;;  %v3726_v27 = vor.u32 %v3725_v19, %v3724_v15  ;;  %v3728_v60 = vshrl.u32 %v20072_v0, %v16562_v37  ;;  %v16601_v38 = vor.u32 %v3719_v12, %v3718_v41 }
 0x375   : > { %v3518_v49 = vadd.f32 0.041655596, %v3517_v33  ;;  %v3525_v61 = vadd.f32 0.008332121, %v3524_v57  ;;  %v16592_v23 = vshrl.u32 %v3642_v21, 30  ;;  %v3723_v22 = vor.u32 %v3722_v46, %v3721_v63 }
 0x376   : > { %v3729_v59 = vor.u32 %v3728_v60, %v3727_v20  ;;  %vm3730_vm1 = vcmp.lt.s32.totalorder %v16586_v34, 1  ;;  %vm3733_vm0 = vcmp.lt.s32.totalorder %v16586_v34, 4  ;;  %vm3732_vm5 = vcmp.lt.s32.totalorder %v16586_v34, 3 }
 0x377   : > { %v3519_v26 = vmul.f32 %v3518_v49, %v3516_v28  ;;  %v3526_v39 = vmul.f32 %v3525_v61, %v3516_v28  ;;  %v3644_v13 = vshll.u32 %v16592_v23, 30  ;;  %vm3731_vm7 = vcmp.lt.s32.totalorder %v16586_v34, 2 }
 0x378   : > { %v3739_v41 = vsel %vm3733_vm0, %v3726_v27, 920167782  ;;  %v16614_v12 = vshll.u32 %v3706_v52, 8  ;;  %v3857_v15 = vshrl.u32 %v3856_v36, 23  ;;  %v3742_v63 = vsel %vm3730_vm1, %v16601_v38, %v3723_v22 }
 0x379   : > { %v3520_v56 = vadd.f32 -0.4999988, %v3519_v26  ;;  %v3527_v1 = vadd.f32 -0.16666654, %v3526_v39  ;;  %v16607_v25 = vsub.s32 %v3641_v47, %v3644_v13  ;;  %v3738_v47 = vsel %vm3730_vm1, %v16596_v44, %v16601_v38 }
 0x37a   : > { %v3740_v19 = vsel %vm3732_vm5, %v3723_v22, %v3739_v41  ;;  %v3743_v46 = vsel %vm3733_vm0, %v3729_v59, 1326507024  ;;  %v3747_v60 = vand.u32 65535, %v16614_v12  ;;  %v3748_v26 = vshrl.u32 %v16614_v12, 16 }
 0x37b   : > { %v3521_v33 = vmul.f32 %v3520_v56, %v3516_v28  ;;  %v3528_v57 = vmul.f32 %v3527_v1, %v3516_v28  ;;  %vm3646_vm9 = vcmp.lt.s32.totalorder %v16607_v25, 0  ;;  %v3647_v21 = vsub.s32 0, %v16607_v25 }
 0x37c   : > { %v3744_v52 = vsel %vm3732_vm5, %v3726_v27, %v3743_v46  ;;  %v3741_v59 = vsel %vm3731_vm7, %v3738_v47, %v3740_v19  ;;  %v3714_v47 = vshrl.u32 %v20067_v3, %v16562_v37 }
 0x37d   : > { %v16629_v28 = vadd.f32 1.0, %v3521_v33  ;;  %v3529_v20 = vadd.f32 1.0, %v3528_v57  ;;  %v3648_v49 = vsel %vm3646_vm9, %v3647_v21, %v16607_v25  ;;  %v3745_v56 = vsel %vm3731_vm7, %v3742_v63, %v3744_v52 }
 0x37e   : > { %v3649_v36 = vclz %v3648_v49  ;;  %v3749_v41 = vand.u32 65535, %v3745_v56  ;;  %v3750_v33 = vshrl.u32 %v3745_v56, 16  ;;  %v13099_v57 = vadd.s32 4294967169, %v3857_v15 }
 0x37f   : > { %20186 = vst [vmem:[#allocation95_spill] sm:$0xff] %v16629_v28  ;;  %v16638_v39 = vmul.f32 %v3529_v20, %v16567_v58  ;;  %v19850_v13 = vxor.u32 2147483648, %v16629_v28  ;;  %v3667_v21 = vsub.s32 4, %v16592_v23  ;;  %v3771_v63 = vand.u32 65535, %v3741_v59 }
 0x380   : > { %v13094_v1 = vadd.s32 4294967294, %v3649_v36  ;;  %v3752_v19 = vmul.u32 %v3750_v33, %v3747_v60  ;;  %v3772_v46 = vshrl.u32 %v3741_v59, 16  ;;  %v3751_v49 = vmul.u32 %v3749_v41, %v3747_v60 }
 0x381   : > { %20187 = vst [vmem:[#allocation96_spill] sm:$0xff] %v16638_v39  ;;  %v19851_v27 = vxor.u32 2147483648, %v16638_v39  ;;  %v3540_v58 = vsel %vm3538_vm12, %v19850_v13, %v16638_v39  ;;  %v3753_v36 = vmul.u32 %v3749_v41, %v3748_v26  ;;  %vm3545_vm12 = vcmp.lt.s32.totalorder %v20170_v4, 0 }
 0x382   : > { %vm13095_vm9 = vcmp.lt.s32.totalorder %v13094_v1, 0  ;;  %v3863_v41 = vadd.s32 1, %v13099_v57  ;;  %v3755_v16 = vshll.u32 %v3752_v19, 16  ;;  %v3756_v61 = vshrl.u32 %v3752_v19, 16 }
 0x383   : > { %v3537_v15 = vsel %vm3535_vm6, %v16629_v28, %v19851_v27  ;;  %v3652_v20 = vsel %vm13095_vm9, 0, %v13094_v1  ;;  %v3734_v27 = vsel %vm3730_vm1, %v3714_v47, %v16596_v44  ;;  %v3735_v1 = vsel %vm3733_vm0, %v3723_v22, 2102212464 }
 0x384   : > { %v3541_v52 = vsel %vm3534_vm4, %v3537_v15, %v3540_v58  ;;  %v3653_v37 = vsub.s32 32, %v3652_v20  ;;  %v3654_v56 = vshll.u32 %v16607_v25, %v3652_v20  ;;  %v3657_v13 = vsub.s32 4294967266, %v3652_v20 }
 0x385   : > { %v3542_v59 = vsel %vm19858_vm10, nan, %v3541_v52  ;;  %v3754_v15 = vmul.u32 %v3750_v33, %v3748_v26  ;;  %v3757_v25 = vshll.u32 %v3753_v36, 16  ;;  %v3773_v20 = vmul.u32 %v3771_v63, %v3747_v60 }
 0x386   : > { %v3655_v29 = vshrl.u32 %v16571_v2, %v3653_v37  ;;  %v3658_v58 = vadd.s32 127, %v3657_v13  ;;  %6662 = vst [vmem:[%s14173_s11 + $0x98] sm:$0xff] %v3542_v59  ;;  %v3774_v28 = vmul.u32 %v3772_v46, %v3747_v60  ;;  %v20188_v52 = vand.u32 2147483647, %v20170_v4 }
 0x387   : > { %vm3759_vm1 = vc.u32 %v3751_v49, %v3755_v16  ;;  %v3761_v22 = vadd.s32 %v3755_v16, %v3751_v49  ;;  %v3775_v13 = vmul.u32 %v3771_v63, %v3748_v26  ;;  %v3776_v33 = vmul.u32 %v3772_v46, %v3748_v26 }
 0x388   : > { %vm16674_vm6 = vcmp.le.f32.partialorder %v20188_v52, 0.7853982  ;;  %v3656_v44 = vor.u32 %v3655_v29, %v3654_v56  ;;  %v3659_v47 = vshll.u32 %v3658_v58, 23  ;;  %v3760_v2 = vsel %vm3759_vm1, 1, %v20073_v43 }
 0x389   : > { %v3777_v57 = vshll.u32 %v3774_v28, 16  ;;  %v3762_v59 = vadd.s32 %v3760_v2, %v3754_v15  ;;  %vm3763_vm0 = vc.u32 %v3761_v22, %v3757_v25  ;;  %v3736_v60 = vsel %vm3732_vm5, %v16601_v38, %v3735_v1 }
 0x38a   : > { %v3660_v37 = vor.u32 4788187, %v3659_v47  ;;  %v3663_v19 = vcvt.s32.f32 %v3656_v44  ;;  %v3758_v52 = vshrl.u32 %v3753_v36, 16  ;;  %v3764_v39 = vsel %vm3763_vm0, 1, %v20073_v43 }
 0x38b   : > { %v3779_v56 = vshll.u32 %v3775_v13, 16  ;;  %v3766_v58 = vadd.s32 %v3764_v39, %v3762_v59  ;;  %vm3781_vm4 = vc.u32 %v3773_v20, %v3777_v57  ;;  %v3783_v16 = vadd.s32 %v3777_v57, %v3773_v20 }
 0x38c   : > { %v3661_v29 = vand.u32 2147483647, %v3660_v37  ;;  %v3668_v26 = vsel %vm3545_vm12, %v3667_v21, %v16592_v23  ;;  %v3778_v63 = vshrl.u32 %v3774_v28, 16  ;;  %v3782_v46 = vsel %vm3781_vm4, 1, %v20073_v43 }
 0x38d   : > { %vm3864_vm9 = vcmp.gt.s32.totalorder %v3863_v41, 0  ;;  %v3767_v15 = vadd.s32 %v3766_v58, %v3756_v61  ;;  %v3784_v25 = vadd.s32 %v3782_v46, %v3776_v33  ;;  %vm3785_vm5 = vc.u32 %v3783_v16, %v3779_v56 }
 0x38e   : > { %v3664_v49 = vmul.f32 %v3663_v19, %v3661_v29  ;;  %v3737_v38 = vsel %vm3731_vm7, %v3734_v27, %v3736_v60  ;;  %v3786_v36 = vsel %vm3785_vm5, 1, %v20073_v43  ;;  %v16690_v39 = vadd.s32 %v3783_v16, %v3779_v56 }
 0x38f   : > { %v3865_v1 = vsel %vm3864_vm9, %v3863_v41, 0  ;;  %v16692_v44 = vadd.s32 %v3767_v15, %v3758_v52  ;;  %v3780_v23 = vshrl.u32 %v3775_v13, 16  ;;  %v3788_v28 = vadd.s32 %v3786_v36, %v3784_v25 }
 0x390   : > { %v3665_v20 = vxor.u32 2147483648, %v3664_v49  ;;  %v16696_v21 = vsel %vm16674_vm6, 0, %v3668_v26  ;;  %v20192_v61 = vand.u32 2147483647, %v20185_v17  ;;  %v3867_v22 = vand.u32 31, %v3865_v1 }
 0x391   : > { %20191 = vst [vmem:[#allocation97_spill] sm:$0xff] %v16696_v21  ;;  %v3789_v27 = vadd.s32 %v3788_v28, %v3778_v63  ;;  %v3791_v2 = vmul.u32 %v16614_v12, %v3737_v38  ;;  %v16703_v41 = vshrl.u32 %v3865_v1, 5  ;;  %vm3793_vm7 = vc.u32 %v16692_v44, %v16690_v39 }
 0x392   : > { %v3860_v47 = vand.u32 8388607, %v20192_v61  ;;  %v3666_v34 = vsel %vm3545_vm12, %v3665_v20, %v3664_v49  ;;  %v16710_v33 = vsub.s32 32, %v3867_v22  ;;  %v3870_v57 = vshll.u32 %v20067_v3, %v3867_v22 }
 0x393   : > { %v3669_v13 = vsel %vm16674_vm6, %v20170_v4, %v3666_v34  ;;  %v3790_v19 = vadd.s32 %v3789_v27, %v3780_v23  ;;  %v3873_v59 = vshll.u32 %v20068_v51, %v3867_v22  ;;  %v3876_v60 = vshll.u32 %v20069_v54, %v3867_v22 }
 0x394   : > { %v3671_v37 = vmul.f32 %v3669_v13, %v3669_v13  ;;  %v3871_v12 = vshrl.u32 %v20068_v51, %v16710_v33  ;;  %v3874_v42 = vshrl.u32 %v20069_v54, %v16710_v33  ;;  %v3877_v52 = vshrl.u32 %v20070_v8, %v16710_v33 }
 0x395   : > { %v3879_v56 = vshll.u32 %v20070_v8, %v3867_v22  ;;  %v3794_v16 = vadd.s32 1, %v3790_v19  ;;  %v3880_v26 = vshrl.u32 %v20071_v7, %v16710_v33  ;;  %v3687_v63 = vadd.s32 3, %v16696_v21 }
 0x396   : > { %v3672_v29 = vmul.f32 -0.001358992, %v3671_v37  ;;  %v3679_v58 = vmul.f32 -0.00019511016, %v3671_v37  ;;  %v3861_v46 = vor.u32 8388608, %v3860_v47  ;;  %v16725_v49 = vor.u32 %v3871_v12, %v3870_v57 }
 0x397   : > { %v3795_v38 = vsel %vm3793_vm7, %v3794_v16, %v3790_v19  ;;  %v3882_v36 = vshll.u32 %v20071_v7, %v3867_v22  ;;  %v16731_v20 = vor.u32 %v3874_v42, %v3873_v59  ;;  %v3881_v23 = vor.u32 %v3880_v26, %v3879_v56 }
 0x398   : > { %v3673_v15 = vadd.f32 0.041655596, %v3672_v29  ;;  %v3680_v25 = vadd.f32 0.008332121, %v3679_v58  ;;  %v3796_v1 = vadd.s32 %v3795_v38, %v3791_v2  ;;  %v3883_v28 = vshrl.u32 %v20072_v0, %v16710_v33 }
 0x399   : > { %v16735_v47 = vor.u32 %v3877_v52, %v3876_v60  ;;  %vm3885_vm12 = vcmp.lt.s32.totalorder %v16703_v41, 1  ;;  %v3688_v27 = vand.u32 3, %v3687_v63  ;;  %vm3887_vm6 = vcmp.lt.s32.totalorder %v16703_v41, 3 }
 0x39a   : > { %v3674_v61 = vmul.f32 %v3673_v15, %v3671_v37  ;;  %v3681_v34 = vmul.f32 %v3680_v25, %v3671_v37  ;;  %v3797_v57 = vadd.s32 536870912, %v3796_v1  ;;  %vm3888_vm1 = vcmp.lt.s32.totalorder %v16703_v41, 4 }
 0x39b   : > { %v3884_v19 = vor.u32 %v3883_v28, %v3882_v36  ;;  %vm3886_vm0 = vcmp.lt.s32.totalorder %v16703_v41, 2  ;;  %v3893_v60 = vsel %vm3885_vm12, %v16725_v49, %v16731_v20  ;;  %v3894_v12 = vsel %vm3888_vm1, %v3881_v23, 920167782 }
 0x39c   : > { %v3675_v22 = vadd.f32 -0.4999988, %v3674_v61  ;;  %v3682_v2 = vadd.f32 -0.16666654, %v3681_v34  ;;  %v16741_v59 = vshrl.u32 %v3797_v57, 30  ;;  %v16749_v42 = vshll.u32 %v3861_v46, 8 }
 0x39d   : > { %vm19878_vm4 = vweird.f32 %v20170_v4  ;;  %v3895_v29 = vsel %vm3887_vm6, %v16735_v47, %v3894_v12  ;;  %vm3690_vm9 = vcmp.eq.s32.totalorder %v3688_v27, 0  ;;  %v3897_v26 = vsel %vm3885_vm12, %v16731_v20, %v16735_v47 }
 0x39e   : > { %v3676_v52 = vmul.f32 %v3675_v22, %v3671_v37  ;;  %v3683_v56 = vmul.f32 %v3682_v2, %v3671_v37  ;;  %v3799_v58 = vshll.u32 %v16741_v59, 30  ;;  %v3896_v16 = vsel %vm3886_vm0, %v3893_v60, %v3895_v29 }
 0x39f   : > { %vm3693_vm5 = vcmp.eq.s32.totalorder %v3688_v27, 2  ;;  %v3898_v46 = vsel %vm3888_vm1, %v3884_v19, 1326507024  ;;  %v3902_v38 = vand.u32 65535, %v16749_v42  ;;  %v3903_v36 = vshrl.u32 %v16749_v42, 16 }
 0x3a0   : > { %v16762_v63 = vadd.f32 1.0, %v3676_v52  ;;  %v3684_v37 = vadd.f32 1.0, %v3683_v56  ;;  %v16766_v15 = vsub.s32 %v3796_v1, %v3799_v58  ;;  %v3899_v25 = vsel %vm3887_vm6, %v3881_v23, %v3898_v46 }
 0x3a1   : > { %v3900_v34 = vsel %vm3886_vm0, %v3897_v26, %v3899_v25  ;;  %v3927_v57 = vshrl.u32 %v3896_v16, 16  ;;  %vm3689_vm10 = vcmp.lt.s32.totalorder %v3688_v27, 2  ;;  %v3926_v19 = vand.u32 65535, %v3896_v16 }
 0x3a2   : > { %20193 = vst [vmem:[#allocation98_spill] sm:$0xff] %v16762_v63  ;;  %v16772_v28 = vmul.f32 %v3684_v37, %v3669_v13  ;;  %v19860_v61 = vxor.u32 2147483648, %v16762_v63  ;;  %vm3801_vm7 = vcmp.lt.s32.totalorder %v16766_v15, 0  ;;  %v3802_v1 = vsub.s32 0, %v16766_v15  ;;  %v20195_v37 = vld [vmem:[#allocation36_spill] sm:$0xff] }
 0x3a3   : > { %v3904_v22 = vand.u32 65535, %v3900_v34  ;;  %v3905_v2 = vshrl.u32 %v3900_v34, 16  ;;  %v3929_v26 = vmul.u32 %v3927_v57, %v3902_v38  ;;  %v4011_v46 = vand.u32 2139095040, %v20195_v37 }
 0x3a4   : > { %20194 = vst [vmem:[#allocation99_spill] sm:$0xff] %v16772_v28  ;;  %v19862_v23 = vxor.u32 2147483648, %v16772_v28  ;;  %v3695_v13 = vsel %vm3693_vm5, %v19860_v61, %v16772_v28  ;;  %v3803_v60 = vsel %vm3801_vm7, %v3802_v1, %v16766_v15  ;;  %v3869_v27 = vshrl.u32 %v20067_v3, %v16710_v33 }
 0x3a5   : > { %v3906_v12 = vmul.u32 %v3904_v22, %v3902_v38  ;;  %v3907_v52 = vmul.u32 %v3905_v2, %v3902_v38  ;;  %v3908_v56 = vmul.u32 %v3904_v22, %v3903_v36  ;;  %v3804_v58 = vclz %v3803_v60 }
 0x3a6   : > { %v3692_v29 = vsel %vm3690_vm9, %v16762_v63, %v19862_v23  ;;  %v3909_v34 = vmul.u32 %v3905_v2, %v3903_v36  ;;  %v3792_v22 = vadd.s32 %v16690_v39, %v16692_v44  ;;  %v3822_v23 = vsub.s32 4, %v16741_v59 }
 0x3a7   : > { %v3696_v25 = vsel %vm3689_vm10, %v3692_v29, %v3695_v13  ;;  %v3910_v16 = vshll.u32 %v3907_v52, 16  ;;  %v3912_v61 = vshll.u32 %v3908_v56, 16  ;;  %v13097_v21 = vadd.s32 4294967294, %v3804_v58 }
 0x3a8   : > { %v3697_v1 = vsel %vm19878_vm4, nan, %v3696_v25  ;;  %v3928_v63 = vmul.u32 %v3926_v19, %v3902_v38  ;;  %v20196_v2 = vand.u32 2147483647, %v20180_v24  ;;  %v3911_v29 = vshrl.u32 %v3907_v52, 16 }
 0x3a9   : > { %vm3914_vm9 = vc.u32 %v3906_v12, %v3910_v16  ;;  %v3916_v60 = vadd.s32 %v3910_v16, %v3906_v12  ;;  %6663 = vst [vmem:[%s14173_s11 + $0xa0] sm:$0xff] %v3697_v1  ;;  %vm13098_vm5 = vcmp.lt.s32.totalorder %v13097_v21, 0  ;;  %v3930_v44 = vmul.u32 %v3926_v19, %v3903_v36 }
 0x3aa   : > { %vm16801_vm10 = vcmp.le.f32.partialorder %v20196_v2, 0.7853982  ;;  %v3915_v39 = vsel %vm3914_vm9, 1, %v20073_v43  ;;  %v3807_v58 = vsel %vm13098_vm5, 0, %v13097_v21  ;;  %v3932_v33 = vshll.u32 %v3929_v26, 16 }
 0x3ab   : > { %v3917_v25 = vadd.s32 %v3915_v39, %v3909_v34  ;;  %vm3918_vm7 = vc.u32 %v3916_v60, %v3912_v61  ;;  %v3808_v4 = vsub.s32 32, %v3807_v58  ;;  %v3809_v12 = vshll.u32 %v16766_v15, %v3807_v58 }
 0x3ac   : > { %v3812_v38 = vsub.s32 4294967266, %v3807_v58  ;;  %v3919_v16 = vsel %vm3918_vm7, 1, %v20073_v43  ;;  %v3889_v1 = vsel %vm3885_vm12, %v3869_v27, %v16725_v49  ;;  %v3890_v52 = vsel %vm3888_vm1, %v16735_v47, 2102212464 }
 0x3ad   : > { %v3921_v2 = vadd.s32 %v3919_v16, %v3917_v25  ;;  %v3931_v19 = vmul.u32 %v3927_v57, %v3903_v36  ;;  %v3810_v21 = vshrl.u32 %v3792_v22, %v3808_v4  ;;  %v3823_v61 = vsel %vm3700_vm2, %v3822_v23, %v16741_v59 }
 0x3ae   : > { %v3813_v34 = vadd.s32 127, %v3812_v38  ;;  %v3934_v15 = vshll.u32 %v3930_v44, 16  ;;  %v3913_v60 = vshrl.u32 %v3908_v56, 16  ;;  %vm3936_vm9 = vc.u32 %v3928_v63, %v3932_v33 }
 0x3af   : > { %v3922_v39 = vadd.s32 %v3921_v2, %v3911_v29  ;;  %v3938_v58 = vadd.s32 %v3932_v33, %v3928_v63  ;;  %v3811_v28 = vor.u32 %v3810_v21, %v3809_v12  ;;  %v3937_v49 = vsel %vm3936_vm9, 1, %v20073_v43 }
 0x3b0   : > { %v3814_v32 = vshll.u32 %v3813_v34, 23  ;;  %v4012_v27 = vshrl.u32 %v4011_v46, 23  ;;  %v3891_v47 = vsel %vm3887_vm6, %v16731_v20, %v3890_v52  ;;  %v3933_v4 = vshrl.u32 %v3929_v26, 16 }
 0x3b1   : > { %v3939_v36 = vadd.s32 %v3937_v49, %v3931_v19  ;;  %vm3940_vm12 = vc.u32 %v3938_v58, %v3934_v15  ;;  %v3818_v22 = vcvt.s32.f32 %v3811_v28  ;;  %v16824_v63 = vsel %vm16801_vm10, 0, %v3823_v61 }
 0x3b2   : > { %v3815_v57 = vor.u32 4788187, %v3814_v32  ;;  %v3941_v59 = vsel %vm3940_vm12, 1, %v20073_v43  ;;  %v13102_v23 = vadd.s32 4294967169, %v4012_v27  ;;  %20199 = vst [vmem:[#allocation100_spill] sm:$0xff] %v16824_v63  ;;  %v3935_v56 = vshrl.u32 %v3930_v44, 16 }
 0x3b3   : > { %v3943_v29 = vadd.s32 %v3941_v59, %v3939_v36  ;;  %v3923_v46 = vadd.s32 %v3922_v39, %v3913_v60  ;;  %v3942_v33 = vadd.s32 %v3938_v58, %v3934_v15  ;;  %v3892_v20 = vsel %vm3886_vm0, %v3889_v1, %v3891_v47 }
 0x3b4   : > { %v3816_v25 = vand.u32 2147483647, %v3815_v57  ;;  %v4018_v12 = vadd.s32 1, %v13102_v23  ;;  %v3842_v32 = vadd.s32 3, %v16824_v63  ;;  %v19871_v16 = vand.u32 2147483647, %v20195_v37 }
 0x3b5   : > { %v3944_v26 = vadd.s32 %v3943_v29, %v3933_v4  ;;  %v3946_v44 = vmul.u32 %v16749_v42, %v3892_v20  ;;  %vm3948_vm1 = vc.u32 %v3923_v46, %v3942_v33  ;;  %v16842_v15 = vadd.s32 %v3942_v33, %v3923_v46  ;;  %v20200_v20 = vld [vmem:[#allocation37_spill] sm:$0xff] }
 0x3b6   : > { %v3819_v38 = vmul.f32 %v3818_v22, %v3816_v25  ;;  %vm4019_vm6 = vcmp.gt.s32.totalorder %v4018_v12, 0  ;;  %v16840_v61 = vand.u32 3, %v3842_v32  ;;  %v4015_v58 = vand.u32 8388607, %v19871_v16 }
 0x3b7   : > { %v3945_v28 = vadd.s32 %v3944_v26, %v3935_v56  ;;  %v4020_v52 = vsel %vm4019_vm6, %v4018_v12, 0  ;;  %v4166_v26 = vand.u32 2139095040, %v20200_v20  ;;  %vm19877_vm12 = vweird.f32 %v20180_v24 }
 0x3b8   : > { %v3820_v2 = vxor.u32 2147483648, %v3819_v38  ;;  %v4022_v19 = vand.u32 31, %v4020_v52  ;;  %v16857_v23 = vshrl.u32 %v4020_v52, 5  ;;  %vm3845_vm0 = vcmp.eq.s32.totalorder %v16840_v61, 0 }
 0x3b9   : > { %v3949_v21 = vadd.s32 1, %v3945_v28  ;;  %vm3844_vm7 = vcmp.lt.s32.totalorder %v16840_v61, 2  ;;  %vm4010_vm4 = vcmp.lt.s32.totalorder %v20195_v37, 0 }
 0x3ba   : > { %v3821_v34 = vsel %vm3700_vm2, %v3820_v2, %v3819_v38  ;;  %v16833_v41 = vsub.s32 32, %v4022_v19  ;;  %v4025_v49 = vshll.u32 %v20067_v3, %v4022_v19  ;;  %v4028_v13 = vshll.u32 %v20068_v51, %v4022_v19 }
 0x3bb   : > { %v16838_v1 = vsel %vm16801_vm10, %v20180_v24, %v3821_v34  ;;  %v3950_v60 = vsel %vm3948_vm1, %v3949_v21, %v3945_v28  ;;  %v4034_v4 = vshll.u32 %v20070_v8, %v4022_v19  ;;  %v4031_v56 = vshll.u32 %v20069_v54, %v4022_v19 }
 0x3bc   : > { %v3826_v42 = vmul.f32 %v16838_v1, %v16838_v1  ;;  %v3951_v39 = vadd.s32 %v3950_v60, %v3946_v44  ;;  %v4026_v27 = vshrl.u32 %v20068_v51, %v16833_v41  ;;  %v4029_v47 = vshrl.u32 %v20069_v54, %v16833_v41 }
 0x3bd   : > { %v4035_v59 = vshrl.u32 %v20071_v7, %v16833_v41  ;;  %v4032_v29 = vshrl.u32 %v20070_v8, %v16833_v41  ;;  %v4037_v25 = vshll.u32 %v20071_v7, %v4022_v19  ;;  %vm3848_vm2 = vcmp.eq.s32.totalorder %v16840_v61, 2 }
 0x3be   : > { %v3827_v36 = vmul.f32 -0.001358992, %v3826_v42  ;;  %v3834_v57 = vmul.f32 -0.00019511016, %v3826_v42  ;;  %v3952_v22 = vadd.s32 536870912, %v3951_v39  ;;  %v4016_v38 = vor.u32 8388608, %v4015_v58 }
 0x3bf   : > { %v16867_v32 = vor.u32 %v4026_v27, %v4025_v49  ;;  %v4036_v28 = vor.u32 %v4035_v59, %v4034_v4  ;;  %v4038_v52 = vshrl.u32 %v20072_v0, %v16833_v41  ;;  %v16872_v19 = vor.u32 %v4029_v47, %v4028_v13 }
 0x3c0   : > { %v3828_v46 = vadd.f32 0.041655596, %v3827_v36  ;;  %v3835_v33 = vadd.f32 0.008332121, %v3834_v57  ;;  %v16863_v12 = vshrl.u32 %v3952_v22, 30  ;;  %v4033_v34 = vor.u32 %v4032_v29, %v4031_v56 }
 0x3c1   : > { %v4039_v60 = vor.u32 %v4038_v52, %v4037_v25  ;;  %vm4040_vm10 = vcmp.lt.s32.totalorder %v16857_v23, 1  ;;  %vm4043_vm5 = vcmp.lt.s32.totalorder %v16857_v23, 4  ;;  %vm4042_vm9 = vcmp.lt.s32.totalorder %v16857_v23, 3 }
 0x3c2   : > { %v3829_v2 = vmul.f32 %v3828_v46, %v3826_v42  ;;  %v3836_v44 = vmul.f32 %v3835_v33, %v3826_v42  ;;  %v3954_v21 = vshll.u32 %v16863_v12, 30  ;;  %vm4041_vm6 = vcmp.lt.s32.totalorder %v16857_v23, 2 }
 0x3c3   : > { %v4049_v13 = vsel %vm4043_vm5, %v4036_v28, 920167782  ;;  %v16885_v47 = vshll.u32 %v4016_v38, 8  ;;  %v4167_v4 = vshrl.u32 %v4166_v26, 23  ;;  %v4052_v56 = vsel %vm4040_vm10, %v16872_v19, %v4033_v34 }
 0x3c4   : > { %v3830_v58 = vadd.f32 -0.4999988, %v3829_v2  ;;  %v3837_v49 = vadd.f32 -0.16666654, %v3836_v44  ;;  %v16878_v27 = vsub.s32 %v3951_v39, %v3954_v21  ;;  %v4048_v39 = vsel %vm4040_vm10, %v16867_v32, %v16872_v19 }
 0x3c5   : > { %v4050_v59 = vsel %vm4042_vm9, %v4033_v34, %v4049_v13  ;;  %v4053_v29 = vsel %vm4043_vm5, %v4039_v60, 1326507024  ;;  %v4057_v52 = vand.u32 65535, %v16885_v47  ;;  %v4058_v2 = vshrl.u32 %v16885_v47, 16 }
 0x3c6   : > { %v3831_v36 = vmul.f32 %v3830_v58, %v3826_v42  ;;  %v3838_v57 = vmul.f32 %v3837_v49, %v3826_v42  ;;  %vm3956_vm1 = vcmp.lt.s32.totalorder %v16878_v27, 0  ;;  %v3957_v22 = vsub.s32 0, %v16878_v27 }
 0x3c7   : > { %v4054_v38 = vsel %vm4042_vm9, %v4036_v28, %v4053_v29  ;;  %v4051_v60 = vsel %vm4041_vm6, %v4048_v39, %v4050_v59  ;;  %v4024_v39 = vshrl.u32 %v20067_v3, %v16833_v41 }
 0x3c8   : > { %v16900_v42 = vadd.f32 1.0, %v3831_v36  ;;  %v3839_v25 = vadd.f32 1.0, %v3838_v57  ;;  %v3958_v46 = vsel %vm3956_vm1, %v3957_v22, %v16878_v27  ;;  %v4055_v58 = vsel %vm4041_vm6, %v4052_v56, %v4054_v38 }
 0x3c9   : > { %v3959_v26 = vclz %v3958_v46  ;;  %v4059_v13 = vand.u32 65535, %v4055_v58  ;;  %v4060_v36 = vshrl.u32 %v4055_v58, 16  ;;  %v13105_v57 = vadd.s32 4294967169, %v4167_v4 }
 0x3ca   : > { %20201 = vst [vmem:[#allocation101_spill] sm:$0xff] %v16900_v42  ;;  %v16909_v44 = vmul.f32 %v3839_v25, %v16838_v1  ;;  %v19869_v21 = vxor.u32 2147483648, %v16900_v42  ;;  %v3977_v22 = vsub.s32 4, %v16863_v12  ;;  %v4081_v56 = vand.u32 65535, %v4051_v60 }
 0x3cb   : > { %v13100_v49 = vadd.s32 4294967294, %v3959_v26  ;;  %v4062_v59 = vmul.u32 %v4060_v36, %v4057_v52  ;;  %v4082_v29 = vshrl.u32 %v4051_v60, 16  ;;  %v4061_v46 = vmul.u32 %v4059_v13, %v4057_v52 }
 0x3cc   : > { %20202 = vst [vmem:[#allocation102_spill] sm:$0xff] %v16909_v44  ;;  %v19870_v28 = vxor.u32 2147483648, %v16909_v44  ;;  %v3850_v1 = vsel %vm3848_vm2, %v19869_v21, %v16909_v44  ;;  %v4063_v26 = vmul.u32 %v4059_v13, %v4058_v2  ;;  %vm3855_vm2 = vcmp.lt.s32.totalorder %v20185_v17, 0 }
 0x3cd   : > { %vm13101_vm1 = vcmp.lt.s32.totalorder %v13100_v49, 0  ;;  %v4173_v13 = vadd.s32 1, %v13105_v57  ;;  %v4065_v16 = vshll.u32 %v4062_v59, 16  ;;  %v4066_v33 = vshrl.u32 %v4062_v59, 16 }
 0x3ce   : > { %v3847_v4 = vsel %vm3845_vm0, %v16900_v42, %v19870_v28  ;;  %v3962_v25 = vsel %vm13101_vm1, 0, %v13100_v49  ;;  %v4044_v28 = vsel %vm4040_vm10, %v4024_v39, %v16867_v32  ;;  %v4045_v49 = vsel %vm4043_vm5, %v4033_v34, 2102212464 }
 0x3cf   : > { %v3851_v38 = vsel %vm3844_vm7, %v3847_v4, %v3850_v1  ;;  %v3963_v41 = vsub.s32 32, %v3962_v25  ;;  %v3964_v58 = vshll.u32 %v16878_v27, %v3962_v25  ;;  %v3967_v21 = vsub.s32 4294967266, %v3962_v25 }
 0x3d0   : > { %v3852_v60 = vsel %vm19877_vm12, nan, %v3851_v38  ;;  %v4064_v4 = vmul.u32 %v4060_v36, %v4058_v2  ;;  %v4067_v27 = vshll.u32 %v4063_v26, 16  ;;  %v4083_v25 = vmul.u32 %v4081_v56, %v4057_v52 }
 0x3d1   : > { %v3965_v61 = vshrl.u32 %v16842_v15, %v3963_v41  ;;  %v3968_v1 = vadd.s32 127, %v3967_v21  ;;  %6664 = vst [vmem:[%s14173_s11 + $0xa8] sm:$0xff] %v3852_v60  ;;  %v4084_v42 = vmul.u32 %v4082_v29, %v4057_v52  ;;  %v20203_v38 = vand.u32 2147483647, %v20185_v17 }
 0x3d2   : > { %vm4069_vm10 = vc.u32 %v4061_v46, %v4065_v16  ;;  %v4071_v34 = vadd.s32 %v4065_v16, %v4061_v46  ;;  %v4085_v21 = vmul.u32 %v4081_v56, %v4058_v2  ;;  %v4086_v36 = vmul.u32 %v4082_v29, %v4058_v2 }
 0x3d3   : > { %vm16945_vm0 = vcmp.le.f32.partialorder %v20203_v38, 0.7853982  ;;  %v3966_v32 = vor.u32 %v3965_v61, %v3964_v58  ;;  %v3969_v39 = vshll.u32 %v3968_v1, 23  ;;  %v4070_v15 = vsel %vm4069_vm10, 1, %v20073_v43 }
 0x3d4   : > { %v4087_v57 = vshll.u32 %v4084_v42, 16  ;;  %v4072_v60 = vadd.s32 %v4070_v15, %v4064_v4  ;;  %vm4073_vm5 = vc.u32 %v4071_v34, %v4067_v27  ;;  %v4046_v52 = vsel %vm4042_vm9, %v16872_v19, %v4045_v49 }
 0x3d5   : > { %v3970_v41 = vor.u32 4788187, %v3969_v39  ;;  %v3973_v59 = vcvt.s32.f32 %v3966_v32  ;;  %v4068_v38 = vshrl.u32 %v4063_v26, 16  ;;  %v4074_v44 = vsel %vm4073_vm5, 1, %v20073_v43 }
 0x3d6   : > { %v4089_v58 = vshll.u32 %v4085_v21, 16  ;;  %v4076_v1 = vadd.s32 %v4074_v44, %v4072_v60  ;;  %vm4091_vm7 = vc.u32 %v4083_v25, %v4087_v57  ;;  %v4093_v16 = vadd.s32 %v4087_v57, %v4083_v25 }
 0x3d7   : > { %v3971_v61 = vand.u32 2147483647, %v3970_v41  ;;  %v3978_v2 = vsel %vm3855_vm2, %v3977_v22, %v16863_v12  ;;  %v4088_v56 = vshrl.u32 %v4084_v42, 16  ;;  %v4092_v29 = vsel %vm4091_vm7, 1, %v20073_v43 }
 0x3d8   : > { %vm4174_vm1 = vcmp.gt.s32.totalorder %v4173_v13, 0  ;;  %v4077_v4 = vadd.s32 %v4076_v1, %v4066_v33  ;;  %v4094_v27 = vadd.s32 %v4092_v29, %v4086_v36  ;;  %vm4095_vm9 = vc.u32 %v4093_v16, %v4089_v58 }
 0x3d9   : > { %v3974_v46 = vmul.f32 %v3973_v59, %v3971_v61  ;;  %v4047_v19 = vsel %vm4041_vm6, %v4044_v28, %v4046_v52  ;;  %v4096_v26 = vsel %vm4095_vm9, 1, %v20073_v43  ;;  %v16961_v44 = vadd.s32 %v4093_v16, %v4089_v58 }
 0x3da   : > { %v4175_v49 = vsel %vm4174_vm1, %v4173_v13, 0  ;;  %v16963_v32 = vadd.s32 %v4077_v4, %v4068_v38  ;;  %v4090_v12 = vshrl.u32 %v4085_v21, 16  ;;  %v4098_v42 = vadd.s32 %v4096_v26, %v4094_v27 }
 0x3db   : > { %v3975_v25 = vxor.u32 2147483648, %v3974_v46  ;;  %v16967_v22 = vsel %vm16945_vm0, 0, %v3978_v2  ;;  %v20207_v33 = vand.u32 2147483647, %v20200_v20  ;;  %v4177_v34 = vand.u32 31, %v4175_v49 }
 0x3dc   : > { %20206 = vst [vmem:[#allocation103_spill] sm:$0xff] %v16967_v22  ;;  %v4099_v28 = vadd.s32 %v4098_v42, %v4088_v56  ;;  %v4101_v15 = vmul.u32 %v16885_v47, %v4047_v19  ;;  %v16974_v13 = vshrl.u32 %v4175_v49, 5  ;;  %vm4103_vm6 = vc.u32 %v16963_v32, %v16961_v44 }
 0x3dd   : > { %v4170_v39 = vand.u32 8388607, %v20207_v33  ;;  %v3976_v23 = vsel %vm3855_vm2, %v3975_v25, %v3974_v46  ;;  %v16981_v36 = vsub.s32 32, %v4177_v34  ;;  %v4180_v57 = vshll.u32 %v20067_v3, %v4177_v34 }
 0x3de   : > { %v3979_v21 = vsel %vm16945_vm0, %v20185_v17, %v3976_v23  ;;  %v4100_v59 = vadd.s32 %v4099_v28, %v4090_v12  ;;  %v4183_v60 = vshll.u32 %v20068_v51, %v4177_v34  ;;  %v4186_v52 = vshll.u32 %v20069_v54, %v4177_v34 }
 0x3df   : > { %v3981_v41 = vmul.f32 %v3979_v21, %v3979_v21  ;;  %v4181_v47 = vshrl.u32 %v20068_v51, %v16981_v36  ;;  %v4184_v24 = vshrl.u32 %v20069_v54, %v16981_v36  ;;  %v4187_v38 = vshrl.u32 %v20070_v8, %v16981_v36 }
 0x3e0   : > { %v4189_v58 = vshll.u32 %v20070_v8, %v4177_v34  ;;  %v4104_v16 = vadd.s32 1, %v4100_v59  ;;  %v4190_v2 = vshrl.u32 %v20071_v7, %v16981_v36  ;;  %v3997_v56 = vadd.s32 3, %v16967_v22 }
 0x3e1   : > { %v3982_v61 = vmul.f32 -0.001358992, %v3981_v41  ;;  %v3989_v1 = vmul.f32 -0.00019511016, %v3981_v41  ;;  %v4171_v29 = vor.u32 8388608, %v4170_v39  ;;  %v16996_v46 = vor.u32 %v4181_v47, %v4180_v57 }
 0x3e2   : > { %v4105_v19 = vsel %vm4103_vm6, %v4104_v16, %v4100_v59  ;;  %v4192_v26 = vshll.u32 %v20071_v7, %v4177_v34  ;;  %v17002_v25 = vor.u32 %v4184_v24, %v4183_v60  ;;  %v4191_v12 = vor.u32 %v4190_v2, %v4189_v58 }
 0x3e3   : > { %v3983_v4 = vadd.f32 0.041655596, %v3982_v61  ;;  %v3990_v27 = vadd.f32 0.008332121, %v3989_v1  ;;  %v4106_v49 = vadd.s32 %v4105_v19, %v4101_v15  ;;  %v4193_v42 = vshrl.u32 %v20072_v0, %v16981_v36 }
 0x3e4   : > { %v17006_v39 = vor.u32 %v4187_v38, %v4186_v52  ;;  %vm4195_vm2 = vcmp.lt.s32.totalorder %v16974_v13, 1  ;;  %v3998_v28 = vand.u32 3, %v3997_v56  ;;  %vm4197_vm0 = vcmp.lt.s32.totalorder %v16974_v13, 3 }
 0x3e5   : > { %v3984_v33 = vmul.f32 %v3983_v4, %v3981_v41  ;;  %v3991_v23 = vmul.f32 %v3990_v27, %v3981_v41  ;;  %v4107_v57 = vadd.s32 536870912, %v4106_v49  ;;  %vm4198_vm10 = vcmp.lt.s32.totalorder %v16974_v13, 4 }
 0x3e6   : > { %v4194_v59 = vor.u32 %v4193_v42, %v4192_v26  ;;  %vm4196_vm5 = vcmp.lt.s32.totalorder %v16974_v13, 2  ;;  %v4203_v52 = vsel %vm4195_vm2, %v16996_v46, %v17002_v25  ;;  %v4204_v47 = vsel %vm4198_vm10, %v4191_v12, 920167782 }
 0x3e7   : > { %v3985_v34 = vadd.f32 -0.4999988, %v3984_v33  ;;  %v3992_v15 = vadd.f32 -0.16666654, %v3991_v23  ;;  %v17012_v60 = vshrl.u32 %v4107_v57, 30  ;;  %v17020_v24 = vshll.u32 %v4171_v29, 8 }
 0x3e8   : > { %vm19897_vm7 = vweird.f32 %v20185_v17  ;;  %v4205_v61 = vsel %vm4197_vm0, %v17006_v39, %v4204_v47  ;;  %vm4000_vm1 = vcmp.eq.s32.totalorder %v3998_v28, 0  ;;  %v4207_v2 = vsel %vm4195_vm2, %v17002_v25, %v17006_v39 }
 0x3e9   : > { %v3986_v38 = vmul.f32 %v3985_v34, %v3981_v41  ;;  %v3993_v58 = vmul.f32 %v3992_v15, %v3981_v41  ;;  %v4109_v1 = vshll.u32 %v17012_v60, 30  ;;  %v4206_v16 = vsel %vm4196_vm5, %v4203_v52, %v4205_v61 }
 0x3ea   : > { %vm4003_vm9 = vcmp.eq.s32.totalorder %v3998_v28, 2  ;;  %v4208_v29 = vsel %vm4198_vm10, %v4194_v59, 1326507024  ;;  %v4212_v19 = vand.u32 65535, %v17020_v24  ;;  %v4213_v26 = vshrl.u32 %v17020_v24, 16 }
 0x3eb   : > { %v17033_v56 = vadd.f32 1.0, %v3986_v38  ;;  %v3994_v41 = vadd.f32 1.0, %v3993_v58  ;;  %v17037_v4 = vsub.s32 %v4106_v49, %v4109_v1  ;;  %v4209_v27 = vsel %vm4197_vm0, %v4191_v12, %v4208_v29 }
 0x3ec   : > { %v4210_v23 = vsel %vm4196_vm5, %v4207_v2, %v4209_v27  ;;  %v4237_v57 = vshrl.u32 %v4206_v16, 16  ;;  %vm3999_vm12 = vcmp.lt.s32.totalorder %v3998_v28, 2  ;;  %v4236_v59 = vand.u32 65535, %v4206_v16 }
 0x3ed   : > { %20208 = vst [vmem:[#allocation104_spill] sm:$0xff] %v17033_v56  ;;  %v17043_v42 = vmul.f32 %v3994_v41, %v3979_v21  ;;  %v19879_v33 = vxor.u32 2147483648, %v17033_v56  ;;  %vm4111_vm6 = vcmp.lt.s32.totalorder %v17037_v4, 0  ;;  %v4112_v49 = vsub.s32 0, %v17037_v4  ;;  %v20210_v41 = vld [vmem:[#allocation38_spill] sm:$0xff] }
 0x3ee   : > { %v4214_v34 = vand.u32 65535, %v4210_v23  ;;  %v4215_v15 = vshrl.u32 %v4210_v23, 16  ;;  %v4239_v2 = vmul.u32 %v4237_v57, %v4212_v19  ;;  %v4321_v29 = vand.u32 2139095040, %v20210_v41 }
 0x3ef   : > { %20209 = vst [vmem:[#allocation105_spill] sm:$0xff] %v17043_v42  ;;  %v19881_v12 = vxor.u32 2147483648, %v17043_v42  ;;  %v4005_v21 = vsel %vm4003_vm9, %v19879_v33, %v17043_v42  ;;  %v4113_v52 = vsel %vm4111_vm6, %v4112_v49, %v17037_v4  ;;  %v4179_v28 = vshrl.u32 %v20067_v3, %v16981_v36 }
 0x3f0   : > { %v4216_v47 = vmul.u32 %v4214_v34, %v4212_v19  ;;  %v4217_v38 = vmul.u32 %v4215_v15, %v4212_v19  ;;  %v4218_v58 = vmul.u32 %v4214_v34, %v4213_v26  ;;  %v4114_v1 = vclz %v4113_v52 }
 0x3f1   : > { %v4002_v61 = vsel %vm4000_vm1, %v17033_v56, %v19881_v12  ;;  %v4219_v23 = vmul.u32 %v4215_v15, %v4213_v26  ;;  %v4102_v34 = vadd.s32 %v16961_v44, %v16963_v32  ;;  %v4132_v12 = vsub.s32 4, %v17012_v60 }
 0x3f2   : > { %v4006_v27 = vsel %vm3999_vm12, %v4002_v61, %v4005_v21  ;;  %v4220_v16 = vshll.u32 %v4217_v38, 16  ;;  %v4222_v33 = vshll.u32 %v4218_v58, 16  ;;  %v13103_v22 = vadd.s32 4294967294, %v4114_v1 }
 0x3f3   : > { %v4007_v49 = vsel %vm19897_vm7, nan, %v4006_v27  ;;  %v4238_v56 = vmul.u32 %v4236_v59, %v4212_v19  ;;  %v20211_v15 = vand.u32 2147483647, %v20195_v37  ;;  %v4221_v61 = vshrl.u32 %v4217_v38, 16 }
 0x3f4   : > { %vm4224_vm1 = vc.u32 %v4216_v47, %v4220_v16  ;;  %v4226_v52 = vadd.s32 %v4220_v16, %v4216_v47  ;;  %6665 = vst [vmem:[%s14173_s11 + $0xb0] sm:$0xff] %v4007_v49  ;;  %vm13104_vm9 = vcmp.lt.s32.totalorder %v13103_v22, 0  ;;  %v4240_v32 = vmul.u32 %v4236_v59, %v4213_v26 }
 0x3f5   : > { %vm17072_vm12 = vcmp.le.f32.partialorder %v20211_v15, 0.7853982  ;;  %v4225_v44 = vsel %vm4224_vm1, 1, %v20073_v43  ;;  %v4117_v1 = vsel %vm13104_vm9, 0, %v13103_v22  ;;  %v4242_v36 = vshll.u32 %v4239_v2, 16 }
 0x3f6   : > { %v4227_v27 = vadd.s32 %v4225_v44, %v4219_v23  ;;  %vm4228_vm6 = vc.u32 %v4226_v52, %v4222_v33  ;;  %v4118_v17 = vsub.s32 32, %v4117_v1  ;;  %v4119_v47 = vshll.u32 %v17037_v4, %v4117_v1 }
 0x3f7   : > { %v4122_v19 = vsub.s32 4294967266, %v4117_v1  ;;  %v4229_v16 = vsel %vm4228_vm6, 1, %v20073_v43  ;;  %v4199_v49 = vsel %vm4195_vm2, %v4179_v28, %v16996_v46  ;;  %v4200_v38 = vsel %vm4198_vm10, %v17006_v39, 2102212464 }
 0x3f8   : > { %v4231_v15 = vadd.s32 %v4229_v16, %v4227_v27  ;;  %v4241_v59 = vmul.u32 %v4237_v57, %v4213_v26  ;;  %v4120_v22 = vshrl.u32 %v4102_v34, %v4118_v17  ;;  %v4133_v33 = vsel %vm4010_vm4, %v4132_v12, %v17012_v60 }
 0x3f9   : > { %v4123_v23 = vadd.s32 127, %v4122_v19  ;;  %v4244_v4 = vshll.u32 %v4240_v32, 16  ;;  %v4223_v52 = vshrl.u32 %v4218_v58, 16  ;;  %vm4246_vm1 = vc.u32 %v4238_v56, %v4242_v36 }
 0x3fa   : > { %v4232_v44 = vadd.s32 %v4231_v15, %v4221_v61  ;;  %v4248_v1 = vadd.s32 %v4242_v36, %v4238_v56  ;;  %v4121_v42 = vor.u32 %v4120_v22, %v4119_v47  ;;  %v4247_v46 = vsel %vm4246_vm1, 1, %v20073_v43 }
 0x3fb   : > { %v4124_v63 = vshll.u32 %v4123_v23, 23  ;;  %v4322_v28 = vshrl.u32 %v4321_v29, 23  ;;  %v4201_v39 = vsel %vm4197_vm0, %v17002_v25, %v4200_v38  ;;  %v4243_v17 = vshrl.u32 %v4239_v2, 16 }
 0x3fc   : > { %v4249_v26 = vadd.s32 %v4247_v46, %v4241_v59  ;;  %vm4250_vm2 = vc.u32 %v4248_v1, %v4244_v4  ;;  %v4128_v34 = vcvt.s32.f32 %v4121_v42  ;;  %v17095_v56 = vsel %vm17072_vm12, 0, %v4133_v33 }
 0x3fd   : > { %v4125_v57 = vor.u32 4788187, %v4124_v63  ;;  %v4251_v60 = vsel %vm4250_vm2, 1, %v20073_v43  ;;  %v13108_v12 = vadd.s32 4294967169, %v4322_v28  ;;  %20214 = vst [vmem:[#allocation106_spill] sm:$0xff] %v17095_v56  ;;  %v4245_v58 = vshrl.u32 %v4240_v32, 16 }
 0x3fe   : > { %v4253_v61 = vadd.s32 %v4251_v60, %v4249_v26  ;;  %v4233_v29 = vadd.s32 %v4232_v44, %v4223_v52  ;;  %v4252_v36 = vadd.s32 %v4248_v1, %v4244_v4  ;;  %v4202_v25 = vsel %vm4196_vm5, %v4199_v49, %v4201_v39 }
 0x3ff   : > { %v4126_v27 = vand.u32 2147483647, %v4125_v57  ;;  %v4328_v47 = vadd.s32 1, %v13108_v12  ;;  %v4152_v63 = vadd.s32 3, %v17095_v56  ;;  %v19890_v16 = vand.u32 2147483647, %v20210_v41 }
 0x400   : > { %v4254_v2 = vadd.s32 %v4253_v61, %v4243_v17  ;;  %v4256_v32 = vmul.u32 %v17020_v24, %v4202_v25  ;;  %vm4258_vm10 = vc.u32 %v4233_v29, %v4252_v36  ;;  %v17113_v4 = vadd.s32 %v4252_v36, %v4233_v29  ;;  %v20215_v25 = vld [vmem:[#allocation39_spill] sm:$0xff] }
 0x401   : > { %v4129_v19 = vmul.f32 %v4128_v34, %v4126_v27  ;;  %vm4329_vm0 = vcmp.gt.s32.totalorder %v4328_v47, 0  ;;  %v17111_v33 = vand.u32 3, %v4152_v63  ;;  %v4325_v1 = vand.u32 8388607, %v19890_v16 }
 0x402   : > { %v4255_v42 = vadd.s32 %v4254_v2, %v4245_v58  ;;  %v4330_v38 = vsel %vm4329_vm0, %v4328_v47, 0  ;;  %v4476_v2 = vand.u32 2139095040, %v20215_v25  ;;  %vm19896_vm2 = vweird.f32 %v20195_v37 }
 0x403   : > { %v4130_v15 = vxor.u32 2147483648, %v4129_v19  ;;  %v4332_v59 = vand.u32 31, %v4330_v38  ;;  %v17128_v12 = vshrl.u32 %v4330_v38, 5  ;;  %vm4155_vm5 = vcmp.eq.s32.totalorder %v17111_v33, 0 }
 0x404   : > { %v4259_v22 = vadd.s32 1, %v4255_v42  ;;  %vm4154_vm6 = vcmp.lt.s32.totalorder %v17111_v33, 2  ;;  %vm4320_vm7 = vcmp.lt.s32.totalorder %v20210_v41, 0 }
 0x405   : > { %v4131_v23 = vsel %vm4010_vm4, %v4130_v15, %v4129_v19  ;;  %v17104_v13 = vsub.s32 32, %v4332_v59  ;;  %v4335_v46 = vshll.u32 %v20067_v3, %v4332_v59  ;;  %v4338_v21 = vshll.u32 %v20068_v51, %v4332_v59 }
 0x406   : > { %v17109_v49 = vsel %vm17072_vm12, %v20195_v37, %v4131_v23  ;;  %v4260_v52 = vsel %vm4258_vm10, %v4259_v22, %v4255_v42  ;;  %v4344_v17 = vshll.u32 %v20070_v8, %v4332_v59  ;;  %v4341_v58 = vshll.u32 %v20069_v54, %v4332_v59 }
 0x407   : > { %v4136_v24 = vmul.f32 %v17109_v49, %v17109_v49  ;;  %v4261_v44 = vadd.s32 %v4260_v52, %v4256_v32  ;;  %v4336_v28 = vshrl.u32 %v20068_v51, %v17104_v13  ;;  %v4339_v39 = vshrl.u32 %v20069_v54, %v17104_v13 }
 0x408   : > { %v4345_v60 = vshrl.u32 %v20071_v7, %v17104_v13  ;;  %v4342_v61 = vshrl.u32 %v20070_v8, %v17104_v13  ;;  %v4347_v27 = vshll.u32 %v20071_v7, %v4332_v59  ;;  %vm4158_vm4 = vcmp.eq.s32.totalorder %v17111_v33, 2 }
 0x409   : > { %v4137_v26 = vmul.f32 -0.001358992, %v4136_v24  ;;  %v4144_v57 = vmul.f32 -0.00019511016, %v4136_v24  ;;  %v4262_v34 = vadd.s32 536870912, %v4261_v44  ;;  %v4326_v19 = vor.u32 8388608, %v4325_v1 }
 0x40a   : > { %v17138_v63 = vor.u32 %v4336_v28, %v4335_v46  ;;  %v4346_v42 = vor.u32 %v4345_v60, %v4344_v17  ;;  %v4348_v38 = vshrl.u32 %v20072_v0, %v17104_v13  ;;  %v17143_v59 = vor.u32 %v4339_v39, %v4338_v21 }
 0x40b   : > { %v4138_v29 = vadd.f32 0.041655596, %v4137_v26  ;;  %v4145_v36 = vadd.f32 0.008332121, %v4144_v57  ;;  %v17134_v47 = vshrl.u32 %v4262_v34, 30  ;;  %v4343_v23 = vor.u32 %v4342_v61, %v4341_v58 }
 0x40c   : > { %v4349_v52 = vor.u32 %v4348_v38, %v4347_v27  ;;  %vm4350_vm12 = vcmp.lt.s32.totalorder %v17128_v12, 1  ;;  %vm4353_vm9 = vcmp.lt.s32.totalorder %v17128_v12, 4  ;;  %vm4352_vm1 = vcmp.lt.s32.totalorder %v17128_v12, 3 }
 0x40d   : > { %v4139_v15 = vmul.f32 %v4138_v29, %v4136_v24  ;;  %v4146_v32 = vmul.f32 %v4145_v36, %v4136_v24  ;;  %v4264_v22 = vshll.u32 %v17134_v47, 30  ;;  %vm4351_vm0 = vcmp.lt.s32.totalorder %v17128_v12, 2 }
 0x40e   : > { %v4359_v21 = vsel %vm4353_vm9, %v4346_v42, 920167782  ;;  %v17156_v39 = vshll.u32 %v4326_v19, 8  ;;  %v4477_v17 = vshrl.u32 %v4476_v2, 23  ;;  %v4362_v58 = vsel %vm4350_vm12, %v17143_v59, %v4343_v23 }
 0x40f   : > { %v4140_v1 = vadd.f32 -0.4999988, %v4139_v15  ;;  %v4147_v46 = vadd.f32 -0.16666654, %v4146_v32  ;;  %v17149_v28 = vsub.s32 %v4261_v44, %v4264_v22  ;;  %v4358_v44 = vsel %vm4350_vm12, %v17138_v63, %v17143_v59 }
 0x410   : > { %v4360_v60 = vsel %vm4352_vm1, %v4343_v23, %v4359_v21  ;;  %v4363_v61 = vsel %vm4353_vm9, %v4349_v52, 1326507024  ;;  %v4367_v38 = vand.u32 65535, %v17156_v39  ;;  %v4368_v15 = vshrl.u32 %v17156_v39, 16 }
 0x411   : > { %v4141_v26 = vmul.f32 %v4140_v1, %v4136_v24  ;;  %v4148_v57 = vmul.f32 %v4147_v46, %v4136_v24  ;;  %vm4266_vm10 = vcmp.lt.s32.totalorder %v17149_v28, 0  ;;  %v4267_v34 = vsub.s32 0, %v17149_v28 }
 0x412   : > { %v4364_v19 = vsel %vm4352_vm1, %v4346_v42, %v4363_v61  ;;  %v4361_v52 = vsel %vm4351_vm0, %v4358_v44, %v4360_v60  ;;  %v4334_v44 = vshrl.u32 %v20067_v3, %v17104_v13 }
 0x413   : > { %v17171_v24 = vadd.f32 1.0, %v4141_v26  ;;  %v4149_v27 = vadd.f32 1.0, %v4148_v57  ;;  %v4268_v29 = vsel %vm4266_vm10, %v4267_v34, %v17149_v28  ;;  %v4365_v1 = vsel %vm4351_vm0, %v4362_v58, %v4364_v19 }
 0x414   : > { %v4269_v2 = vclz %v4268_v29  ;;  %v4369_v21 = vand.u32 65535, %v4365_v1  ;;  %v4370_v26 = vshrl.u32 %v4365_v1, 16  ;;  %v13111_v57 = vadd.s32 4294967169, %v4477_v17 }
 0x415   : > { %20216 = vst [vmem:[#allocation107_spill] sm:$0xff] %v17171_v24  ;;  %v17180_v32 = vmul.f32 %v4149_v27, %v17109_v49  ;;  %v19888_v22 = vxor.u32 2147483648, %v17171_v24  ;;  %v4287_v34 = vsub.s32 4, %v17134_v47  ;;  %v4391_v58 = vand.u32 65535, %v4361_v52 }
 0x416   : > { %v13106_v46 = vadd.s32 4294967294, %v4269_v2  ;;  %v4372_v60 = vmul.u32 %v4370_v26, %v4367_v38  ;;  %v4392_v61 = vshrl.u32 %v4361_v52, 16  ;;  %v4371_v29 = vmul.u32 %v4369_v21, %v4367_v38 }
 0x417   : > { %20217 = vst [vmem:[#allocation108_spill] sm:$0xff] %v17180_v32  ;;  %v19889_v42 = vxor.u32 2147483648, %v17180_v32  ;;  %v4160_v49 = vsel %vm4158_vm4, %v19888_v22, %v17180_v32  ;;  %v4373_v2 = vmul.u32 %v4369_v21, %v4368_v15  ;;  %vm4165_vm4 = vcmp.lt.s32.totalorder %v20200_v20, 0 }
 0x418   : > { %vm13107_vm10 = vcmp.lt.s32.totalorder %v13106_v46, 0  ;;  %v4483_v21 = vadd.s32 1, %v13111_v57  ;;  %v4375_v16 = vshll.u32 %v4372_v60, 16  ;;  %v4376_v36 = vshrl.u32 %v4372_v60, 16 }
 0x419   : > { %v4157_v17 = vsel %vm4155_vm5, %v17171_v24, %v19889_v42  ;;  %v4272_v27 = vsel %vm13107_vm10, 0, %v13106_v46  ;;  %v4354_v42 = vsel %vm4350_vm12, %v4334_v44, %v17138_v63  ;;  %v4355_v46 = vsel %vm4353_vm9, %v4343_v23, 2102212464 }
 0x41a   : > { %v4161_v19 = vsel %vm4154_vm6, %v4157_v17, %v4160_v49  ;;  %v4273_v13 = vsub.s32 32, %v4272_v27  ;;  %v4274_v1 = vshll.u32 %v17149_v28, %v4272_v27  ;;  %v4277_v22 = vsub.s32 4294967266, %v4272_v27 }
 0x41b   : > { %v4162_v52 = vsel %vm19896_vm2, nan, %v4161_v19  ;;  %v4374_v17 = vmul.u32 %v4370_v26, %v4368_v15  ;;  %v4377_v28 = vshll.u32 %v4373_v2, 16  ;;  %v4393_v27 = vmul.u32 %v4391_v58, %v4367_v38 }
 0x41c   : > { %v4275_v33 = vshrl.u32 %v17113_v4, %v4273_v13  ;;  %v4278_v49 = vadd.s32 127, %v4277_v22  ;;  %6666 = vst [vmem:[%s14173_s11 + $0xb8] sm:$0xff] %v4162_v52  ;;  %v4394_v24 = vmul.u32 %v4392_v61, %v4367_v38  ;;  %v20218_v19 = vand.u32 2147483647, %v20200_v20 }
 0x41d   : > { %vm4379_vm12 = vc.u32 %v4371_v29, %v4375_v16  ;;  %v4381_v23 = vadd.s32 %v4375_v16, %v4371_v29  ;;  %v4395_v22 = vmul.u32 %v4391_v58, %v4368_v15  ;;  %v4396_v26 = vmul.u32 %v4392_v61, %v4368_v15 }
 0x41e   : > { %vm17216_vm5 = vcmp.le.f32.partialorder %v20218_v19, 0.7853982  ;;  %v4276_v63 = vor.u32 %v4275_v33, %v4274_v1  ;;  %v4279_v44 = vshll.u32 %v4278_v49, 23  ;;  %v4380_v4 = vsel %vm4379_vm12, 1, %v20073_v43 }
 0x41f   : > { %v4397_v57 = vshll.u32 %v4394_v24, 16  ;;  %v4382_v52 = vadd.s32 %v4380_v4, %v4374_v17  ;;  %vm4383_vm9 = vc.u32 %v4381_v23, %v4377_v28  ;;  %v4356_v38 = vsel %vm4352_vm1, %v17143_v59, %v4355_v46 }
 0x420   : > { %v4280_v13 = vor.u32 4788187, %v4279_v44  ;;  %v4283_v60 = vcvt.s32.f32 %v4276_v63  ;;  %v4378_v19 = vshrl.u32 %v4373_v2, 16  ;;  %v4384_v32 = vsel %vm4383_vm9, 1, %v20073_v43 }
 0x421   : > { %v4399_v1 = vshll.u32 %v4395_v22, 16  ;;  %v4386_v49 = vadd.s32 %v4384_v32, %v4382_v52  ;;  %vm4401_vm6 = vc.u32 %v4393_v27, %v4397_v57  ;;  %v4403_v16 = vadd.s32 %v4397_v57, %v4393_v27 }
 0x422   : > { %v4281_v33 = vand.u32 2147483647, %v4280_v13  ;;  %v4288_v15 = vsel %vm4165_vm4, %v4287_v34, %v17134_v47  ;;  %v4398_v58 = vshrl.u32 %v4394_v24, 16  ;;  %v4402_v61 = vsel %vm4401_vm6, 1, %v20073_v43 }
 0x423   : > { %vm4484_vm10 = vcmp.gt.s32.totalorder %v4483_v21, 0  ;;  %v4387_v17 = vadd.s32 %v4386_v49, %v4376_v36  ;;  %v4404_v28 = vadd.s32 %v4402_v61, %v4396_v26  ;;  %vm4405_vm1 = vc.u32 %v4403_v16, %v4399_v1 }
 0x424   : > { %v4284_v29 = vmul.f32 %v4283_v60, %v4281_v33  ;;  %v4357_v59 = vsel %vm4351_vm0, %v4354_v42, %v4356_v38  ;;  %v4406_v2 = vsel %vm4405_vm1, 1, %v20073_v43  ;;  %v17232_v32 = vadd.s32 %v4403_v16, %v4399_v1 }
 0x425   : > { %v4485_v46 = vsel %vm4484_vm10, %v4483_v21, 0  ;;  %v17234_v63 = vadd.s32 %v4387_v17, %v4378_v19  ;;  %v4400_v47 = vshrl.u32 %v4395_v22, 16  ;;  %v4408_v24 = vadd.s32 %v4406_v2, %v4404_v28 }
 0x426   : > { %v4285_v27 = vxor.u32 2147483648, %v4284_v29  ;;  %v17238_v34 = vsel %vm17216_vm5, 0, %v4288_v15  ;;  %v20222_v36 = vand.u32 2147483647, %v20215_v25  ;;  %v4487_v23 = vand.u32 31, %v4485_v46 }
 0x427   : > { %20221 = vst [vmem:[#allocation109_spill] sm:$0xff] %v17238_v34  ;;  %v4409_v42 = vadd.s32 %v4408_v24, %v4398_v58  ;;  %v4411_v4 = vmul.u32 %v17156_v39, %v4357_v59  ;;  %v17245_v21 = vshrl.u32 %v4485_v46, 5  ;;  %vm4413_vm0 = vc.u32 %v17234_v63, %v17232_v32 }
 0x428   : > { %v4480_v44 = vand.u32 8388607, %v20222_v36  ;;  %v4286_v12 = vsel %vm4165_vm4, %v4285_v27, %v4284_v29  ;;  %v17252_v26 = vsub.s32 32, %v4487_v23  ;;  %v4490_v57 = vshll.u32 %v20067_v3, %v4487_v23 }
 0x429   : > { %v4289_v22 = vsel %vm17216_vm5, %v20200_v20, %v4286_v12  ;;  %v4410_v60 = vadd.s32 %v4409_v42, %v4400_v47  ;;  %v4493_v52 = vshll.u32 %v20068_v51, %v4487_v23  ;;  %v4496_v38 = vshll.u32 %v20069_v54, %v4487_v23 }
 0x42a   : > { %v4291_v13 = vmul.f32 %v4289_v22, %v4289_v22  ;;  %v4491_v39 = vshrl.u32 %v20068_v51, %v17252_v26  ;;  %v4494_v37 = vshrl.u32 %v20069_v54, %v17252_v26  ;;  %v4497_v19 = vshrl.u32 %v20070_v8, %v17252_v26 }
 0x42b   : > { %v4499_v1 = vshll.u32 %v20070_v8, %v4487_v23  ;;  %v4414_v16 = vadd.s32 1, %v4410_v60  ;;  %v4500_v15 = vshrl.u32 %v20071_v7, %v17252_v26  ;;  %v4307_v58 = vadd.s32 3, %v17238_v34 }
 0x42c   : > { %v4292_v33 = vmul.f32 -0.001358992, %v4291_v13  ;;  %v4299_v49 = vmul.f32 -0.00019511016, %v4291_v13  ;;  %v4481_v61 = vor.u32 8388608, %v4480_v44  ;;  %v17267_v29 = vor.u32 %v4491_v39, %v4490_v57 }
 0x42d   : > { %v4415_v59 = vsel %vm4413_vm0, %v4414_v16, %v4410_v60  ;;  %v4502_v2 = vshll.u32 %v20071_v7, %v4487_v23  ;;  %v17273_v27 = vor.u32 %v4494_v37, %v4493_v52  ;;  %v4501_v47 = vor.u32 %v4500_v15, %v4499_v1 }
 0x42e   : > { %v4293_v17 = vadd.f32 0.041655596, %v4292_v33  ;;  %v4300_v28 = vadd.f32 0.008332121, %v4299_v49  ;;  %v4416_v46 = vadd.s32 %v4415_v59, %v4411_v4  ;;  %v4503_v24 = vshrl.u32 %v20072_v0, %v17252_v26 }
 0x42f   : > { %v17277_v44 = vor.u32 %v4497_v19, %v4496_v38  ;;  %vm4505_vm4 = vcmp.lt.s32.totalorder %v17245_v21, 1  ;;  %v4308_v42 = vand.u32 3, %v4307_v58  ;;  %vm4507_vm5 = vcmp.lt.s32.totalorder %v17245_v21, 3 }
 0x430   : > { %v4294_v36 = vmul.f32 %v4293_v17, %v4291_v13  ;;  %v4301_v12 = vmul.f32 %v4300_v28, %v4291_v13  ;;  %v4417_v57 = vadd.s32 536870912, %v4416_v46  ;;  %vm4508_vm12 = vcmp.lt.s32.totalorder %v17245_v21, 4 }
 0x431   : > { %v4504_v60 = vor.u32 %v4503_v24, %v4502_v2  ;;  %vm4506_vm9 = vcmp.lt.s32.totalorder %v17245_v21, 2  ;;  %v4513_v38 = vsel %vm4505_vm4, %v17267_v29, %v17273_v27  ;;  %v4514_v39 = vsel %vm4508_vm12, %v4501_v47, 920167782 }
 0x432   : > { %v4295_v23 = vadd.f32 -0.4999988, %v4294_v36  ;;  %v4302_v4 = vadd.f32 -0.16666654, %v4301_v12  ;;  %v17283_v52 = vshrl.u32 %v4417_v57, 30  ;;  %v17291_v37 = vshll.u32 %v4481_v61, 8 }
 0x433   : > { %vm19916_vm6 = vweird.f32 %v20200_v20  ;;  %v4515_v33 = vsel %vm4507_vm5, %v17277_v44, %v4514_v39  ;;  %vm4310_vm10 = vcmp.eq.s32.totalorder %v4308_v42, 0  ;;  %v4517_v15 = vsel %vm4505_vm4, %v17273_v27, %v17277_v44 }
 0x434   : > { %v4296_v19 = vmul.f32 %v4295_v23, %v4291_v13  ;;  %v4303_v1 = vmul.f32 %v4302_v4, %v4291_v13  ;;  %v4419_v49 = vshll.u32 %v17283_v52, 30  ;;  %v4516_v16 = vsel %vm4506_vm9, %v4513_v38, %v4515_v33 }
 0x435   : > { %vm4313_vm1 = vcmp.eq.s32.totalorder %v4308_v42, 2  ;;  %v4518_v61 = vsel %vm4508_vm12, %v4504_v60, 1326507024  ;;  %v4522_v59 = vand.u32 65535, %v17291_v37  ;;  %v4523_v2 = vshrl.u32 %v17291_v37, 16 }
 0x436   : > { %v17304_v58 = vadd.f32 1.0, %v4296_v19  ;;  %v4304_v13 = vadd.f32 1.0, %v4303_v1  ;;  %v17308_v17 = vsub.s32 %v4416_v46, %v4419_v49  ;;  %v4519_v28 = vsel %vm4507_vm5, %v4501_v47, %v4518_v61 }
 0x437   : > { %v4520_v12 = vsel %vm4506_vm9, %v4517_v15, %v4519_v28  ;;  %v4547_v57 = vshrl.u32 %v4516_v16, 16  ;;  %vm4309_vm2 = vcmp.lt.s32.totalorder %v4308_v42, 2  ;;  %v4546_v60 = vand.u32 65535, %v4516_v16 }
 0x438   : > { %20223 = vst [vmem:[#allocation110_spill] sm:$0xff] %v17304_v58  ;;  %v17314_v24 = vmul.f32 %v4304_v13, %v4289_v22  ;;  %v19898_v36 = vxor.u32 2147483648, %v17304_v58  ;;  %vm4421_vm0 = vcmp.lt.s32.totalorder %v17308_v17, 0  ;;  %v4422_v46 = vsub.s32 0, %v17308_v17  ;;  %v20225_v13 = vld [vmem:[#allocation40_spill] sm:$0xff] }
 0x439   : > { %v4524_v23 = vand.u32 65535, %v4520_v12  ;;  %v4525_v4 = vshrl.u32 %v4520_v12, 16  ;;  %v4549_v15 = vmul.u32 %v4547_v57, %v4522_v59  ;;  %v4631_v61 = vand.u32 2139095040, %v20225_v13 }
 0x43a   : > { %20224 = vst [vmem:[#allocation111_spill] sm:$0xff] %v17314_v24  ;;  %v19900_v47 = vxor.u32 2147483648, %v17314_v24  ;;  %v4315_v22 = vsel %vm4313_vm1, %v19898_v36, %v17314_v24  ;;  %v4423_v38 = vsel %vm4421_vm0, %v4422_v46, %v17308_v17  ;;  %v4489_v42 = vshrl.u32 %v20067_v3, %v17252_v26 }
 0x43b   : > { %v4526_v39 = vmul.u32 %v4524_v23, %v4522_v59  ;;  %v4527_v19 = vmul.u32 %v4525_v4, %v4522_v59  ;;  %v4528_v1 = vmul.u32 %v4524_v23, %v4523_v2  ;;  %v4424_v49 = vclz %v4423_v38 }
 0x43c   : > { %v4312_v33 = vsel %vm4310_vm10, %v17304_v58, %v19900_v47  ;;  %v4529_v12 = vmul.u32 %v4525_v4, %v4523_v2  ;;  %v4412_v23 = vadd.s32 %v17232_v32, %v17234_v63  ;;  %v4442_v47 = vsub.s32 4, %v17283_v52 }
 0x43d   : > { %v4316_v28 = vsel %vm4309_vm2, %v4312_v33, %v4315_v22  ;;  %v4530_v16 = vshll.u32 %v4527_v19, 16  ;;  %v4532_v36 = vshll.u32 %v4528_v1, 16  ;;  %v13109_v34 = vadd.s32 4294967294, %v4424_v49 }
 0x43e   : > { %v4317_v46 = vsel %vm19916_vm6, nan, %v4316_v28  ;;  %v4548_v58 = vmul.u32 %v4546_v60, %v4522_v59  ;;  %v20226_v4 = vand.u32 2147483647, %v20210_v41  ;;  %v4531_v33 = vshrl.u32 %v4527_v19, 16 }
 0x43f   : > { %vm4534_vm10 = vc.u32 %v4526_v39, %v4530_v16  ;;  %v4536_v38 = vadd.s32 %v4530_v16, %v4526_v39  ;;  %6667 = vst [vmem:[%s14173_s11 + $0xc0] sm:$0xff] %v4317_v46  ;;  %vm13110_vm1 = vcmp.lt.s32.totalorder %v13109_v34, 0  ;;  %v4550_v63 = vmul.u32 %v4546_v60, %v4523_v2 }
 0x440   : > { %vm17343_vm2 = vcmp.le.f32.partialorder %v20226_v4, 0.7853982  ;;  %v4535_v32 = vsel %vm4534_vm10, 1, %v20073_v43  ;;  %v4427_v49 = vsel %vm13110_vm1, 0, %v13109_v34  ;;  %v4552_v26 = vshll.u32 %v4549_v15, 16 }
 0x441   : > { %v4537_v28 = vadd.s32 %v4535_v32, %v4529_v12  ;;  %vm4538_vm0 = vc.u32 %v4536_v38, %v4532_v36  ;;  %v4428_v20 = vsub.s32 32, %v4427_v49  ;;  %v4429_v39 = vshll.u32 %v17308_v17, %v4427_v49 }
 0x442   : > { %v4432_v59 = vsub.s32 4294967266, %v4427_v49  ;;  %v4539_v16 = vsel %vm4538_vm0, 1, %v20073_v43  ;;  %v4509_v46 = vsel %vm4505_vm4, %v4489_v42, %v17267_v29  ;;  %v4510_v19 = vsel %vm4508_vm12, %v17277_v44, 2102212464 }
 0x443   : > { %v4541_v4 = vadd.s32 %v4539_v16, %v4537_v28  ;;  %v4551_v60 = vmul.u32 %v4547_v57, %v4523_v2  ;;  %v4430_v34 = vshrl.u32 %v4412_v23, %v4428_v20  ;;  %v4443_v36 = vsel %vm4320_vm7, %v4442_v47, %v17283_v52 }
 0x444   : > { %v4433_v12 = vadd.s32 127, %v4432_v59  ;;  %v4554_v17 = vshll.u32 %v4550_v63, 16  ;;  %v4533_v38 = vshrl.u32 %v4528_v1, 16  ;;  %vm4556_vm10 = vc.u32 %v4548_v58, %v4552_v26 }
 0x445   : > { %v4542_v32 = vadd.s32 %v4541_v4, %v4531_v33  ;;  %v4558_v49 = vadd.s32 %v4552_v26, %v4548_v58  ;;  %v4431_v24 = vor.u32 %v4430_v34, %v4429_v39  ;;  %v4557_v29 = vsel %vm4556_vm10, 1, %v20073_v43 }
 0x446   : > { %v4434_v56 = vshll.u32 %v4433_v12, 23  ;;  %v4632_v42 = vshrl.u32 %v4631_v61, 23  ;;  %v4511_v44 = vsel %vm4507_vm5, %v17273_v27, %v4510_v19  ;;  %v4553_v20 = vshrl.u32 %v4549_v15, 16 }
 0x447   : > { %v4559_v2 = vadd.s32 %v4557_v29, %v4551_v60  ;;  %vm4560_vm4 = vc.u32 %v4558_v49, %v4554_v17  ;;  %v4438_v23 = vcvt.s32.f32 %v4431_v24  ;;  %v17366_v58 = vsel %vm17343_vm2, 0, %v4443_v36 }
 0x448   : > { %v4435_v57 = vor.u32 4788187, %v4434_v56  ;;  %v4561_v52 = vsel %vm4560_vm4, 1, %v20073_v43  ;;  %v13114_v47 = vadd.s32 4294967169, %v4632_v42  ;;  %20229 = vst [vmem:[#allocation112_spill] sm:$0xff] %v17366_v58  ;;  %v4555_v1 = vshrl.u32 %v4550_v63, 16 }
 0x449   : > { %v4563_v33 = vadd.s32 %v4561_v52, %v4559_v2  ;;  %v4543_v61 = vadd.s32 %v4542_v32, %v4533_v38  ;;  %v4562_v26 = vadd.s32 %v4558_v49, %v4554_v17  ;;  %v4512_v27 = vsel %vm4506_vm9, %v4509_v46, %v4511_v44 }
 0x44a   : > { %v4436_v28 = vand.u32 2147483647, %v4435_v57  ;;  %v4638_v39 = vadd.s32 1, %v13114_v47  ;;  %v4462_v56 = vadd.s32 3, %v17366_v58  ;;  %v19909_v16 = vand.u32 2147483647, %v20225_v13 }
 0x44b   : > { %v4564_v15 = vadd.s32 %v4563_v33, %v4553_v20  ;;  %v4566_v63 = vmul.u32 %v17291_v37, %v4512_v27  ;;  %vm4568_vm12 = vc.u32 %v4543_v61, %v4562_v26  ;;  %v17384_v17 = vadd.s32 %v4562_v26, %v4543_v61  ;;  %v20230_v27 = vld [vmem:[#allocation41_spill] sm:$0xff] }
 0x44c   : > { %v4439_v59 = vmul.f32 %v4438_v23, %v4436_v28  ;;  %vm4639_vm5 = vcmp.gt.s32.totalorder %v4638_v39, 0  ;;  %v17382_v36 = vand.u32 3, %v4462_v56  ;;  %v4635_v49 = vand.u32 8388607, %v19909_v16 }
 0x44d   : > { %v4565_v24 = vadd.s32 %v4564_v15, %v4555_v1  ;;  %v4640_v19 = vsel %vm4639_vm5, %v4638_v39, 0  ;;  %v4786_v15 = vand.u32 2139095040, %v20230_v27  ;;  %vm19915_vm4 = vweird.f32 %v20210_v41 }
 0x44e   : > { %v4440_v4 = vxor.u32 2147483648, %v4439_v59  ;;  %v4642_v60 = vand.u32 31, %v4640_v19  ;;  %v17399_v47 = vshrl.u32 %v4640_v19, 5  ;;  %vm4465_vm9 = vcmp.eq.s32.totalorder %v17382_v36, 0 }
 0x44f   : > { %v4569_v34 = vadd.s32 1, %v4565_v24  ;;  %vm4464_vm0 = vcmp.lt.s32.totalorder %v17382_v36, 2  ;;  %vm4630_vm6 = vcmp.lt.s32.totalorder %v20225_v13, 0 }
 0x450   : > { %v4441_v12 = vsel %vm4320_vm7, %v4440_v4, %v4439_v59  ;;  %v17375_v21 = vsub.s32 32, %v4642_v60  ;;  %v4645_v29 = vshll.u32 %v20067_v3, %v4642_v60  ;;  %v4648_v22 = vshll.u32 %v20068_v51, %v4642_v60 }
 0x451   : > { %v17380_v46 = vsel %vm17343_vm2, %v20210_v41, %v4441_v12  ;;  %v4570_v38 = vsel %vm4568_vm12, %v4569_v34, %v4565_v24  ;;  %v4654_v20 = vshll.u32 %v20070_v8, %v4642_v60  ;;  %v4651_v1 = vshll.u32 %v20069_v54, %v4642_v60 }
 0x452   : > { %v4446_v37 = vmul.f32 %v17380_v46, %v17380_v46  ;;  %v4571_v32 = vadd.s32 %v4570_v38, %v4566_v63  ;;  %v4646_v42 = vshrl.u32 %v20068_v51, %v17375_v21  ;;  %v4649_v44 = vshrl.u32 %v20069_v54, %v17375_v21 }
 0x453   : > { %v4655_v52 = vshrl.u32 %v20071_v7, %v17375_v21  ;;  %v4652_v33 = vshrl.u32 %v20070_v8, %v17375_v21  ;;  %v4657_v28 = vshll.u32 %v20071_v7, %v4642_v60  ;;  %vm4468_vm7 = vcmp.eq.s32.totalorder %v17382_v36, 2 }
 0x454   : > { %v4447_v2 = vmul.f32 -0.001358992, %v4446_v37  ;;  %v4454_v57 = vmul.f32 -0.00019511016, %v4446_v37  ;;  %v4572_v23 = vadd.s32 536870912, %v4571_v32  ;;  %v4636_v59 = vor.u32 8388608, %v4635_v49 }
 0x455   : > { %v17409_v56 = vor.u32 %v4646_v42, %v4645_v29  ;;  %v4656_v24 = vor.u32 %v4655_v52, %v4654_v20  ;;  %v4658_v19 = vshrl.u32 %v20072_v0, %v17375_v21  ;;  %v17414_v60 = vor.u32 %v4649_v44, %v4648_v22 }
 0x456   : > { %v4448_v61 = vadd.f32 0.041655596, %v4447_v2  ;;  %v4455_v26 = vadd.f32 0.008332121, %v4454_v57  ;;  %v17405_v39 = vshrl.u32 %v4572_v23, 30  ;;  %v4653_v12 = vor.u32 %v4652_v33, %v4651_v1 }
 0x457   : > { %v4659_v38 = vor.u32 %v4658_v19, %v4657_v28  ;;  %vm4660_vm2 = vcmp.lt.s32.totalorder %v17399_v47, 1  ;;  %vm4663_vm1 = vcmp.lt.s32.totalorder %v17399_v47, 4  ;;  %vm4662_vm10 = vcmp.lt.s32.totalorder %v17399_v47, 3 }
 0x458   : > { %v4449_v4 = vmul.f32 %v4448_v61, %v4446_v37  ;;  %v4456_v63 = vmul.f32 %v4455_v26, %v4446_v37  ;;  %v4574_v34 = vshll.u32 %v17405_v39, 30  ;;  %vm4661_vm5 = vcmp.lt.s32.totalorder %v17399_v47, 2 }
 0x459   : > { %v4669_v22 = vsel %vm4663_vm1, %v4656_v24, 920167782  ;;  %v17427_v44 = vshll.u32 %v4636_v59, 8  ;;  %v4787_v20 = vshrl.u32 %v4786_v15, 23  ;;  %v4672_v1 = vsel %vm4660_vm2, %v17414_v60, %v4653_v12 }
 0x45a   : > { %v4450_v49 = vadd.f32 -0.4999988, %v4449_v4  ;;  %v4457_v29 = vadd.f32 -0.16666654, %v4456_v63  ;;  %v17420_v42 = vsub.s32 %v4571_v32, %v4574_v34  ;;  %v4668_v32 = vsel %vm4660_vm2, %v17409_v56, %v17414_v60 }
 0x45b   : > { %v4670_v52 = vsel %vm4662_vm10, %v4653_v12, %v4669_v22  ;;  %v4673_v33 = vsel %vm4663_vm1, %v4659_v38, 1326507024  ;;  %v4677_v19 = vand.u32 65535, %v17427_v44  ;;  %v4678_v4 = vshrl.u32 %v17427_v44, 16 }
 0x45c   : > { %v4451_v2 = vmul.f32 %v4450_v49, %v4446_v37  ;;  %v4458_v57 = vmul.f32 %v4457_v29, %v4446_v37  ;;  %vm4576_vm12 = vcmp.lt.s32.totalorder %v17420_v42, 0  ;;  %v4577_v23 = vsub.s32 0, %v17420_v42 }
 0x45d   : > { %v4674_v59 = vsel %vm4662_vm10, %v4656_v24, %v4673_v33  ;;  %v4671_v38 = vsel %vm4661_vm5, %v4668_v32, %v4670_v52  ;;  %v4644_v32 = vshrl.u32 %v20067_v3, %v17375_v21 }
 0x45e   : > { %v17442_v37 = vadd.f32 1.0, %v4451_v2  ;;  %v4459_v28 = vadd.f32 1.0, %v4458_v57  ;;  %v4578_v61 = vsel %vm4576_vm12, %v4577_v23, %v17420_v42  ;;  %v4675_v49 = vsel %vm4661_vm5, %v4672_v1, %v4674_v59 }
 0x45f   : > { %v4579_v15 = vclz %v4578_v61  ;;  %v4679_v22 = vand.u32 65535, %v4675_v49  ;;  %v4680_v2 = vshrl.u32 %v4675_v49, 16  ;;  %v13117_v57 = vadd.s32 4294967169, %v4787_v20 }
 0x460   : > { %20231 = vst [vmem:[#allocation113_spill] sm:$0xff] %v17442_v37  ;;  %v17451_v63 = vmul.f32 %v4459_v28, %v17380_v46  ;;  %v19907_v34 = vxor.u32 2147483648, %v17442_v37  ;;  %v4597_v23 = vsub.s32 4, %v17405_v39  ;;  %v4701_v1 = vand.u32 65535, %v4671_v38 }
 0x461   : > { %v13112_v29 = vadd.s32 4294967294, %v4579_v15  ;;  %v4682_v52 = vmul.u32 %v4680_v2, %v4677_v19  ;;  %v4702_v33 = vshrl.u32 %v4671_v38, 16  ;;  %v4681_v61 = vmul.u32 %v4679_v22, %v4677_v19 }
 0x462   : > { %20232 = vst [vmem:[#allocation114_spill] sm:$0xff] %v17451_v63  ;;  %v19908_v24 = vxor.u32 2147483648, %v17451_v63  ;;  %v4470_v46 = vsel %vm4468_vm7, %v19907_v34, %v17451_v63  ;;  %v4683_v15 = vmul.u32 %v4679_v22, %v4678_v4  ;;  %vm4475_vm7 = vcmp.lt.s32.totalorder %v20215_v25, 0 }
 0x463   : > { %vm13113_vm12 = vcmp.lt.s32.totalorder %v13112_v29, 0  ;;  %v4793_v22 = vadd.s32 1, %v13117_v57  ;;  %v4685_v16 = vshll.u32 %v4682_v52, 16  ;;  %v4686_v26 = vshrl.u32 %v4682_v52, 16 }
 0x464   : > { %v4467_v20 = vsel %vm4465_vm9, %v17442_v37, %v19908_v24  ;;  %v4582_v28 = vsel %vm13113_vm12, 0, %v13112_v29  ;;  %v4664_v24 = vsel %vm4660_vm2, %v4644_v32, %v17409_v56  ;;  %v4665_v29 = vsel %vm4663_vm1, %v4653_v12, 2102212464 }
 0x465   : > { %v4471_v59 = vsel %vm4464_vm0, %v4467_v20, %v4470_v46  ;;  %v4583_v21 = vsub.s32 32, %v4582_v28  ;;  %v4584_v49 = vshll.u32 %v17420_v42, %v4582_v28  ;;  %v4587_v34 = vsub.s32 4294967266, %v4582_v28 }
 0x466   : > { %v4472_v38 = vsel %vm19915_vm4, nan, %v4471_v59  ;;  %v4684_v20 = vmul.u32 %v4680_v2, %v4678_v4  ;;  %v4687_v42 = vshll.u32 %v4683_v15, 16  ;;  %v4703_v28 = vmul.u32 %v4701_v1, %v4677_v19 }
 0x467   : > { %v4585_v36 = vshrl.u32 %v17384_v17, %v4583_v21  ;;  %v4588_v46 = vadd.s32 127, %v4587_v34  ;;  %6668 = vst [vmem:[%s14173_s11 + $0xc8] sm:$0xff] %v4472_v38  ;;  %v4704_v37 = vmul.u32 %v4702_v33, %v4677_v19  ;;  %v20233_v59 = vand.u32 2147483647, %v20215_v25 }
 0x468   : > { %vm4689_vm2 = vc.u32 %v4681_v61, %v4685_v16  ;;  %v4691_v12 = vadd.s32 %v4685_v16, %v4681_v61  ;;  %v4705_v34 = vmul.u32 %v4701_v1, %v4678_v4  ;;  %v4706_v2 = vmul.u32 %v4702_v33, %v4678_v4 }
 0x469   : > { %vm17487_vm9 = vcmp.le.f32.partialorder %v20233_v59, 0.7853982  ;;  %v4586_v56 = vor.u32 %v4585_v36, %v4584_v49  ;;  %v4589_v32 = vshll.u32 %v4588_v46, 23  ;;  %v4690_v17 = vsel %vm4689_vm2, 1, %v20073_v43 }
 0x46a   : > { %v4707_v57 = vshll.u32 %v4704_v37, 16  ;;  %v4692_v38 = vadd.s32 %v4690_v17, %v4684_v20  ;;  %vm4693_vm1 = vc.u32 %v4691_v12, %v4687_v42  ;;  %v4666_v19 = vsel %vm4662_vm10, %v17414_v60, %v4665_v29 }
 0x46b   : > { %v4590_v21 = vor.u32 4788187, %v4589_v32  ;;  %v4593_v52 = vcvt.s32.f32 %v4586_v56  ;;  %v4688_v59 = vshrl.u32 %v4683_v15, 16  ;;  %v4694_v63 = vsel %vm4693_vm1, 1, %v20073_v43 }
 0x46c   : > { %v4709_v49 = vshll.u32 %v4705_v34, 16  ;;  %v4696_v46 = vadd.s32 %v4694_v63, %v4692_v38  ;;  %vm4711_vm0 = vc.u32 %v4703_v28, %v4707_v57  ;;  %v4713_v16 = vadd.s32 %v4707_v57, %v4703_v28 }
 0x46d   : > { %v4591_v36 = vand.u32 2147483647, %v4590_v21  ;;  %v4598_v4 = vsel %vm4475_vm7, %v4597_v23, %v17405_v39  ;;  %v4708_v1 = vshrl.u32 %v4704_v37, 16  ;;  %v4712_v33 = vsel %vm4711_vm0, 1, %v20073_v43 }
 0x46e   : > { %vm4794_vm12 = vcmp.gt.s32.totalorder %v4793_v22, 0  ;;  %v4697_v20 = vadd.s32 %v4696_v46, %v4686_v26  ;;  %v4714_v42 = vadd.s32 %v4712_v33, %v4706_v2  ;;  %vm4715_vm10 = vc.u32 %v4713_v16, %v4709_v49 }
 0x46f   : > { %v4594_v61 = vmul.f32 %v4593_v52, %v4591_v36  ;;  %v4667_v60 = vsel %vm4661_vm5, %v4664_v24, %v4666_v19  ;;  %v4716_v15 = vsel %vm4715_vm10, 1, %v20073_v43  ;;  %v17503_v63 = vadd.s32 %v4713_v16, %v4709_v49 }
 0x470   : > { %v4795_v29 = vsel %vm4794_vm12, %v4793_v22, 0  ;;  %v17505_v56 = vadd.s32 %v4697_v20, %v4688_v59  ;;  %v4710_v39 = vshrl.u32 %v4705_v34, 16  ;;  %v4718_v37 = vadd.s32 %v4716_v15, %v4714_v42 }
 0x471   : > { %v4595_v28 = vxor.u32 2147483648, %v4594_v61  ;;  %v17509_v23 = vsel %vm17487_vm9, 0, %v4598_v4  ;;  %v20237_v26 = vand.u32 2147483647, %v20230_v27  ;;  %v4797_v12 = vand.u32 31, %v4795_v29 }
 0x472   : > { %20236 = vst [vmem:[#allocation115_spill] sm:$0xff] %v17509_v23  ;;  %v4719_v24 = vadd.s32 %v4718_v37, %v4708_v1  ;;  %v4721_v17 = vmul.u32 %v17427_v44, %v4667_v60  ;;  %v17516_v22 = vshrl.u32 %v4795_v29, 5  ;;  %vm4723_vm5 = vc.u32 %v17505_v56, %v17503_v63 }
 0x473   : > { %v4790_v32 = vand.u32 8388607, %v20237_v26  ;;  %v4596_v47 = vsel %vm4475_vm7, %v4595_v28, %v4594_v61  ;;  %v17523_v2 = vsub.s32 32, %v4797_v12  ;;  %v4800_v57 = vshll.u32 %v20067_v3, %v4797_v12 }
 0x474   : > { %v4599_v34 = vsel %vm17487_vm9, %v20215_v25, %v4596_v47  ;;  %v4720_v52 = vadd.s32 %v4719_v24, %v4710_v39  ;;  %v4803_v38 = vshll.u32 %v20068_v51, %v4797_v12  ;;  %v4806_v19 = vshll.u32 %v20069_v54, %v4797_v12 }
 0x475   : > { %v4601_v21 = vmul.f32 %v4599_v34, %v4599_v34  ;;  %v4801_v44 = vshrl.u32 %v20068_v51, %v17523_v2  ;;  %v4804_v41 = vshrl.u32 %v20069_v54, %v17523_v2  ;;  %v4807_v59 = vshrl.u32 %v20070_v8, %v17523_v2 }
 0x476   : > { %v4809_v49 = vshll.u32 %v20070_v8, %v4797_v12  ;;  %v4724_v16 = vadd.s32 1, %v4720_v52  ;;  %v4810_v4 = vshrl.u32 %v20071_v7, %v17523_v2  ;;  %v4617_v1 = vadd.s32 3, %v17509_v23 }
 0x477   : > { %v4602_v36 = vmul.f32 -0.001358992, %v4601_v21  ;;  %v4609_v46 = vmul.f32 -0.00019511016, %v4601_v21  ;;  %v4791_v33 = vor.u32 8388608, %v4790_v32  ;;  %v17538_v61 = vor.u32 %v4801_v44, %v4800_v57 }
 0x478   : > { %v4725_v60 = vsel %vm4723_vm5, %v4724_v16, %v4720_v52  ;;  %v4812_v15 = vshll.u32 %v20071_v7, %v4797_v12  ;;  %v17544_v28 = vor.u32 %v4804_v41, %v4803_v38  ;;  %v4811_v39 = vor.u32 %v4810_v4, %v4809_v49 }
 0x479   : > { %v4603_v20 = vadd.f32 0.041655596, %v4602_v36  ;;  %v4610_v42 = vadd.f32 0.008332121, %v4609_v46  ;;  %v4726_v29 = vadd.s32 %v4725_v60, %v4721_v17  ;;  %v4813_v37 = vshrl.u32 %v20072_v0, %v17523_v2 }
 0x47a   : > { %v17548_v32 = vor.u32 %v4807_v59, %v4806_v19  ;;  %vm4815_vm7 = vcmp.lt.s32.totalorder %v17516_v22, 1  ;;  %v4618_v24 = vand.u32 3, %v4617_v1  ;;  %vm4817_vm9 = vcmp.lt.s32.totalorder %v17516_v22, 3 }
 0x47b   : > { %v4604_v26 = vmul.f32 %v4603_v20, %v4601_v21  ;;  %v4611_v47 = vmul.f32 %v4610_v42, %v4601_v21  ;;  %v4727_v57 = vadd.s32 536870912, %v4726_v29  ;;  %vm4818_vm2 = vcmp.lt.s32.totalorder %v17516_v22, 4 }
 0x47c   : > { %v4814_v52 = vor.u32 %v4813_v37, %v4812_v15  ;;  %vm4816_vm1 = vcmp.lt.s32.totalorder %v17516_v22, 2  ;;  %v4823_v19 = vsel %vm4815_vm7, %v17538_v61, %v17544_v28  ;;  %v4824_v44 = vsel %vm4818_vm2, %v4811_v39, 920167782 }
 0x47d   : > { %v4605_v12 = vadd.f32 -0.4999988, %v4604_v26  ;;  %v4612_v17 = vadd.f32 -0.16666654, %v4611_v47  ;;  %v17554_v38 = vshrl.u32 %v4727_v57, 30  ;;  %v17562_v41 = vshll.u32 %v4791_v33, 8 }
 0x47e   : > { %vm19935_vm0 = vweird.f32 %v20215_v25  ;;  %v4825_v36 = vsel %vm4817_vm9, %v17548_v32, %v4824_v44  ;;  %vm4620_vm12 = vcmp.eq.s32.totalorder %v4618_v24, 0  ;;  %v4827_v4 = vsel %vm4815_vm7, %v17544_v28, %v17548_v32 }
 0x47f   : > { %v4606_v59 = vmul.f32 %v4605_v12, %v4601_v21  ;;  %v4613_v49 = vmul.f32 %v4612_v17, %v4601_v21  ;;  %v4729_v46 = vshll.u32 %v17554_v38, 30  ;;  %v4826_v16 = vsel %vm4816_vm1, %v4823_v19, %v4825_v36 }
 0x480   : > { %vm4623_vm10 = vcmp.eq.s32.totalorder %v4618_v24, 2  ;;  %v4828_v33 = vsel %vm4818_vm2, %v4814_v52, 1326507024  ;;  %v4832_v60 = vand.u32 65535, %v17562_v41  ;;  %v4833_v15 = vshrl.u32 %v17562_v41, 16 }
 0x481   : > { %v17575_v1 = vadd.f32 1.0, %v4606_v59  ;;  %v4614_v21 = vadd.f32 1.0, %v4613_v49  ;;  %v17579_v20 = vsub.s32 %v4726_v29, %v4729_v46  ;;  %v4829_v42 = vsel %vm4817_vm9, %v4811_v39, %v4828_v33 }
 0x482   : > { %v4830_v47 = vsel %vm4816_vm1, %v4827_v4, %v4829_v42  ;;  %v4857_v57 = vshrl.u32 %v4826_v16, 16  ;;  %vm4619_vm4 = vcmp.lt.s32.totalorder %v4618_v24, 2  ;;  %v4856_v52 = vand.u32 65535, %v4826_v16 }
 0x483   : > { %20238 = vst [vmem:[#allocation116_spill] sm:$0xff] %v17575_v1  ;;  %v17585_v37 = vmul.f32 %v4614_v21, %v4599_v34  ;;  %v19917_v26 = vxor.u32 2147483648, %v17575_v1  ;;  %vm4731_vm5 = vcmp.lt.s32.totalorder %v17579_v20, 0  ;;  %v4732_v29 = vsub.s32 0, %v17579_v20  ;;  %v20240_v21 = vld [vmem:[#allocation42_spill] sm:$0xff] }
 0x484   : > { %v4834_v12 = vand.u32 65535, %v4830_v47  ;;  %v4835_v17 = vshrl.u32 %v4830_v47, 16  ;;  %v4859_v4 = vmul.u32 %v4857_v57, %v4832_v60  ;;  %v4941_v33 = vand.u32 2139095040, %v20240_v21 }
 0x485   : > { %20239 = vst [vmem:[#allocation117_spill] sm:$0xff] %v17585_v37  ;;  %v19919_v39 = vxor.u32 2147483648, %v17585_v37  ;;  %v4625_v34 = vsel %vm4623_vm10, %v19917_v26, %v17585_v37  ;;  %v4733_v19 = vsel %vm4731_vm5, %v4732_v29, %v17579_v20  ;;  %v4799_v24 = vshrl.u32 %v20067_v3, %v17523_v2 }
 0x486   : > { %v4836_v44 = vmul.u32 %v4834_v12, %v4832_v60  ;;  %v4837_v59 = vmul.u32 %v4835_v17, %v4832_v60  ;;  %v4838_v49 = vmul.u32 %v4834_v12, %v4833_v15  ;;  %v4734_v46 = vclz %v4733_v19 }
 0x487   : > { %v4622_v36 = vsel %vm4620_vm12, %v17575_v1, %v19919_v39  ;;  %v4839_v47 = vmul.u32 %v4835_v17, %v4833_v15  ;;  %v4722_v12 = vadd.s32 %v17503_v63, %v17505_v56  ;;  %v4752_v39 = vsub.s32 4, %v17554_v38 }
 0x488   : > { %v4626_v42 = vsel %vm4619_vm4, %v4622_v36, %v4625_v34  ;;  %v4840_v16 = vshll.u32 %v4837_v59, 16  ;;  %v4842_v26 = vshll.u32 %v4838_v49, 16  ;;  %v13115_v23 = vadd.s32 4294967294, %v4734_v46 }
 0x489   : > { %v4627_v29 = vsel %vm19935_vm0, nan, %v4626_v42  ;;  %v4858_v1 = vmul.u32 %v4856_v52, %v4832_v60  ;;  %v20241_v17 = vand.u32 2147483647, %v20225_v13  ;;  %v4841_v36 = vshrl.u32 %v4837_v59, 16 }
 0x48a   : > { %vm4844_vm12 = vc.u32 %v4836_v44, %v4840_v16  ;;  %v4846_v19 = vadd.s32 %v4840_v16, %v4836_v44  ;;  %6669 = vst [vmem:[%s14173_s11 + $0xd0] sm:$0xff] %v4627_v29  ;;  %vm13116_vm10 = vcmp.lt.s32.totalorder %v13115_v23, 0  ;;  %v4860_v56 = vmul.u32 %v4856_v52, %v4833_v15 }
 0x48b   : > { %vm17614_vm4 = vcmp.le.f32.partialorder %v20241_v17, 0.7853982  ;;  %v4845_v63 = vsel %vm4844_vm12, 1, %v20073_v43  ;;  %v4737_v46 = vsel %vm13116_vm10, 0, %v13115_v23  ;;  %v4862_v2 = vshll.u32 %v4859_v4, 16 }
 0x48c   : > { %v4847_v42 = vadd.s32 %v4845_v63, %v4839_v47  ;;  %vm4848_vm5 = vc.u32 %v4846_v19, %v4842_v26  ;;  %v4738_v25 = vsub.s32 32, %v4737_v46  ;;  %v4739_v44 = vshll.u32 %v17579_v20, %v4737_v46 }
 0x48d   : > { %v4742_v60 = vsub.s32 4294967266, %v4737_v46  ;;  %v4849_v16 = vsel %vm4848_vm5, 1, %v20073_v43  ;;  %v4819_v29 = vsel %vm4815_vm7, %v4799_v24, %v17538_v61  ;;  %v4820_v59 = vsel %vm4818_vm2, %v17548_v32, 2102212464 }
 0x48e   : > { %v4851_v17 = vadd.s32 %v4849_v16, %v4847_v42  ;;  %v4861_v52 = vmul.u32 %v4857_v57, %v4833_v15  ;;  %v4740_v23 = vshrl.u32 %v4722_v12, %v4738_v25  ;;  %v4753_v26 = vsel %vm4630_vm6, %v4752_v39, %v17554_v38 }
 0x48f   : > { %v4743_v47 = vadd.s32 127, %v4742_v60  ;;  %v4864_v20 = vshll.u32 %v4860_v56, 16  ;;  %v4843_v19 = vshrl.u32 %v4838_v49, 16  ;;  %vm4866_vm12 = vc.u32 %v4858_v1, %v4862_v2 }
 0x490   : > { %v4852_v63 = vadd.s32 %v4851_v17, %v4841_v36  ;;  %v4868_v46 = vadd.s32 %v4862_v2, %v4858_v1  ;;  %v4741_v37 = vor.u32 %v4740_v23, %v4739_v44  ;;  %v4867_v61 = vsel %vm4866_vm12, 1, %v20073_v43 }
 0x491   : > { %v4744_v58 = vshll.u32 %v4743_v47, 23  ;;  %v4942_v24 = vshrl.u32 %v4941_v33, 23  ;;  %v4821_v32 = vsel %vm4817_vm9, %v17544_v28, %v4820_v59  ;;  %v4863_v25 = vshrl.u32 %v4859_v4, 16 }
 0x492   : > { %v4869_v15 = vadd.s32 %v4867_v61, %v4861_v52  ;;  %vm4870_vm7 = vc.u32 %v4868_v46, %v4864_v20  ;;  %v4748_v12 = vcvt.s32.f32 %v4741_v37  ;;  %v17637_v1 = vsel %vm17614_vm4, 0, %v4753_v26 }
 0x493   : > { %v4745_v57 = vor.u32 4788187, %v4744_v58  ;;  %v4871_v38 = vsel %vm4870_vm7, 1, %v20073_v43  ;;  %v13120_v39 = vadd.s32 4294967169, %v4942_v24  ;;  %20244 = vst [vmem:[#allocation118_spill] sm:$0xff] %v17637_v1  ;;  %v4865_v49 = vshrl.u32 %v4860_v56, 16 }
 0x494   : > { %v4873_v36 = vadd.s32 %v4871_v38, %v4869_v15  ;;  %v4853_v33 = vadd.s32 %v4852_v63, %v4843_v19  ;;  %v4872_v2 = vadd.s32 %v4868_v46, %v4864_v20  ;;  %v4822_v28 = vsel %vm4816_vm1, %v4819_v29, %v4821_v32 }
 0x495   : > { %v4746_v42 = vand.u32 2147483647, %v4745_v57  ;;  %v4948_v44 = vadd.s32 1, %v13120_v39  ;;  %v4772_v58 = vadd.s32 3, %v17637_v1  ;;  %v19928_v16 = vand.u32 2147483647, %v20240_v21 }
 0x496   : > { %v4874_v4 = vadd.s32 %v4873_v36, %v4863_v25  ;;  %v4876_v56 = vmul.u32 %v17562_v41, %v4822_v28  ;;  %vm4878_vm2 = vc.u32 %v4853_v33, %v4872_v2  ;;  %v17655_v20 = vadd.s32 %v4872_v2, %v4853_v33  ;;  %v20245_v28 = vld [vmem:[#allocation43_spill] sm:$0xff] }
 0x497   : > { %v4749_v60 = vmul.f32 %v4748_v12, %v4746_v42  ;;  %vm4949_vm9 = vcmp.gt.s32.totalorder %v4948_v44, 0  ;;  %v17653_v26 = vand.u32 3, %v4772_v58  ;;  %v4945_v46 = vand.u32 8388607, %v19928_v16 }
 0x498   : > { %v4875_v37 = vadd.s32 %v4874_v4, %v4865_v49  ;;  %v4950_v59 = vsel %vm4949_vm9, %v4948_v44, 0  ;;  %v5096_v4 = vand.u32 2139095040, %v20245_v28  ;;  %vm19934_vm7 = vweird.f32 %v20225_v13 }
 0x499   : > { %v4750_v17 = vxor.u32 2147483648, %v4749_v60  ;;  %v4952_v52 = vand.u32 31, %v4950_v59  ;;  %v17670_v39 = vshrl.u32 %v4950_v59, 5  ;;  %vm4775_vm1 = vcmp.eq.s32.totalorder %v17653_v26, 0 }
 0x49a   : > { %v4879_v23 = vadd.s32 1, %v4875_v37  ;;  %vm4774_vm5 = vcmp.lt.s32.totalorder %v17653_v26, 2  ;;  %vm4940_vm0 = vcmp.lt.s32.totalorder %v20240_v21, 0 }
 0x49b   : > { %v4751_v47 = vsel %vm4630_vm6, %v4750_v17, %v4749_v60  ;;  %v17646_v22 = vsub.s32 32, %v4952_v52  ;;  %v4955_v61 = vshll.u32 %v20067_v3, %v4952_v52  ;;  %v4958_v34 = vshll.u32 %v20068_v51, %v4952_v52 }
 0x49c   : > { %v17651_v29 = vsel %vm17614_vm4, %v20225_v13, %v4751_v47  ;;  %v4880_v19 = vsel %vm4878_vm2, %v4879_v23, %v4875_v37  ;;  %v4964_v25 = vshll.u32 %v20070_v8, %v4952_v52  ;;  %v4961_v49 = vshll.u32 %v20069_v54, %v4952_v52 }
 0x49d   : > { %v4756_v41 = vmul.f32 %v17651_v29, %v17651_v29  ;;  %v4881_v63 = vadd.s32 %v4880_v19, %v4876_v56  ;;  %v4956_v24 = vshrl.u32 %v20068_v51, %v17646_v22  ;;  %v4959_v32 = vshrl.u32 %v20069_v54, %v17646_v22 }
 0x49e   : > { %v4965_v38 = vshrl.u32 %v20071_v7, %v17646_v22  ;;  %v4962_v36 = vshrl.u32 %v20070_v8, %v17646_v22  ;;  %v4967_v42 = vshll.u32 %v20071_v7, %v4952_v52  ;;  %vm4778_vm6 = vcmp.eq.s32.totalorder %v17653_v26, 2 }
 0x49f   : > { %v4757_v15 = vmul.f32 -0.001358992, %v4756_v41  ;;  %v4764_v57 = vmul.f32 -0.00019511016, %v4756_v41  ;;  %v4882_v12 = vadd.s32 536870912, %v4881_v63  ;;  %v4946_v60 = vor.u32 8388608, %v4945_v46 }
 0x4a0   : > { %v17680_v58 = vor.u32 %v4956_v24, %v4955_v61  ;;  %v4966_v37 = vor.u32 %v4965_v38, %v4964_v25  ;;  %v4968_v59 = vshrl.u32 %v20072_v0, %v17646_v22  ;;  %v17685_v52 = vor.u32 %v4959_v32, %v4958_v34 }
 0x4a1   : > { %v4758_v33 = vadd.f32 0.041655596, %v4757_v15  ;;  %v4765_v2 = vadd.f32 0.008332121, %v4764_v57  ;;  %v17676_v44 = vshrl.u32 %v4882_v12, 30  ;;  %v4963_v47 = vor.u32 %v4962_v36, %v4961_v49 }
 0x4a2   : > { %v4969_v19 = vor.u32 %v4968_v59, %v4967_v42  ;;  %vm4970_vm4 = vcmp.lt.s32.totalorder %v17670_v39, 1  ;;  %vm4973_vm10 = vcmp.lt.s32.totalorder %v17670_v39, 4  ;;  %vm4972_vm12 = vcmp.lt.s32.totalorder %v17670_v39, 3 }
 0x4a3   : > { %v4759_v17 = vmul.f32 %v4758_v33, %v4756_v41  ;;  %v4766_v56 = vmul.f32 %v4765_v2, %v4756_v41  ;;  %v4884_v23 = vshll.u32 %v17676_v44, 30  ;;  %vm4971_vm9 = vcmp.lt.s32.totalorder %v17670_v39, 2 }
 0x4a4   : > { %v4979_v34 = vsel %vm4973_vm10, %v4966_v37, 920167782  ;;  %v17698_v32 = vshll.u32 %v4946_v60, 8  ;;  %v5097_v25 = vshrl.u32 %v5096_v4, 23  ;;  %v4982_v49 = vsel %vm4970_vm4, %v17685_v52, %v4963_v47 }
 0x4a5   : > { %v4760_v46 = vadd.f32 -0.4999988, %v4759_v17  ;;  %v4767_v61 = vadd.f32 -0.16666654, %v4766_v56  ;;  %v17691_v24 = vsub.s32 %v4881_v63, %v4884_v23  ;;  %v4978_v63 = vsel %vm4970_vm4, %v17680_v58, %v17685_v52 }
 0x4a6   : > { %v4980_v38 = vsel %vm4972_vm12, %v4963_v47, %v4979_v34  ;;  %v4983_v36 = vsel %vm4973_vm10, %v4969_v19, 1326507024  ;;  %v4987_v59 = vand.u32 65535, %v17698_v32  ;;  %v4988_v17 = vshrl.u32 %v17698_v32, 16 }
 0x4a7   : > { %v4761_v15 = vmul.f32 %v4760_v46, %v4756_v41  ;;  %v4768_v57 = vmul.f32 %v4767_v61, %v4756_v41  ;;  %vm4886_vm2 = vcmp.lt.s32.totalorder %v17691_v24, 0  ;;  %v4887_v12 = vsub.s32 0, %v17691_v24 }
 0x4a8   : > { %v4984_v60 = vsel %vm4972_vm12, %v4966_v37, %v4983_v36  ;;  %v4981_v19 = vsel %vm4971_vm9, %v4978_v63, %v4980_v38  ;;  %v4954_v63 = vshrl.u32 %v20067_v3, %v17646_v22 }
 0x4a9   : > { %v17713_v41 = vadd.f32 1.0, %v4761_v15  ;;  %v4769_v42 = vadd.f32 1.0, %v4768_v57  ;;  %v4888_v33 = vsel %vm4886_vm2, %v4887_v12, %v17691_v24  ;;  %v4985_v46 = vsel %vm4971_vm9, %v4982_v49, %v4984_v60 }
 0x4aa   : > { %v4889_v4 = vclz %v4888_v33  ;;  %v4989_v34 = vand.u32 65535, %v4985_v46  ;;  %v4990_v15 = vshrl.u32 %v4985_v46, 16  ;;  %v13123_v57 = vadd.s32 4294967169, %v5097_v25 }
 0x4ab   : > { %20246 = vst [vmem:[#allocation119_spill] sm:$0xff] %v17713_v41  ;;  %v17722_v56 = vmul.f32 %v4769_v42, %v17651_v29  ;;  %v19926_v23 = vxor.u32 2147483648, %v17713_v41  ;;  %v4907_v12 = vsub.s32 4, %v17676_v44  ;;  %v5011_v49 = vand.u32 65535, %v4981_v19 }
 0x4ac   : > { %v13118_v61 = vadd.s32 4294967294, %v4889_v4  ;;  %v4992_v38 = vmul.u32 %v4990_v15, %v4987_v59  ;;  %v5012_v36 = vshrl.u32 %v4981_v19, 16  ;;  %v4991_v33 = vmul.u32 %v4989_v34, %v4987_v59 }
 0x4ad   : > { %20247 = vst [vmem:[#allocation120_spill] sm:$0xff] %v17722_v56  ;;  %v19927_v37 = vxor.u32 2147483648, %v17722_v56  ;;  %v4780_v29 = vsel %vm4778_vm6, %v19926_v23, %v17722_v56  ;;  %v4993_v4 = vmul.u32 %v4989_v34, %v4988_v17  ;;  %vm4785_vm6 = vcmp.lt.s32.totalorder %v20230_v27, 0 }
 0x4ae   : > { %vm13119_vm2 = vcmp.lt.s32.totalorder %v13118_v61, 0  ;;  %v5103_v34 = vadd.s32 1, %v13123_v57  ;;  %v4995_v16 = vshll.u32 %v4992_v38, 16  ;;  %v4996_v2 = vshrl.u32 %v4992_v38, 16 }
 0x4af   : > { %v4777_v25 = vsel %vm4775_vm1, %v17713_v41, %v19927_v37  ;;  %v4892_v42 = vsel %vm13119_vm2, 0, %v13118_v61  ;;  %v4974_v37 = vsel %vm4970_vm4, %v4954_v63, %v17680_v58  ;;  %v4975_v61 = vsel %vm4973_vm10, %v4963_v47, 2102212464 }
 0x4b0   : > { %v4781_v60 = vsel %vm4774_vm5, %v4777_v25, %v4780_v29  ;;  %v4893_v22 = vsub.s32 32, %v4892_v42  ;;  %v4894_v46 = vshll.u32 %v17691_v24, %v4892_v42  ;;  %v4897_v23 = vsub.s32 4294967266, %v4892_v42 }
 0x4b1   : > { %v4782_v19 = vsel %vm19934_vm7, nan, %v4781_v60  ;;  %v4994_v25 = vmul.u32 %v4990_v15, %v4988_v17  ;;  %v4997_v24 = vshll.u32 %v4993_v4, 16  ;;  %v5013_v42 = vmul.u32 %v5011_v49, %v4987_v59 }
 0x4b2   : > { %v4895_v26 = vshrl.u32 %v17655_v20, %v4893_v22  ;;  %v4898_v29 = vadd.s32 127, %v4897_v23  ;;  %6670 = vst [vmem:[%s14173_s11 + $0xd8] sm:$0xff] %v4782_v19  ;;  %v5014_v41 = vmul.u32 %v5012_v36, %v4987_v59  ;;  %v20248_v60 = vand.u32 2147483647, %v20230_v27 }
 0x4b3   : > { %vm4999_vm4 = vc.u32 %v4991_v33, %v4995_v16  ;;  %v5001_v47 = vadd.s32 %v4995_v16, %v4991_v33  ;;  %v5015_v23 = vmul.u32 %v5011_v49, %v4988_v17  ;;  %v5016_v15 = vmul.u32 %v5012_v36, %v4988_v17 }
 0x4b4   : > { %vm17758_vm1 = vcmp.le.f32.partialorder %v20248_v60, 0.7853982  ;;  %v4896_v58 = vor.u32 %v4895_v26, %v4894_v46  ;;  %v4899_v63 = vshll.u32 %v4898_v29, 23  ;;  %v5000_v20 = vsel %vm4999_vm4, 1, %v20073_v43 }
 0x4b5   : > { %v5017_v57 = vshll.u32 %v5014_v41, 16  ;;  %v5002_v19 = vadd.s32 %v5000_v20, %v4994_v25  ;;  %vm5003_vm10 = vc.u32 %v5001_v47, %v4997_v24  ;;  %v4976_v59 = vsel %vm4972_vm12, %v17685_v52, %v4975_v61 }
 0x4b6   : > { %v4900_v22 = vor.u32 4788187, %v4899_v63  ;;  %v4903_v38 = vcvt.s32.f32 %v4896_v58  ;;  %v4998_v60 = vshrl.u32 %v4993_v4, 16  ;;  %v5004_v56 = vsel %vm5003_vm10, 1, %v20073_v43 }
 0x4b7   : > { %v5019_v46 = vshll.u32 %v5015_v23, 16  ;;  %v5006_v29 = vadd.s32 %v5004_v56, %v5002_v19  ;;  %vm5021_vm5 = vc.u32 %v5013_v42, %v5017_v57  ;;  %v5023_v16 = vadd.s32 %v5017_v57, %v5013_v42 }
 0x4b8   : > { %v4901_v26 = vand.u32 2147483647, %v4900_v22  ;;  %v4908_v17 = vsel %vm4785_vm6, %v4907_v12, %v17676_v44  ;;  %v5018_v49 = vshrl.u32 %v5014_v41, 16  ;;  %v5022_v36 = vsel %vm5021_vm5, 1, %v20073_v43 }
 0x4b9   : > { %vm5104_vm2 = vcmp.gt.s32.totalorder %v5103_v34, 0  ;;  %v5007_v25 = vadd.s32 %v5006_v29, %v4996_v2  ;;  %v5024_v24 = vadd.s32 %v5022_v36, %v5016_v15  ;;  %vm5025_vm12 = vc.u32 %v5023_v16, %v5019_v46 }
 0x4ba   : > { %v4904_v33 = vmul.f32 %v4903_v38, %v4901_v26  ;;  %v4977_v52 = vsel %vm4971_vm9, %v4974_v37, %v4976_v59  ;;  %v5026_v4 = vsel %vm5025_vm12, 1, %v20073_v43  ;;  %v17774_v56 = vadd.s32 %v5023_v16, %v5019_v46 }
 0x4bb   : > { %v5105_v61 = vsel %vm5104_vm2, %v5103_v34, 0  ;;  %v17776_v58 = vadd.s32 %v5007_v25, %v4998_v60  ;;  %v5020_v44 = vshrl.u32 %v5015_v23, 16  ;;  %v5028_v41 = vadd.s32 %v5026_v4, %v5024_v24 }
 0x4bc   : > { %v4905_v42 = vxor.u32 2147483648, %v4904_v33  ;;  %v17780_v12 = vsel %vm17758_vm1, 0, %v4908_v17  ;;  %v20252_v2 = vand.u32 2147483647, %v20245_v28  ;;  %v5107_v47 = vand.u32 31, %v5105_v61 }
 0x4bd   : > { %20251 = vst [vmem:[#allocation121_spill] sm:$0xff] %v17780_v12  ;;  %v5029_v37 = vadd.s32 %v5028_v41, %v5018_v49  ;;  %v5031_v20 = vmul.u32 %v17698_v32, %v4977_v52  ;;  %v17787_v34 = vshrl.u32 %v5105_v61, 5  ;;  %vm5033_vm9 = vc.u32 %v17776_v58, %v17774_v56 }
 0x4be   : > { %v5100_v63 = vand.u32 8388607, %v20252_v2  ;;  %v4906_v39 = vsel %vm4785_vm6, %v4905_v42, %v4904_v33  ;;  %v17794_v15 = vsub.s32 32, %v5107_v47  ;;  %v5110_v57 = vshll.u32 %v20067_v3, %v5107_v47 }
 0x4bf   : > { %v4909_v23 = vsel %vm17758_vm1, %v20230_v27, %v4906_v39  ;;  %v5030_v38 = vadd.s32 %v5029_v37, %v5020_v44  ;;  %v5113_v19 = vshll.u32 %v20068_v51, %v5107_v47  ;;  %v5116_v59 = vshll.u32 %v20069_v54, %v5107_v47 }
 0x4c0   : > { %v4911_v22 = vmul.f32 %v4909_v23, %v4909_v23  ;;  %v5111_v32 = vshrl.u32 %v20068_v51, %v17794_v15  ;;  %v5114_v13 = vshrl.u32 %v20069_v54, %v17794_v15  ;;  %v5117_v60 = vshrl.u32 %v20070_v8, %v17794_v15 }
 0x4c1   : > { %v5119_v46 = vshll.u32 %v20070_v8, %v5107_v47  ;;  %v5034_v16 = vadd.s32 1, %v5030_v38  ;;  %v5120_v17 = vshrl.u32 %v20071_v7, %v17794_v15  ;;  %v4927_v49 = vadd.s32 3, %v17780_v12 }
 0x4c2   : > { %v4912_v26 = vmul.f32 -0.001358992, %v4911_v22  ;;  %v4919_v29 = vmul.f32 -0.00019511016, %v4911_v22  ;;  %v5101_v36 = vor.u32 8388608, %v5100_v63  ;;  %v17809_v33 = vor.u32 %v5111_v32, %v5110_v57 }
 0x4c3   : > { %v5035_v52 = vsel %vm5033_vm9, %v5034_v16, %v5030_v38  ;;  %v5122_v4 = vshll.u32 %v20071_v7, %v5107_v47  ;;  %v17815_v42 = vor.u32 %v5114_v13, %v5113_v19  ;;  %v5121_v44 = vor.u32 %v5120_v17, %v5119_v46 }
 0x4c4   : > { %v4913_v25 = vadd.f32 0.041655596, %v4912_v26  ;;  %v4920_v24 = vadd.f32 0.008332121, %v4919_v29  ;;  %v5036_v61 = vadd.s32 %v5035_v52, %v5031_v20  ;;  %v5123_v41 = vshrl.u32 %v20072_v0, %v17794_v15 }
 0x4c5   : > { %v17819_v63 = vor.u32 %v5117_v60, %v5116_v59  ;;  %vm5125_vm6 = vcmp.lt.s32.totalorder %v17787_v34, 1  ;;  %v4928_v37 = vand.u32 3, %v4927_v49  ;;  %vm5127_vm1 = vcmp.lt.s32.totalorder %v17787_v34, 3 }
 0x4c6   : > { %v4914_v2 = vmul.f32 %v4913_v25, %v4911_v22  ;;  %v4921_v39 = vmul.f32 %v4920_v24, %v4911_v22  ;;  %v5037_v57 = vadd.s32 536870912, %v5036_v61  ;;  %vm5128_vm4 = vcmp.lt.s32.totalorder %v17787_v34, 4 }
 0x4c7   : > { %v5124_v38 = vor.u32 %v5123_v41, %v5122_v4  ;;  %vm5126_vm10 = vcmp.lt.s32.totalorder %v17787_v34, 2  ;;  %v5133_v59 = vsel %vm5125_vm6, %v17809_v33, %v17815_v42  ;;  %v5134_v32 = vsel %vm5128_vm4, %v5121_v44, 920167782 }
 0x4c8   : > { %v4915_v47 = vadd.f32 -0.4999988, %v4914_v2  ;;  %v4922_v20 = vadd.f32 -0.16666654, %v4921_v39  ;;  %v17825_v19 = vshrl.u32 %v5037_v57, 30  ;;  %v17833_v13 = vshll.u32 %v5101_v36, 8 }
 0x4c9   : > { %vm19954_vm5 = vweird.f32 %v20230_v27  ;;  %v5135_v26 = vsel %vm5127_vm1, %v17819_v63, %v5134_v32  ;;  %vm4930_vm2 = vcmp.eq.s32.totalorder %v4928_v37, 0  ;;  %v5137_v17 = vsel %vm5125_vm6, %v17815_v42, %v17819_v63 }
 0x4ca   : > { %v4916_v60 = vmul.f32 %v4915_v47, %v4911_v22  ;;  %v4923_v46 = vmul.f32 %v4922_v20, %v4911_v22  ;;  %v5039_v29 = vshll.u32 %v17825_v19, 30  ;;  %v5136_v16 = vsel %vm5126_vm10, %v5133_v59, %v5135_v26 }
 0x4cb   : > { %vm4933_vm12 = vcmp.eq.s32.totalorder %v4928_v37, 2  ;;  %v5138_v36 = vsel %vm5128_vm4, %v5124_v38, 1326507024  ;;  %v5142_v52 = vand.u32 65535, %v17833_v13  ;;  %v5143_v4 = vshrl.u32 %v17833_v13, 16 }
 0x4cc   : > { %v17846_v49 = vadd.f32 1.0, %v4916_v60  ;;  %v4924_v22 = vadd.f32 1.0, %v4923_v46  ;;  %v17850_v25 = vsub.s32 %v5036_v61, %v5039_v29  ;;  %v5139_v24 = vsel %vm5127_vm1, %v5121_v44, %v5138_v36 }
 0x4cd   : > { %v5140_v39 = vsel %vm5126_vm10, %v5137_v17, %v5139_v24  ;;  %v5167_v57 = vshrl.u32 %v5136_v16, 16  ;;  %vm4929_vm7 = vcmp.lt.s32.totalorder %v4928_v37, 2  ;;  %v5166_v38 = vand.u32 65535, %v5136_v16 }
 0x4ce   : > { %20253 = vst [vmem:[#allocation122_spill] sm:$0xff] %v17846_v49  ;;  %v17856_v41 = vmul.f32 %v4924_v22, %v4909_v23  ;;  %v19936_v2 = vxor.u32 2147483648, %v17846_v49  ;;  %vm5041_vm9 = vcmp.lt.s32.totalorder %v17850_v25, 0  ;;  %v5042_v61 = vsub.s32 0, %v17850_v25  ;;  %v20255_v22 = vld [vmem:[#allocation44_spill] sm:$0xff] }
 0x4cf   : > { %v5144_v47 = vand.u32 65535, %v5140_v39  ;;  %v5145_v20 = vshrl.u32 %v5140_v39, 16  ;;  %v5169_v17 = vmul.u32 %v5167_v57, %v5142_v52  ;;  %v5251_v36 = vand.u32 2139095040, %v20255_v22 }
 0x4d0   : > { %20254 = vst [vmem:[#allocation123_spill] sm:$0xff] %v17856_v41  ;;  %v19938_v44 = vxor.u32 2147483648, %v17856_v41  ;;  %v4935_v23 = vsel %vm4933_vm12, %v19936_v2, %v17856_v41  ;;  %v5043_v59 = vsel %vm5041_vm9, %v5042_v61, %v17850_v25  ;;  %v5109_v37 = vshrl.u32 %v20067_v3, %v17794_v15 }
 0x4d1   : > { %v5146_v32 = vmul.u32 %v5144_v47, %v5142_v52  ;;  %v5147_v60 = vmul.u32 %v5145_v20, %v5142_v52  ;;  %v5148_v46 = vmul.u32 %v5144_v47, %v5143_v4  ;;  %v5044_v29 = vclz %v5043_v59 }
 0x4d2   : > { %v4932_v26 = vsel %vm4930_vm2, %v17846_v49, %v19938_v44  ;;  %v5149_v39 = vmul.u32 %v5145_v20, %v5143_v4  ;;  %v5032_v47 = vadd.s32 %v17774_v56, %v17776_v58  ;;  %v5062_v44 = vsub.s32 4, %v17825_v19 }
 0x4d3   : > { %v4936_v24 = vsel %vm4929_vm7, %v4932_v26, %v4935_v23  ;;  %v5150_v16 = vshll.u32 %v5147_v60, 16  ;;  %v5152_v2 = vshll.u32 %v5148_v46, 16  ;;  %v13121_v12 = vadd.s32 4294967294, %v5044_v29 }
 0x4d4   : > { %v4937_v61 = vsel %vm19954_vm5, nan, %v4936_v24  ;;  %v5168_v49 = vmul.u32 %v5166_v38, %v5142_v52  ;;  %v20256_v20 = vand.u32 2147483647, %v20240_v21  ;;  %v5151_v26 = vshrl.u32 %v5147_v60, 16 }
 0x4d5   : > { %vm5154_vm2 = vc.u32 %v5146_v32, %v5150_v16  ;;  %v5156_v59 = vadd.s32 %v5150_v16, %v5146_v32  ;;  %6671 = vst [vmem:[%s14173_s11 + $0xe0] sm:$0xff] %v4937_v61  ;;  %vm13122_vm12 = vcmp.lt.s32.totalorder %v13121_v12, 0  ;;  %v5170_v58 = vmul.u32 %v5166_v38, %v5143_v4 }
 0x4d6   : > { %vm17885_vm7 = vcmp.le.f32.partialorder %v20256_v20, 0.7853982  ;;  %v5155_v56 = vsel %vm5154_vm2, 1, %v20073_v43  ;;  %v5047_v29 = vsel %vm13122_vm12, 0, %v13121_v12  ;;  %v5172_v15 = vshll.u32 %v5169_v17, 16 }
 0x4d7   : > { %v5157_v24 = vadd.s32 %v5155_v56, %v5149_v39  ;;  %vm5158_vm9 = vc.u32 %v5156_v59, %v5152_v2  ;;  %v5048_v27 = vsub.s32 32, %v5047_v29  ;;  %v5049_v32 = vshll.u32 %v17850_v25, %v5047_v29 }
 0x4d8   : > { %v5052_v52 = vsub.s32 4294967266, %v5047_v29  ;;  %v5159_v16 = vsel %vm5158_vm9, 1, %v20073_v43  ;;  %v5129_v61 = vsel %vm5125_vm6, %v5109_v37, %v17809_v33  ;;  %v5130_v60 = vsel %vm5128_vm4, %v17819_v63, 2102212464 }
 0x4d9   : > { %v5161_v20 = vadd.s32 %v5159_v16, %v5157_v24  ;;  %v5171_v38 = vmul.u32 %v5167_v57, %v5143_v4  ;;  %v5050_v12 = vshrl.u32 %v5032_v47, %v5048_v27  ;;  %v5063_v2 = vsel %vm4940_vm0, %v5062_v44, %v17825_v19 }
 0x4da   : > { %v5053_v39 = vadd.s32 127, %v5052_v52  ;;  %v5174_v25 = vshll.u32 %v5170_v58, 16  ;;  %v5153_v59 = vshrl.u32 %v5148_v46, 16  ;;  %vm5176_vm2 = vc.u32 %v5168_v49, %v5172_v15 }
 0x4db   : > { %v5162_v56 = vadd.s32 %v5161_v20, %v5151_v26  ;;  %v5178_v29 = vadd.s32 %v5172_v15, %v5168_v49  ;;  %v5051_v41 = vor.u32 %v5050_v12, %v5049_v32  ;;  %v5177_v33 = vsel %vm5176_vm2, 1, %v20073_v43 }
 0x4dc   : > { %v5054_v1 = vshll.u32 %v5053_v39, 23  ;;  %v5252_v37 = vshrl.u32 %v5251_v36, 23  ;;  %v5131_v63 = vsel %vm5127_vm1, %v17815_v42, %v5130_v60  ;;  %v5173_v27 = vshrl.u32 %v5169_v17, 16 }
 0x4dd   : > { %v5179_v4 = vadd.s32 %v5177_v33, %v5171_v38  ;;  %vm5180_vm6 = vc.u32 %v5178_v29, %v5174_v25  ;;  %v5058_v47 = vcvt.s32.f32 %v5051_v41  ;;  %v17908_v49 = vsel %vm17885_vm7, 0, %v5063_v2 }
 0x4de   : > { %v5055_v57 = vor.u32 4788187, %v5054_v1  ;;  %v5181_v19 = vsel %vm5180_vm6, 1, %v20073_v43  ;;  %v13126_v44 = vadd.s32 4294967169, %v5252_v37  ;;  %20259 = vst [vmem:[#allocation124_spill] sm:$0xff] %v17908_v49  ;;  %v5175_v46 = vshrl.u32 %v5170_v58, 16 }
 0x4df   : > { %v5183_v26 = vadd.s32 %v5181_v19, %v5179_v4  ;;  %v5163_v36 = vadd.s32 %v5162_v56, %v5153_v59  ;;  %v5182_v15 = vadd.s32 %v5178_v29, %v5174_v25  ;;  %v5132_v42 = vsel %vm5126_vm10, %v5129_v61, %v5131_v63 }
 0x4e0   : > { %v5056_v24 = vand.u32 2147483647, %v5055_v57  ;;  %v5258_v32 = vadd.s32 1, %v13126_v44  ;;  %v5082_v1 = vadd.s32 3, %v17908_v49  ;;  %v19947_v16 = vand.u32 2147483647, %v20255_v22 }
 0x4e1   : > { %v5184_v17 = vadd.s32 %v5183_v26, %v5173_v27  ;;  %v5186_v58 = vmul.u32 %v17833_v13, %v5132_v42  ;;  %vm5188_vm4 = vc.u32 %v5163_v36, %v5182_v15  ;;  %v17926_v25 = vadd.s32 %v5182_v15, %v5163_v36  ;;  %v20260_v42 = vld [vmem:[#allocation45_spill] sm:$0xff] }
 0x4e2   : > { %v5059_v52 = vmul.f32 %v5058_v47, %v5056_v24  ;;  %vm5259_vm1 = vcmp.gt.s32.totalorder %v5258_v32, 0  ;;  %v17924_v2 = vand.u32 3, %v5082_v1  ;;  %v5255_v29 = vand.u32 8388607, %v19947_v16 }
 0x4e3   : > { %v5185_v41 = vadd.s32 %v5184_v17, %v5175_v46  ;;  %v5260_v60 = vsel %vm5259_vm1, %v5258_v32, 0  ;;  %v5406_v17 = vand.u32 2139095040, %v20260_v42  ;;  %vm19953_vm6 = vweird.f32 %v20240_v21 }
 0x4e4   : > { %v5060_v20 = vxor.u32 2147483648, %v5059_v52  ;;  %v5262_v38 = vand.u32 31, %v5260_v60  ;;  %v17941_v44 = vshrl.u32 %v5260_v60, 5  ;;  %vm5085_vm10 = vcmp.eq.s32.totalorder %v17924_v2, 0 }
 0x4e5   : > { %v5189_v12 = vadd.s32 1, %v5185_v41  ;;  %vm5084_vm9 = vcmp.lt.s32.totalorder %v17924_v2, 2  ;;  %vm5250_vm5 = vcmp.lt.s32.totalorder %v20255_v22, 0 }
 0x4e6   : > { %v5061_v39 = vsel %vm4940_vm0, %v5060_v20, %v5059_v52  ;;  %v17917_v34 = vsub.s32 32, %v5262_v38  ;;  %v5265_v33 = vshll.u32 %v20067_v3, %v5262_v38  ;;  %v5268_v23 = vshll.u32 %v20068_v51, %v5262_v38 }
 0x4e7   : > { %v17922_v61 = vsel %vm17885_vm7, %v20240_v21, %v5061_v39  ;;  %v5190_v59 = vsel %vm5188_vm4, %v5189_v12, %v5185_v41  ;;  %v5274_v27 = vshll.u32 %v20070_v8, %v5262_v38  ;;  %v5271_v46 = vshll.u32 %v20069_v54, %v5262_v38 }
 0x4e8   : > { %v5066_v13 = vmul.f32 %v17922_v61, %v17922_v61  ;;  %v5191_v56 = vadd.s32 %v5190_v59, %v5186_v58  ;;  %v5266_v37 = vshrl.u32 %v20068_v51, %v17917_v34  ;;  %v5269_v63 = vshrl.u32 %v20069_v54, %v17917_v34 }
 0x4e9   : > { %v5275_v19 = vshrl.u32 %v20071_v7, %v17917_v34  ;;  %v5272_v26 = vshrl.u32 %v20070_v8, %v17917_v34  ;;  %v5277_v24 = vshll.u32 %v20071_v7, %v5262_v38  ;;  %vm5088_vm0 = vcmp.eq.s32.totalorder %v17924_v2, 2 }
 0x4ea   : > { %v5067_v4 = vmul.f32 -0.001358992, %v5066_v13  ;;  %v5074_v57 = vmul.f32 -0.00019511016, %v5066_v13  ;;  %v5192_v47 = vadd.s32 536870912, %v5191_v56  ;;  %v5256_v52 = vor.u32 8388608, %v5255_v29 }
 0x4eb   : > { %v17951_v1 = vor.u32 %v5266_v37, %v5265_v33  ;;  %v5276_v41 = vor.u32 %v5275_v19, %v5274_v27  ;;  %v5278_v60 = vshrl.u32 %v20072_v0, %v17917_v34  ;;  %v17956_v38 = vor.u32 %v5269_v63, %v5268_v23 }
 0x4ec   : > { %v5068_v36 = vadd.f32 0.041655596, %v5067_v4  ;;  %v5075_v15 = vadd.f32 0.008332121, %v5074_v57  ;;  %v17947_v32 = vshrl.u32 %v5192_v47, 30  ;;  %v5273_v39 = vor.u32 %v5272_v26, %v5271_v46 }
 0x4ed   : > { %v5279_v59 = vor.u32 %v5278_v60, %v5277_v24  ;;  %vm5280_vm7 = vcmp.lt.s32.totalorder %v17941_v44, 1  ;;  %vm5283_vm12 = vcmp.lt.s32.totalorder %v17941_v44, 4  ;;  %vm5282_vm2 = vcmp.lt.s32.totalorder %v17941_v44, 3 }
 0x4ee   : > { %v5069_v20 = vmul.f32 %v5068_v36, %v5066_v13  ;;  %v5076_v58 = vmul.f32 %v5075_v15, %v5066_v13  ;;  %v5194_v12 = vshll.u32 %v17947_v32, 30  ;;  %vm5281_vm1 = vcmp.lt.s32.totalorder %v17941_v44, 2 }
 0x4ef   : > { %v5289_v23 = vsel %vm5283_vm12, %v5276_v41, 920167782  ;;  %v17969_v63 = vshll.u32 %v5256_v52, 8  ;;  %v5407_v27 = vshrl.u32 %v5406_v17, 23  ;;  %v5292_v46 = vsel %vm5280_vm7, %v17956_v38, %v5273_v39 }
 0x4f0   : > { %v5070_v29 = vadd.f32 -0.4999988, %v5069_v20  ;;  %v5077_v33 = vadd.f32 -0.16666654, %v5076_v58  ;;  %v17962_v37 = vsub.s32 %v5191_v56, %v5194_v12  ;;  %v5288_v56 = vsel %vm5280_vm7, %v17951_v1, %v17956_v38 }
 0x4f1   : > { %v5290_v19 = vsel %vm5282_vm2, %v5273_v39, %v5289_v23  ;;  %v5293_v26 = vsel %vm5283_vm12, %v5279_v59, 1326507024  ;;  %v5297_v60 = vand.u32 65535, %v17969_v63  ;;  %v5298_v20 = vshrl.u32 %v17969_v63, 16 }
 0x4f2   : > { %v5071_v4 = vmul.f32 %v5070_v29, %v5066_v13  ;;  %v5078_v57 = vmul.f32 %v5077_v33, %v5066_v13  ;;  %vm5196_vm4 = vcmp.lt.s32.totalorder %v17962_v37, 0  ;;  %v5197_v47 = vsub.s32 0, %v17962_v37 }
 0x4f3   : > { %v5294_v52 = vsel %vm5282_vm2, %v5276_v41, %v5293_v26  ;;  %v5291_v59 = vsel %vm5281_vm1, %v5288_v56, %v5290_v19  ;;  %v5264_v56 = vshrl.u32 %v20067_v3, %v17917_v34 }
 0x4f4   : > { %v17984_v13 = vadd.f32 1.0, %v5071_v4  ;;  %v5079_v24 = vadd.f32 1.0, %v5078_v57  ;;  %v5198_v36 = vsel %vm5196_vm4, %v5197_v47, %v17962_v37  ;;  %v5295_v29 = vsel %vm5281_vm1, %v5292_v46, %v5294_v52 }
 0x4f5   : > { %v5199_v17 = vclz %v5198_v36  ;;  %v5299_v23 = vand.u32 65535, %v5295_v29  ;;  %v5300_v4 = vshrl.u32 %v5295_v29, 16  ;;  %v13129_v57 = vadd.s32 4294967169, %v5407_v27 }
 0x4f6   : > { %20261 = vst [vmem:[#allocation125_spill] sm:$0xff] %v17984_v13  ;;  %v17993_v58 = vmul.f32 %v5079_v24, %v17922_v61  ;;  %v19945_v12 = vxor.u32 2147483648, %v17984_v13  ;;  %v5217_v47 = vsub.s32 4, %v17947_v32  ;;  %v5321_v46 = vand.u32 65535, %v5291_v59 }
 0x4f7   : > { %v13124_v33 = vadd.s32 4294967294, %v5199_v17  ;;  %v5302_v19 = vmul.u32 %v5300_v4, %v5297_v60  ;;  %v5322_v26 = vshrl.u32 %v5291_v59, 16  ;;  %v5301_v36 = vmul.u32 %v5299_v23, %v5297_v60 }
 0x4f8   : > { %20262 = vst [vmem:[#allocation126_spill] sm:$0xff] %v17993_v58  ;;  %v19946_v41 = vxor.u32 2147483648, %v17993_v58  ;;  %v5090_v61 = vsel %vm5088_vm0, %v19945_v12, %v17993_v58  ;;  %v5303_v17 = vmul.u32 %v5299_v23, %v5298_v20  ;;  %vm5095_vm0 = vcmp.lt.s32.totalorder %v20245_v28, 0 }
 0x4f9   : > { %vm13125_vm4 = vcmp.lt.s32.totalorder %v13124_v33, 0  ;;  %v5413_v23 = vadd.s32 1, %v13129_v57  ;;  %v5305_v16 = vshll.u32 %v5302_v19, 16  ;;  %v5306_v15 = vshrl.u32 %v5302_v19, 16 }
 0x4fa   : > { %v5087_v27 = vsel %vm5085_vm10, %v17984_v13, %v19946_v41  ;;  %v5202_v24 = vsel %vm13125_vm4, 0, %v13124_v33  ;;  %v5284_v41 = vsel %vm5280_vm7, %v5264_v56, %v17951_v1  ;;  %v5285_v33 = vsel %vm5283_vm12, %v5273_v39, 2102212464 }
 0x4fb   : > { %v5091_v52 = vsel %vm5084_vm9, %v5087_v27, %v5090_v61  ;;  %v5203_v34 = vsub.s32 32, %v5202_v24  ;;  %v5204_v29 = vshll.u32 %v17962_v37, %v5202_v24  ;;  %v5207_v12 = vsub.s32 4294967266, %v5202_v24 }
 0x4fc   : > { %v5092_v59 = vsel %vm19953_vm6, nan, %v5091_v52  ;;  %v5304_v27 = vmul.u32 %v5300_v4, %v5298_v20  ;;  %v5307_v37 = vshll.u32 %v5303_v17, 16  ;;  %v5323_v24 = vmul.u32 %v5321_v46, %v5297_v60 }
 0x4fd   : > { %v5205_v2 = vshrl.u32 %v17926_v25, %v5203_v34  ;;  %v5208_v61 = vadd.s32 127, %v5207_v12  ;;  %6672 = vst [vmem:[%s14173_s11 + $0xe8] sm:$0xff] %v5092_v59  ;;  %v5324_v13 = vmul.u32 %v5322_v26, %v5297_v60  ;;  %v20263_v52 = vand.u32 2147483647, %v20245_v28 }
 0x4fe   : > { %vm5309_vm7 = vc.u32 %v5301_v36, %v5305_v16  ;;  %v5311_v39 = vadd.s32 %v5305_v16, %v5301_v36  ;;  %v5325_v12 = vmul.u32 %v5321_v46, %v5298_v20  ;;  %v5326_v4 = vmul.u32 %v5322_v26, %v5298_v20 }
 0x4ff   : > { %vm18029_vm10 = vcmp.le.f32.partialorder %v20263_v52, 0.7853982  ;;  %v5206_v1 = vor.u32 %v5205_v2, %v5204_v29  ;;  %v5209_v56 = vshll.u32 %v5208_v61, 23  ;;  %v5310_v25 = vsel %vm5309_vm7, 1, %v20073_v43 }
 0x500   : > { %v5327_v57 = vshll.u32 %v5324_v13, 16  ;;  %v5312_v59 = vadd.s32 %v5310_v25, %v5304_v27  ;;  %vm5313_vm12 = vc.u32 %v5311_v39, %v5307_v37  ;;  %v5286_v60 = vsel %vm5282_vm2, %v17956_v38, %v5285_v33 }
 0x501   : > { %v5210_v34 = vor.u32 4788187, %v5209_v56  ;;  %v5213_v19 = vcvt.s32.f32 %v5206_v1  ;;  %v5308_v52 = vshrl.u32 %v5303_v17, 16  ;;  %v5314_v58 = vsel %vm5313_vm12, 1, %v20073_v43 }
 0x502   : > { %v5329_v29 = vshll.u32 %v5325_v12, 16  ;;  %v5316_v61 = vadd.s32 %v5314_v58, %v5312_v59  ;;  %vm5331_vm9 = vc.u32 %v5323_v24, %v5327_v57  ;;  %v5333_v16 = vadd.s32 %v5327_v57, %v5323_v24 }
 0x503   : > { %v5211_v2 = vand.u32 2147483647, %v5210_v34  ;;  %v5218_v20 = vsel %vm5095_vm0, %v5217_v47, %v17947_v32  ;;  %v5328_v46 = vshrl.u32 %v5324_v13, 16  ;;  %v5332_v26 = vsel %vm5331_vm9, 1, %v20073_v43 }
 0x504   : > { %vm5414_vm4 = vcmp.gt.s32.totalorder %v5413_v23, 0  ;;  %v5317_v27 = vadd.s32 %v5316_v61, %v5306_v15  ;;  %v5334_v37 = vadd.s32 %v5332_v26, %v5326_v4  ;;  %vm5335_vm2 = vc.u32 %v5333_v16, %v5329_v29 }
 0x505   : > { %v5214_v36 = vmul.f32 %v5213_v19, %v5211_v2  ;;  %v5287_v38 = vsel %vm5281_vm1, %v5284_v41, %v5286_v60  ;;  %v5336_v17 = vsel %vm5335_vm2, 1, %v20073_v43  ;;  %v18045_v58 = vadd.s32 %v5333_v16, %v5329_v29 }
 0x506   : > { %v5415_v33 = vsel %vm5414_vm4, %v5413_v23, 0  ;;  %v18047_v1 = vadd.s32 %v5317_v27, %v5308_v52  ;;  %v5330_v32 = vshrl.u32 %v5325_v12, 16  ;;  %v5338_v13 = vadd.s32 %v5336_v17, %v5334_v37 }
 0x507   : > { %v5215_v24 = vxor.u32 2147483648, %v5214_v36  ;;  %v18051_v47 = vsel %vm18029_vm10, 0, %v5218_v20  ;;  %v20267_v15 = vand.u32 2147483647, %v20260_v42  ;;  %v5417_v39 = vand.u32 31, %v5415_v33 }
 0x508   : > { %20266 = vst [vmem:[#allocation127_spill] sm:$0xff] %v18051_v47  ;;  %v5339_v41 = vadd.s32 %v5338_v13, %v5328_v46  ;;  %v5341_v25 = vmul.u32 %v17969_v63, %v5287_v38  ;;  %v18058_v23 = vshrl.u32 %v5415_v33, 5  ;;  %vm5343_vm1 = vc.u32 %v18047_v1, %v18045_v58 }
 0x509   : > { %v5410_v56 = vand.u32 8388607, %v20267_v15  ;;  %v5216_v44 = vsel %vm5095_vm0, %v5215_v24, %v5214_v36  ;;  %v18065_v4 = vsub.s32 32, %v5417_v39  ;;  %v5420_v57 = vshll.u32 %v20067_v3, %v5417_v39 }
 0x50a   : > { %v5219_v12 = vsel %vm18029_vm10, %v20245_v28, %v5216_v44  ;;  %v5340_v19 = vadd.s32 %v5339_v41, %v5330_v32  ;;  %v5423_v59 = vshll.u32 %v20068_v51, %v5417_v39  ;;  %v5426_v60 = vshll.u32 %v20069_v54, %v5417_v39 }
 0x50b   : > { %v5221_v34 = vmul.f32 %v5219_v12, %v5219_v12  ;;  %v5421_v63 = vshrl.u32 %v20068_v51, %v18065_v4  ;;  %v5424_v21 = vshrl.u32 %v20069_v54, %v18065_v4  ;;  %v5427_v52 = vshrl.u32 %v20070_v8, %v18065_v4 }
 0x50c   : > { %v5429_v29 = vshll.u32 %v20070_v8, %v5417_v39  ;;  %v5344_v16 = vadd.s32 1, %v5340_v19  ;;  %v5430_v20 = vshrl.u32 %v20071_v7, %v18065_v4  ;;  %v5237_v46 = vadd.s32 3, %v18051_v47 }
 0x50d   : > { %v5222_v2 = vmul.f32 -0.001358992, %v5221_v34  ;;  %v5229_v61 = vmul.f32 -0.00019511016, %v5221_v34  ;;  %v5411_v26 = vor.u32 8388608, %v5410_v56  ;;  %v18080_v36 = vor.u32 %v5421_v63, %v5420_v57 }
 0x50e   : > { %v5345_v38 = vsel %vm5343_vm1, %v5344_v16, %v5340_v19  ;;  %v5432_v17 = vshll.u32 %v20071_v7, %v5417_v39  ;;  %v18086_v24 = vor.u32 %v5424_v21, %v5423_v59  ;;  %v5431_v32 = vor.u32 %v5430_v20, %v5429_v29 }
 0x50f   : > { %v5223_v27 = vadd.f32 0.041655596, %v5222_v2  ;;  %v5230_v37 = vadd.f32 0.008332121, %v5229_v61  ;;  %v5346_v33 = vadd.s32 %v5345_v38, %v5341_v25  ;;  %v5433_v13 = vshrl.u32 %v20072_v0, %v18065_v4 }
 0x510   : > { %v18090_v56 = vor.u32 %v5427_v52, %v5426_v60  ;;  %vm5435_vm0 = vcmp.lt.s32.totalorder %v18058_v23, 1  ;;  %v5238_v41 = vand.u32 3, %v5237_v46  ;;  %vm5437_vm10 = vcmp.lt.s32.totalorder %v18058_v23, 3 }
 0x511   : > { %v5224_v15 = vmul.f32 %v5223_v27, %v5221_v34  ;;  %v5231_v44 = vmul.f32 %v5230_v37, %v5221_v34  ;;  %v5347_v57 = vadd.s32 536870912, %v5346_v33  ;;  %vm5438_vm7 = vcmp.lt.s32.totalorder %v18058_v23, 4 }
 0x512   : > { %v5434_v19 = vor.u32 %v5433_v13, %v5432_v17  ;;  %vm5436_vm12 = vcmp.lt.s32.totalorder %v18058_v23, 2  ;;  %v5443_v60 = vsel %vm5435_vm0, %v18080_v36, %v18086_v24  ;;  %v5444_v63 = vsel %vm5438_vm7, %v5431_v32, 920167782 }
 0x513   : > { %v5225_v39 = vadd.f32 -0.4999988, %v5224_v15  ;;  %v5232_v25 = vadd.f32 -0.16666654, %v5231_v44  ;;  %v18096_v59 = vshrl.u32 %v5347_v57, 30  ;;  %v18104_v21 = vshll.u32 %v5411_v26, 8 }
 0x514   : > { %vm19973_vm9 = vweird.f32 %v20245_v28  ;;  %v5445_v2 = vsel %vm5437_vm10, %v18090_v56, %v5444_v63  ;;  %vm5240_vm4 = vcmp.eq.s32.totalorder %v5238_v41, 0  ;;  %v5447_v20 = vsel %vm5435_vm0, %v18086_v24, %v18090_v56 }
 0x515   : > { %v5226_v52 = vmul.f32 %v5225_v39, %v5221_v34  ;;  %v5233_v29 = vmul.f32 %v5232_v25, %v5221_v34  ;;  %v5349_v61 = vshll.u32 %v18096_v59, 30  ;;  %v5446_v16 = vsel %vm5436_vm12, %v5443_v60, %v5445_v2 }
 0x516   : > { %vm5243_vm2 = vcmp.eq.s32.totalorder %v5238_v41, 2  ;;  %v5448_v26 = vsel %vm5438_vm7, %v5434_v19, 1326507024  ;;  %v5452_v38 = vand.u32 65535, %v18104_v21  ;;  %v5453_v17 = vshrl.u32 %v18104_v21, 16 }
 0x517   : > { %v18117_v46 = vadd.f32 1.0, %v5226_v52  ;;  %v5234_v34 = vadd.f32 1.0, %v5233_v29  ;;  %v18121_v27 = vsub.s32 %v5346_v33, %v5349_v61  ;;  %v5449_v37 = vsel %vm5437_vm10, %v5431_v32, %v5448_v26 }
 0x518   : > { %v5450_v44 = vsel %vm5436_vm12, %v5447_v20, %v5449_v37  ;;  %v5477_v57 = vshrl.u32 %v5446_v16, 16  ;;  %vm5239_vm6 = vcmp.lt.s32.totalorder %v5238_v41, 2  ;;  %v5476_v19 = vand.u32 65535, %v5446_v16 }
 0x519   : > { %20268 = vst [vmem:[#allocation128_spill] sm:$0xff] %v18117_v46  ;;  %v18127_v13 = vmul.f32 %v5234_v34, %v5219_v12  ;;  %v19955_v15 = vxor.u32 2147483648, %v18117_v46  ;;  %vm5351_vm1 = vcmp.lt.s32.totalorder %v18121_v27, 0  ;;  %v5352_v33 = vsub.s32 0, %v18121_v27  ;;  %v20270_v34 = vld [vmem:[#allocation46_spill] sm:$0xff] }
 0x51a   : > { %v5454_v39 = vand.u32 65535, %v5450_v44  ;;  %v5455_v25 = vshrl.u32 %v5450_v44, 16  ;;  %v5479_v20 = vmul.u32 %v5477_v57, %v5452_v38  ;;  %v5561_v26 = vand.u32 2139095040, %v20270_v34 }
 0x51b   : > { %20269 = vst [vmem:[#allocation129_spill] sm:$0xff] %v18127_v13  ;;  %v19957_v32 = vxor.u32 2147483648, %v18127_v13  ;;  %v5245_v12 = vsel %vm5243_vm2, %v19955_v15, %v18127_v13  ;;  %v5353_v60 = vsel %vm5351_vm1, %v5352_v33, %v18121_v27  ;;  %v5419_v41 = vshrl.u32 %v20067_v3, %v18065_v4 }
 0x51c   : > { %v5456_v63 = vmul.u32 %v5454_v39, %v5452_v38  ;;  %v5457_v52 = vmul.u32 %v5455_v25, %v5452_v38  ;;  %v5458_v29 = vmul.u32 %v5454_v39, %v5453_v17  ;;  %v5354_v61 = vclz %v5353_v60 }
 0x51d   : > { %v5242_v2 = vsel %vm5240_vm4, %v18117_v46, %v19957_v32  ;;  %v5459_v44 = vmul.u32 %v5455_v25, %v5453_v17  ;;  %v5342_v39 = vadd.s32 %v18045_v58, %v18047_v1  ;;  %v5372_v32 = vsub.s32 4, %v18096_v59 }
 0x51e   : > { %v5246_v37 = vsel %vm5239_vm6, %v5242_v2, %v5245_v12  ;;  %v5460_v16 = vshll.u32 %v5457_v52, 16  ;;  %v5462_v15 = vshll.u32 %v5458_v29, 16  ;;  %v13127_v47 = vadd.s32 4294967294, %v5354_v61 }
 0x51f   : > { %v5247_v33 = vsel %vm19973_vm9, nan, %v5246_v37  ;;  %v5478_v46 = vmul.u32 %v5476_v19, %v5452_v38  ;;  %v20271_v25 = vand.u32 2147483647, %v20255_v22  ;;  %v5461_v2 = vshrl.u32 %v5457_v52, 16 }
 0x520   : > { %vm5464_vm4 = vc.u32 %v5456_v63, %v5460_v16  ;;  %v5466_v60 = vadd.s32 %v5460_v16, %v5456_v63  ;;  %6673 = vst [vmem:[%s14173_s11 + $0xf0] sm:$0xff] %v5247_v33  ;;  %vm13128_vm2 = vcmp.lt.s32.totalorder %v13127_v47, 0  ;;  %v5480_v1 = vmul.u32 %v5476_v19, %v5453_v17 }
 0x521   : > { %vm18156_vm6 = vcmp.le.f32.partialorder %v20271_v25, 0.7853982  ;;  %v5465_v58 = vsel %vm5464_vm4, 1, %v20073_v43  ;;  %v5357_v61 = vsel %vm13128_vm2, 0, %v13127_v47  ;;  %v5482_v4 = vshll.u32 %v5479_v20, 16 }
 0x522   : > { %v5467_v37 = vadd.s32 %v5465_v58, %v5459_v44  ;;  %vm5468_vm1 = vc.u32 %v5466_v60, %v5462_v15  ;;  %v5358_v28 = vsub.s32 32, %v5357_v61  ;;  %v5359_v63 = vshll.u32 %v18121_v27, %v5357_v61 }
 0x523   : > { %v5362_v38 = vsub.s32 4294967266, %v5357_v61  ;;  %v5469_v16 = vsel %vm5468_vm1, 1, %v20073_v43  ;;  %v5439_v33 = vsel %vm5435_vm0, %v5419_v41, %v18080_v36  ;;  %v5440_v52 = vsel %vm5438_vm7, %v18090_v56, 2102212464 }
 0x524   : > { %v5471_v25 = vadd.s32 %v5469_v16, %v5467_v37  ;;  %v5481_v19 = vmul.u32 %v5477_v57, %v5453_v17  ;;  %v5360_v47 = vshrl.u32 %v5342_v39, %v5358_v28  ;;  %v5373_v15 = vsel %vm5250_vm5, %v5372_v32, %v18096_v59 }
 0x525   : > { %v5363_v44 = vadd.s32 127, %v5362_v38  ;;  %v5484_v27 = vshll.u32 %v5480_v1, 16  ;;  %v5463_v60 = vshrl.u32 %v5458_v29, 16  ;;  %vm5486_vm4 = vc.u32 %v5478_v46, %v5482_v4 }
 0x526   : > { %v5472_v58 = vadd.s32 %v5471_v25, %v5461_v2  ;;  %v5488_v61 = vadd.s32 %v5482_v4, %v5478_v46  ;;  %v5361_v13 = vor.u32 %v5360_v47, %v5359_v63  ;;  %v5487_v36 = vsel %vm5486_vm4, 1, %v20073_v43 }
 0x527   : > { %v5364_v49 = vshll.u32 %v5363_v44, 23  ;;  %v5562_v41 = vshrl.u32 %v5561_v26, 23  ;;  %v5441_v56 = vsel %vm5437_vm10, %v18086_v24, %v5440_v52  ;;  %v5483_v28 = vshrl.u32 %v5479_v20, 16 }
 0x528   : > { %v5489_v17 = vadd.s32 %v5487_v36, %v5481_v19  ;;  %vm5490_vm0 = vc.u32 %v5488_v61, %v5484_v27  ;;  %v5368_v39 = vcvt.s32.f32 %v5361_v13  ;;  %v18179_v46 = vsel %vm18156_vm6, 0, %v5373_v15 }
 0x529   : > { %v5365_v57 = vor.u32 4788187, %v5364_v49  ;;  %v5491_v59 = vsel %vm5490_vm0, 1, %v20073_v43  ;;  %v13132_v32 = vadd.s32 4294967169, %v5562_v41  ;;  %20274 = vst [vmem:[#allocation130_spill] sm:$0xff] %v18179_v46  ;;  %v5485_v29 = vshrl.u32 %v5480_v1, 16 }
 0x52a   : > { %v5493_v2 = vadd.s32 %v5491_v59, %v5489_v17  ;;  %v5473_v26 = vadd.s32 %v5472_v58, %v5463_v60  ;;  %v5492_v4 = vadd.s32 %v5488_v61, %v5484_v27  ;;  %v5442_v24 = vsel %vm5436_vm12, %v5439_v33, %v5441_v56 }
 0x52b   : > { %v5366_v37 = vand.u32 2147483647, %v5365_v57  ;;  %v5568_v63 = vadd.s32 1, %v13132_v32  ;;  %v5392_v49 = vadd.s32 3, %v18179_v46  ;;  %v19966_v16 = vand.u32 2147483647, %v20270_v34 }
 0x52c   : > { %v5494_v20 = vadd.s32 %v5493_v2, %v5483_v28  ;;  %v5496_v1 = vmul.u32 %v18104_v21, %v5442_v24  ;;  %vm5498_vm7 = vc.u32 %v5473_v26, %v5492_v4  ;;  %v18197_v27 = vadd.s32 %v5492_v4, %v5473_v26  ;;  %v20275_v24 = vld [vmem:[#allocation47_spill] sm:$0xff] }
 0x52d   : > { %v5369_v38 = vmul.f32 %v5368_v39, %v5366_v37  ;;  %vm5569_vm10 = vcmp.gt.s32.totalorder %v5568_v63, 0  ;;  %v18195_v15 = vand.u32 3, %v5392_v49  ;;  %v5565_v61 = vand.u32 8388607, %v19966_v16 }
 0x52e   : > { %v5495_v13 = vadd.s32 %v5494_v20, %v5485_v29  ;;  %v5570_v52 = vsel %vm5569_vm10, %v5568_v63, 0  ;;  %v5716_v20 = vand.u32 2139095040, %v20275_v24  ;;  %vm19972_vm0 = vweird.f32 %v20255_v22 }
 0x52f   : > { %v5370_v25 = vxor.u32 2147483648, %v5369_v38  ;;  %v5572_v19 = vand.u32 31, %v5570_v52  ;;  %v18212_v32 = vshrl.u32 %v5570_v52, 5  ;;  %vm5395_vm12 = vcmp.eq.s32.totalorder %v18195_v15, 0 }
 0x530   : > { %v5499_v47 = vadd.s32 1, %v5495_v13  ;;  %vm5394_vm1 = vcmp.lt.s32.totalorder %v18195_v15, 2  ;;  %vm5560_vm9 = vcmp.lt.s32.totalorder %v20270_v34, 0 }
 0x531   : > { %v5371_v44 = vsel %vm5250_vm5, %v5370_v25, %v5369_v38  ;;  %v18188_v23 = vsub.s32 32, %v5572_v19  ;;  %v5575_v36 = vshll.u32 %v20067_v3, %v5572_v19  ;;  %v5578_v12 = vshll.u32 %v20068_v51, %v5572_v19 }
 0x532   : > { %v18193_v33 = vsel %vm18156_vm6, %v20255_v22, %v5371_v44  ;;  %v5500_v60 = vsel %vm5498_vm7, %v5499_v47, %v5495_v13  ;;  %v5584_v28 = vshll.u32 %v20070_v8, %v5572_v19  ;;  %v5581_v29 = vshll.u32 %v20069_v54, %v5572_v19 }
 0x533   : > { %v5376_v21 = vmul.f32 %v18193_v33, %v18193_v33  ;;  %v5501_v58 = vadd.s32 %v5500_v60, %v5496_v1  ;;  %v5576_v41 = vshrl.u32 %v20068_v51, %v18188_v23  ;;  %v5579_v56 = vshrl.u32 %v20069_v54, %v18188_v23 }
 0x534   : > { %v5585_v59 = vshrl.u32 %v20071_v7, %v18188_v23  ;;  %v5582_v2 = vshrl.u32 %v20070_v8, %v18188_v23  ;;  %v5587_v37 = vshll.u32 %v20071_v7, %v5572_v19  ;;  %vm5398_vm5 = vcmp.eq.s32.totalorder %v18195_v15, 2 }
 0x535   : > { %v5377_v17 = vmul.f32 -0.001358992, %v5376_v21  ;;  %v5384_v57 = vmul.f32 -0.00019511016, %v5376_v21  ;;  %v5502_v39 = vadd.s32 536870912, %v5501_v58  ;;  %v5566_v38 = vor.u32 8388608, %v5565_v61 }
 0x536   : > { %v18222_v49 = vor.u32 %v5576_v41, %v5575_v36  ;;  %v5586_v13 = vor.u32 %v5585_v59, %v5584_v28  ;;  %v5588_v52 = vshrl.u32 %v20072_v0, %v18188_v23  ;;  %v18227_v19 = vor.u32 %v5579_v56, %v5578_v12 }
 0x537   : > { %v5378_v26 = vadd.f32 0.041655596, %v5377_v17  ;;  %v5385_v4 = vadd.f32 0.008332121, %v5384_v57  ;;  %v18218_v63 = vshrl.u32 %v5502_v39, 30  ;;  %v5583_v44 = vor.u32 %v5582_v2, %v5581_v29 }
 0x538   : > { %v5589_v60 = vor.u32 %v5588_v52, %v5587_v37  ;;  %vm5590_vm6 = vcmp.lt.s32.totalorder %v18212_v32, 1  ;;  %vm5593_vm2 = vcmp.lt.s32.totalorder %v18212_v32, 4  ;;  %vm5592_vm4 = vcmp.lt.s32.totalorder %v18212_v32, 3 }
 0x539   : > { %v5379_v25 = vmul.f32 %v5378_v26, %v5376_v21  ;;  %v5386_v1 = vmul.f32 %v5385_v4, %v5376_v21  ;;  %v5504_v47 = vshll.u32 %v18218_v63, 30  ;;  %vm5591_vm10 = vcmp.lt.s32.totalorder %v18212_v32, 2 }
 0x53a   : > { %v5599_v12 = vsel %vm5593_vm2, %v5586_v13, 920167782  ;;  %v18240_v56 = vshll.u32 %v5566_v38, 8  ;;  %v5717_v28 = vshrl.u32 %v5716_v20, 23  ;;  %v5602_v29 = vsel %vm5590_vm6, %v18227_v19, %v5583_v44 }
 0x53b   : > { %v5380_v61 = vadd.f32 -0.4999988, %v5379_v25  ;;  %v5387_v36 = vadd.f32 -0.16666654, %v5386_v1  ;;  %v18233_v41 = vsub.s32 %v5501_v58, %v5504_v47  ;;  %v5598_v58 = vsel %vm5590_vm6, %v18222_v49, %v18227_v19 }
 0x53c   : > { %v5600_v59 = vsel %vm5592_vm4, %v5583_v44, %v5599_v12  ;;  %v5603_v2 = vsel %vm5593_vm2, %v5589_v60, 1326507024  ;;  %v5607_v52 = vand.u32 65535, %v18240_v56  ;;  %v5608_v25 = vshrl.u32 %v18240_v56, 16 }
 0x53d   : > { %v5381_v17 = vmul.f32 %v5380_v61, %v5376_v21  ;;  %v5388_v57 = vmul.f32 %v5387_v36, %v5376_v21  ;;  %vm5506_vm7 = vcmp.lt.s32.totalorder %v18233_v41, 0  ;;  %v5507_v39 = vsub.s32 0, %v18233_v41 }
 0x53e   : > { %v5604_v38 = vsel %vm5592_vm4, %v5586_v13, %v5603_v2  ;;  %v5601_v60 = vsel %vm5591_vm10, %v5598_v58, %v5600_v59  ;;  %v5574_v58 = vshrl.u32 %v20067_v3, %v18188_v23 }
 0x53f   : > { %v18255_v21 = vadd.f32 1.0, %v5381_v17  ;;  %v5389_v37 = vadd.f32 1.0, %v5388_v57  ;;  %v5508_v26 = vsel %vm5506_vm7, %v5507_v39, %v18233_v41  ;;  %v5605_v61 = vsel %vm5591_vm10, %v5602_v29, %v5604_v38 }
 0x540   : > { %v5509_v20 = vclz %v5508_v26  ;;  %v5609_v12 = vand.u32 65535, %v5605_v61  ;;  %v5610_v17 = vshrl.u32 %v5605_v61, 16  ;;  %v13135_v57 = vadd.s32 4294967169, %v5717_v28 }
 0x541   : > { %20276 = vst [vmem:[#allocation131_spill] sm:$0xff] %v18255_v21  ;;  %v18264_v1 = vmul.f32 %v5389_v37, %v18193_v33  ;;  %v19964_v47 = vxor.u32 2147483648, %v18255_v21  ;;  %v5527_v39 = vsub.s32 4, %v18218_v63  ;;  %v5631_v29 = vand.u32 65535, %v5601_v60 }
 0x542   : > { %v13130_v36 = vadd.s32 4294967294, %v5509_v20  ;;  %v5612_v59 = vmul.u32 %v5610_v17, %v5607_v52  ;;  %v5632_v2 = vshrl.u32 %v5601_v60, 16  ;;  %v5611_v26 = vmul.u32 %v5609_v12, %v5607_v52 }
 0x543   : > { %20277 = vst [vmem:[#allocation132_spill] sm:$0xff] %v18264_v1  ;;  %v19965_v13 = vxor.u32 2147483648, %v18264_v1  ;;  %v5400_v33 = vsel %vm5398_vm5, %v19964_v47, %v18264_v1  ;;  %v5613_v20 = vmul.u32 %v5609_v12, %v5608_v25  ;;  %vm5405_vm5 = vcmp.lt.s32.totalorder %v20260_v42, 0 }
 0x544   : > { %vm13131_vm7 = vcmp.lt.s32.totalorder %v13130_v36, 0  ;;  %v5723_v12 = vadd.s32 1, %v13135_v57  ;;  %v5615_v16 = vshll.u32 %v5612_v59, 16  ;;  %v5616_v4 = vshrl.u32 %v5612_v59, 16 }
 0x545   : > { %v5397_v28 = vsel %vm5395_vm12, %v18255_v21, %v19965_v13  ;;  %v5512_v37 = vsel %vm13131_vm7, 0, %v13130_v36  ;;  %v5594_v13 = vsel %vm5590_vm6, %v5574_v58, %v18222_v49  ;;  %v5595_v36 = vsel %vm5593_vm2, %v5583_v44, 2102212464 }
 0x546   : > { %v5401_v38 = vsel %vm5394_vm1, %v5397_v28, %v5400_v33  ;;  %v5513_v23 = vsub.s32 32, %v5512_v37  ;;  %v5514_v61 = vshll.u32 %v18233_v41, %v5512_v37  ;;  %v5517_v47 = vsub.s32 4294967266, %v5512_v37 }
 0x547   : > { %v5402_v60 = vsel %vm19972_vm0, nan, %v5401_v38  ;;  %v5614_v28 = vmul.u32 %v5610_v17, %v5608_v25  ;;  %v5617_v41 = vshll.u32 %v5613_v20, 16  ;;  %v5633_v37 = vmul.u32 %v5631_v29, %v5607_v52 }
 0x548   : > { %v5515_v15 = vshrl.u32 %v18197_v27, %v5513_v23  ;;  %v5518_v33 = vadd.s32 127, %v5517_v47  ;;  %6674 = vst [vmem:[%s14173_s11 + $0xf8] sm:$0xff] %v5402_v60  ;;  %v5634_v21 = vmul.u32 %v5632_v2, %v5607_v52  ;;  %v20278_v38 = vand.u32 2147483647, %v20260_v42 }
 0x549   : > { %vm5619_vm6 = vc.u32 %v5611_v26, %v5615_v16  ;;  %v5621_v44 = vadd.s32 %v5615_v16, %v5611_v26  ;;  %v5635_v47 = vmul.u32 %v5631_v29, %v5608_v25  ;;  %v5636_v17 = vmul.u32 %v5632_v2, %v5608_v25 }
 0x54a   : > { %vm18300_vm12 = vcmp.le.f32.partialorder %v20278_v38, 0.7853982  ;;  %v5516_v49 = vor.u32 %v5515_v15, %v5514_v61  ;;  %v5519_v58 = vshll.u32 %v5518_v33, 23  ;;  %v5620_v27 = vsel %vm5619_vm6, 1, %v20073_v43 }
 0x54b   : > { %v5637_v57 = vshll.u32 %v5634_v21, 16  ;;  %v5622_v60 = vadd.s32 %v5620_v27, %v5614_v28  ;;  %vm5623_vm2 = vc.u32 %v5621_v44, %v5617_v41  ;;  %v5596_v52 = vsel %vm5592_vm4, %v18227_v19, %v5595_v36 }
 0x54c   : > { %v5520_v23 = vor.u32 4788187, %v5519_v58  ;;  %v5523_v59 = vcvt.s32.f32 %v5516_v49  ;;  %v5618_v38 = vshrl.u32 %v5613_v20, 16  ;;  %v5624_v1 = vsel %vm5623_vm2, 1, %v20073_v43 }
 0x54d   : > { %v5639_v61 = vshll.u32 %v5635_v47, 16  ;;  %v5626_v33 = vadd.s32 %v5624_v1, %v5622_v60  ;;  %vm5641_vm1 = vc.u32 %v5633_v37, %v5637_v57  ;;  %v5643_v16 = vadd.s32 %v5637_v57, %v5633_v37 }
 0x54e   : > { %v5521_v15 = vand.u32 2147483647, %v5520_v23  ;;  %v5528_v25 = vsel %vm5405_vm5, %v5527_v39, %v18218_v63  ;;  %v5638_v29 = vshrl.u32 %v5634_v21, 16  ;;  %v5642_v2 = vsel %vm5641_vm1, 1, %v20073_v43 }
 0x54f   : > { %vm5724_vm7 = vcmp.gt.s32.totalorder %v5723_v12, 0  ;;  %v5627_v28 = vadd.s32 %v5626_v33, %v5616_v4  ;;  %v5644_v41 = vadd.s32 %v5642_v2, %v5636_v17  ;;  %vm5645_vm4 = vc.u32 %v5643_v16, %v5639_v61 }
 0x550   : > { %v5524_v26 = vmul.f32 %v5523_v59, %v5521_v15  ;;  %v5597_v19 = vsel %vm5591_vm10, %v5594_v13, %v5596_v52  ;;  %v5646_v20 = vsel %vm5645_vm4, 1, %v20073_v43  ;;  %v18316_v1 = vadd.s32 %v5643_v16, %v5639_v61 }
 0x551   : > { %v5725_v36 = vsel %vm5724_vm7, %v5723_v12, 0  ;;  %v18318_v49 = vadd.s32 %v5627_v28, %v5618_v38  ;;  %v5640_v63 = vshrl.u32 %v5635_v47, 16  ;;  %v5648_v21 = vadd.s32 %v5646_v20, %v5644_v41 }
 0x552   : > { %v5525_v37 = vxor.u32 2147483648, %v5524_v26  ;;  %v18322_v39 = vsel %vm18300_vm12, 0, %v5528_v25  ;;  %v20282_v4 = vand.u32 2147483647, %v20275_v24  ;;  %v5727_v44 = vand.u32 31, %v5725_v36 }
 0x553   : > { %20281 = vst [vmem:[#allocation133_spill] sm:$0xff] %v18322_v39  ;;  %v5649_v13 = vadd.s32 %v5648_v21, %v5638_v29  ;;  %v5651_v27 = vmul.u32 %v18240_v56, %v5597_v19  ;;  %v18329_v12 = vshrl.u32 %v5725_v36, 5  ;;  %vm5653_vm10 = vc.u32 %v18318_v49, %v18316_v1 }
 0x554   : > { %v5720_v58 = vand.u32 8388607, %v20282_v4  ;;  %v5526_v32 = vsel %vm5405_vm5, %v5525_v37, %v5524_v26  ;;  %v18336_v17 = vsub.s32 32, %v5727_v44  ;;  %v5730_v57 = vshll.u32 %v20067_v3, %v5727_v44 }
 0x555   : > { %v5529_v47 = vsel %vm18300_vm12, %v20260_v42, %v5526_v32  ;;  %v5650_v59 = vadd.s32 %v5649_v13, %v5640_v63  ;;  %v5733_v60 = vshll.u32 %v20068_v51, %v5727_v44  ;;  %v5736_v52 = vshll.u32 %v20069_v54, %v5727_v44 }
 0x556   : > { %v5531_v23 = vmul.f32 %v5529_v47, %v5529_v47  ;;  %v5731_v56 = vshrl.u32 %v20068_v51, %v18336_v17  ;;  %v5734_v22 = vshrl.u32 %v20069_v54, %v18336_v17  ;;  %v5737_v38 = vshrl.u32 %v20070_v8, %v18336_v17 }
 0x557   : > { %v5739_v61 = vshll.u32 %v20070_v8, %v5727_v44  ;;  %v5654_v16 = vadd.s32 1, %v5650_v59  ;;  %v5740_v25 = vshrl.u32 %v20071_v7, %v18336_v17  ;;  %v5547_v29 = vadd.s32 3, %v18322_v39 }
 0x558   : > { %v5532_v15 = vmul.f32 -0.001358992, %v5531_v23  ;;  %v5539_v33 = vmul.f32 -0.00019511016, %v5531_v23  ;;  %v5721_v2 = vor.u32 8388608, %v5720_v58  ;;  %v18351_v26 = vor.u32 %v5731_v56, %v5730_v57 }
 0x559   : > { %v5655_v19 = vsel %vm5653_vm10, %v5654_v16, %v5650_v59  ;;  %v5742_v20 = vshll.u32 %v20071_v7, %v5727_v44  ;;  %v18357_v37 = vor.u32 %v5734_v22, %v5733_v60  ;;  %v5741_v63 = vor.u32 %v5740_v25, %v5739_v61 }
 0x55a   : > { %v5533_v28 = vadd.f32 0.041655596, %v5532_v15  ;;  %v5540_v41 = vadd.f32 0.008332121, %v5539_v33  ;;  %v5656_v36 = vadd.s32 %v5655_v19, %v5651_v27  ;;  %v5743_v21 = vshrl.u32 %v20072_v0, %v18336_v17 }
 0x55b   : > { %v18361_v58 = vor.u32 %v5737_v38, %v5736_v52  ;;  %vm5745_vm5 = vcmp.lt.s32.totalorder %v18329_v12, 1  ;;  %v5548_v13 = vand.u32 3, %v5547_v29  ;;  %vm5747_vm12 = vcmp.lt.s32.totalorder %v18329_v12, 3 }
 0x55c   : > { %v5534_v4 = vmul.f32 %v5533_v28, %v5531_v23  ;;  %v5541_v32 = vmul.f32 %v5540_v41, %v5531_v23  ;;  %v5657_v57 = vadd.s32 536870912, %v5656_v36  ;;  %vm5748_vm6 = vcmp.lt.s32.totalorder %v18329_v12, 4 }
 0x55d   : > { %v5744_v59 = vor.u32 %v5743_v21, %v5742_v20  ;;  %vm5746_vm2 = vcmp.lt.s32.totalorder %v18329_v12, 2  ;;  %v5753_v52 = vsel %vm5745_vm5, %v18351_v26, %v18357_v37  ;;  %v5754_v56 = vsel %vm5748_vm6, %v5741_v63, 920167782 }
 0x55e   : > { %v5535_v44 = vadd.f32 -0.4999988, %v5534_v4  ;;  %v5542_v27 = vadd.f32 -0.16666654, %v5541_v32  ;;  %v18367_v60 = vshrl.u32 %v5657_v57, 30  ;;  %v18375_v22 = vshll.u32 %v5721_v2, 8 }
 0x55f   : > { %vm19992_vm1 = vweird.f32 %v20260_v42  ;;  %v5755_v15 = vsel %vm5747_vm12, %v18361_v58, %v5754_v56  ;;  %vm5550_vm7 = vcmp.eq.s32.totalorder %v5548_v13, 0  ;;  %v5757_v25 = vsel %vm5745_vm5, %v18357_v37, %v18361_v58 }
 0x560   : > { %v5536_v38 = vmul.f32 %v5535_v44, %v5531_v23  ;;  %v5543_v61 = vmul.f32 %v5542_v27, %v5531_v23  ;;  %v5659_v33 = vshll.u32 %v18367_v60, 30  ;;  %v5756_v16 = vsel %vm5746_vm2, %v5753_v52, %v5755_v15 }
 0x561   : > { %vm5553_vm4 = vcmp.eq.s32.totalorder %v5548_v13, 2  ;;  %v5758_v2 = vsel %vm5748_vm6, %v5744_v59, 1326507024  ;;  %v5762_v19 = vand.u32 65535, %v18375_v22  ;;  %v5763_v20 = vshrl.u32 %v18375_v22, 16 }
 0x562   : > { %v18388_v29 = vadd.f32 1.0, %v5536_v38  ;;  %v5544_v23 = vadd.f32 1.0, %v5543_v61  ;;  %v18392_v28 = vsub.s32 %v5656_v36, %v5659_v33  ;;  %v5759_v41 = vsel %vm5747_vm12, %v5741_v63, %v5758_v2 }
 0x563   : > { %v5760_v32 = vsel %vm5746_vm2, %v5757_v25, %v5759_v41  ;;  %v5787_v57 = vshrl.u32 %v5756_v16, 16  ;;  %vm5549_vm0 = vcmp.lt.s32.totalorder %v5548_v13, 2  ;;  %v5786_v59 = vand.u32 65535, %v5756_v16 }
 0x564   : > { %20283 = vst [vmem:[#allocation134_spill] sm:$0xff] %v18388_v29  ;;  %v18398_v21 = vmul.f32 %v5544_v23, %v5529_v47  ;;  %v19974_v4 = vxor.u32 2147483648, %v18388_v29  ;;  %vm5661_vm10 = vcmp.lt.s32.totalorder %v18392_v28, 0  ;;  %v5662_v36 = vsub.s32 0, %v18392_v28  ;;  %v20285_v23 = vld [vmem:[#allocation48_spill] sm:$0xff] }
 0x565   : > { %v5764_v44 = vand.u32 65535, %v5760_v32  ;;  %v5765_v27 = vshrl.u32 %v5760_v32, 16  ;;  %v5789_v25 = vmul.u32 %v5787_v57, %v5762_v19  ;;  %v5871_v2 = vand.u32 2139095040, %v20285_v23 }
 0x566   : > { %20284 = vst [vmem:[#allocation135_spill] sm:$0xff] %v18398_v21  ;;  %v19976_v63 = vxor.u32 2147483648, %v18398_v21  ;;  %v5555_v47 = vsel %vm5553_vm4, %v19974_v4, %v18398_v21  ;;  %v5663_v52 = vsel %vm5661_vm10, %v5662_v36, %v18392_v28  ;;  %v5729_v13 = vshrl.u32 %v20067_v3, %v18336_v17 }
 0x567   : > { %v5766_v56 = vmul.u32 %v5764_v44, %v5762_v19  ;;  %v5767_v38 = vmul.u32 %v5765_v27, %v5762_v19  ;;  %v5768_v61 = vmul.u32 %v5764_v44, %v5763_v20  ;;  %v5664_v33 = vclz %v5663_v52 }
 0x568   : > { %v5552_v15 = vsel %vm5550_vm7, %v18388_v29, %v19976_v63  ;;  %v5769_v32 = vmul.u32 %v5765_v27, %v5763_v20  ;;  %v5652_v44 = vadd.s32 %v18316_v1, %v18318_v49  ;;  %v5682_v63 = vsub.s32 4, %v18367_v60 }
 0x569   : > { %v5556_v41 = vsel %vm5549_vm0, %v5552_v15, %v5555_v47  ;;  %v5770_v16 = vshll.u32 %v5767_v38, 16  ;;  %v5772_v4 = vshll.u32 %v5768_v61, 16  ;;  %v13133_v39 = vadd.s32 4294967294, %v5664_v33 }
 0x56a   : > { %v5557_v36 = vsel %vm19992_vm1, nan, %v5556_v41  ;;  %v5788_v29 = vmul.u32 %v5786_v59, %v5762_v19  ;;  %v20286_v27 = vand.u32 2147483647, %v20270_v34  ;;  %v5771_v15 = vshrl.u32 %v5767_v38, 16 }
 0x56b   : > { %vm5774_vm7 = vc.u32 %v5766_v56, %v5770_v16  ;;  %v5776_v52 = vadd.s32 %v5770_v16, %v5766_v56  ;;  %6675 = vst [vmem:[%s14173_s11 + $0x100] sm:$0xff] %v5557_v36  ;;  %vm13134_vm4 = vcmp.lt.s32.totalorder %v13133_v39, 0  ;;  %v5790_v49 = vmul.u32 %v5786_v59, %v5763_v20 }
 0x56c   : > { %vm18427_vm0 = vcmp.le.f32.partialorder %v20286_v27, 0.7853982  ;;  %v5775_v1 = vsel %vm5774_vm7, 1, %v20073_v43  ;;  %v5667_v33 = vsel %vm13134_vm4, 0, %v13133_v39  ;;  %v5792_v17 = vshll.u32 %v5789_v25, 16 }
 0x56d   : > { %v5777_v41 = vadd.s32 %v5775_v1, %v5769_v32  ;;  %vm5778_vm10 = vc.u32 %v5776_v52, %v5772_v4  ;;  %v5668_v42 = vsub.s32 32, %v5667_v33  ;;  %v5669_v56 = vshll.u32 %v18392_v28, %v5667_v33 }
 0x56e   : > { %v5672_v19 = vsub.s32 4294967266, %v5667_v33  ;;  %v5779_v16 = vsel %vm5778_vm10, 1, %v20073_v43  ;;  %v5749_v36 = vsel %vm5745_vm5, %v5729_v13, %v18351_v26  ;;  %v5750_v38 = vsel %vm5748_vm6, %v18361_v58, 2102212464 }
 0x56f   : > { %v5781_v27 = vadd.s32 %v5779_v16, %v5777_v41  ;;  %v5791_v59 = vmul.u32 %v5787_v57, %v5763_v20  ;;  %v5670_v39 = vshrl.u32 %v5652_v44, %v5668_v42  ;;  %v5683_v4 = vsel %vm5560_vm9, %v5682_v63, %v18367_v60 }
 0x570   : > { %v5673_v32 = vadd.s32 127, %v5672_v19  ;;  %v5794_v28 = vshll.u32 %v5790_v49, 16  ;;  %v5773_v52 = vshrl.u32 %v5768_v61, 16  ;;  %vm5796_vm7 = vc.u32 %v5788_v29, %v5792_v17 }
 0x571   : > { %v5782_v1 = vadd.s32 %v5781_v27, %v5771_v15  ;;  %v5798_v33 = vadd.s32 %v5792_v17, %v5788_v29  ;;  %v5671_v21 = vor.u32 %v5670_v39, %v5669_v56  ;;  %v5797_v26 = vsel %vm5796_vm7, 1, %v20073_v43 }
 0x572   : > { %v5674_v46 = vshll.u32 %v5673_v32, 23  ;;  %v5872_v13 = vshrl.u32 %v5871_v2, 23  ;;  %v5751_v58 = vsel %vm5747_vm12, %v18357_v37, %v5750_v38  ;;  %v5793_v42 = vshrl.u32 %v5789_v25, 16 }
 0x573   : > { %v5799_v20 = vadd.s32 %v5797_v26, %v5791_v59  ;;  %vm5800_vm5 = vc.u32 %v5798_v33, %v5794_v28  ;;  %v5678_v44 = vcvt.s32.f32 %v5671_v21  ;;  %v18450_v29 = vsel %vm18427_vm0, 0, %v5683_v4 }
 0x574   : > { %v5675_v57 = vor.u32 4788187, %v5674_v46  ;;  %v5801_v60 = vsel %vm5800_vm5, 1, %v20073_v43  ;;  %v13138_v63 = vadd.s32 4294967169, %v5872_v13  ;;  %20289 = vst [vmem:[#allocation136_spill] sm:$0xff] %v18450_v29  ;;  %v5795_v61 = vshrl.u32 %v5790_v49, 16 }
 0x575   : > { %v5803_v15 = vadd.s32 %v5801_v60, %v5799_v20  ;;  %v5783_v2 = vadd.s32 %v5782_v1, %v5773_v52  ;;  %v5802_v17 = vadd.s32 %v5798_v33, %v5794_v28  ;;  %v5752_v37 = vsel %vm5746_vm2, %v5749_v36, %v5751_v58 }
 0x576   : > { %v5676_v41 = vand.u32 2147483647, %v5675_v57  ;;  %v5878_v56 = vadd.s32 1, %v13138_v63  ;;  %v5702_v46 = vadd.s32 3, %v18450_v29  ;;  %v19985_v16 = vand.u32 2147483647, %v20285_v23 }
 0x577   : > { %v5804_v25 = vadd.s32 %v5803_v15, %v5793_v42  ;;  %v5806_v49 = vmul.u32 %v18375_v22, %v5752_v37  ;;  %vm5808_vm6 = vc.u32 %v5783_v2, %v5802_v17  ;;  %v18468_v28 = vadd.s32 %v5802_v17, %v5783_v2  ;;  %v20290_v37 = vld [vmem:[#allocation49_spill] sm:$0xff] }
 0x578   : > { %v5679_v19 = vmul.f32 %v5678_v44, %v5676_v41  ;;  %vm5879_vm12 = vcmp.gt.s32.totalorder %v5878_v56, 0  ;;  %v18466_v4 = vand.u32 3, %v5702_v46  ;;  %v5875_v33 = vand.u32 8388607, %v19985_v16 }
 0x579   : > { %v5805_v21 = vadd.s32 %v5804_v25, %v5795_v61  ;;  %v5880_v38 = vsel %vm5879_vm12, %v5878_v56, 0  ;;  %v6026_v25 = vand.u32 2139095040, %v20290_v37  ;;  %vm19991_vm5 = vweird.f32 %v20270_v34 }
 0x57a   : > { %v5680_v27 = vxor.u32 2147483648, %v5679_v19  ;;  %v5882_v59 = vand.u32 31, %v5880_v38  ;;  %v18483_v63 = vshrl.u32 %v5880_v38, 5  ;;  %vm5705_vm2 = vcmp.eq.s32.totalorder %v18466_v4, 0 }
 0x57b   : > { %v5809_v39 = vadd.s32 1, %v5805_v21  ;;  %vm5704_vm10 = vcmp.lt.s32.totalorder %v18466_v4, 2  ;;  %vm5870_vm1 = vcmp.lt.s32.totalorder %v20285_v23, 0 }
 0x57c   : > { %v5681_v32 = vsel %vm5560_vm9, %v5680_v27, %v5679_v19  ;;  %v18459_v12 = vsub.s32 32, %v5882_v59  ;;  %v5885_v26 = vshll.u32 %v20067_v3, %v5882_v59  ;;  %v5888_v47 = vshll.u32 %v20068_v51, %v5882_v59 }
 0x57d   : > { %v18464_v36 = vsel %vm18427_vm0, %v20270_v34, %v5681_v32  ;;  %v5810_v52 = vsel %vm5808_vm6, %v5809_v39, %v5805_v21  ;;  %v5894_v42 = vshll.u32 %v20070_v8, %v5882_v59  ;;  %v5891_v61 = vshll.u32 %v20069_v54, %v5882_v59 }
 0x57e   : > { %v5686_v22 = vmul.f32 %v18464_v36, %v18464_v36  ;;  %v5811_v1 = vadd.s32 %v5810_v52, %v5806_v49  ;;  %v5886_v13 = vshrl.u32 %v20068_v51, %v18459_v12  ;;  %v5889_v58 = vshrl.u32 %v20069_v54, %v18459_v12 }
 0x57f   : > { %v5895_v60 = vshrl.u32 %v20071_v7, %v18459_v12  ;;  %v5892_v15 = vshrl.u32 %v20070_v8, %v18459_v12  ;;  %v5897_v41 = vshll.u32 %v20071_v7, %v5882_v59  ;;  %vm5708_vm9 = vcmp.eq.s32.totalorder %v18466_v4, 2 }
 0x580   : > { %v5687_v20 = vmul.f32 -0.001358992, %v5686_v22  ;;  %v5694_v57 = vmul.f32 -0.00019511016, %v5686_v22  ;;  %v5812_v44 = vadd.s32 536870912, %v5811_v1  ;;  %v5876_v19 = vor.u32 8388608, %v5875_v33 }
 0x581   : > { %v18493_v46 = vor.u32 %v5886_v13, %v5885_v26  ;;  %v5896_v21 = vor.u32 %v5895_v60, %v5894_v42  ;;  %v5898_v38 = vshrl.u32 %v20072_v0, %v18459_v12  ;;  %v18498_v59 = vor.u32 %v5889_v58, %v5888_v47 }
 0x582   : > { %v5688_v2 = vadd.f32 0.041655596, %v5687_v20  ;;  %v5695_v17 = vadd.f32 0.008332121, %v5694_v57  ;;  %v18489_v56 = vshrl.u32 %v5812_v44, 30  ;;  %v5893_v32 = vor.u32 %v5892_v15, %v5891_v61 }
 0x583   : > { %v5899_v52 = vor.u32 %v5898_v38, %v5897_v41  ;;  %vm5900_vm0 = vcmp.lt.s32.totalorder %v18483_v63, 1  ;;  %vm5903_vm4 = vcmp.lt.s32.totalorder %v18483_v63, 4  ;;  %vm5902_vm7 = vcmp.lt.s32.totalorder %v18483_v63, 3 }
 0x584   : > { %v5689_v27 = vmul.f32 %v5688_v2, %v5686_v22  ;;  %v5696_v49 = vmul.f32 %v5695_v17, %v5686_v22  ;;  %v5814_v39 = vshll.u32 %v18489_v56, 30  ;;  %vm5901_vm12 = vcmp.lt.s32.totalorder %v18483_v63, 2 }
 0x585   : > { %v5909_v47 = vsel %vm5903_vm4, %v5896_v21, 920167782  ;;  %v18511_v58 = vshll.u32 %v5876_v19, 8  ;;  %v6027_v42 = vshrl.u32 %v6026_v25, 23  ;;  %v5912_v61 = vsel %vm5900_vm0, %v18498_v59, %v5893_v32 }
 0x586   : > { %v5690_v33 = vadd.f32 -0.4999988, %v5689_v27  ;;  %v5697_v26 = vadd.f32 -0.16666654, %v5696_v49  ;;  %v18504_v13 = vsub.s32 %v5811_v1, %v5814_v39  ;;  %v5908_v1 = vsel %vm5900_vm0, %v18493_v46, %v18498_v59 }
 0x587   : > { %v5910_v60 = vsel %vm5902_vm7, %v5893_v32, %v5909_v47  ;;  %v5913_v15 = vsel %vm5903_vm4, %v5899_v52, 1326507024  ;;  %v5917_v38 = vand.u32 65535, %v18511_v58  ;;  %v5918_v27 = vshrl.u32 %v18511_v58, 16 }
 0x588   : > { %v5691_v20 = vmul.f32 %v5690_v33, %v5686_v22  ;;  %v5698_v57 = vmul.f32 %v5697_v26, %v5686_v22  ;;  %vm5816_vm6 = vcmp.lt.s32.totalorder %v18504_v13, 0  ;;  %v5817_v44 = vsub.s32 0, %v18504_v13 }
 0x589   : > { %v5914_v19 = vsel %vm5902_vm7, %v5896_v21, %v5913_v15  ;;  %v5911_v52 = vsel %vm5901_vm12, %v5908_v1, %v5910_v60  ;;  %v5884_v1 = vshrl.u32 %v20067_v3, %v18459_v12 }
 0x58a   : > { %v18526_v22 = vadd.f32 1.0, %v5691_v20  ;;  %v5699_v41 = vadd.f32 1.0, %v5698_v57  ;;  %v5818_v2 = vsel %vm5816_vm6, %v5817_v44, %v18504_v13  ;;  %v5915_v33 = vsel %vm5901_vm12, %v5912_v61, %v5914_v19 }
 0x58b   : > { %v5819_v25 = vclz %v5818_v2  ;;  %v5919_v47 = vand.u32 65535, %v5915_v33  ;;  %v5920_v20 = vshrl.u32 %v5915_v33, 16  ;;  %v13141_v57 = vadd.s32 4294967169, %v6027_v42 }
 0x58c   : > { %20291 = vst [vmem:[#allocation137_spill] sm:$0xff] %v18526_v22  ;;  %v18535_v49 = vmul.f32 %v5699_v41, %v18464_v36  ;;  %v19983_v39 = vxor.u32 2147483648, %v18526_v22  ;;  %v5837_v44 = vsub.s32 4, %v18489_v56  ;;  %v5941_v61 = vand.u32 65535, %v5911_v52 }
 0x58d   : > { %v13136_v26 = vadd.s32 4294967294, %v5819_v25  ;;  %v5922_v60 = vmul.u32 %v5920_v20, %v5917_v38  ;;  %v5942_v15 = vshrl.u32 %v5911_v52, 16  ;;  %v5921_v2 = vmul.u32 %v5919_v47, %v5917_v38 }
 0x58e   : > { %20292 = vst [vmem:[#allocation138_spill] sm:$0xff] %v18535_v49  ;;  %v19984_v21 = vxor.u32 2147483648, %v18535_v49  ;;  %v5710_v36 = vsel %vm5708_vm9, %v19983_v39, %v18535_v49  ;;  %v5923_v25 = vmul.u32 %v5919_v47, %v5918_v27  ;;  %vm5715_vm9 = vcmp.lt.s32.totalorder %v20275_v24, 0 }
 0x58f   : > { %vm13137_vm6 = vcmp.lt.s32.totalorder %v13136_v26, 0  ;;  %v6033_v47 = vadd.s32 1, %v13141_v57  ;;  %v5925_v16 = vshll.u32 %v5922_v60, 16  ;;  %v5926_v17 = vshrl.u32 %v5922_v60, 16 }
 0x590   : > { %v5707_v42 = vsel %vm5705_vm2, %v18526_v22, %v19984_v21  ;;  %v5822_v41 = vsel %vm13137_vm6, 0, %v13136_v26  ;;  %v5904_v21 = vsel %vm5900_vm0, %v5884_v1, %v18493_v46  ;;  %v5905_v26 = vsel %vm5903_vm4, %v5893_v32, 2102212464 }
 0x591   : > { %v5711_v19 = vsel %vm5704_vm10, %v5707_v42, %v5710_v36  ;;  %v5823_v12 = vsub.s32 32, %v5822_v41  ;;  %v5824_v33 = vshll.u32 %v18504_v13, %v5822_v41  ;;  %v5827_v39 = vsub.s32 4294967266, %v5822_v41 }
 0x592   : > { %v5712_v52 = vsel %vm19991_vm5, nan, %v5711_v19  ;;  %v5924_v42 = vmul.u32 %v5920_v20, %v5918_v27  ;;  %v5927_v13 = vshll.u32 %v5923_v25, 16  ;;  %v5943_v41 = vmul.u32 %v5941_v61, %v5917_v38 }
 0x593   : > { %v5825_v4 = vshrl.u32 %v18468_v28, %v5823_v12  ;;  %v5828_v36 = vadd.s32 127, %v5827_v39  ;;  %6676 = vst [vmem:[%s14173_s11 + $0x108] sm:$0xff] %v5712_v52  ;;  %v5944_v22 = vmul.u32 %v5942_v15, %v5917_v38  ;;  %v20293_v19 = vand.u32 2147483647, %v20275_v24 }
 0x594   : > { %vm5929_vm0 = vc.u32 %v5921_v2, %v5925_v16  ;;  %v5931_v32 = vadd.s32 %v5925_v16, %v5921_v2  ;;  %v5945_v39 = vmul.u32 %v5941_v61, %v5918_v27  ;;  %v5946_v20 = vmul.u32 %v5942_v15, %v5918_v27 }
 0x595   : > { %vm18571_vm2 = vcmp.le.f32.partialorder %v20293_v19, 0.7853982  ;;  %v5826_v46 = vor.u32 %v5825_v4, %v5824_v33  ;;  %v5829_v1 = vshll.u32 %v5828_v36, 23  ;;  %v5930_v28 = vsel %vm5929_vm0, 1, %v20073_v43 }
 0x596   : > { %v5947_v57 = vshll.u32 %v5944_v22, 16  ;;  %v5932_v52 = vadd.s32 %v5930_v28, %v5924_v42  ;;  %vm5933_vm4 = vc.u32 %v5931_v32, %v5927_v13  ;;  %v5906_v38 = vsel %vm5902_vm7, %v18498_v59, %v5905_v26 }
 0x597   : > { %v5830_v12 = vor.u32 4788187, %v5829_v1  ;;  %v5833_v60 = vcvt.s32.f32 %v5826_v46  ;;  %v5928_v19 = vshrl.u32 %v5923_v25, 16  ;;  %v5934_v49 = vsel %vm5933_vm4, 1, %v20073_v43 }
 0x598   : > { %v5949_v33 = vshll.u32 %v5945_v39, 16  ;;  %v5936_v36 = vadd.s32 %v5934_v49, %v5932_v52  ;;  %vm5951_vm10 = vc.u32 %v5943_v41, %v5947_v57  ;;  %v5953_v16 = vadd.s32 %v5947_v57, %v5943_v41 }
 0x599   : > { %v5831_v4 = vand.u32 2147483647, %v5830_v12  ;;  %v5838_v27 = vsel %vm5715_vm9, %v5837_v44, %v18489_v56  ;;  %v5948_v61 = vshrl.u32 %v5944_v22, 16  ;;  %v5952_v15 = vsel %vm5951_vm10, 1, %v20073_v43 }
 0x59a   : > { %vm6034_vm6 = vcmp.gt.s32.totalorder %v6033_v47, 0  ;;  %v5937_v42 = vadd.s32 %v5936_v36, %v5926_v17  ;;  %v5954_v13 = vadd.s32 %v5952_v15, %v5946_v20  ;;  %vm5955_vm7 = vc.u32 %v5953_v16, %v5949_v33 }
 0x59b   : > { %v5834_v2 = vmul.f32 %v5833_v60, %v5831_v4  ;;  %v5907_v59 = vsel %vm5901_vm12, %v5904_v21, %v5906_v38  ;;  %v5956_v25 = vsel %vm5955_vm7, 1, %v20073_v43  ;;  %v18587_v49 = vadd.s32 %v5953_v16, %v5949_v33 }
 0x59c   : > { %v6035_v26 = vsel %vm6034_vm6, %v6033_v47, 0  ;;  %v18589_v46 = vadd.s32 %v5937_v42, %v5928_v19  ;;  %v5950_v56 = vshrl.u32 %v5945_v39, 16  ;;  %v5958_v22 = vadd.s32 %v5956_v25, %v5954_v13 }
 0x59d   : > { %v5835_v41 = vxor.u32 2147483648, %v5834_v2  ;;  %v18593_v44 = vsel %vm18571_vm2, 0, %v5838_v27  ;;  %v20297_v17 = vand.u32 2147483647, %v20290_v37  ;;  %v6037_v32 = vand.u32 31, %v6035_v26 }
 0x59e   : > { %20296 = vst [vmem:[#allocation139_spill] sm:$0xff] %v18593_v44  ;;  %v5959_v21 = vadd.s32 %v5958_v22, %v5948_v61  ;;  %v5961_v28 = vmul.u32 %v18511_v58, %v5907_v59  ;;  %v18600_v47 = vshrl.u32 %v6035_v26, 5  ;;  %vm5963_vm12 = vc.u32 %v18589_v46, %v18587_v49 }
 0x59f   : > { %v6030_v1 = vand.u32 8388607, %v20297_v17  ;;  %v5836_v63 = vsel %vm5715_vm9, %v5835_v41, %v5834_v2  ;;  %v18607_v20 = vsub.s32 32, %v6037_v32  ;;  %v6040_v57 = vshll.u32 %v20067_v3, %v6037_v32 }
 0x5a0   : > { %v5839_v39 = vsel %vm18571_vm2, %v20275_v24, %v5836_v63  ;;  %v5960_v60 = vadd.s32 %v5959_v21, %v5950_v56  ;;  %v6043_v52 = vshll.u32 %v20068_v51, %v6037_v32  ;;  %v6046_v38 = vshll.u32 %v20069_v54, %v6037_v32 }
 0x5a1   : > { %v5841_v12 = vmul.f32 %v5839_v39, %v5839_v39  ;;  %v6041_v58 = vshrl.u32 %v20068_v51, %v18607_v20  ;;  %v6044_v34 = vshrl.u32 %v20069_v54, %v18607_v20  ;;  %v6047_v19 = vshrl.u32 %v20070_v8, %v18607_v20 }
 0x5a2   : > { %v6049_v33 = vshll.u32 %v20070_v8, %v6037_v32  ;;  %v5964_v16 = vadd.s32 1, %v5960_v60  ;;  %v6050_v27 = vshrl.u32 %v20071_v7, %v18607_v20  ;;  %v5857_v61 = vadd.s32 3, %v18593_v44 }
 0x5a3   : > { %v5842_v4 = vmul.f32 -0.001358992, %v5841_v12  ;;  %v5849_v36 = vmul.f32 -0.00019511016, %v5841_v12  ;;  %v6031_v15 = vor.u32 8388608, %v6030_v1  ;;  %v18622_v2 = vor.u32 %v6041_v58, %v6040_v57 }
 0x5a4   : > { %v5965_v59 = vsel %vm5963_vm12, %v5964_v16, %v5960_v60  ;;  %v6052_v25 = vshll.u32 %v20071_v7, %v6037_v32  ;;  %v18628_v41 = vor.u32 %v6044_v34, %v6043_v52  ;;  %v6051_v56 = vor.u32 %v6050_v27, %v6049_v33 }
 0x5a5   : > { %v5843_v42 = vadd.f32 0.041655596, %v5842_v4  ;;  %v5850_v13 = vadd.f32 0.008332121, %v5849_v36  ;;  %v5966_v26 = vadd.s32 %v5965_v59, %v5961_v28  ;;  %v6053_v22 = vshrl.u32 %v20072_v0, %v18607_v20 }
 0x5a6   : > { %v18632_v1 = vor.u32 %v6047_v19, %v6046_v38  ;;  %vm6055_vm9 = vcmp.lt.s32.totalorder %v18600_v47, 1  ;;  %v5858_v21 = vand.u32 3, %v5857_v61  ;;  %vm6057_vm2 = vcmp.lt.s32.totalorder %v18600_v47, 3 }
 0x5a7   : > { %v5844_v17 = vmul.f32 %v5843_v42, %v5841_v12  ;;  %v5851_v63 = vmul.f32 %v5850_v13, %v5841_v12  ;;  %v5967_v57 = vadd.s32 536870912, %v5966_v26  ;;  %vm6058_vm0 = vcmp.lt.s32.totalorder %v18600_v47, 4 }
 0x5a8   : > { %v6054_v60 = vor.u32 %v6053_v22, %v6052_v25  ;;  %vm6056_vm4 = vcmp.lt.s32.totalorder %v18600_v47, 2  ;;  %v6063_v38 = vsel %vm6055_vm9, %v18622_v2, %v18628_v41  ;;  %v6064_v58 = vsel %vm6058_vm0, %v6051_v56, 920167782 }
 0x5a9   : > { %v5845_v32 = vadd.f32 -0.4999988, %v5844_v17  ;;  %v5852_v28 = vadd.f32 -0.16666654, %v5851_v63  ;;  %v18638_v52 = vshrl.u32 %v5967_v57, 30  ;;  %v18646_v34 = vshll.u32 %v6031_v15, 8 }
 0x5aa   : > { %vm5856_vm10 = vweird.f32 %v20275_v24  ;;  %v6065_v4 = vsel %vm6057_vm2, %v18632_v1, %v6064_v58  ;;  %vm5860_vm6 = vcmp.eq.s32.totalorder %v5858_v21, 0  ;;  %v6067_v27 = vsel %vm6055_vm9, %v18628_v41, %v18632_v1 }
 0x5ab   : > { %v5846_v19 = vmul.f32 %v5845_v32, %v5841_v12  ;;  %v5853_v33 = vmul.f32 %v5852_v28, %v5841_v12  ;;  %v5969_v36 = vshll.u32 %v18638_v52, 30  ;;  %v6066_v16 = vsel %vm6056_vm4, %v6063_v38, %v6065_v4 }
 0x5ac   : > { %vm5863_vm7 = vcmp.eq.s32.totalorder %v5858_v21, 2  ;;  %v6068_v15 = vsel %vm6058_vm0, %v6054_v60, 1326507024  ;;  %v6072_v59 = vand.u32 65535, %v18646_v34  ;;  %v6073_v25 = vshrl.u32 %v18646_v34, 16 }
 0x5ad   : > { %v18659_v61 = vadd.f32 1.0, %v5846_v19  ;;  %v5854_v12 = vadd.f32 1.0, %v5853_v33  ;;  %v18663_v42 = vsub.s32 %v5966_v26, %v5969_v36  ;;  %v6069_v13 = vsel %vm6057_vm2, %v6051_v56, %v6068_v15 }
 0x5ae   : > { %v6070_v63 = vsel %vm6056_vm4, %v6067_v27, %v6069_v13  ;;  %v6097_v57 = vshrl.u32 %v6066_v16, 16  ;;  %vm5859_vm5 = vcmp.lt.s32.totalorder %v5858_v21, 2  ;;  %v6096_v60 = vand.u32 65535, %v6066_v16 }
 0x5af   : > { %20298 = vst [vmem:[#allocation140_spill] sm:$0xff] %v18659_v61  ;;  %v18669_v22 = vmul.f32 %v5854_v12, %v5839_v39  ;;  %v19993_v17 = vxor.u32 2147483648, %v18659_v61  ;;  %vm5971_vm12 = vcmp.lt.s32.totalorder %v18663_v42, 0  ;;  %v5972_v26 = vsub.s32 0, %v18663_v42  ;;  %v20300_v12 = vld [vmem:[#allocation50_spill] sm:$0xff] }
 0x5b0   : > { %v6074_v32 = vand.u32 65535, %v6070_v63  ;;  %v6075_v28 = vshrl.u32 %v6070_v63, 16  ;;  %v6099_v27 = vmul.u32 %v6097_v57, %v6072_v59  ;;  %v6181_v15 = vand.u32 2139095040, %v20300_v12 }
 0x5b1   : > { %20299 = vst [vmem:[#allocation141_spill] sm:$0xff] %v18669_v22  ;;  %v19995_v56 = vxor.u32 2147483648, %v18669_v22  ;;  %v5865_v39 = vsel %vm5863_vm7, %v19993_v17, %v18669_v22  ;;  %v5973_v38 = vsel %vm5971_vm12, %v5972_v26, %v18663_v42  ;;  %v6039_v21 = vshrl.u32 %v20067_v3, %v18607_v20 }
 0x5b2   : > { %v6076_v58 = vmul.u32 %v6074_v32, %v6072_v59  ;;  %v6077_v19 = vmul.u32 %v6075_v28, %v6072_v59  ;;  %v6078_v33 = vmul.u32 %v6074_v32, %v6073_v25  ;;  %v5974_v36 = vclz %v5973_v38 }
 0x5b3   : > { %v5862_v4 = vsel %vm5860_vm6, %v18659_v61, %v19995_v56  ;;  %v6079_v63 = vmul.u32 %v6075_v28, %v6073_v25  ;;  %v5962_v32 = vadd.s32 %v18587_v49, %v18589_v46  ;;  %v5992_v56 = vsub.s32 4, %v18638_v52 }
 0x5b4   : > { %v5866_v13 = vsel %vm5859_vm5, %v5862_v4, %v5865_v39  ;;  %v6080_v16 = vshll.u32 %v6077_v19, 16  ;;  %v6082_v17 = vshll.u32 %v6078_v33, 16  ;;  %v13139_v44 = vadd.s32 4294967294, %v5974_v36 }
 0x5b5   : > { %v5867_v26 = vsel %vm5856_vm10, nan, %v5866_v13  ;;  %v6098_v61 = vmul.u32 %v6096_v60, %v6072_v59  ;;  %v20301_v28 = vand.u32 2147483647, %v20285_v23  ;;  %v6081_v4 = vshrl.u32 %v6077_v19, 16 }
 0x5b6   : > { %vm6084_vm6 = vc.u32 %v6076_v58, %v6080_v16  ;;  %v6086_v38 = vadd.s32 %v6080_v16, %v6076_v58  ;;  %6677 = vst [vmem:[%s14173_s11 + $0x110] sm:$0xff] %v5867_v26  ;;  %vm13140_vm7 = vcmp.lt.s32.totalorder %v13139_v44, 0  ;;  %v6100_v46 = vmul.u32 %v6096_v60, %v6073_v25 }
 0x5b7   : > { %vm18698_vm5 = vcmp.le.f32.partialorder %v20301_v28, 0.7853982  ;;  %v6085_v49 = vsel %vm6084_vm6, 1, %v20073_v43  ;;  %v5977_v36 = vsel %vm13140_vm7, 0, %v13139_v44  ;;  %v6102_v20 = vshll.u32 %v6099_v27, 16 }
 0x5b8   : > { %v6087_v13 = vadd.s32 %v6085_v49, %v6079_v63  ;;  %vm6088_vm12 = vc.u32 %v6086_v38, %v6082_v17  ;;  %v5978_v24 = vsub.s32 32, %v5977_v36  ;;  %v5979_v58 = vshll.u32 %v18663_v42, %v5977_v36 }
 0x5b9   : > { %v5982_v59 = vsub.s32 4294967266, %v5977_v36  ;;  %v6089_v16 = vsel %vm6088_vm12, 1, %v20073_v43  ;;  %v6059_v26 = vsel %vm6055_vm9, %v6039_v21, %v18622_v2  ;;  %v6060_v19 = vsel %vm6058_vm0, %v18632_v1, 2102212464 }
 0x5ba   : > { %v6091_v28 = vadd.s32 %v6089_v16, %v6087_v13  ;;  %v6101_v60 = vmul.u32 %v6097_v57, %v6073_v25  ;;  %v5980_v44 = vshrl.u32 %v5962_v32, %v5978_v24  ;;  %v5993_v17 = vsel %vm5870_vm1, %v5992_v56, %v18638_v52 }
 0x5bb   : > { %v5983_v63 = vadd.s32 127, %v5982_v59  ;;  %v6104_v42 = vshll.u32 %v6100_v46, 16  ;;  %v6083_v38 = vshrl.u32 %v6078_v33, 16  ;;  %vm6106_vm6 = vc.u32 %v6098_v61, %v6102_v20 }
 0x5bc   : > { %v6092_v49 = vadd.s32 %v6091_v28, %v6081_v4  ;;  %v6108_v36 = vadd.s32 %v6102_v20, %v6098_v61  ;;  %v5981_v22 = vor.u32 %v5980_v44, %v5979_v58  ;;  %v6107_v2 = vsel %vm6106_vm6, 1, %v20073_v43 }
 0x5bd   : > { %v5984_v29 = vshll.u32 %v5983_v63, 23  ;;  %v6182_v21 = vshrl.u32 %v6181_v15, 23  ;;  %v6061_v1 = vsel %vm6057_vm2, %v18628_v41, %v6060_v19  ;;  %v6103_v24 = vshrl.u32 %v6099_v27, 16 }
 0x5be   : > { %v6109_v25 = vadd.s32 %v6107_v2, %v6101_v60  ;;  %vm6110_vm9 = vc.u32 %v6108_v36, %v6104_v42  ;;  %v5988_v32 = vcvt.s32.f32 %v5981_v22  ;;  %v18721_v61 = vsel %vm18698_vm5, 0, %v5993_v17 }
 0x5bf   : > { %v5985_v57 = vor.u32 4788187, %v5984_v29  ;;  %v6111_v52 = vsel %vm6110_vm9, 1, %v20073_v43  ;;  %v13144_v56 = vadd.s32 4294967169, %v6182_v21  ;;  %v6105_v33 = vshrl.u32 %v6100_v46, 16 }
 0x5c0   : > { %v6113_v4 = vadd.s32 %v6111_v52, %v6109_v25  ;;  %v6093_v15 = vadd.s32 %v6092_v49, %v6083_v38  ;;  %v6112_v20 = vadd.s32 %v6108_v36, %v6104_v42  ;;  %v6062_v41 = vsel %vm6056_vm4, %v6059_v26, %v6061_v1 }
 0x5c1   : > { %v5986_v13 = vand.u32 2147483647, %v5985_v57  ;;  %v6188_v58 = vadd.s32 1, %v13144_v56  ;;  %v6012_v29 = vadd.s32 3, %v18721_v61  ;;  %v20004_v16 = vand.u32 2147483647, %v20300_v12 }
 0x5c2   : > { %v6114_v27 = vadd.s32 %v6113_v4, %v6103_v24  ;;  %v6116_v46 = vmul.u32 %v18646_v34, %v6062_v41  ;;  %vm6118_vm0 = vc.u32 %v6093_v15, %v6112_v20  ;;  %v18739_v42 = vadd.s32 %v6112_v20, %v6093_v15  ;;  %v20304_v41 = vld [vmem:[#allocation51_spill] sm:$0xff] }
 0x5c3   : > { %v5989_v59 = vmul.f32 %v5988_v32, %v5986_v13  ;;  %vm6189_vm2 = vcmp.gt.s32.totalorder %v6188_v58, 0  ;;  %v18737_v17 = vand.u32 3, %v6012_v29  ;;  %v6185_v36 = vand.u32 8388607, %v20004_v16 }
 0x5c4   : > { %v6115_v22 = vadd.s32 %v6114_v27, %v6105_v33  ;;  %v6190_v19 = vsel %vm6189_vm2, %v6188_v58, 0  ;;  %v6336_v27 = vand.u32 2139095040, %v20304_v41  ;;  %vm20010_vm9 = vweird.f32 %v20285_v23 }
 0x5c5   : > { %v5990_v28 = vxor.u32 2147483648, %v5989_v59  ;;  %v6192_v60 = vand.u32 31, %v6190_v19  ;;  %v18754_v56 = vshrl.u32 %v6190_v19, 5  ;;  %vm6015_vm4 = vcmp.eq.s32.totalorder %v18737_v17, 0 }
 0x5c6   : > { %v6119_v44 = vadd.s32 1, %v6115_v22  ;;  %vm6014_vm12 = vcmp.lt.s32.totalorder %v18737_v17, 2 }
 0x5c7   : > { %v5991_v63 = vsel %vm5870_vm1, %v5990_v28, %v5989_v59  ;;  %v18730_v47 = vsub.s32 32, %v6192_v60  ;;  %v6195_v2 = vshll.u32 %v20067_v3, %v6192_v60  ;;  %v6198_v39 = vshll.u32 %v20068_v51, %v6192_v60 }
 0x5c8   : > { %v18735_v26 = vsel %vm18698_vm5, %v20285_v23, %v5991_v63  ;;  %v6120_v38 = vsel %vm6118_vm0, %v6119_v44, %v6115_v22  ;;  %v6204_v24 = vshll.u32 %v20070_v8, %v6192_v60  ;;  %v6201_v33 = vshll.u32 %v20069_v54, %v6192_v60 }
 0x5c9   : > { %v5996_v34 = vmul.f32 %v18735_v26, %v18735_v26  ;;  %v6121_v49 = vadd.s32 %v6120_v38, %v6116_v46  ;;  %v6196_v21 = vshrl.u32 %v20068_v51, %v18730_v47  ;;  %v6199_v1 = vshrl.u32 %v20069_v54, %v18730_v47 }
 0x5ca   : > { %v6205_v52 = vshrl.u32 %v20071_v7, %v18730_v47  ;;  %v6202_v4 = vshrl.u32 %v20070_v8, %v18730_v47  ;;  %v6207_v13 = vshll.u32 %v20071_v7, %v6192_v60  ;;  %vm6018_vm1 = vcmp.eq.s32.totalorder %v18737_v17, 2 }
 0x5cb   : > { %v5997_v25 = vmul.f32 -0.001358992, %v5996_v34  ;;  %v6004_v57 = vmul.f32 -0.00019511016, %v5996_v34  ;;  %v6122_v32 = vadd.s32 536870912, %v6121_v49  ;;  %v6186_v59 = vor.u32 8388608, %v6185_v36 }
 0x5cc   : > { %v18764_v29 = vor.u32 %v6196_v21, %v6195_v2  ;;  %v6206_v22 = vor.u32 %v6205_v52, %v6204_v24  ;;  %v6208_v19 = vshrl.u32 %v20072_v0, %v18730_v47  ;;  %v18769_v60 = vor.u32 %v6199_v1, %v6198_v39 }
 0x5cd   : > { %v5998_v15 = vadd.f32 0.041655596, %v5997_v25  ;;  %v6005_v20 = vadd.f32 0.008332121, %v6004_v57  ;;  %v18760_v58 = vshrl.u32 %v6122_v32, 30  ;;  %v6203_v63 = vor.u32 %v6202_v4, %v6201_v33 }
 0x5ce   : > { %v6209_v38 = vor.u32 %v6208_v19, %v6207_v13  ;;  %vm6210_vm5 = vcmp.lt.s32.totalorder %v18754_v56, 1  ;;  %vm6213_vm7 = vcmp.lt.s32.totalorder %v18754_v56, 4  ;;  %vm6212_vm6 = vcmp.lt.s32.totalorder %v18754_v56, 3 }
 0x5cf   : > { %v5999_v28 = vmul.f32 %v5998_v15, %v5996_v34  ;;  %v6006_v46 = vmul.f32 %v6005_v20, %v5996_v34  ;;  %v6124_v44 = vshll.u32 %v18760_v58, 30  ;;  %vm6211_vm2 = vcmp.lt.s32.totalorder %v18754_v56, 2 }
 0x5d0   : > { %v6219_v39 = vsel %vm6213_vm7, %v6206_v22, 920167782  ;;  %v18782_v1 = vshll.u32 %v6186_v59, 8  ;;  %v6337_v24 = vshrl.u32 %v6336_v27, 23  ;;  %v6222_v33 = vsel %vm6210_vm5, %v18769_v60, %v6203_v63 }
 0x5d1   : > { %v6000_v36 = vadd.f32 -0.4999988, %v5999_v28  ;;  %v6007_v2 = vadd.f32 -0.16666654, %v6006_v46  ;;  %v18775_v21 = vsub.s32 %v6121_v49, %v6124_v44  ;;  %v6218_v49 = vsel %vm6210_vm5, %v18764_v29, %v18769_v60 }
 0x5d2   : > { %v6220_v52 = vsel %vm6212_vm6, %v6203_v63, %v6219_v39  ;;  %v6223_v4 = vsel %vm6213_vm7, %v6209_v38, 1326507024  ;;  %v6227_v19 = vand.u32 65535, %v18782_v1  ;;  %v6228_v28 = vshrl.u32 %v18782_v1, 16 }
 0x5d3   : > { %v6001_v25 = vmul.f32 %v6000_v36, %v5996_v34  ;;  %v6008_v57 = vmul.f32 %v6007_v2, %v5996_v34  ;;  %vm6126_vm0 = vcmp.lt.s32.totalorder %v18775_v21, 0  ;;  %v6127_v32 = vsub.s32 0, %v18775_v21 }
 0x5d4   : > { %v6224_v59 = vsel %vm6212_vm6, %v6206_v22, %v6223_v4  ;;  %v6221_v38 = vsel %vm6211_vm2, %v6218_v49, %v6220_v52  ;;  %v6194_v49 = vshrl.u32 %v20067_v3, %v18730_v47 }
 0x5d5   : > { %v18797_v34 = vadd.f32 1.0, %v6001_v25  ;;  %v6009_v13 = vadd.f32 1.0, %v6008_v57  ;;  %v6128_v15 = vsel %vm6126_vm0, %v6127_v32, %v18775_v21  ;;  %v6225_v36 = vsel %vm6211_vm2, %v6222_v33, %v6224_v59 }
 0x5d6   : > { %v6129_v27 = vclz %v6128_v15  ;;  %v6229_v39 = vand.u32 65535, %v6225_v36  ;;  %v6230_v25 = vshrl.u32 %v6225_v36, 16  ;;  %v13147_v57 = vadd.s32 4294967169, %v6337_v24 }
 0x5d7   : > { %20305 = vst [vmem:[#allocation50_spill] sm:$0xff] %v18797_v34  ;;  %v18806_v46 = vmul.f32 %v6009_v13, %v18735_v26  ;;  %v20002_v44 = vxor.u32 2147483648, %v18797_v34  ;;  %v6147_v32 = vsub.s32 4, %v18760_v58  ;;  %v6251_v33 = vand.u32 65535, %v6221_v38 }
 0x5d8   : > { %v13142_v2 = vadd.s32 4294967294, %v6129_v27  ;;  %v6232_v52 = vmul.u32 %v6230_v25, %v6227_v19  ;;  %v6252_v4 = vshrl.u32 %v6221_v38, 16  ;;  %v6231_v15 = vmul.u32 %v6229_v39, %v6227_v19 }
 0x5d9   : > { %20306 = vst [vmem:[#allocation51_spill] sm:$0xff] %v18806_v46  ;;  %v20003_v22 = vxor.u32 2147483648, %v18806_v46  ;;  %v6020_v26 = vsel %vm6018_vm1, %v20002_v44, %v18806_v46  ;;  %v6233_v27 = vmul.u32 %v6229_v39, %v6228_v28  ;;  %vm6025_vm1 = vcmp.lt.s32.totalorder %v20290_v37, 0 }
 0x5da   : > { %vm13143_vm0 = vcmp.lt.s32.totalorder %v13142_v2, 0  ;;  %v6343_v39 = vadd.s32 1, %v13147_v57  ;;  %v6235_v16 = vshll.u32 %v6232_v52, 16  ;;  %v6236_v20 = vshrl.u32 %v6232_v52, 16 }
 0x5db   : > { %v6017_v24 = vsel %vm6015_vm4, %v18797_v34, %v20003_v22  ;;  %v6132_v13 = vsel %vm13143_vm0, 0, %v13142_v2  ;;  %v6214_v22 = vsel %vm6210_vm5, %v6194_v49, %v18764_v29  ;;  %v6215_v2 = vsel %vm6213_vm7, %v6203_v63, 2102212464 }
 0x5dc   : > { %v6021_v59 = vsel %vm6014_vm12, %v6017_v24, %v6020_v26  ;;  %v6133_v47 = vsub.s32 32, %v6132_v13  ;;  %v6134_v36 = vshll.u32 %v18775_v21, %v6132_v13  ;;  %v6137_v44 = vsub.s32 4294967266, %v6132_v13 }
 0x5dd   : > { %v6022_v38 = vsel %vm20010_vm9, nan, %v6021_v59  ;;  %v6234_v24 = vmul.u32 %v6230_v25, %v6228_v28  ;;  %v6237_v21 = vshll.u32 %v6233_v27, 16  ;;  %v6253_v13 = vmul.u32 %v6251_v33, %v6227_v19 }
 0x5de   : > { %v6135_v17 = vshrl.u32 %v18739_v42, %v6133_v47  ;;  %v6138_v26 = vadd.s32 127, %v6137_v44  ;;  %6678 = vst [vmem:[%s14173_s11 + $0x118] sm:$0xff] %v6022_v38  ;;  %v6254_v34 = vmul.u32 %v6252_v4, %v6227_v19  ;;  %v20307_v59 = vand.u32 2147483647, %v20290_v37 }
 0x5df   : > { %vm6239_vm5 = vc.u32 %v6231_v15, %v6235_v16  ;;  %v6241_v63 = vadd.s32 %v6235_v16, %v6231_v15  ;;  %v6255_v44 = vmul.u32 %v6251_v33, %v6228_v28  ;;  %v6256_v25 = vmul.u32 %v6252_v4, %v6228_v28 }
 0x5e0   : > { %vm18842_vm4 = vcmp.le.f32.partialorder %v20307_v59, 0.7853982  ;;  %v6136_v29 = vor.u32 %v6135_v17, %v6134_v36  ;;  %v6139_v49 = vshll.u32 %v6138_v26, 23  ;;  %v6240_v42 = vsel %vm6239_vm5, 1, %v20073_v43 }
 0x5e1   : > { %v6257_v57 = vshll.u32 %v6254_v34, 16  ;;  %v6242_v38 = vadd.s32 %v6240_v42, %v6234_v24  ;;  %vm6243_vm7 = vc.u32 %v6241_v63, %v6237_v21  ;;  %v6216_v19 = vsel %vm6212_vm6, %v18769_v60, %v6215_v2 }
 0x5e2   : > { %v6140_v47 = vor.u32 4788187, %v6139_v49  ;;  %v6143_v52 = vcvt.s32.f32 %v6136_v29  ;;  %v6238_v59 = vshrl.u32 %v6233_v27, 16  ;;  %v6244_v46 = vsel %vm6243_vm7, 1, %v20073_v43 }
 0x5e3   : > { %v6259_v36 = vshll.u32 %v6255_v44, 16  ;;  %v6246_v26 = vadd.s32 %v6244_v46, %v6242_v38  ;;  %vm6261_vm12 = vc.u32 %v6253_v13, %v6257_v57  ;;  %v6263_v16 = vadd.s32 %v6257_v57, %v6253_v13 }
 0x5e4   : > { %v6141_v17 = vand.u32 2147483647, %v6140_v47  ;;  %v6148_v28 = vsel %vm6025_vm1, %v6147_v32, %v18760_v58  ;;  %v6258_v33 = vshrl.u32 %v6254_v34, 16  ;;  %v6262_v4 = vsel %vm6261_vm12, 1, %v20073_v43 }
 0x5e5   : > { %vm6344_vm0 = vcmp.gt.s32.totalorder %v6343_v39, 0  ;;  %v6247_v24 = vadd.s32 %v6246_v26, %v6236_v20  ;;  %v6264_v21 = vadd.s32 %v6262_v4, %v6256_v25  ;;  %vm6265_vm6 = vc.u32 %v6263_v16, %v6259_v36 }
 0x5e6   : > { %v6144_v15 = vmul.f32 %v6143_v52, %v6141_v17  ;;  %v6217_v60 = vsel %vm6211_vm2, %v6214_v22, %v6216_v19  ;;  %v6266_v27 = vsel %vm6265_vm6, 1, %v20073_v43  ;;  %v18858_v46 = vadd.s32 %v6263_v16, %v6259_v36 }
 0x5e7   : > { %v6345_v2 = vsel %vm6344_vm0, %v6343_v39, 0  ;;  %v18860_v29 = vadd.s32 %v6247_v24, %v6238_v59  ;;  %v6260_v58 = vshrl.u32 %v6255_v44, 16  ;;  %v6268_v34 = vadd.s32 %v6266_v27, %v6264_v21 }
 0x5e8   : > { %v6145_v13 = vxor.u32 2147483648, %v6144_v15  ;;  %v18864_v32 = vsel %vm18842_vm4, 0, %v6148_v28  ;;  %v20311_v20 = vand.u32 2147483647, %v20304_v41  ;;  %v6347_v63 = vand.u32 31, %v6345_v2 }
 0x5e9   : > { %20310 = vst [vmem:[#allocation142_spill] sm:$0xff] %v18864_v32  ;;  %v6269_v22 = vadd.s32 %v6268_v34, %v6258_v33  ;;  %v6271_v42 = vmul.u32 %v18782_v1, %v6217_v60  ;;  %v18871_v39 = vshrl.u32 %v6345_v2, 5  ;;  %vm6273_vm2 = vc.u32 %v18860_v29, %v18858_v46 }
 0x5ea   : > { %v6340_v49 = vand.u32 8388607, %v20311_v20  ;;  %v6146_v56 = vsel %vm6025_vm1, %v6145_v13, %v6144_v15  ;;  %v18878_v25 = vsub.s32 32, %v6347_v63  ;;  %v6350_v57 = vshll.u32 %v20067_v3, %v6347_v63 }
 0x5eb   : > { %v6149_v44 = vsel %vm18842_vm4, %v20290_v37, %v6146_v56  ;;  %v6270_v52 = vadd.s32 %v6269_v22, %v6260_v58  ;;  %v6353_v38 = vshll.u32 %v20068_v51, %v6347_v63  ;;  %v6356_v19 = vshll.u32 %v20069_v54, %v6347_v63 }
 0x5ec   : > { %v6151_v47 = vmul.f32 %v6149_v44, %v6149_v44  ;;  %v6351_v1 = vshrl.u32 %v20068_v51, %v18878_v25  ;;  %v6354_v23 = vshrl.u32 %v20069_v54, %v18878_v25  ;;  %v6357_v59 = vshrl.u32 %v20070_v8, %v18878_v25 }
 0x5ed   : > { %v6359_v36 = vshll.u32 %v20070_v8, %v6347_v63  ;;  %v6274_v16 = vadd.s32 1, %v6270_v52  ;;  %v6360_v28 = vshrl.u32 %v20071_v7, %v18878_v25  ;;  %v6167_v33 = vadd.s32 3, %v18864_v32 }
 0x5ee   : > { %v6152_v17 = vmul.f32 -0.001358992, %v6151_v47  ;;  %v6159_v26 = vmul.f32 -0.00019511016, %v6151_v47  ;;  %v6341_v4 = vor.u32 8388608, %v6340_v49  ;;  %v18893_v15 = vor.u32 %v6351_v1, %v6350_v57 }
 0x5ef   : > { %v6275_v60 = vsel %vm6273_vm2, %v6274_v16, %v6270_v52  ;;  %v6362_v27 = vshll.u32 %v20071_v7, %v6347_v63  ;;  %v18899_v13 = vor.u32 %v6354_v23, %v6353_v38  ;;  %v6361_v58 = vor.u32 %v6360_v28, %v6359_v36 }
 0x5f0   : > { %v6153_v24 = vadd.f32 0.041655596, %v6152_v17  ;;  %v6160_v21 = vadd.f32 0.008332121, %v6159_v26  ;;  %v6276_v2 = vadd.s32 %v6275_v60, %v6271_v42  ;;  %v6363_v34 = vshrl.u32 %v20072_v0, %v18878_v25 }
 0x5f1   : > { %v18903_v49 = vor.u32 %v6357_v59, %v6356_v19  ;;  %vm6365_vm1 = vcmp.lt.s32.totalorder %v18871_v39, 1  ;;  %v6168_v22 = vand.u32 3, %v6167_v33  ;;  %vm6367_vm4 = vcmp.lt.s32.totalorder %v18871_v39, 3 }
 0x5f2   : > { %v6154_v20 = vmul.f32 %v6153_v24, %v6151_v47  ;;  %v6161_v56 = vmul.f32 %v6160_v21, %v6151_v47  ;;  %v6277_v57 = vadd.s32 536870912, %v6276_v2  ;;  %vm6368_vm5 = vcmp.lt.s32.totalorder %v18871_v39, 4 }
 0x5f3   : > { %v6364_v52 = vor.u32 %v6363_v34, %v6362_v27  ;;  %vm6366_vm7 = vcmp.lt.s32.totalorder %v18871_v39, 2  ;;  %v6373_v19 = vsel %vm6365_vm1, %v18893_v15, %v18899_v13  ;;  %v6374_v1 = vsel %vm6368_vm5, %v6361_v58, 920167782 }
 0x5f4   : > { %v6155_v63 = vadd.f32 -0.4999988, %v6154_v20  ;;  %v6162_v42 = vadd.f32 -0.16666654, %v6161_v56  ;;  %v18909_v38 = vshrl.u32 %v6277_v57, 30  ;;  %v18917_v23 = vshll.u32 %v6341_v4, 8 }
 0x5f5   : > { %vm20019_vm12 = vweird.f32 %v20290_v37  ;;  %v6375_v17 = vsel %vm6367_vm4, %v18903_v49, %v6374_v1  ;;  %vm6170_vm0 = vcmp.eq.s32.totalorder %v6168_v22, 0  ;;  %v6377_v28 = vsel %vm6365_vm1, %v18899_v13, %v18903_v49 }
 0x5f6   : > { %v6156_v59 = vmul.f32 %v6155_v63, %v6151_v47  ;;  %v6163_v36 = vmul.f32 %v6162_v42, %v6151_v47  ;;  %v6279_v26 = vshll.u32 %v18909_v38, 30  ;;  %v6376_v16 = vsel %vm6366_vm7, %v6373_v19, %v6375_v17 }
 0x5f7   : > { %vm6173_vm6 = vcmp.eq.s32.totalorder %v6168_v22, 2  ;;  %v6378_v4 = vsel %vm6368_vm5, %v6364_v52, 1326507024  ;;  %v6382_v60 = vand.u32 65535, %v18917_v23  ;;  %v6383_v27 = vshrl.u32 %v18917_v23, 16 }
 0x5f8   : > { %v18930_v33 = vadd.f32 1.0, %v6156_v59  ;;  %v6164_v47 = vadd.f32 1.0, %v6163_v36  ;;  %v6280_v24 = vsub.s32 %v6276_v2, %v6279_v26  ;;  %v6379_v21 = vsel %vm6367_vm4, %v6361_v58, %v6378_v4 }
 0x5f9   : > { %v6380_v56 = vsel %vm6366_vm7, %v6377_v28, %v6379_v21  ;;  %v6407_v57 = vshrl.u32 %v6376_v16, 16  ;;  %vm6169_vm9 = vcmp.lt.s32.totalorder %v6168_v22, 2  ;;  %v6349_v22 = vshrl.u32 %v20067_v3, %v18878_v25 }
 0x5fa   : > { %20312 = vst [vmem:[#allocation143_spill] sm:$0xff] %v18930_v33  ;;  %v18938_v34 = vmul.f32 %v6164_v47, %v6149_v44  ;;  %v20011_v20 = vxor.u32 2147483648, %v18930_v33  ;;  %vm6281_vm2 = vcmp.lt.s32.totalorder %v6280_v24, 0  ;;  %v6282_v63 = vsub.s32 0, %v6280_v24 }
 0x5fb   : > { %v6384_v42 = vand.u32 65535, %v6380_v56  ;;  %v6385_v52 = vshrl.u32 %v6380_v56, 16  ;;  %v6406_v44 = vand.u32 65535, %v6376_v16  ;;  %v6409_v28 = vmul.u32 %v6407_v57, %v6382_v60 }
 0x5fc   : > { %20313 = vst [vmem:[#allocation144_spill] sm:$0xff] %v18938_v34  ;;  %v20013_v2 = vxor.u32 2147483648, %v18938_v34  ;;  %v6175_v58 = vsel %vm6173_vm6, %v20011_v20, %v18938_v34  ;;  %v6283_v19 = vsel %vm6281_vm2, %v6282_v63, %v6280_v24  ;;  %v6272_v16 = vadd.s32 %v18858_v46, %v18860_v29 }
 0x5fd   : > { %v6386_v1 = vmul.u32 %v6384_v42, %v6382_v60  ;;  %v6387_v59 = vmul.u32 %v6385_v52, %v6382_v60  ;;  %v6388_v36 = vmul.u32 %v6384_v42, %v6383_v27  ;;  %v6284_v26 = vclz %v6283_v19  ;;  %v20314_v42 = vld [vmem:[#allocation52_spill] sm:$0xff] }
 0x5fe   : > { %v6172_v17 = vsel %vm6170_vm0, %v18930_v33, %v20013_v2  ;;  %v6389_v4 = vmul.u32 %v6385_v52, %v6383_v27  ;;  %v6491_v32 = vand.u32 2139095040, %v20314_v42  ;;  %v6408_v19 = vmul.u32 %v6406_v44, %v6382_v60 }
 0x5ff   : > { %v6176_v47 = vsel %vm6169_vm9, %v6172_v17, %v6175_v58  ;;  %v6390_v21 = vshll.u32 %v6387_v59, 16  ;;  %v6392_v56 = vshll.u32 %v6388_v36, 16  ;;  %v13145_v63 = vadd.s32 4294967294, %v6284_v26 }
 0x600   : > { %v6177_v20 = vsel %vm20019_vm12, nan, %v6176_v47  ;;  %vm6180_vm9 = vcmp.lt.s32.totalorder %v20300_v12, 0  ;;  %v6391_v52 = vshrl.u32 %v6387_v59, 16  ;;  %v6410_v17 = vmul.u32 %v6406_v44, %v6383_v27 }
 0x601   : > { %vm6394_vm6 = vc.u32 %v6386_v1, %v6390_v21  ;;  %v6396_v2 = vadd.s32 %v6390_v21, %v6386_v1  ;;  %6679 = vst [vmem:[%s14173_s11 + $0x120] sm:$0xff] %v6177_v20  ;;  %vm13146_vm0 = vcmp.lt.s32.totalorder %v13145_v63, 0  ;;  %v6412_v46 = vshll.u32 %v6409_v28, 16 }
 0x602   : > { %v6395_v58 = vsel %vm6394_vm6, 1, %v20073_v43  ;;  %v6287_v47 = vsel %vm13146_vm0, 0, %v13145_v63  ;;  %v6369_v60 = vsel %vm6365_vm1, %v6349_v22, %v18893_v15  ;;  %v6370_v20 = vsel %vm6368_vm5, %v18903_v49, 2102212464 }
 0x603   : > { %v6397_v37 = vadd.s32 %v6395_v58, %v6389_v4  ;;  %vm6398_vm2 = vc.u32 %v6396_v2, %v6392_v56  ;;  %v6288_v29 = vsub.s32 32, %v6287_v47  ;;  %v6289_v26 = vshll.u32 %v6280_v24, %v6287_v47 }
 0x604   : > { %v6292_v33 = vsub.s32 4294967266, %v6287_v47  ;;  %v6399_v25 = vsel %vm6398_vm2, 1, %v20073_v43  ;;  %v6411_v59 = vmul.u32 %v6407_v57, %v6383_v27  ;;  %v6302_v2 = vsub.s32 4, %v18909_v38 }
 0x605   : > { %v6401_v1 = vadd.s32 %v6399_v25, %v6397_v37  ;;  %v6290_v44 = vshrl.u32 %v6272_v16, %v6288_v29  ;;  %v6414_v4 = vshll.u32 %v6410_v17, 16  ;;  %v6393_v56 = vshrl.u32 %v6388_v36, 16 }
 0x606   : > { %v6293_v21 = vadd.s32 127, %v6292_v33  ;;  %vm6416_vm6 = vc.u32 %v6408_v19, %v6412_v46  ;;  %v6418_v63 = vadd.s32 %v6412_v46, %v6408_v19  ;;  %v6492_v15 = vshrl.u32 %v6491_v32, 23 }
 0x607   : > { %v6402_v24 = vadd.s32 %v6401_v1, %v6391_v52  ;;  %v6291_v58 = vor.u32 %v6290_v44, %v6289_v26  ;;  %v6417_v34 = vsel %vm6416_vm6, 1, %v20073_v43  ;;  %v6371_v49 = vsel %vm6367_vm4, %v18899_v13, %v6370_v20 }
 0x608   : > { %v6294_v47 = vshll.u32 %v6293_v21, 23  ;;  %v6413_v37 = vshrl.u32 %v6409_v28, 16  ;;  %v6419_v27 = vadd.s32 %v6417_v34, %v6411_v59  ;;  %vm6420_vm1 = vc.u32 %v6418_v63, %v6414_v4 }
 0x609   : > { %v6298_v57 = vcvt.s32.f32 %v6291_v58  ;;  %v6421_v16 = vsel %vm6420_vm1, 1, %v20073_v43  ;;  %v13150_v36 = vadd.s32 4294967169, %v6492_v15  ;;  %v6303_v22 = vsel %vm6180_vm9, %v6302_v2, %v18909_v38 }
 0x60a   : > { %v6295_v33 = vor.u32 4788187, %v6294_v47  ;;  %v6415_v19 = vshrl.u32 %v6410_v17, 16  ;;  %v6423_v52 = vadd.s32 %v6421_v16, %v6419_v27  ;;  %v18978_v32 = vadd.s32 %v6402_v24, %v6393_v56 }
 0x60b   : > { %v18980_v29 = vadd.s32 %v6418_v63, %v6414_v4  ;;  %v6498_v13 = vadd.s32 1, %v13150_v36  ;;  %v6372_v34 = vsel %vm6366_vm7, %v6369_v60, %v6371_v49  ;;  %v20315_v26 = vand.u32 2147483647, %v20300_v12 }
 0x60c   : > { %v6296_v46 = vand.u32 2147483647, %v6295_v33  ;;  %v6424_v28 = vadd.s32 %v6423_v52, %v6413_v37  ;;  %v6488_v17 = vand.u32 2147483647, %v20314_v42  ;;  %v6426_v44 = vmul.u32 %v18917_v23, %v6372_v34 }
 0x60d   : > { %vm6179_vm4 = vcmp.le.f32.partialorder %v20315_v26, 0.7853982  ;;  %vm6499_vm5 = vcmp.gt.s32.totalorder %v6498_v13, 0  ;;  %vm6428_vm0 = vc.u32 %v18978_v32, %v18980_v29  ;;  %vm20023_vm6 = vweird.f32 %v20300_v12 }
 0x60e   : > { %v6299_v25 = vmul.f32 %v6298_v57, %v6296_v46  ;;  %v18986_v20 = vsel %vm6179_vm4, 0, %v6303_v22  ;;  %v6425_v38 = vadd.s32 %v6424_v28, %v6415_v19  ;;  %v6500_v1 = vsel %vm6499_vm5, %v6498_v13, 0 }
 0x60f   : > { %v6502_v39 = vand.u32 31, %v6500_v1  ;;  %v6322_v56 = vadd.s32 3, %v18986_v20  ;;  %v6495_v23 = vand.u32 8388607, %v6488_v17  ;;  %v19009_v22 = vshrl.u32 %v6500_v1, 5 }
 0x610   : > { %v6300_v59 = vxor.u32 2147483648, %v6299_v25  ;;  %v6429_v60 = vadd.s32 1, %v6425_v38 }
 0x611   : > { %v18994_v2 = vsub.s32 32, %v6502_v39  ;;  %v6505_v47 = vshll.u32 %v20067_v3, %v6502_v39  ;;  %v6508_v49 = vshll.u32 %v20068_v51, %v6502_v39  ;;  %v6514_v27 = vshll.u32 %v20070_v8, %v6502_v39 }
 0x612   : > { %v6301_v21 = vsel %vm6180_vm9, %v6300_v59, %v6299_v25  ;;  %v6430_v24 = vsel %vm6428_vm0, %v6429_v60, %v6425_v38  ;;  %v6511_v19 = vshll.u32 %v20069_v54, %v6502_v39  ;;  %v6323_v34 = vand.u32 3, %v6322_v56 }
 0x613   : > { %v6304_v4 = vsel %vm6179_vm4, %v20300_v12, %v6301_v21  ;;  %v6431_v58 = vadd.s32 %v6430_v24, %v6426_v44  ;;  %v6506_v15 = vshrl.u32 %v20068_v51, %v18994_v2  ;;  %v6509_v37 = vshrl.u32 %v20069_v54, %v18994_v2 }
 0x614   : > { %v6306_v63 = vmul.f32 %v6304_v4, %v6304_v4  ;;  %v6515_v36 = vshrl.u32 %v20071_v7, %v18994_v2  ;;  %v6512_v52 = vshrl.u32 %v20070_v8, %v18994_v2  ;;  %v6517_v51 = vshll.u32 %v20071_v7, %v6502_v39 }
 0x615   : > { %v6432_v16 = vadd.s32 536870912, %v6431_v58  ;;  %v6496_v26 = vor.u32 8388608, %v6495_v23  ;;  %v19017_v25 = vor.u32 %v6506_v15, %v6505_v47  ;;  %v6518_v1 = vshrl.u32 %v20072_v0, %v18994_v2 }
 0x616   : > { %v6307_v33 = vmul.f32 -0.001358992, %v6306_v63  ;;  %v6314_v57 = vmul.f32 -0.00019511016, %v6306_v63  ;;  %v6516_v38 = vor.u32 %v6515_v36, %v6514_v27  ;;  %v19022_v60 = vor.u32 %v6509_v37, %v6508_v49 }
 0x617   : > { %v19015_v28 = vshrl.u32 %v6432_v16, 30  ;;  %v19024_v8 = vor.u32 %v6512_v52, %v6511_v19  ;;  %v6519_v7 = vor.u32 %v6518_v1, %v6517_v51  ;;  %vm6520_vm7 = vcmp.lt.s32.totalorder %v19009_v22, 1 }
 0x618   : > { %v6308_v46 = vadd.f32 0.041655596, %v6307_v33  ;;  %v6315_v13 = vadd.f32 0.008332121, %v6314_v57  ;;  %vm6523_vm9 = vcmp.lt.s32.totalorder %v19009_v22, 4  ;;  %vm6522_vm2 = vcmp.lt.s32.totalorder %v19009_v22, 3 }
 0x619   : > { %v6434_v54 = vshll.u32 %v19015_v28, 30  ;;  %vm6521_vm1 = vcmp.lt.s32.totalorder %v19009_v22, 2  ;;  %v6529_v0 = vsel %vm6523_vm9, %v6516_v38, 920167782  ;;  %v19033_v24 = vshll.u32 %v6496_v26, 8 }
 0x61a   : > { %v6309_v59 = vmul.f32 %v6308_v46, %v6306_v63  ;;  %v6316_v44 = vmul.f32 %v6315_v13, %v6306_v63  ;;  %v6530_v49 = vsel %vm6522_vm2, %v19024_v8, %v6529_v0  ;;  %v6532_v37 = vsel %vm6520_vm7, %v19022_v60, %v19024_v8 }
 0x61b   : > { %v6435_v56 = vsub.s32 %v6431_v58, %v6434_v54  ;;  %v6528_v58 = vsel %vm6520_vm7, %v19017_v25, %v19022_v60  ;;  %v6533_v27 = vsel %vm6523_vm9, %v6519_v7, 1326507024  ;;  %vm6328_vm5 = vcmp.eq.s32.totalorder %v6323_v34, 2 }
 0x61c   : > { %v6310_v39 = vadd.f32 -0.4999988, %v6309_v59  ;;  %v6317_v21 = vadd.f32 -0.16666654, %v6316_v44  ;;  %v6534_v36 = vsel %vm6522_vm2, %v6516_v38, %v6533_v27  ;;  %v6537_v19 = vand.u32 65535, %v19033_v24 }
 0x61d   : > { %vm6436_vm4 = vcmp.lt.s32.totalorder %v6435_v56, 0  ;;  %v6437_v15 = vsub.s32 0, %v6435_v56  ;;  %v6538_v52 = vshrl.u32 %v19033_v24, 16  ;;  %v6531_v13 = vsel %vm6521_vm1, %v6528_v58, %v6530_v49 }
 0x61e   : > { %v6311_v23 = vmul.f32 %v6310_v39, %v6306_v63  ;;  %v6318_v47 = vmul.f32 %v6317_v21, %v6306_v63  ;;  %v6535_v26 = vsel %vm6521_vm1, %v6532_v37, %v6534_v36  ;;  %vm6325_vm0 = vcmp.eq.s32.totalorder %v6323_v34, 0 }
 0x61f   : > { %v6438_v57 = vsel %vm6436_vm4, %v6437_v15, %v6435_v56  ;;  %v6539_v59 = vand.u32 65535, %v6535_v26  ;;  %v6540_v44 = vshrl.u32 %v6535_v26, 16  ;;  %vm6324_vm4 = vcmp.lt.s32.totalorder %v6323_v34, 2 }
 0x620   : > { %v19048_v63 = vadd.f32 1.0, %v6311_v23  ;;  %v6319_v33 = vadd.f32 1.0, %v6318_v47  ;;  %v6439_v16 = vclz %v6438_v57  ;;  %v6427_v54 = vadd.s32 %v18980_v29, %v18978_v32 }
 0x621   : > { %v6542_v7 = vmul.u32 %v6540_v44, %v6537_v19  ;;  %v6561_v39 = vand.u32 65535, %v6531_v13  ;;  %v6562_v21 = vshrl.u32 %v6531_v13, 16  ;;  %v6541_v47 = vmul.u32 %v6539_v59, %v6537_v19 }
 0x622   : > { %v19054_v51 = vmul.f32 %v6319_v33, %v6304_v4  ;;  %v20020_v46 = vxor.u32 2147483648, %v19048_v63  ;;  %v13148_v1 = vadd.s32 4294967294, %v6439_v16  ;;  %v6543_v15 = vmul.u32 %v6539_v59, %v6538_v52 }
 0x623   : > { %v6544_v33 = vmul.u32 %v6540_v44, %v6538_v52  ;;  %v6545_v57 = vshll.u32 %v6542_v7, 16  ;;  %v6546_v16 = vshrl.u32 %v6542_v7, 16  ;;  %v6563_v13 = vmul.u32 %v6561_v39, %v6537_v19 }
 0x624   : > { %v20021_v38 = vxor.u32 2147483648, %v19054_v51  ;;  %v6330_v4 = vsel %vm6328_vm5, %v20020_v46, %v19054_v51  ;;  %vm13149_vm12 = vcmp.lt.s32.totalorder %v13148_v1, 0  ;;  %v6547_v36 = vshll.u32 %v6543_v15, 16 }
 0x625   : > { %v6442_v23 = vsel %vm13149_vm12, 0, %v13148_v1  ;;  %v6564_v26 = vmul.u32 %v6562_v21, %v6537_v19  ;;  %vm6549_vm12 = vc.u32 %v6541_v47, %v6545_v57  ;;  %v6551_v59 = vadd.s32 %v6545_v57, %v6541_v47 }
 0x626   : > { %v6327_v0 = vsel %vm6325_vm0, %v19048_v63, %v20021_v38  ;;  %v6443_v49 = vsub.s32 32, %v6442_v23  ;;  %v6444_v37 = vshll.u32 %v6435_v56, %v6442_v23  ;;  %v6447_v34 = vsub.s32 4294967266, %v6442_v23 }
 0x627   : > { %v6331_v58 = vsel %vm6324_vm4, %v6327_v0, %v6330_v4  ;;  %v6550_v4 = vsel %vm6549_vm12, 1, %v20073_v43  ;;  %v6565_v56 = vmul.u32 %v6561_v39, %v6538_v52  ;;  %v6566_v0 = vmul.u32 %v6562_v21, %v6538_v52 }
 0x628   : > { %v6332_v27 = vsel %vm20023_vm6, nan, %v6331_v58  ;;  %v6445_v32 = vshrl.u32 %v6427_v54, %v6443_v49  ;;  %v6448_v29 = vadd.s32 127, %v6447_v34  ;;  %v6567_v23 = vshll.u32 %v6564_v26, 16 }
 0x629   : > { %6680 = vst [vmem:[%s14173_s11 + $0x128] sm:$0xff] %v6332_v27  ;;  %v6552_v54 = vadd.s32 %v6550_v4, %v6544_v33  ;;  %vm6553_vm5 = vc.u32 %v6551_v59, %v6547_v36  ;;  %v6504_v44 = vshrl.u32 %v20067_v3, %v18994_v2  ;;  %v6525_v19 = vsel %vm6523_vm9, %v19024_v8, 2102212464 }
 0x62a   : > { %v6446_v46 = vor.u32 %v6445_v32, %v6444_v37  ;;  %v6449_v1 = vshll.u32 %v6448_v29, 23  ;;  %v6554_v7 = vsel %vm6553_vm5, 1, %v20073_v43  ;;  %v6569_v49 = vshll.u32 %v6565_v56, 16 }
 0x62b   : > { %v6556_v37 = vadd.s32 %v6554_v7, %v6552_v54  ;;  %vm6571_vm0 = vc.u32 %v6563_v13, %v6567_v23  ;;  %v6573_v39 = vadd.s32 %v6567_v23, %v6563_v13  ;;  %vm6335_vm4 = vcmp.lt.s32.totalorder %v20304_v41, 0 }
 0x62c   : > { %v6450_v38 = vor.u32 4788187, %v6449_v1  ;;  %v6453_v58 = vcvt.s32.f32 %v6446_v46  ;;  %v6548_v52 = vshrl.u32 %v6543_v15, 16  ;;  %v6568_v46 = vshrl.u32 %v6564_v26, 16 }
 0x62d   : > { %v6572_v21 = vsel %vm6571_vm0, 1, %v20073_v43  ;;  %v6557_v27 = vadd.s32 %v6556_v37, %v6546_v16  ;;  %vm6575_vm12 = vc.u32 %v6573_v39, %v6569_v49  ;;  %v6457_v2 = vsub.s32 4, %v19015_v28 }
 0x62e   : > { %v6451_v47 = vand.u32 2147483647, %v6450_v38  ;;  %v6574_v3 = vadd.s32 %v6572_v21, %v6566_v0  ;;  %v6524_v8 = vsel %vm6520_vm7, %v6504_v44, %v19017_v25  ;;  %v6526_v38 = vsel %vm6522_vm2, %v19022_v60, %v6525_v19 }
 0x62f   : > { %v6576_v32 = vsel %vm6575_vm12, 1, %v20073_v43  ;;  %v20316_v15 = vand.u32 2147483647, %v20304_v41  ;;  %v6570_v33 = vshrl.u32 %v6565_v56, 16  ;;  %v6558_v16 = vadd.s32 %v6557_v27, %v6548_v52 }
 0x630   : > { %v6454_v34 = vmul.f32 %v6453_v58, %v6451_v47  ;;  %v6578_v57 = vadd.s32 %v6576_v32, %v6574_v3  ;;  %v6577_v36 = vadd.s32 %v6573_v39, %v6569_v49  ;;  %v6527_v25 = vsel %vm6521_vm1, %v6524_v8, %v6526_v38 }
 0x631   : > { %vm6334_vm9 = vcmp.le.f32.partialorder %v20316_v15, 0.7853982  ;;  %v6458_v60 = vsel %vm6335_vm4, %v6457_v2, %v19015_v28  ;;  %v6581_v4 = vmul.u32 %v19033_v24, %v6527_v25  ;;  %vm6490_vm1 = vcmp.lt.s32.totalorder %v20314_v42, 0 }
 0x632   : > { %v6455_v29 = vxor.u32 2147483648, %v6454_v34  ;;  %v6579_v26 = vadd.s32 %v6578_v57, %v6568_v46  ;;  %vm6583_vm7 = vc.u32 %v6558_v16, %v6577_v36  ;;  %v19102_v56 = vsel %vm6334_vm9, 0, %v6458_v60 }
 0x633   : > { %v6477_v19 = vadd.s32 3, %v19102_v56  ;;  %vm20022_vm12 = vweird.f32 %v20304_v41 }
 0x634   : > { %v6456_v13 = vsel %vm6335_vm4, %v6455_v29, %v6454_v34  ;;  %v6580_v59 = vadd.s32 %v6579_v26, %v6570_v33 }
 0x635   : > { %v6459_v43 = vsel %vm6334_vm9, %v20304_v41, %v6456_v13  ;;  %v6478_v52 = vand.u32 3, %v6477_v19  ;;  %vm19120_vm9 = vcmp.le.f32.partialorder %v6488_v17, 0.7853982 }
 0x636   : > { %v6461_v1 = vmul.f32 %v6459_v43, %v6459_v43  ;;  %v6584_v58 = vadd.s32 1, %v6580_v59 }
 0x637   : > { %vm6483_vm2 = vcmp.eq.s32.totalorder %v6478_v52, 2  ;;  %vm6480_vm5 = vcmp.eq.s32.totalorder %v6478_v52, 0  ;;  %vm6479_vm4 = vcmp.lt.s32.totalorder %v6478_v52, 2 }
 0x638   : > { %v6462_v0 = vmul.f32 -0.001358992, %v6461_v1  ;;  %v6469_v23 = vmul.f32 -0.00019511016, %v6461_v1  ;;  %v6585_v44 = vsel %vm6583_vm7, %v6584_v58, %v6580_v59  ;;  %v6827_v58 = vand.u32 3, %v14045_v30 }
 0x639   : > { %v6586_v7 = vadd.s32 %v6585_v44, %v6581_v4 }
 0x63a   : > { %v6463_v54 = vadd.f32 0.041655596, %v6462_v0  ;;  %v6470_v22 = vadd.f32 0.008332121, %v6469_v23  ;;  %v6582_v0 = vadd.s32 %v6577_v36, %v6558_v16  ;;  %v20321_v16 = vld [vmem:[#allocation54_spill] sm:$0xff] }
 0x63b   : > { %v6587_v47 = vadd.s32 536870912, %v6586_v7  ;;  %v20322_v52 = vxor.u32 2147483648, %v20321_v16 }
 0x63c   : > { %v6464_v49 = vmul.f32 %v6463_v54, %v6461_v1  ;;  %v6471_v28 = vmul.f32 %v6470_v22, %v6461_v1  ;;  %v6981_v54 = vand.u32 3, %v14128_v48 }
 0x63d   : > { %v6588_v46 = vshrl.u32 %v6587_v47, 30 }
 0x63e   : > { %v6465_v37 = vadd.f32 -0.4999988, %v6464_v49  ;;  %v6472_v39 = vadd.f32 -0.16666654, %v6471_v28  ;;  %v7135_v49 = vand.u32 3, %v14277_v35 }
 0x63f   : > { %v6589_v34 = vshll.u32 %v6588_v46, 30  ;;  %v6612_v27 = vsub.s32 4, %v6588_v46 }
 0x640   : > { %v6466_v24 = vmul.f32 %v6465_v37, %v6461_v1  ;;  %v6473_v21 = vmul.f32 %v6472_v39, %v6461_v1  ;;  %v20319_v37 = vld [vmem:[#allocation55_spill] sm:$0xff]  ;;  %vm7137_vm6 = vcmp.eq.s32.totalorder %v7135_v49, 0 }
 0x641   : > { %v6590_v8 = vsub.s32 %v6586_v7, %v6589_v34  ;;  %v6613_v29 = vsel %vm6490_vm1, %v6612_v27, %v6588_v46  ;;  %v20320_v39 = vxor.u32 2147483648, %v20319_v37 }
 0x642   : > { %v19105_v3 = vadd.f32 1.0, %v6466_v24  ;;  %v6474_v2 = vadd.f32 1.0, %v6473_v21  ;;  %v20323_v24 = vld [vmem:[#allocation57_spill] sm:$0xff]  ;;  %v20325_v21 = vld [vmem:[#allocation56_spill] sm:$0xff] }
 0x643   : > { %vm6591_vm0 = vcmp.lt.s32.totalorder %v6590_v8, 0  ;;  %v6592_v15 = vsub.s32 0, %v6590_v8  ;;  %v20324_v35 = vxor.u32 2147483648, %v20323_v24 }
 0x644   : > { %v19107_v38 = vmul.f32 %v6474_v2, %v6459_v43  ;;  %v6484_v32 = vxor.u32 2147483648, %v19105_v3  ;;  %v19129_v43 = vsel %vm19120_vm9, 0, %v6613_v29  ;;  %v20326_v2 = vxor.u32 2147483648, %v20325_v21 }
 0x645   : > { %v6593_v25 = vsel %vm6591_vm0, %v6592_v15, %v6590_v8  ;;  %v6632_v17 = vadd.s32 3, %v19129_v43  ;;  %vm6832_vm0 = vcmp.eq.s32.totalorder %v6827_v58, 2 }
 0x646   : > { %v6481_v33 = vxor.u32 2147483648, %v19107_v38  ;;  %v6485_v57 = vsel %vm6483_vm2, %v6484_v32, %v19107_v38  ;;  %v6594_v60 = vclz %v6593_v25  ;;  %vm6829_vm2 = vcmp.eq.s32.totalorder %v6827_v58, 0 }
 0x647   : > { %v19137_v7 = vand.u32 3, %v6632_v17  ;;  %v6831_v36 = vsel %vm6829_vm2, %v20321_v16, %v20320_v39  ;;  %v6834_v46 = vsel %vm6832_vm0, %v20322_v52, %v20319_v37  ;;  %vm7136_vm2 = vcmp.lt.s32.totalorder %v7135_v49, 2  ;;  %v20331_v17 = vld [vmem:[#allocation58_spill] sm:$0xff] }
 0x648   : > { %v6482_v26 = vsel %vm6480_vm5, %v19105_v3, %v6481_v33  ;;  %v13151_v4 = vadd.s32 4294967294, %v6594_v60  ;;  %vm6828_vm5 = vcmp.lt.s32.totalorder %v6827_v58, 2 }
 0x649   : > { %v6486_v1 = vsel %vm6479_vm4, %v6482_v26, %v6485_v57  ;;  %vm6982_vm4 = vcmp.lt.s32.totalorder %v6981_v54, 2  ;;  %v6835_v27 = vsel %vm6828_vm5, %v6831_v36, %v6834_v46  ;;  %vm7140_vm5 = vcmp.eq.s32.totalorder %v7135_v49, 2 }
 0x64a   : > { %v6487_v59 = vsel %vm20022_vm12, nan, %v6486_v1  ;;  %vm13152_vm7 = vcmp.lt.s32.totalorder %v13151_v4, 0  ;;  %vm6986_vm12 = vcmp.eq.s32.totalorder %v6981_v54, 2  ;;  %v6836_v25 = vsel %vm586_vm8, nan, %v6835_v27 }
 0x64b   : > { %6681 = vst [vmem:[%s14173_s11 + $0x130] sm:$0xff] %v6487_v59  ;;  %v6597_v23 = vsel %vm13152_vm7, 0, %v13151_v4  ;;  %vm6983_vm7 = vcmp.eq.s32.totalorder %v6981_v54, 0  ;;  %v20329_v59 = vld [vmem:[#allocation59_spill] sm:$0xff]  ;;  %v20335_v36 = vxor.u32 2147483648, %v14468_v5 }
 0x64c   : > { %v6598_v22 = vsub.s32 32, %v6597_v23  ;;  %v6599_v44 = vshll.u32 %v6590_v8, %v6597_v23  ;;  %v6602_v19 = vsub.s32 4294967266, %v6597_v23  ;;  %v6985_v34 = vsel %vm6983_vm7, %v20325_v21, %v20324_v35  ;;  %v20332_v23 = vld [vmem:[#allocation60_spill] sm:$0xff]  ;;  %12843 = vst [vmem:[%s19162_s16] sm:$0xff] %v6836_v25  ;;  %v20340_v21 = vld [vmem:[#allocation61_spill] sm:$0xff]  ;;  %v20345_v25 = vld [vmem:[#allocation63_spill] sm:$0xff] }
 0x64d   : > { %v6988_v8 = vsel %vm6986_vm12, %v20326_v2, %v20323_v24  ;;  %v20330_v4 = vxor.u32 2147483648, %v20329_v59  ;;  %v7289_v58 = vand.u32 3, %v20332_v23  ;;  %v20338_v24 = vld [vmem:[#allocation62_spill] sm:$0xff]  ;;  %v20341_v27 = vxor.u32 2147483648, %v20340_v21 }
 0x64e   : > { %v6600_v28 = vshrl.u32 %v6582_v0, %v6598_v22  ;;  %v6603_v47 = vadd.s32 127, %v6602_v19  ;;  %v6989_v26 = vsel %vm6982_vm4, %v6985_v34, %v6988_v8  ;;  %v20333_v22 = vxor.u32 2147483648, %v20331_v17 }
 0x64f   : > { %v6990_v1 = vsel %vm741_vm14, nan, %v6989_v26  ;;  %v7139_v0 = vsel %vm7137_vm6, %v20331_v17, %v20330_v4  ;;  %v7443_v19 = vand.u32 3, %v14525_v6  ;;  %vm7290_vm8 = vcmp.lt.s32.totalorder %v7289_v58, 2 }
 0x650   : > { %v6601_v30 = vor.u32 %v6600_v28, %v6599_v44  ;;  %v6604_v48 = vshll.u32 %v6603_v47, 23  ;;  %v7142_v44 = vsel %vm7140_vm5, %v20333_v22, %v20329_v59  ;;  %v7597_v28 = vand.u32 3, %v14667_v10  ;;  %12844 = vst [vmem:[%s19162_s16 + $0x8] sm:$0xff] %v6990_v1 }
 0x651   : > { %v7143_v47 = vsel %vm7136_vm2, %v7139_v0, %v7142_v44  ;;  %vm7291_vm14 = vcmp.eq.s32.totalorder %v7289_v58, 0  ;;  %vm7294_vm6 = vcmp.eq.s32.totalorder %v7289_v58, 2  ;;  %v20336_v6 = vxor.u32 2147483648, %v14464_v40  ;;  %v20368_v58 = vld [vmem:[#allocation71_spill] sm:$0xff] }
 0x652   : > { %v6605_v15 = vor.u32 4788187, %v6604_v48  ;;  %v6608_v29 = vcvt.s32.f32 %v6601_v30  ;;  %v7144_v16 = vsel %vm896_vm3, nan, %v7143_v47  ;;  %v7293_v30 = vsel %vm7291_vm14, %v14464_v40, %v20335_v36 }
 0x653   : > { %v7296_v48 = vsel %vm7294_vm6, %v20336_v6, %v14468_v5  ;;  %vm7444_vm12 = vcmp.lt.s32.totalorder %v7443_v19, 2  ;;  %vm7445_vm0 = vcmp.eq.s32.totalorder %v7443_v19, 0  ;;  %vm7448_vm4 = vcmp.eq.s32.totalorder %v7443_v19, 2  ;;  %12845 = vst [vmem:[%s19162_s16 + $0x10] sm:$0xff] %v7144_v16  ;;  %v20349_v19 = vld [vmem:[#allocation65_spill] sm:$0xff]  ;;  %v20351_v16 = vld [vmem:[#allocation19_spill] sm:$0xff] }
 0x654   : > { %v6606_v54 = vand.u32 2147483647, %v6605_v15  ;;  %v7297_v10 = vsel %vm7290_vm8, %v7293_v30, %v7296_v48  ;;  %v20339_v35 = vxor.u32 2147483648, %v20338_v24  ;;  %v7450_v2 = vsel %vm7448_vm4, %v20341_v27, %v20338_v24  ;;  %v20353_v30 = vld [vmem:[#allocation67_spill] sm:$0xff]  ;;  %v20355_v48 = vld [vmem:[#allocation66_spill] sm:$0xff] }
 0x655   : > { %v7298_v46 = vsel %vm1051_vm11, nan, %v7297_v10  ;;  %vm7598_vm3 = vcmp.lt.s32.totalorder %v7597_v28, 2  ;;  %vm7599_vm7 = vcmp.eq.s32.totalorder %v7597_v28, 0  ;;  %vm7602_vm2 = vcmp.eq.s32.totalorder %v7597_v28, 2 }
 0x656   : > { %v6609_v37 = vmul.f32 %v6608_v29, %v6606_v54  ;;  %v7447_v34 = vsel %vm7445_vm0, %v20340_v21, %v20339_v35  ;;  %12846 = vst [vmem:[%s19162_s16 + $0x18] sm:$0xff] %v7298_v46  ;;  %v20343_v29 = vld [vmem:[#allocation64_spill] sm:$0xff]  ;;  %v20346_v60 = vxor.u32 2147483648, %v20345_v25  ;;  %v7751_v17 = vand.u32 3, %v14787_v14  ;;  %v20357_v35 = vld [vmem:[#allocation69_spill] sm:$0xff] }
 0x657   : > { %v7451_v40 = vsel %vm7444_vm12, %v7447_v34, %v7450_v2  ;;  %v20344_v57 = vxor.u32 2147483648, %v20343_v29  ;;  %v7905_v0 = vand.u32 3, %v14937_v55  ;;  %v8059_v22 = vand.u32 3, %v15070_v31  ;;  %v20359_v34 = vld [vmem:[#allocation68_spill] sm:$0xff] }
 0x658   : > { %v6610_v49 = vxor.u32 2147483648, %v6609_v37  ;;  %v7452_v15 = vsel %vm1206_vm15, nan, %v7451_v40  ;;  %v7604_v1 = vsel %vm7602_vm2, %v20346_v60, %v20343_v29  ;;  %v8213_v44 = vand.u32 3, %v15198_v9  ;;  %v20360_v2 = vld [vmem:[#allocation20_spill] sm:$0xff] }
 0x659   : > { %v7601_v26 = vsel %vm7599_vm7, %v20345_v25, %v20344_v57  ;;  %12847 = vst [vmem:[%s19162_s16 + $0x20] sm:$0xff] %v7452_v15  ;;  %vm7752_vm11 = vcmp.lt.s32.totalorder %v7751_v17, 2  ;;  %vm7753_vm15 = vcmp.eq.s32.totalorder %v7751_v17, 0  ;;  %v20348_v55 = vxor.u32 2147483648, %v14876_v53 }
 0x65a   : > { %v6611_v5 = vsel %vm6490_vm1, %v6610_v49, %v6609_v37  ;;  %v7605_v4 = vsel %vm7598_vm3, %v7601_v26, %v7604_v1  ;;  %vm7756_vm1 = vcmp.eq.s32.totalorder %v7751_v17, 2  ;;  %v20350_v47 = vxor.u32 2147483648, %v20349_v19  ;;  %v20364_v26 = vld [vmem:[#allocation70_spill] sm:$0xff]  ;;  %v20365_v1 = vld [vmem:[#allocation21_spill] sm:$0xff] }
 0x65b   : > { %v19203_v59 = vsel %vm19120_vm9, %v20314_v42, %v6611_v5  ;;  %v7606_v54 = vsel %vm1361_vm13, nan, %v7605_v4  ;;  %vm7906_vm9 = vcmp.lt.s32.totalorder %v7905_v0, 2  ;;  %v7755_v28 = vsel %vm7753_vm15, %v20349_v19, %v20348_v55 }
 0x65c   : > { %v6616_v23 = vmul.f32 %v19203_v59, %v19203_v59  ;;  %12848 = vst [vmem:[%s19162_s16 + $0x28] sm:$0xff] %v7606_v54  ;;  %v7758_v37 = vsel %vm7756_vm1, %v20350_v47, %v14876_v53  ;;  %vm7907_vm13 = vcmp.eq.s32.totalorder %v7905_v0, 0  ;;  %vm7910_vm5 = vcmp.eq.s32.totalorder %v7905_v0, 2 }
 0x65d   : > { %v7759_v39 = vsel %vm7752_vm11, %v7755_v28, %v7758_v37  ;;  %vm8060_vm8 = vcmp.lt.s32.totalorder %v8059_v22, 2  ;;  %vm20352_vm14 = vweird.f32 %v20351_v16  ;;  %v20354_v6 = vxor.u32 2147483648, %v20353_v30  ;;  %v20369_v28 = vld [vmem:[#allocation22_spill] sm:$0xff] }
 0x65e   : > { %v6617_v13 = vmul.f32 -0.001358992, %v6616_v23  ;;  %v6624_v14 = vmul.f32 -0.00019511016, %v6616_v23  ;;  %v7760_v36 = vsel %vm20352_vm14, nan, %v7759_v39  ;;  %vm6638_vm6 = vcmp.eq.s32.totalorder %v19137_v7, 2 }
 0x65f   : > { %v7909_v10 = vsel %vm7907_vm13, %v20355_v48, %v20354_v6  ;;  %v20356_v49 = vxor.u32 2147483648, %v20355_v48  ;;  %vm8061_vm12 = vcmp.eq.s32.totalorder %v8059_v22, 0  ;;  %vm8064_vm0 = vcmp.eq.s32.totalorder %v8059_v22, 2  ;;  %12849 = vst [vmem:[%s19162_s16 + $0x30] sm:$0xff] %v7760_v36  ;;  %v20371_v39 = vld [vmem:[#allocation73_spill] sm:$0xff]  ;;  %v20377_v48 = vld [vmem:[#allocation75_spill] sm:$0xff] }
 0x660   : > { %v6618_v31 = vadd.f32 0.041655596, %v6617_v13  ;;  %v6625_v9 = vadd.f32 0.008332121, %v6624_v14  ;;  %vm8214_vm4 = vcmp.lt.s32.totalorder %v8213_v44, 2  ;;  %v20358_v21 = vxor.u32 2147483648, %v20357_v35 }
 0x661   : > { %v7912_v52 = vsel %vm7910_vm5, %v20356_v49, %v20353_v30  ;;  %vm6635_vm3 = vcmp.eq.s32.totalorder %v19137_v7, 0  ;;  %vm20361_vm7 = vweird.f32 %v20360_v2  ;;  %v20362_v5 = vxor.u32 2147483648, %v20359_v34  ;;  %v20375_v30 = vld [vmem:[#allocation23_spill] sm:$0xff]  ;;  %v20379_v49 = vld [vmem:[#allocation74_spill] sm:$0xff] }
 0x662   : > { %v6619_v53 = vmul.f32 %v6618_v31, %v6616_v23  ;;  %v6626_v46 = vmul.f32 %v6625_v9, %v6616_v23  ;;  %v7913_v24 = vsel %vm7906_vm9, %v7909_v10, %v7912_v52  ;;  %v8063_v27 = vsel %vm8061_vm12, %v20359_v34, %v20358_v21  ;;  %v20373_v9 = vld [vmem:[#allocation72_spill] sm:$0xff]  ;;  %v20381_v21 = vld [vmem:[#allocation77_spill] sm:$0xff] }
 0x663   : > { %v7914_v40 = vsel %vm20361_vm7, nan, %v7913_v24  ;;  %v8066_v8 = vsel %vm8064_vm0, %v20362_v5, %v20357_v35  ;;  %vm8215_vm2 = vcmp.eq.s32.totalorder %v8213_v44, 0  ;;  %vm8218_vm11 = vcmp.eq.s32.totalorder %v8213_v44, 2 }
 0x664   : > { %v6620_v15 = vadd.f32 -0.4999988, %v6619_v53  ;;  %v6627_v29 = vadd.f32 -0.16666654, %v6626_v46  ;;  %vm6634_vm15 = vcmp.lt.s32.totalorder %v19137_v7, 2  ;;  %v8067_v57 = vsel %vm8060_vm8, %v8063_v27, %v8066_v8  ;;  %12850 = vst [vmem:[%s19162_s16 + $0x38] sm:$0xff] %v7914_v40 }
 0x665   : > { %v20363_v25 = vxor.u32 2147483648, %v15283_v62  ;;  %vm6631_vm1 = vweird.f32 %v20314_v42  ;;  %vm20366_vm9 = vweird.f32 %v20365_v1  ;;  %v20367_v17 = vxor.u32 2147483648, %v20364_v26  ;;  %v20383_v27 = vld [vmem:[#allocation76_spill] sm:$0xff] }
 0x666   : > { %v8068_v4 = vsel %vm20366_vm9, nan, %v8067_v57  ;;  %v8367_v54 = vand.u32 3, %v20368_v58  ;;  %v8521_v22 = vand.u32 3, %v15469_v18  ;;  %v6621_v13 = vmul.f32 %v6620_v15, %v6616_v23  ;;  %v20384_v40 = vld [vmem:[#allocation24_spill] sm:$0xff] }
 0x667   : > { %v8217_v60 = vsel %vm8215_vm2, %v20364_v26, %v20363_v25  ;;  %v8220_v0 = vsel %vm8218_vm11, %v20367_v17, %v15283_v62  ;;  %v6628_v14 = vmul.f32 %v6627_v29, %v6616_v23  ;;  %v8675_v19 = vand.u32 3, %v15612_v50  ;;  %12851 = vst [vmem:[%s19162_s16 + $0x40] sm:$0xff] %v8068_v4  ;;  %v20388_v4 = vld [vmem:[#allocation85_spill] sm:$0xff] }
 0x668   : > { %v8221_v55 = vsel %vm8214_vm4, %v8217_v60, %v8220_v0  ;;  %vm20370_vm13 = vweird.f32 %v20369_v28  ;;  %vm8368_vm5 = vcmp.lt.s32.totalorder %v8367_v54, 2  ;;  %vm8369_vm8 = vcmp.eq.s32.totalorder %v8367_v54, 0  ;;  %v20387_v60 = vld [vmem:[#allocation82_spill] sm:$0xff]  ;;  %v20395_v28 = vld [vmem:[#allocation81_spill] sm:$0xff] }
 0x669   : > { %v8222_v47 = vsel %vm20370_vm13, nan, %v8221_v55  ;;  %vm8372_vm14 = vcmp.eq.s32.totalorder %v8367_v54, 2  ;;  %v19260_v62 = vadd.f32 1.0, %v6621_v13  ;;  %v6629_v37 = vadd.f32 1.0, %v6628_v14  ;;  %v20391_v54 = vld [vmem:[#allocation79_spill] sm:$0xff]  ;;  %v20393_v13 = vld [vmem:[#allocation78_spill] sm:$0xff] }
 0x66a   : > { %v20372_v31 = vxor.u32 2147483648, %v20371_v39  ;;  %v20374_v23 = vxor.u32 2147483648, %v20373_v9  ;;  %12852 = vst [vmem:[%s19162_s16 + $0x48] sm:$0xff] %v8222_v47  ;;  %vm8522_vm12 = vcmp.lt.s32.totalorder %v8521_v22, 2  ;;  %vm8523_vm0 = vcmp.eq.s32.totalorder %v8521_v22, 0 }
 0x66b   : > { %vm8526_vm4 = vcmp.eq.s32.totalorder %v8521_v22, 2  ;;  %v19274_v16 = vmul.f32 %v6629_v37, %v19203_v59  ;;  %v6639_v36 = vxor.u32 2147483648, %v19260_v62  ;;  %vm20376_vm7 = vweird.f32 %v20375_v30  ;;  %v20397_v37 = vld [vmem:[#allocation80_spill] sm:$0xff] }
 0x66c   : > { %v8371_v18 = vsel %vm8369_vm8, %v20373_v9, %v20372_v31  ;;  %v8374_v44 = vsel %vm8372_vm14, %v20374_v23, %v20371_v39  ;;  %v20378_v10 = vxor.u32 2147483648, %v20377_v48  ;;  %v20380_v53 = vxor.u32 2147483648, %v20379_v49 }
 0x66d   : > { %v8375_v50 = vsel %vm8368_vm5, %v8371_v18, %v8374_v44  ;;  %vm8676_vm2 = vcmp.lt.s32.totalorder %v8675_v19, 2  ;;  %vm8677_vm11 = vcmp.eq.s32.totalorder %v8675_v19, 0  ;;  %vm8680_vm9 = vcmp.eq.s32.totalorder %v8675_v19, 2 }
 0x66e   : > { %v8376_v6 = vsel %vm20376_vm7, nan, %v8375_v50  ;;  %v8525_v52 = vsel %vm8523_vm0, %v20379_v49, %v20378_v10  ;;  %v8528_v46 = vsel %vm8526_vm4, %v20380_v53, %v20377_v48  ;;  %v6636_v59 = vxor.u32 2147483648, %v19274_v16 }
 0x66f   : > { %12853 = vst [vmem:[%s19162_s16 + $0x50] sm:$0xff] %v8376_v6  ;;  %v6640_v24 = vsel %vm6638_vm6, %v6639_v36, %v19274_v16  ;;  %v8529_v35 = vsel %vm8522_vm12, %v8525_v52, %v8528_v46  ;;  %v20382_v34 = vxor.u32 2147483648, %v20381_v21  ;;  %vm20385_vm13 = vweird.f32 %v20384_v40 }
 0x670   : > { %v8530_v5 = vsel %vm20385_vm13, nan, %v8529_v35  ;;  %v20386_v8 = vxor.u32 2147483648, %v20383_v27  ;;  %v8829_v29 = vand.u32 3, %v15740_v45  ;;  %v8983_v57 = vand.u32 3, %v15883_v11  ;;  %v20389_v11 = vld [vmem:[#allocation25_spill] sm:$0xff] }
 0x671   : > { %v8679_v2 = vsel %vm8677_vm11, %v20383_v27, %v20382_v34  ;;  %v6637_v25 = vsel %vm6635_vm3, %v19260_v62, %v6636_v59  ;;  %v9137_v1 = vand.u32 3, %v20387_v60  ;;  %v9291_v17 = vand.u32 3, %v20388_v4  ;;  %12854 = vst [vmem:[%s19162_s16 + $0x58] sm:$0xff] %v8530_v5 }
 0x672   : > { %v8682_v15 = vsel %vm8680_vm9, %v20386_v8, %v20381_v21  ;;  %v6641_v45 = vsel %vm6634_vm15, %v6637_v25, %v6640_v24  ;;  %vm20390_vm6 = vweird.f32 %v20389_v11  ;;  %vm8830_vm5 = vcmp.lt.s32.totalorder %v8829_v29, 2 }
 0x673   : > { %v8683_v26 = vsel %vm8676_vm2, %v8679_v2, %v8682_v15  ;;  %vm8831_vm8 = vcmp.eq.s32.totalorder %v8829_v29, 0  ;;  %v6642_v58 = vsel %vm6631_vm1, nan, %v6641_v45  ;;  %v20392_v22 = vxor.u32 2147483648, %v20391_v54 }
 0x674   : > { %v8684_v0 = vsel %vm20390_vm6, nan, %v8683_v26  ;;  %vm8834_vm3 = vcmp.eq.s32.totalorder %v8829_v29, 2  ;;  %vm8984_vm14 = vcmp.lt.s32.totalorder %v8983_v57, 2  ;;  %6682 = vst [vmem:[%s14173_s11 + $0x138] sm:$0xff] %v6642_v58  ;;  %v20394_v7 = vxor.u32 2147483648, %v20393_v13 }
 0x675   : > { %v8833_v14 = vsel %vm8831_vm8, %v20393_v13, %v20392_v22  ;;  %12855 = vst [vmem:[%s19162_s16 + $0x60] sm:$0xff] %v8684_v0  ;;  %vm8985_vm15 = vcmp.eq.s32.totalorder %v8983_v57, 0  ;;  %vm8988_vm12 = vcmp.eq.s32.totalorder %v8983_v57, 2  ;;  %vm9138_vm0 = vcmp.lt.s32.totalorder %v9137_v1, 2 }
 0x676   : > { %v8836_v55 = vsel %vm8834_vm3, %v20394_v7, %v20391_v54  ;;  %v20396_v47 = vxor.u32 2147483648, %v20395_v28  ;;  %v20398_v31 = vxor.u32 2147483648, %v20397_v37  ;;  %vm9139_vm4 = vcmp.eq.s32.totalorder %v9137_v1, 0 }
 0x677   : > { %v8837_v19 = vsel %vm8830_vm5, %v8833_v14, %v8836_v55 }
 0x678   : > { %v8987_v39 = vsel %vm8985_vm15, %v20397_v37, %v20396_v47  ;;  %v8990_v9 = vsel %vm8988_vm12, %v20398_v31, %v20395_v28 }
 0x679   : > { %13443 = shalt.err (!%p13440_p7)
}
 0x67a   : > { %s13529_s7 = smov 128   ;;  %s13530_s10 = smov 8   ;;  %v20399_v18 = vld [vmem:[#allocation26_spill] sm:$0xff]  ;;  %v8991_v44 = vsel %vm8984_vm14, %v8987_v39, %v8990_v9  ;;  %v20401_v50 = vld [vmem:[#allocation84_spill] sm:$0xff]  ;;  %v20403_v6 = vld [vmem:[#allocation83_spill] sm:$0xff]  ;;  %vm9142_vm2 = vcmp.eq.s32.totalorder %v9137_v1, 2 }
 0x67b   : > { %13288 = dma.vmem_to_hbm [thread:$0]  (%p13589_p5), %s19314_s24, 5120, %s12904_s25, %s12884_s26, %s13529_s7, %s13529_s7, %s13530_s10   ;;  %vm20400_vm7 = vweird.f32 %v20399_v18  ;;  %v20402_v30 = vxor.u32 2147483648, %v20401_v50  ;;  %v20404_v10 = vld [vmem:[#allocation27_spill] sm:$0xff]  ;;  %v20406_v52 = vxor.u32 2147483648, %v20403_v6  ;;  %vm9292_vm9 = vcmp.lt.s32.totalorder %v9291_v17, 2  ;;  %v20409_v21 = vld [vmem:[#allocation86_spill] sm:$0xff] }
 0x67c   : > { %v8838_v23 = vsel %vm20400_vm7, nan, %v8837_v19  ;;  %vm20405_vm11 = vweird.f32 %v20404_v10  ;;  %vm9293_vm13 = vcmp.eq.s32.totalorder %v9291_v17, 0  ;;  %v20407_v24 = vld [vmem:[#allocation87_spill] sm:$0xff]  ;;  %vm9296_vm6 = vcmp.eq.s32.totalorder %v9291_v17, 2  ;;  %v20410_v27 = vld [vmem:[#allocation88_spill] sm:$0xff]  ;;  %v20415_v25 = vld [vmem:[#allocation94_spill] sm:$0xff]  ;;  %s12917_s19 = scalar_lea.hbm %s19655_s3, %s13625_s8 }
 0x67d   : > { %v9141_v48 = vsel %vm9139_vm4, %v20403_v6, %v20402_v30  ;;  %v8992_v49 = vsel %vm20405_vm11, nan, %v8991_v44  ;;  %v9144_v53 = vsel %vm9142_vm2, %v20406_v52, %v20401_v50  ;;  %12856 = vst [vmem:[%s19162_s16 + $0x68] sm:$0xff] %v8838_v23  ;;  %v20408_v35 = vxor.u32 2147483648, %v20407_v24  ;;  %v20411_v40 = vld [vmem:[#allocation28_spill] sm:$0xff]  ;;  %v20414_v29 = vld [vmem:[#allocation91_spill] sm:$0xff]  ;;  %v20416_v1 = vld [vmem:[#allocation29_spill] sm:$0xff] }
 0x67e   : > { %v9145_v46 = vsel %vm9138_vm0, %v9141_v48, %v9144_v53  ;;  %v9445_v2 = vand.u32 3, %v20410_v27  ;;  %12857 = vst [vmem:[%s19162_s16 + $0x70] sm:$0xff] %v8992_v49  ;;  %vm20412_vm5 = vweird.f32 %v20411_v40  ;;  %v20413_v8 = vxor.u32 2147483648, %v20409_v21  ;;  %v20418_v17 = vld [vmem:[#allocation90_spill] sm:$0xff]  ;;  %v20420_v11 = vld [vmem:[#allocation89_spill] sm:$0xff]  ;;  %v20426_v19 = vld [vmem:[#allocation92_spill] sm:$0xff] }
 0x67f   : > { %v9295_v34 = vsel %vm9293_vm13, %v20409_v21, %v20408_v35  ;;  %v9146_v5 = vsel %vm20412_vm5, nan, %v9145_v46  ;;  %v9599_v57 = vand.u32 3, %v20414_v29  ;;  %v9753_v26 = vand.u32 3, %v20415_v25  ;;  %v20422_v13 = vld [vmem:[#allocation30_spill] sm:$0xff]  ;;  %v20424_v7 = vld [vmem:[#allocation93_spill] sm:$0xff]  ;;  %v20428_v31 = vld [vmem:[#allocation96_spill] sm:$0xff] }
 0x680   : > { %v9298_v15 = vsel %vm9296_vm6, %v20413_v8, %v20407_v24  ;;  %vm9446_vm8 = vcmp.lt.s32.totalorder %v9445_v2, 2  ;;  %vm9447_vm3 = vcmp.eq.s32.totalorder %v9445_v2, 0  ;;  %vm9450_vm14 = vcmp.eq.s32.totalorder %v9445_v2, 2  ;;  %12858 = vst [vmem:[%s19162_s16 + $0x78] sm:$0xff] %v9146_v5  ;;  %v20430_v18 = vld [vmem:[#allocation95_spill] sm:$0xff]  ;;  %v20431_v44 = vld [vmem:[#allocation97_spill] sm:$0xff] }
 0x681   : > { %v9299_v60 = vsel %vm9292_vm9, %v9295_v34, %v9298_v15  ;;  %vm20417_vm15 = vweird.f32 %v20416_v1  ;;  %v20419_v45 = vxor.u32 2147483648, %v20418_v17  ;;  %v20421_v58 = vxor.u32 2147483648, %v20420_v11  ;;  %v20432_v30 = vld [vmem:[#allocation31_spill] sm:$0xff]  ;;  %v20435_v49 = vld [vmem:[#allocation100_spill] sm:$0xff]  ;;  %v20441_v2 = vld [vmem:[#allocation98_spill] sm:$0xff]  ;;  %s12918_s8 = sshll.u32 %s19162_s16, 4  ;;  %s12919_s8 = int_to_ptr.vmem [resolvable:$true] %s12918_s8 }
 0x682   : > { %v9300_v4 = vsel %vm20417_vm15, nan, %v9299_v60  ;;  %vm9600_vm12 = vcmp.lt.s32.totalorder %v9599_v57, 2  ;;  %vm9601_vm0 = vcmp.eq.s32.totalorder %v9599_v57, 0  ;;  %vm9604_vm4 = vcmp.eq.s32.totalorder %v9599_v57, 2  ;;  %v20436_v53 = vld [vmem:[#allocation103_spill] sm:$0xff]  ;;  %v20437_v35 = vld [vmem:[#allocation32_spill] sm:$0xff] }
 0x683   : > { %v9449_v0 = vsel %vm9447_vm3, %v20420_v11, %v20419_v45  ;;  %v9452_v54 = vsel %vm9450_vm14, %v20421_v58, %v20418_v17  ;;  %vm9754_vm7 = vcmp.lt.s32.totalorder %v9753_v26, 2  ;;  %12859 = vst [vmem:[%s19162_s16 + $0x80] sm:$0xff] %v9300_v4  ;;  %vm20423_vm2 = vweird.f32 %v20422_v13  ;;  %v20439_v34 = vld [vmem:[#allocation99_spill] sm:$0xff]  ;;  %v20443_v29 = vld [vmem:[#allocation33_spill] sm:$0xff]  ;;  %v20445_v25 = vld [vmem:[#allocation102_spill] sm:$0xff]  ;;  %s19605_s20 = sshll.u32 %s12917_s19, 4  ;;  %s12921_s20 = int_to_ptr.hbm [resolvable:$true] %s19605_s20 }
 0x684   : > { %v9453_v22 = vsel %vm9446_vm8, %v9449_v0, %v9452_v54  ;;  %v20425_v55 = vxor.u32 2147483648, %v20424_v7  ;;  %v20427_v47 = vxor.u32 2147483648, %v20426_v19  ;;  %vm9755_vm11 = vcmp.eq.s32.totalorder %v9753_v26, 0  ;;  %v20447_v60 = vld [vmem:[#allocation101_spill] sm:$0xff]  ;;  %v20451_v58 = vld [vmem:[#allocation104_spill] sm:$0xff]  ;;  %s12889_s24 = scalar_lea.sflag [#allocation9], %s14132_s9 }
 0x685   : > { %v9454_v14 = vsel %vm20423_vm2, nan, %v9453_v22  ;;  %v20429_v9 = vxor.u32 2147483648, %v20428_v31  ;;  %vm9758_vm9 = vcmp.eq.s32.totalorder %v9753_v26, 2  ;;  %v9907_v50 = vand.u32 3, %v20431_v44  ;;  %v20449_v11 = vld [vmem:[#allocation105_spill] sm:$0xff]  ;;  %v20452_v22 = vld [vmem:[#allocation106_spill] sm:$0xff] }
 0x686   : > { %v9603_v28 = vsel %vm9601_vm0, %v20426_v19, %v20425_v55  ;;  %v9606_v37 = vsel %vm9604_vm4, %v20427_v47, %v20424_v7  ;;  %12860 = vst [vmem:[%s19162_s16 + $0x88] sm:$0xff] %v9454_v14  ;;  %vm20433_vm13 = vweird.f32 %v20432_v30  ;;  %v20434_v48 = vxor.u32 2147483648, %v20430_v18  ;;  %v20453_v14 = vld [vmem:[#allocation34_spill] sm:$0xff]  ;;  %s13458_s25 = sshra.s32 %s12921_s20, 4  ;;  %s13464_s29 = scalar_lea.hbm %s19655_s3, 640  ;;  %s13459_s25 = int_to_ptr.hbm [resolvable:$true] %s13458_s25 }
 0x687   : > { %v9607_v39 = vsel %vm9600_vm12, %v9603_v28, %v9606_v37  ;;  %v9757_v23 = vsel %vm9755_vm11, %v20430_v18, %v20429_v9  ;;  %v10061_v52 = vand.u32 3, %v20435_v49  ;;  %v10215_v46 = vand.u32 3, %v20436_v53  ;;  %v20456_v28 = vld [vmem:[#allocation109_spill] sm:$0xff]  ;;  %v20457_v37 = vld [vmem:[#allocation112_spill] sm:$0xff]  ;;  %v20458_v9 = vld [vmem:[#allocation35_spill] sm:$0xff]  ;;  %s13460_s26 = scalar_lea.hbm %s13459_s25, 320  ;;  %p13465_p11 = scmp.lt.s32.totalorder %s13459_s25, %s19655_s3 }
 0x688   : > { %v9608_v6 = vsel %vm20433_vm13, nan, %v9607_v39  ;;  %v9760_v10 = vsel %vm9758_vm9, %v20434_v48, %v20428_v31  ;;  %vm9908_vm6 = vcmp.lt.s32.totalorder %v9907_v50, 2  ;;  %vm9909_vm5 = vcmp.eq.s32.totalorder %v9907_v50, 0  ;;  %v20464_v49 = vld [vmem:[#allocation36_spill] sm:$0xff]  ;;  %v20466_v53 = vld [vmem:[#allocation111_spill] sm:$0xff]  ;;  %p13461_p8 = scmp.ne.s32.totalorder %s13459_s25, %s13460_s26  ;;  %p13466_p12 = scmp.lt.s32.totalorder %s13464_s29, %s13460_s26 }
 0x689   : > { %v9761_v24 = vsel %vm9754_vm7, %v9757_v23, %v9760_v10  ;;  %vm9912_vm8 = vcmp.eq.s32.totalorder %v9907_v50, 2  ;;  %12861 = vst [vmem:[%s19162_s16 + $0x90] sm:$0xff] %v9608_v6  ;;  %vm20438_vm3 = vweird.f32 %v20437_v35  ;;  %v20440_v27 = vxor.u32 2147483648, %v20439_v34  ;;  %v20460_v23 = vld [vmem:[#allocation108_spill] sm:$0xff]  ;;  %v20462_v50 = vld [vmem:[#allocation107_spill] sm:$0xff] }
 0x68a   : > { %v9762_v21 = vsel %vm20438_vm3, nan, %v9761_v24  ;;  %v20442_v5 = vxor.u32 2147483648, %v20441_v2  ;;  %vm10062_vm14 = vcmp.lt.s32.totalorder %v10061_v52, 2  ;;  %vm10063_vm15 = vcmp.eq.s32.totalorder %v10061_v52, 0  ;;  %v20468_v24 = vld [vmem:[#allocation110_spill] sm:$0xff]  ;;  %p13462_p9 = pnand %p13461_p8, %p13589_p5  ;;  %p13467_p13 = por %p13466_p12, %p13465_p11 }
 0x68b   : > { %v9911_v40 = vsel %vm9909_vm5, %v20441_v2, %v20440_v27  ;;  %vm10066_vm12 = vcmp.eq.s32.totalorder %v10061_v52, 2  ;;  %vm10216_vm0 = vcmp.lt.s32.totalorder %v10215_v46, 2  ;;  %12862 = vst [vmem:[%s19162_s16 + $0x98] sm:$0xff] %v9762_v21  ;;  %vm20444_vm4 = vweird.f32 %v20443_v29  ;;  %v20470_v2 = vld [vmem:[#allocation114_spill] sm:$0xff] }
 0x68c   : > { %v9914_v8 = vsel %vm9912_vm8, %v20442_v5, %v20439_v34  ;;  %v20446_v26 = vxor.u32 2147483648, %v20445_v25  ;;  %v20448_v4 = vxor.u32 2147483648, %v20447_v60  ;;  %vm10217_vm7 = vcmp.eq.s32.totalorder %v10215_v46, 0  ;;  %v20472_v5 = vld [vmem:[#allocation113_spill] sm:$0xff]  ;;  %p13463_p10 = pneg %p13462_p9 }
 0x68d   : > { %v9915_v15 = vsel %vm9908_vm6, %v9911_v40, %v9914_v8  ;;  %v20450_v0 = vxor.u32 2147483648, %v20449_v11  ;;  %vm10220_vm2 = vcmp.eq.s32.totalorder %v10215_v46, 2  ;;  %v10369_v13 = vand.u32 3, %v20452_v22 }
 0x68e   : > { %v9916_v57 = vsel %vm20444_vm4, nan, %v9915_v15  ;;  %v10065_v1 = vsel %vm10063_vm15, %v20447_v60, %v20446_v26  ;;  %v10068_v17 = vsel %vm10066_vm12, %v20448_v4, %v20445_v25  ;;  %vm20454_vm11 = vweird.f32 %v20453_v14  ;;  %v20473_v15 = vld [vmem:[#allocation115_spill] sm:$0xff]  ;;  %p13468_p0 = pnand %p13467_p13, %p13463_p10 }
 0x68f   : > { %v10069_v45 = vsel %vm10062_vm14, %v10065_v1, %v10068_v17  ;;  %v10219_v54 = vsel %vm10217_vm7, %v20451_v58, %v20450_v0  ;;  %12863 = vst [vmem:[%s19162_s16 + $0xa0] sm:$0xff] %v9916_v57  ;;  %v20455_v55 = vxor.u32 2147483648, %v20451_v58  ;;  %v10523_v47 = vand.u32 3, %v20456_v28  ;;  %v20474_v57 = vld [vmem:[#allocation37_spill] sm:$0xff]  ;;  %v20477_v1 = vld [vmem:[#allocation118_spill] sm:$0xff]  ;;  %v20485_v28 = vld [vmem:[#allocation39_spill] sm:$0xff] }
 0x690   : > { %v10070_v7 = vsel %vm20454_vm11, nan, %v10069_v45  ;;  %v10677_v39 = vand.u32 3, %v20457_v37  ;;  %vm10370_vm9 = vcmp.lt.s32.totalorder %v10369_v13, 2  ;;  %vm10371_vm13 = vcmp.eq.s32.totalorder %v10369_v13, 0  ;;  %v20478_v17 = vld [vmem:[#allocation121_spill] sm:$0xff]  ;;  %v20479_v0 = vld [vmem:[#allocation38_spill] sm:$0xff] }
 0x691   : > { %v10222_v19 = vsel %vm10220_vm2, %v20455_v55, %v20449_v11  ;;  %vm10374_vm6 = vcmp.eq.s32.totalorder %v10369_v13, 2  ;;  %12864 = vst [vmem:[%s19162_s16 + $0xa8] sm:$0xff] %v10070_v7  ;;  %vm20459_vm5 = vweird.f32 %v20458_v9  ;;  %v20461_v44 = vxor.u32 2147483648, %v20460_v23  ;;  %v20483_v13 = vld [vmem:[#allocation116_spill] sm:$0xff] }
 0x692   : > { %v10223_v31 = vsel %vm10216_vm0, %v10219_v54, %v10222_v19  ;;  %v20463_v6 = vxor.u32 2147483648, %v20462_v50  ;;  %vm10524_vm8 = vcmp.lt.s32.totalorder %v10523_v47, 2  ;;  %vm10525_vm3 = vcmp.eq.s32.totalorder %v10523_v47, 0  ;;  %v20481_v54 = vld [vmem:[#allocation117_spill] sm:$0xff]  ;;  %v20487_v37 = vld [vmem:[#allocation120_spill] sm:$0xff] }
 0x693   : > { %v10224_v18 = vsel %vm20459_vm5, nan, %v10223_v31  ;;  %v10373_v30 = vsel %vm10371_vm13, %v20462_v50, %v20461_v44  ;;  %vm10528_vm14 = vcmp.eq.s32.totalorder %v10523_v47, 2  ;;  %vm10678_vm15 = vcmp.lt.s32.totalorder %v10677_v39, 2  ;;  %v20489_v31 = vld [vmem:[#allocation119_spill] sm:$0xff] }
 0x694   : > { %v10376_v48 = vsel %vm10374_vm6, %v20463_v6, %v20460_v23  ;;  %12865 = vst [vmem:[%s19162_s16 + $0xb0] sm:$0xff] %v10224_v18  ;;  %vm20465_vm12 = vweird.f32 %v20464_v49  ;;  %v20467_v46 = vxor.u32 2147483648, %v20466_v53  ;;  %v20469_v21 = vxor.u32 2147483648, %v20468_v24  ;;  %v20491_v50 = vld [vmem:[#allocation123_spill] sm:$0xff]  ;;  %v20493_v6 = vld [vmem:[#allocation122_spill] sm:$0xff] }
 0x695   : > { %v10377_v10 = vsel %vm10370_vm9, %v10373_v30, %v10376_v48  ;;  %vm10679_vm0 = vcmp.eq.s32.totalorder %v10677_v39, 0  ;;  %v20471_v40 = vxor.u32 2147483648, %v20470_v2  ;;  %vm10682_vm4 = vcmp.eq.s32.totalorder %v10677_v39, 2 }
 0x696   : > { %v10378_v52 = vsel %vm20465_vm12, nan, %v10377_v10  ;;  %v10527_v35 = vsel %vm10525_vm3, %v20468_v24, %v20467_v46  ;;  %v10530_v34 = vsel %vm10528_vm14, %v20469_v21, %v20466_v53  ;;  %v10831_v29 = vand.u32 3, %v20473_v15  ;;  %v20494_v10 = vld [vmem:[#allocation124_spill] sm:$0xff] }
 0x697   : > { %v10531_v27 = vsel %vm10524_vm8, %v10527_v35, %v10530_v34  ;;  %v10681_v8 = vsel %vm10679_vm0, %v20472_v5, %v20471_v40  ;;  %12866 = vst [vmem:[%s19162_s16 + $0xb8] sm:$0xff] %v10378_v52  ;;  %vm20475_vm7 = vweird.f32 %v20474_v57  ;;  %v20476_v26 = vxor.u32 2147483648, %v20472_v5  ;;  %v20495_v52 = vld [vmem:[#allocation40_spill] sm:$0xff]  ;;  %v20498_v35 = vld [vmem:[#allocation127_spill] sm:$0xff]  ;;  %v20499_v34 = vld [vmem:[#allocation130_spill] sm:$0xff] }
 0x698   : > { %v10532_v25 = vsel %vm20475_vm7, nan, %v10531_v27  ;;  %v10985_v4 = vand.u32 3, %v20477_v1  ;;  %v11139_v45 = vand.u32 3, %v20478_v17  ;;  %vm10832_vm2 = vcmp.lt.s32.totalorder %v10831_v29, 2  ;;  %v20500_v40 = vld [vmem:[#allocation41_spill] sm:$0xff]  ;;  %v20506_v1 = vld [vmem:[#allocation42_spill] sm:$0xff] }
 0x699   : > { %v10684_v60 = vsel %vm10682_vm4, %v20476_v26, %v20470_v2  ;;  %vm10833_vm11 = vcmp.eq.s32.totalorder %v10831_v29, 0  ;;  %vm10836_vm9 = vcmp.eq.s32.totalorder %v10831_v29, 2  ;;  %12867 = vst [vmem:[%s19162_s16 + $0xc0] sm:$0xff] %v10532_v25  ;;  %vm20480_vm13 = vweird.f32 %v20479_v0  ;;  %v20504_v29 = vld [vmem:[#allocation125_spill] sm:$0xff] }
 0x69a   : > { %v10685_v11 = vsel %vm10678_vm15, %v10681_v8, %v10684_v60  ;;  %v20482_v22 = vxor.u32 2147483648, %v20481_v54  ;;  %v20484_v7 = vxor.u32 2147483648, %v20483_v13  ;;  %vm10986_vm6 = vcmp.lt.s32.totalorder %v10985_v4, 2  ;;  %v20502_v8 = vld [vmem:[#allocation126_spill] sm:$0xff]  ;;  %v20508_v17 = vld [vmem:[#allocation129_spill] sm:$0xff] }
 0x69b   : > { %v10686_v58 = vsel %vm20480_vm13, nan, %v10685_v11  ;;  %vm10987_vm5 = vcmp.eq.s32.totalorder %v10985_v4, 0  ;;  %vm10990_vm8 = vcmp.eq.s32.totalorder %v10985_v4, 2  ;;  %vm11140_vm3 = vcmp.lt.s32.totalorder %v11139_v45, 2  ;;  %v20510_v11 = vld [vmem:[#allocation128_spill] sm:$0xff] }
 0x69c   : > { %v10835_v14 = vsel %vm10833_vm11, %v20483_v13, %v20482_v22  ;;  %v10838_v55 = vsel %vm10836_vm9, %v20484_v7, %v20481_v54  ;;  %12868 = vst [vmem:[%s19162_s16 + $0xc8] sm:$0xff] %v10686_v58  ;;  %vm20486_vm14 = vweird.f32 %v20485_v28  ;;  %v20488_v39 = vxor.u32 2147483648, %v20487_v37  ;;  %v20512_v13 = vld [vmem:[#allocation132_spill] sm:$0xff]  ;;  %v20514_v7 = vld [vmem:[#allocation131_spill] sm:$0xff] }
 0x69d   : > { %v10839_v19 = vsel %vm10832_vm2, %v10835_v14, %v10838_v55  ;;  %v20490_v18 = vxor.u32 2147483648, %v20489_v31  ;;  %vm11141_vm15 = vcmp.eq.s32.totalorder %v11139_v45, 0  ;;  %v20492_v30 = vxor.u32 2147483648, %v20491_v50 }
 0x69e   : > { %v10840_v47 = vsel %vm20486_vm14, nan, %v10839_v19  ;;  %v10989_v9 = vsel %vm10987_vm5, %v20489_v31, %v20488_v39  ;;  %vm11144_vm12 = vcmp.eq.s32.totalorder %v11139_v45, 2  ;;  %v11293_v49 = vand.u32 3, %v20494_v10  ;;  %v20515_v19 = vld [vmem:[#allocation133_spill] sm:$0xff] }
 0x69f   : > { %v10992_v23 = vsel %vm10990_vm8, %v20490_v18, %v20487_v37  ;;  %v11143_v48 = vsel %vm11141_vm15, %v20493_v6, %v20492_v30  ;;  %12869 = vst [vmem:[%s19162_s16 + $0xd0] sm:$0xff] %v10840_v47  ;;  %vm20496_vm0 = vweird.f32 %v20495_v52  ;;  %v20497_v46 = vxor.u32 2147483648, %v20493_v6  ;;  %v20516_v47 = vld [vmem:[#allocation43_spill] sm:$0xff]  ;;  %v20521_v30 = vld [vmem:[#allocation44_spill] sm:$0xff] }
 0x6a0   : > { %v10993_v44 = vsel %vm10986_vm6, %v10989_v9, %v10992_v23  ;;  %v11447_v21 = vand.u32 3, %v20498_v35  ;;  %v11601_v27 = vand.u32 3, %v20499_v34  ;;  %vm11294_vm4 = vcmp.lt.s32.totalorder %v11293_v49, 2  ;;  %v20519_v9 = vld [vmem:[#allocation136_spill] sm:$0xff]  ;;  %v20520_v23 = vld [vmem:[#allocation139_spill] sm:$0xff]  ;;  %v20527_v35 = vld [vmem:[#allocation45_spill] sm:$0xff] }
 0x6a1   : > { %v10994_v53 = vsel %vm20496_vm0, nan, %v10993_v44  ;;  %v11146_v24 = vsel %vm11144_vm12, %v20497_v46, %v20491_v50  ;;  %vm11295_vm7 = vcmp.eq.s32.totalorder %v11293_v49, 0  ;;  %vm11298_vm2 = vcmp.eq.s32.totalorder %v11293_v49, 2  ;;  %v20525_v49 = vld [vmem:[#allocation134_spill] sm:$0xff] }
 0x6a2   : > { %v11147_v2 = vsel %vm11140_vm3, %v11143_v48, %v11146_v24  ;;  %12870 = vst [vmem:[%s19162_s16 + $0xd8] sm:$0xff] %v10994_v53  ;;  %vm20501_vm11 = vweird.f32 %v20500_v40  ;;  %v20503_v15 = vxor.u32 2147483648, %v20502_v8  ;;  %v20505_v25 = vxor.u32 2147483648, %v20504_v29  ;;  %v20523_v48 = vld [vmem:[#allocation135_spill] sm:$0xff]  ;;  %v20529_v34 = vld [vmem:[#allocation138_spill] sm:$0xff] }
 0x6a3   : > { %v11148_v5 = vsel %vm20501_vm11, nan, %v11147_v2  ;;  %vm11448_vm9 = vcmp.lt.s32.totalorder %v11447_v21, 2  ;;  %vm11449_vm13 = vcmp.eq.s32.totalorder %v11447_v21, 0  ;;  %vm11452_vm6 = vcmp.eq.s32.totalorder %v11447_v21, 2  ;;  %v20531_v2 = vld [vmem:[#allocation137_spill] sm:$0xff] }
 0x6a4   : > { %v11297_v57 = vsel %vm11295_vm7, %v20504_v29, %v20503_v15  ;;  %v11300_v26 = vsel %vm11298_vm2, %v20505_v25, %v20502_v8  ;;  %vm11602_vm5 = vcmp.lt.s32.totalorder %v11601_v27, 2  ;;  %12871 = vst [vmem:[%s19162_s16 + $0xe0] sm:$0xff] %v11148_v5  ;;  %vm20507_vm8 = vweird.f32 %v20506_v1  ;;  %v20533_v29 = vld [vmem:[#allocation141_spill] sm:$0xff]  ;;  %v20535_v25 = vld [vmem:[#allocation140_spill] sm:$0xff]  ;;  %v20536_v1 = vld [vmem:[#allocation46_spill] sm:$0xff] }
 0x6a5   : > { %v11301_v60 = vsel %vm11294_vm4, %v11297_v57, %v11300_v26  ;;  %v20509_v45 = vxor.u32 2147483648, %v20508_v17  ;;  %v20511_v58 = vxor.u32 2147483648, %v20510_v11  ;;  %vm11603_vm3 = vcmp.eq.s32.totalorder %v11601_v27, 0 }
 0x6a6   : > { %v11302_v4 = vsel %vm20507_vm8, nan, %v11301_v60  ;;  %v20513_v14 = vxor.u32 2147483648, %v20512_v13  ;;  %vm11606_vm14 = vcmp.eq.s32.totalorder %v11601_v27, 2  ;;  %v11755_v28 = vand.u32 3, %v20515_v19 }
 0x6a7   : > { %v11451_v0 = vsel %vm11449_vm13, %v20510_v11, %v20509_v45  ;;  %v11454_v54 = vsel %vm11452_vm6, %v20511_v58, %v20508_v17  ;;  %12872 = vst [vmem:[%s19162_s16 + $0xe8] sm:$0xff] %v11302_v4  ;;  %vm20517_vm15 = vweird.f32 %v20516_v47  ;;  %v20518_v39 = vxor.u32 2147483648, %v20514_v7  ;;  %v20539_v11 = vld [vmem:[#allocation142_spill] sm:$0xff]  ;;  %v20545_v47 = vld [vmem:[#allocation48_spill] sm:$0xff] }
 0x6a8   : > { %v11455_v22 = vsel %vm11448_vm9, %v11451_v0, %v11454_v54  ;;  %v11605_v55 = vsel %vm11603_vm3, %v20514_v7, %v20513_v14  ;;  %v11909_v18 = vand.u32 3, %v20519_v9  ;;  %v12063_v44 = vand.u32 3, %v20520_v23  ;;  %v20543_v7 = vld [vmem:[#allocation50_spill] sm:$0xff]  ;;  %v20549_v9 = vld [vmem:[#allocation143_spill] sm:$0xff] }
 0x6a9   : > { %v11456_v37 = vsel %vm20517_vm15, nan, %v11455_v22  ;;  %v11608_v31 = vsel %vm11606_vm14, %v20518_v39, %v20512_v13  ;;  %vm11756_vm12 = vcmp.lt.s32.totalorder %v11755_v28, 2  ;;  %vm11757_vm0 = vcmp.eq.s32.totalorder %v11755_v28, 0  ;;  %v20541_v13 = vld [vmem:[#allocation51_spill] sm:$0xff]  ;;  %v20547_v39 = vld [vmem:[#allocation144_spill] sm:$0xff] }
 0x6aa   : > { %v11609_v50 = vsel %vm11602_vm5, %v11605_v55, %v11608_v31  ;;  %vm11760_vm4 = vcmp.eq.s32.totalorder %v11755_v28, 2  ;;  %12873 = vst [vmem:[%s19162_s16 + $0xf0] sm:$0xff] %v11456_v37  ;;  %vm20522_vm7 = vweird.f32 %v20521_v30  ;;  %v20524_v10 = vxor.u32 2147483648, %v20523_v48 }
 0x6ab   : > { %v11610_v6 = vsel %vm20522_vm7, nan, %v11609_v50  ;;  %v20526_v53 = vxor.u32 2147483648, %v20525_v49  ;;  %vm11910_vm2 = vcmp.lt.s32.totalorder %v11909_v18, 2  ;;  %vm11911_vm11 = vcmp.eq.s32.totalorder %v11909_v18, 0 }
 0x6ac   : > { %v11759_v52 = vsel %vm11757_vm0, %v20525_v49, %v20524_v10  ;;  %vm11914_vm9 = vcmp.eq.s32.totalorder %v11909_v18, 2  ;;  %vm12064_vm13 = vcmp.lt.s32.totalorder %v12063_v44, 2  ;;  %12874 = vst [vmem:[%s19162_s16 + $0xf8] sm:$0xff] %v11610_v6  ;;  %vm20528_vm6 = vweird.f32 %v20527_v35  ;;  %v20552_v10 = vld [vmem:[#allocation49_spill] sm:$0xff] }
 0x6ad   : > { %v11762_v46 = vsel %vm11760_vm4, %v20526_v53, %v20523_v48  ;;  %v20530_v27 = vxor.u32 2147483648, %v20529_v34  ;;  %v20532_v5 = vxor.u32 2147483648, %v20531_v2  ;;  %vm12065_vm5 = vcmp.eq.s32.totalorder %v12063_v44, 0 }
 0x6ae   : > { %v11763_v24 = vsel %vm11756_vm12, %v11759_v52, %v11762_v46  ;;  %v20534_v57 = vxor.u32 2147483648, %v20533_v29  ;;  %vm12068_vm8 = vcmp.eq.s32.totalorder %v12063_v44, 2  ;;  %v12217_v60 = vand.u32 3, %v18721_v61 }
 0x6af   : > { %v11764_v21 = vsel %vm20528_vm6, nan, %v11763_v24  ;;  %v11913_v40 = vsel %vm11911_vm11, %v20531_v2, %v20530_v27  ;;  %v11916_v8 = vsel %vm11914_vm9, %v20532_v5, %v20529_v34  ;;  %vm20537_vm3 = vweird.f32 %v20536_v1 }
 0x6b0   : > { %v11917_v15 = vsel %vm11910_vm2, %v11913_v40, %v11916_v8  ;;  %v12067_v26 = vsel %vm12065_vm5, %v20535_v25, %v20534_v57  ;;  %12875 = vst [vmem:[%s19162_s16 + $0x100] sm:$0xff] %v11764_v21  ;;  %v20538_v17 = vxor.u32 2147483648, %v20535_v25  ;;  %v12371_v0 = vand.u32 3, %v20539_v11 }
 0x6b1   : > { %v11918_v4 = vsel %vm20537_vm3, nan, %v11917_v15  ;;  %v12525_v58 = vand.u32 3, %v18986_v20  ;;  %vm12218_vm14 = vcmp.lt.s32.totalorder %v12217_v60, 2  ;;  %vm12219_vm15 = vcmp.eq.s32.totalorder %v12217_v60, 0 }
 0x6b2   : > { %v12070_v45 = vsel %vm12068_vm8, %v20538_v17, %v20533_v29  ;;  %vm12222_vm12 = vcmp.eq.s32.totalorder %v12217_v60, 2  ;;  %12876 = vst [vmem:[%s19162_s16 + $0x108] sm:$0xff] %v11918_v4  ;;  %v20542_v14 = vxor.u32 2147483648, %v20541_v13  ;;  %v20544_v19 = vxor.u32 2147483648, %v20543_v7 }
 0x6b3   : > { %v12071_v54 = vsel %vm12064_vm13, %v12067_v26, %v12070_v45  ;;  %vm12372_vm0 = vcmp.lt.s32.totalorder %v12371_v0, 2  ;;  %vm12373_vm4 = vcmp.eq.s32.totalorder %v12371_v0, 0  ;;  %vm12376_vm7 = vcmp.eq.s32.totalorder %v12371_v0, 2 }
 0x6b4   : > { %v12072_v61 = vsel %vm5856_vm10, nan, %v12071_v54  ;;  %v12221_v55 = vsel %vm12219_vm15, %v20543_v7, %v20542_v14  ;;  %v12224_v28 = vsel %vm12222_vm12, %v20544_v19, %v20541_v13  ;;  %vm12526_vm2 = vcmp.lt.s32.totalorder %v12525_v58, 2 }
 0x6b5   : > { %v12225_v20 = vsel %vm12218_vm14, %v12221_v55, %v12224_v28  ;;  %12877 = vst [vmem:[%s19162_s16 + $0x110] sm:$0xff] %v12072_v61  ;;  %vm20546_vm11 = vweird.f32 %v20545_v47  ;;  %v20548_v31 = vxor.u32 2147483648, %v20547_v39  ;;  %v20550_v23 = vxor.u32 2147483648, %v20549_v9 }
 0x6b6   : > { %v12226_v37 = vsel %vm20546_vm11, nan, %v12225_v20  ;;  %vm12527_vm10 = vcmp.eq.s32.totalorder %v12525_v58, 0  ;;  %v20551_v30 = vxor.u32 2147483648, %v19054_v51  ;;  %vm12530_vm9 = vcmp.eq.s32.totalorder %v12525_v58, 2 }
 0x6b7   : > { %v12375_v18 = vsel %vm12373_vm4, %v20549_v9, %v20548_v31  ;;  %v12378_v44 = vsel %vm12376_vm7, %v20550_v23, %v20547_v39  ;;  %v12679_v48 = vand.u32 3, %v19102_v56  ;;  %12878 = vst [vmem:[%s19162_s16 + $0x118] sm:$0xff] %v12226_v37  ;;  %vm20553_vm13 = vweird.f32 %v20552_v10 }
 0x6b8   : > { %v12379_v50 = vsel %vm12372_vm0, %v12375_v18, %v12378_v44  ;;  %v12529_v6 = vsel %vm12527_vm10, %v19048_v63, %v20551_v30  ;;  %v20554_v52 = vxor.u32 2147483648, %v19048_v63  ;;  %v12833_v46 = vand.u32 3, %v19129_v43 }
 0x6b9   : > { %v12380_v49 = vsel %vm20553_vm13, nan, %v12379_v50  ;;  %vm12680_vm6 = vcmp.lt.s32.totalorder %v12679_v48, 2  ;;  %vm12681_vm5 = vcmp.eq.s32.totalorder %v12679_v48, 0  ;;  %vm12684_vm8 = vcmp.eq.s32.totalorder %v12679_v48, 2 }
 0x6ba   : > { %v12532_v53 = vsel %vm12530_vm9, %v20554_v52, %v19054_v51  ;;  %12879 = vst [vmem:[%s19162_s16 + $0x120] sm:$0xff] %v12380_v49  ;;  %vm20555_vm3 = vweird.f32 %v20300_v12  ;;  %v12683_v35 = vsel %vm12681_vm5, %v19105_v3, %v6481_v33  ;;  %v12686_v63 = vsel %vm12684_vm8, %v6484_v32, %v19107_v38 }
 0x6bb   : > { %v12533_v24 = vsel %vm12526_vm2, %v12529_v6, %v12532_v53  ;;  %vm12834_vm14 = vcmp.lt.s32.totalorder %v12833_v46, 2  ;;  %v12687_v51 = vsel %vm12680_vm6, %v12683_v35, %v12686_v63  ;;  %vm12835_vm15 = vcmp.eq.s32.totalorder %v12833_v46, 0 }
 0x6bc   : > { %v12534_v56 = vsel %vm20555_vm3, nan, %v12533_v24  ;;  %vm12838_vm12 = vcmp.eq.s32.totalorder %v12833_v46, 2  ;;  %vm20556_vm0 = vweird.f32 %v20304_v41  ;;  %v12837_v3 = vsel %vm12835_vm15, %v19260_v62, %v6636_v59 }
 0x6bd   : > { %12880 = vst [vmem:[%s19162_s16 + $0x128] sm:$0xff] %v12534_v56  ;;  %v12688_v12 = vsel %vm20556_vm0, nan, %v12687_v51  ;;  %v12840_v38 = vsel %vm12838_vm12, %v6639_v36, %v19274_v16 }
 0x6be   : > { %v12841_v32 = vsel %vm12834_vm14, %v12837_v3, %v12840_v38  ;;  %12881 = vst [vmem:[%s19162_s16 + $0x130] sm:$0xff] %v12688_v12 }
 0x6bf   : > { %v12842_v33 = vsel %vm6631_vm1, nan, %v12841_v32 }
 0x6c0   : > { %12882 = vst [vmem:[%s19162_s16 + $0x138] sm:$0xff] %v12842_v33 }
 0x6c1   : > { %13471 = shalt.err (!%p13468_p0)
}
 0x6c2   : > { %13289 = dma.vmem_to_hbm [thread:$0]  (%p13589_p5), %s12919_s8, 5120, %s12921_s20, %s12889_s24, %s13529_s7, %s13529_s7, %s13530_s10  }
 0x6c3 PF: > { %p13310_p1 = scmp.ge.s32.totalorder %s13518_s15, 2  ;;  %s12935_s9 = sand.u32 1, %s13506_s12  }
 0x6c4   : > { %s12936_s16 = scalar_lea.sflag [#allocation4], %s12935_s9 }
 0x6c5   : > { %p13300_p2 = pnand %p13310_p1, %p13593_p6 }
 0x6c7   : > { %p13301_p3 = pneg %p13300_p2 }
 0x6c9   : > { %13497 = dma.done.wait (%p13301_p3), %s12936_s16, 5120  }
 0x6ca   : > { %13499 = vsyncadd (%p13301_p3), %s12936_s16, 4294962176  ;;  %s12946_s5 = scalar_lea.sflag [#allocation9], %s12935_s9 }
 0x6cb   : > { %13501 = dma.done.wait (%p13301_p3), %s12946_s5, 5120  }
 0x6cc   : > { %13503 = vsyncadd (%p13301_p3), %s12946_s5, 4294962176  ;;  %p19_p5 = scmp.ge.s32.totalorder %s13576_s18, 4   ;;  %s20557_s12 = smov %s13510_s13 }
 0x6cd   : > { %s20558_s13 = smov %s13514_s14  ;;  %s20559_s14 = smov %s13587_s21 }
 0x6ce   : > { %s20560_s15 = smov %s13576_s18  ;;  %21 = sbr.rel (!%p19_p5) target bundleno = 7 (0x7), region = 86 }
 0x6d3   :  { %12952 = vsyncpa [#allocation3], 1 }
 0x6d4   :  { %12954 = vsyncpa [#allocation3 + $0x1], 1 }
 0x6d5   :  { %12955 = vsyncpa [#allocation6], 1 }
 0x6d6   :  { %12956 = vsyncpa [#allocation4], 1 }
 0x6d7   :  { %12958 = vsyncpa [#allocation4 + $0x1], 1 }
 0x6d8   :  { %12959 = vsyncpa [#allocation9], 1 }
 0x6d9   :  { %12961 = vsyncpa [#allocation9 + $0x1], 1 }

</bundles_post_ra>
